<compile_context>
chip_gen: v5e
topology: v5e:2x2
jax: 0.10.0
libtpu: 0.0.40
codegen_flags: <defaults>
</compile_context>

<pallas_src>
import functools

import numpy as np
import jax
import jax.numpy as jnp
from jax import lax
from jax.experimental import pallas as pl
from jax.experimental.pallas import tpu as pltpu

EPS = 1e-5


# ----------------------------------------------------------------------------
# Fused Pallas kernel: one full GELayerS2 forward for one image.
# ----------------------------------------------------------------------------
def gelayer_s2_kernel(x_ref, t1_ref, t2_ref, t3_ref, e_ref,
                      w1_ref, b1_ref,
                      wd1_ref, bd1_ref,
                      wd2_ref, bd2_ref,
                      wsd_ref, bsd_ref,
                      w2_ref, ws2_ref, bh_ref,
                      out_ref):
    """Layout: channels on sublanes, flattened spatial on lanes (== NCHW).

    x_ref    : (Cin, H*W)        input image (flattened spatial)
    t1_ref   : (9, H*W, H*W)     3x3 stride-1 tap-gather one-hots (shift+pad)
    t2_ref   : (9, H*W, Ho*Wo)   3x3 stride-2 tap-gather one-hots
    t3_ref   : (9, Ho*Wo, Ho*Wo) 3x3 stride-1 tap-gather at the low resolution
    e_ref    : (Mid, Cin)        grouped-conv channel-expansion one-hot
    w1_ref   : (9, Cin, Cin)     conv1 per-tap weights (BN scale folded in)
    wd*_ref  : (9, C, 1)         depthwise per-tap per-channel weights (scaled)
    w2_ref   : (Cout, Mid)       conv2 1x1 weights (BN scale folded in)
    ws2_ref  : (Cout, Cin)       shortcut 1x1 weights (BN scale folded in)
    b*_ref   : (C, 1)            folded BN biases; bh = b_conv2 + b_shortcut
    out_ref  : (Cout, Ho*Wo)
    """
    f32 = jnp.float32
    x = x_ref[...]                              # (Cin, HW1)
    cin, hw1 = x.shape
    mid = e_ref.shape[0]
    hw2 = t2_ref.shape[2]

    # ---- conv1: 3x3 s1, Cin->Cin, BN + ReLU ---------------------------------
    # Per tap: gather the shifted window (MXU one-hot matmul), then contract
    # input channels with the (BN-scaled) per-tap weight matrix.
    f1 = jnp.zeros((cin, hw1), f32)
    for k in range(9):
        tap = jnp.dot(x, t1_ref[k], preferred_element_type=f32)          # (Cin, HW1)
        f1 = f1 + jnp.dot(w1_ref[k], tap, preferred_element_type=f32)    # (Cin, HW1)
    f1 = jnp.maximum(f1 + b1_ref[...], 0.0)

    # ---- dwconv1: 3x3 s2 grouped (Cin -> Mid), BN (no ReLU) -----------------
    # Expand channels (each input channel feeds mid/cin outputs), then a
    # per-channel VPU MAC over the 9 taps; stride-2 + padding are folded into
    # the t2 gather matrices so the result is already at Ho*Wo.
    xe = jnp.dot(e_ref[...], f1, preferred_element_type=f32)             # (Mid, HW1)
    f2 = jnp.zeros((mid, hw2), f32)
    for k in range(9):
        tap = jnp.dot(xe, t2_ref[k], preferred_element_type=f32)         # (Mid, HW2)
        f2 = f2 + wd1_ref[k] * tap                                       # (Mid,1)*(Mid,HW2)
    f2 = f2 + bd1_ref[...]

    # ---- dwconv2: 3x3 s1 depthwise, BN + ReLU (at Ho x Wo) ------------------
    f3 = jnp.zeros((mid, hw2), f32)
    for k in range(9):
        tap = jnp.dot(f2, t3_ref[k], preferred_element_type=f32)         # (Mid, HW2)
        f3 = f3 + wd2_ref[k] * tap
    f3 = jnp.maximum(f3 + bd2_ref[...], 0.0)

    # ---- shortcut: depthwise 3x3 s2 + BN (re-uses the stride-2 gathers) -----
    s = jnp.zeros((cin, hw2), f32)
    for k in range(9):
        tap = jnp.dot(x, t2_ref[k], preferred_element_type=f32)          # (Cin, HW2)
        s = s + wsd_ref[k] * tap
    s = s + bsd_ref[...]

    # ---- head: conv2 1x1 + BN, shortcut 1x1 + BN, residual add, ReLU --------
    y = (jnp.dot(w2_ref[...], f3, preferred_element_type=f32)
         + jnp.dot(ws2_ref[...], s, preferred_element_type=f32)
         + bh_ref[...])
    out_ref[...] = jnp.maximum(y, 0.0).astype(out_ref.dtype)


# ----------------------------------------------------------------------------
# pallas_call wrapper: grid over batch ("parallel" -> both v7x TensorCores).
# ----------------------------------------------------------------------------
def gelayer_s2_forward(x_nchw, kp):
    n, cin, h, w = x_nchw.shape
    hw1 = h * w
    mid = kp["e"].shape[0]
    cout = kp["w2p"].shape[0]
    hw2 = kp["t2"].shape[2]
    ho, wo = kp["ho"], kp["wo"]

    x_flat = x_nchw.reshape(n, cin, hw1)   # NCHW flattened == kernel layout

    def const(shape):
        return pl.BlockSpec(shape, lambda i, _s=shape: (0,) * len(_s))

    out = pl.pallas_call(
        gelayer_s2_kernel,
        out_shape=jax.ShapeDtypeStruct((n, cout, hw2), jnp.float32),
        grid=(n,),
        in_specs=[
            pl.BlockSpec((None, cin, hw1), lambda i: (i, 0, 0)),   # x (per image)
            const((9, hw1, hw1)),     # t1
            const((9, hw1, hw2)),     # t2
            const((9, hw2, hw2)),     # t3
            const((mid, cin)),        # E
            const((9, cin, cin)),     # conv1 per-tap weights
            const((cin, 1)),          # conv1 bias
            const((9, mid, 1)),       # dwconv1 per-tap weights
            const((mid, 1)),          # dwconv1 bias
            const((9, mid, 1)),       # dwconv2 per-tap weights
            const((mid, 1)),          # dwconv2 bias
            const((9, cin, 1)),       # shortcut-dw per-tap weights
            const((cin, 1)),          # shortcut-dw bias
            const((cout, mid)),       # conv2 1x1
            const((cout, cin)),       # shortcut 1x1
            const((cout, 1)),         # combined head bias
        ],
        out_specs=pl.BlockSpec((None, cout, hw2), lambda i: (i, 0, 0)),
        compiler_params=pltpu.CompilerParams(
            dimension_semantics=("parallel",)),
    )(x_flat, kp["t1"], kp["t2"], kp["t3"], kp["e"],
      kp["w1s"], kp["b1"], kp["wd1s"], kp["bd1"],
      kp["wd2s"], kp["bd2"], kp["wsds"], kp["bsd"],
      kp["w2p"], kp["ws2p"], kp["bh"])

    return out.reshape(n, cout, ho, wo)    # already NCHW


# ----------------------------------------------------------------------------
# Host-side constant construction (NumPy): tap gathers, expansion, BN folding.
# ----------------------------------------------------------------------------
def make_tap_gather(h, w, stride):
    """One-hot (9, h*w, ho*wo) matrices s.t. X @ T[k] is the k-th 3x3 tap of X
    (zero padding=1, the given stride folded in)."""
    ho = (h + 2 - 3) // stride + 1
    wo = (w + 2 - 3) // stride + 1
    t = np.zeros((9, h * w, ho * wo), np.float32)
    for dy in range(3):
        for dx in range(3):
            k = dy * 3 + dx
            for yo in range(ho):
                yi = yo * stride + dy - 1
                if not (0 <= yi < h):
                    continue
                for xo in range(wo):
                    xi = xo * stride + dx - 1
                    if 0 <= xi < w:
                        t[k, yi * w + xi, yo * wo + xo] = 1.0
    return t, ho, wo


def fold_bn(bn_params):
    gamma, beta, mean, var = bn_params
    scale = gamma / jnp.sqrt(var + EPS)
    bias = beta - mean * scale
    return scale, bias


def prepare_pallas_params(raw, h, w):
    cin, mid, cout = raw["in_chan"], raw["mid_chan"], raw["out_chan"]

    t1, _, _ = make_tap_gather(h, w, 1)
    t2, ho, wo = make_tap_gather(h, w, 2)
    t3, _, _ = make_tap_gather(ho, wo, 1)

    s1, b1 = fold_bn(raw["bn1"])
    sd1, bd1 = fold_bn(raw["bnd1"])
    sd2, bd2 = fold_bn(raw["bnd2"])
    s2, b2 = fold_bn(raw["bn2"])
    ssd, bsd = fold_bn(raw["bnsd"])
    ss2, bs2 = fold_bn(raw["bns2"])

    # conv1: (O, I, 3, 3) -> per-tap (9, O, I) with the BN scale folded in.
    w1s = jnp.transpose(raw["w1"], (2, 3, 0, 1)).reshape(9, cin, cin)
    w1s = w1s * s1[None, :, None]

    # depthwise/grouped: (O, 1, 3, 3) -> per-tap per-channel (9, O, 1), scaled.
    def dw_taps(wd, scale):
        o = wd.shape[0]
        taps = jnp.transpose(wd[:, 0, :, :], (1, 2, 0)).reshape(9, o)
        return (taps * scale[None, :])[..., None]

    # grouped-conv channel expansion: output channel c reads input c // (mid/cin)
    e = np.zeros((mid, cin), np.float32)
    e[np.arange(mid), np.arange(mid) // (mid // cin)] = 1.0

    return {
        "t1": jnp.asarray(t1), "t2": jnp.asarray(t2), "t3": jnp.asarray(t3),
        "e": jnp.asarray(e),
        "w1s": w1s, "b1": b1.reshape(cin, 1),
        "wd1s": dw_taps(raw["wd1"], sd1), "bd1": bd1.reshape(mid, 1),
        "wd2s": dw_taps(raw["wd2"], sd2), "bd2": bd2.reshape(mid, 1),
        "wsds": dw_taps(raw["wsd"], ssd), "bsd": bsd.reshape(cin, 1),
        "w2p": raw["w2"][:, :, 0, 0] * s2[:, None],
        "ws2p": raw["ws2"][:, :, 0, 0] * ss2[:, None],
        "bh": (b2 + bs2).reshape(cout, 1),
        "ho": ho, "wo": wo,
    }


# ----------------------------------------------------------------------------
# Parameter initialization (deterministic, synthetic)
# ----------------------------------------------------------------------------
def init_raw_params(key, in_chan, out_chan, exp_ratio=6):
    mid = in_chan * exp_ratio

    def conv_w(k, shape):
        return 0.1 * jax.random.normal(k, shape, jnp.float32)

    def bn(k, c):
        k1, k2, k3, k4 = jax.random.split(k, 4)
        gamma = 1.0 + 0.1 * jax.random.normal(k1, (c,), jnp.float32)
        beta = 0.1 * jax.random.normal(k2, (c,), jnp.float32)
        mean = 0.1 * jax.random.normal(k3, (c,), jnp.float32)
        var = 1.0 + 0.1 * jax.random.uniform(k4, (c,), jnp.float32)
        return gamma, beta, mean, var

    ks = jax.random.split(key, 12)
    return {
        "in_chan": in_chan, "mid_chan": mid, "out_chan": out_chan,
        "w1":  conv_w(ks[0], (in_chan, in_chan, 3, 3)),
        "wd1": conv_w(ks[1], (mid, 1, 3, 3)),
        "wd2": conv_w(ks[2], (mid, 1, 3, 3)),
        "w2":  conv_w(ks[3], (out_chan, mid, 1, 1)),
        "wsd": conv_w(ks[4], (in_chan, 1, 3, 3)),
        "ws2": conv_w(ks[5], (out_chan, in_chan, 1, 1)),
        "bn1":  bn(ks[6], in_chan),
        "bnd1": bn(ks[7], mid),
        "bnd2": bn(ks[8], mid),
        "bn2":  bn(ks[9], out_chan),
        "bnsd": bn(ks[10], in_chan),
        "bns2": bn(ks[11], out_chan),
    }


# ----------------------------------------------------------------------------
# Pure-JAX reference (lax.conv) for correctness checking
# ----------------------------------------------------------------------------
def _conv_bn_ref(x, w_oihw, stride, pad, groups, bn, relu):
    scale, bias = fold_bn(bn)
    y = lax.conv_general_dilated(
        x, jnp.transpose(w_oihw, (2, 3, 1, 0)),
        window_strides=(stride, stride),
        padding=((pad, pad), (pad, pad)),
        dimension_numbers=("NHWC", "HWIO", "NHWC"),
        feature_group_count=groups,
        precision=lax.Precision.HIGHEST)
    y = y * scale.reshape(1, 1, 1, -1) + bias.reshape(1, 1, 1, -1)
    if relu:
        y = jnp.maximum(y, 0.0)
    return y


def ref_forward(x_nchw, raw):
    x = jnp.transpose(x_nchw, (0, 2, 3, 1))
    ic, mc = raw["in_chan"], raw["mid_chan"]
    feat = _conv_bn_ref(x, raw["w1"], 1, 1, 1, raw["bn1"], True)
    feat = _conv_bn_ref(feat, raw["wd1"], 2, 1, ic, raw["bnd1"], False)
    feat = _conv_bn_ref(feat, raw["wd2"], 1, 1, mc, raw["bnd2"], True)
    feat = _conv_bn_ref(feat, raw["w2"], 1, 0, 1, raw["bn2"], False)
    short = _conv_bn_ref(x, raw["wsd"], 2, 1, ic, raw["bnsd"], False)
    short = _conv_bn_ref(short, raw["ws2"], 1, 0, 1, raw["bns2"], False)
    out = jnp.maximum(feat + short, 0.0)
    return jnp.transpose(out, (0, 3, 1, 2))


# ----------------------------------------------------------------------------
if __name__ == "__main__":
    key = jax.random.PRNGKey(0)
    k_x, k_p = jax.random.split(key)

    N, IN_CHAN, OUT_CHAN, H, W = 2, 4, 8, 16, 16
    x = jax.random.normal(k_x, (N, IN_CHAN, H, W), jnp.float32)

    raw = init_raw_params(k_p, IN_CHAN, OUT_CHAN, exp_ratio=6)
    kp = prepare_pallas_params(raw, H, W)

    out = gelayer_s2_forward(x, kp)
    out = jax.block_until_ready(out)

    expected = jax.block_until_ready(ref_forward(x, raw))
    assert out.shape == (N, OUT_CHAN, H // 2, W // 2), out.shape
    np.testing.assert_allclose(np.asarray(out), np.asarray(expected),
                               rtol=2e-3, atol=2e-3)
    print("KERNEL_OK")
</pallas_src>

<mosaic_0001>
module attributes {stable_mosaic.version = 11 : i64} {
  func.func @gelayer_s2_kernel(%arg0: i32, %arg1: memref<1x4x256xf32, #tpu.memory_space<vmem>>, %arg2: memref<9x256x256xf32, #tpu.memory_space<vmem>>, %arg3: memref<9x256x64xf32, #tpu.memory_space<vmem>>, %arg4: memref<9x64x64xf32, #tpu.memory_space<vmem>>, %arg5: memref<24x4xf32, #tpu.memory_space<vmem>>, %arg6: memref<9x4x4xf32, #tpu.memory_space<vmem>>, %arg7: memref<4x1xf32, #tpu.memory_space<vmem>>, %arg8: memref<9x24x1xf32, #tpu.memory_space<vmem>>, %arg9: memref<24x1xf32, #tpu.memory_space<vmem>>, %arg10: memref<9x24x1xf32, #tpu.memory_space<vmem>>, %arg11: memref<24x1xf32, #tpu.memory_space<vmem>>, %arg12: memref<9x4x1xf32, #tpu.memory_space<vmem>>, %arg13: memref<4x1xf32, #tpu.memory_space<vmem>>, %arg14: memref<8x24xf32, #tpu.memory_space<vmem>>, %arg15: memref<8x4xf32, #tpu.memory_space<vmem>>, %arg16: memref<8x1xf32, #tpu.memory_space<vmem>>, %arg17: memref<1x8x64xf32, #tpu.memory_space<vmem>>) attributes {dimension_semantics = [#tpu.dimension_semantics<parallel>], iteration_bounds = array<i64: 2>, scalar_prefetch = 0 : i64, scratch_operands = 0 : i64, tpu.core_type = #tpu.core_type<tc>, window_params = [{transform_indices = @transform_0, window_bounds = array<i64: 1, 4, 256>}, {pipeline_mode = #tpu.pipeline_mode<synchronous>, transform_indices = @transform_1, window_bounds = array<i64: 9, 256, 256>}, {pipeline_mode = #tpu.pipeline_mode<synchronous>, transform_indices = @transform_2, window_bounds = array<i64: 9, 256, 64>}, {pipeline_mode = #tpu.pipeline_mode<synchronous>, transform_indices = @transform_3, window_bounds = array<i64: 9, 64, 64>}, {pipeline_mode = #tpu.pipeline_mode<synchronous>, transform_indices = @transform_4, window_bounds = array<i64: 24, 4>}, {pipeline_mode = #tpu.pipeline_mode<synchronous>, transform_indices = @transform_5, window_bounds = array<i64: 9, 4, 4>}, {pipeline_mode = #tpu.pipeline_mode<synchronous>, transform_indices = @transform_6, window_bounds = array<i64: 4, 1>}, {pipeline_mode = #tpu.pipeline_mode<synchronous>, transform_indices = @transform_7, window_bounds = array<i64: 9, 24, 1>}, {pipeline_mode = #tpu.pipeline_mode<synchronous>, transform_indices = @transform_8, window_bounds = array<i64: 24, 1>}, {pipeline_mode = #tpu.pipeline_mode<synchronous>, transform_indices = @transform_9, window_bounds = array<i64: 9, 24, 1>}, {pipeline_mode = #tpu.pipeline_mode<synchronous>, transform_indices = @transform_10, window_bounds = array<i64: 24, 1>}, {pipeline_mode = #tpu.pipeline_mode<synchronous>, transform_indices = @transform_11, window_bounds = array<i64: 9, 4, 1>}, {pipeline_mode = #tpu.pipeline_mode<synchronous>, transform_indices = @transform_12, window_bounds = array<i64: 4, 1>}, {pipeline_mode = #tpu.pipeline_mode<synchronous>, transform_indices = @transform_13, window_bounds = array<i64: 8, 24>}, {pipeline_mode = #tpu.pipeline_mode<synchronous>, transform_indices = @transform_14, window_bounds = array<i64: 8, 4>}, {pipeline_mode = #tpu.pipeline_mode<synchronous>, transform_indices = @transform_15, window_bounds = array<i64: 8, 1>}, {transform_indices = @transform_16, window_bounds = array<i64: 1, 8, 64>}]} {
    %c0 = arith.constant 0 : index
    %c0_0 = arith.constant 0 : index
    %c0_1 = arith.constant 0 : index
    %0 = vector.load %arg1[%c0, %c0_0, %c0_1] : memref<1x4x256xf32, #tpu.memory_space<vmem>>, vector<1x4x256xf32>
    %1 = vector.shape_cast %0 : vector<1x4x256xf32> to vector<4x256xf32>
    %cst = arith.constant 0.000000e+00 : f32
    %2 = vector.broadcast %cst : f32 to vector<4x256xf32>
    %c0_2 = arith.constant 0 : index
    %c0_3 = arith.constant 0 : index
    %c0_4 = arith.constant 0 : index
    %3 = vector.load %arg2[%c0_2, %c0_3, %c0_4] : memref<9x256x256xf32, #tpu.memory_space<vmem>>, vector<1x256x256xf32>
    %4 = vector.shape_cast %3 : vector<1x256x256xf32> to vector<256x256xf32>
    %cst_5 = arith.constant dense<0.000000e+00> : vector<4x256xf32>
    %5 = tpu.matmul %1, %4, %cst_5 {dimension_numbers = #tpu.dot_dimension_numbers<[1], [0], [0], [1], [0, 0, 1, 1], [], []>} : vector<4x256xf32>, vector<256x256xf32>, vector<4x256xf32> -> vector<4x256xf32>
    %c0_6 = arith.constant 0 : index
    %c0_7 = arith.constant 0 : index
    %c0_8 = arith.constant 0 : index
    %6 = vector.load %arg6[%c0_6, %c0_7, %c0_8] : memref<9x4x4xf32, #tpu.memory_space<vmem>>, vector<1x4x4xf32>
    %7 = vector.shape_cast %6 : vector<1x4x4xf32> to vector<4x4xf32>
    %cst_9 = arith.constant dense<0.000000e+00> : vector<4x256xf32>
    %8 = tpu.matmul %7, %5, %cst_9 {dimension_numbers = #tpu.dot_dimension_numbers<[1], [0], [0], [1], [0, 0, 1, 1], [], []>} : vector<4x4xf32>, vector<4x256xf32>, vector<4x256xf32> -> vector<4x256xf32>
    %9 = arith.addf %2, %8 : vector<4x256xf32>
    %c1 = arith.constant 1 : index
    %c0_10 = arith.constant 0 : index
    %c0_11 = arith.constant 0 : index
    %10 = vector.load %arg2[%c1, %c0_10, %c0_11] : memref<9x256x256xf32, #tpu.memory_space<vmem>>, vector<1x256x256xf32>
    %11 = vector.shape_cast %10 : vector<1x256x256xf32> to vector<256x256xf32>
    %cst_12 = arith.constant dense<0.000000e+00> : vector<4x256xf32>
    %12 = tpu.matmul %1, %11, %cst_12 {dimension_numbers = #tpu.dot_dimension_numbers<[1], [0], [0], [1], [0, 0, 1, 1], [], []>} : vector<4x256xf32>, vector<256x256xf32>, vector<4x256xf32> -> vector<4x256xf32>
    %c1_13 = arith.constant 1 : index
    %c0_14 = arith.constant 0 : index
    %c0_15 = arith.constant 0 : index
    %13 = vector.load %arg6[%c1_13, %c0_14, %c0_15] : memref<9x4x4xf32, #tpu.memory_space<vmem>>, vector<1x4x4xf32>
    %14 = vector.shape_cast %13 : vector<1x4x4xf32> to vector<4x4xf32>
    %cst_16 = arith.constant dense<0.000000e+00> : vector<4x256xf32>
    %15 = tpu.matmul %14, %12, %cst_16 {dimension_numbers = #tpu.dot_dimension_numbers<[1], [0], [0], [1], [0, 0, 1, 1], [], []>} : vector<4x4xf32>, vector<4x256xf32>, vector<4x256xf32> -> vector<4x256xf32>
    %16 = arith.addf %9, %15 : vector<4x256xf32>
    %c2 = arith.constant 2 : index
    %c0_17 = arith.constant 0 : index
    %c0_18 = arith.constant 0 : index
    %17 = vector.load %arg2[%c2, %c0_17, %c0_18] : memref<9x256x256xf32, #tpu.memory_space<vmem>>, vector<1x256x256xf32>
    %18 = vector.shape_cast %17 : vector<1x256x256xf32> to vector<256x256xf32>
    %cst_19 = arith.constant dense<0.000000e+00> : vector<4x256xf32>
    %19 = tpu.matmul %1, %18, %cst_19 {dimension_numbers = #tpu.dot_dimension_numbers<[1], [0], [0], [1], [0, 0, 1, 1], [], []>} : vector<4x256xf32>, vector<256x256xf32>, vector<4x256xf32> -> vector<4x256xf32>
    %c2_20 = arith.constant 2 : index
    %c0_21 = arith.constant 0 : index
    %c0_22 = arith.constant 0 : index
    %20 = vector.load %arg6[%c2_20, %c0_21, %c0_22] : memref<9x4x4xf32, #tpu.memory_space<vmem>>, vector<1x4x4xf32>
    %21 = vector.shape_cast %20 : vector<1x4x4xf32> to vector<4x4xf32>
    %cst_23 = arith.constant dense<0.000000e+00> : vector<4x256xf32>
    %22 = tpu.matmul %21, %19, %cst_23 {dimension_numbers = #tpu.dot_dimension_numbers<[1], [0], [0], [1], [0, 0, 1, 1], [], []>} : vector<4x4xf32>, vector<4x256xf32>, vector<4x256xf32> -> vector<4x256xf32>
    %23 = arith.addf %16, %22 : vector<4x256xf32>
    %c3 = arith.constant 3 : index
    %c0_24 = arith.constant 0 : index
    %c0_25 = arith.constant 0 : index
    %24 = vector.load %arg2[%c3, %c0_24, %c0_25] : memref<9x256x256xf32, #tpu.memory_space<vmem>>, vector<1x256x256xf32>
    %25 = vector.shape_cast %24 : vector<1x256x256xf32> to vector<256x256xf32>
    %cst_26 = arith.constant dense<0.000000e+00> : vector<4x256xf32>
    %26 = tpu.matmul %1, %25, %cst_26 {dimension_numbers = #tpu.dot_dimension_numbers<[1], [0], [0], [1], [0, 0, 1, 1], [], []>} : vector<4x256xf32>, vector<256x256xf32>, vector<4x256xf32> -> vector<4x256xf32>
    %c3_27 = arith.constant 3 : index
    %c0_28 = arith.constant 0 : index
    %c0_29 = arith.constant 0 : index
    %27 = vector.load %arg6[%c3_27, %c0_28, %c0_29] : memref<9x4x4xf32, #tpu.memory_space<vmem>>, vector<1x4x4xf32>
    %28 = vector.shape_cast %27 : vector<1x4x4xf32> to vector<4x4xf32>
    %cst_30 = arith.constant dense<0.000000e+00> : vector<4x256xf32>
    %29 = tpu.matmul %28, %26, %cst_30 {dimension_numbers = #tpu.dot_dimension_numbers<[1], [0], [0], [1], [0, 0, 1, 1], [], []>} : vector<4x4xf32>, vector<4x256xf32>, vector<4x256xf32> -> vector<4x256xf32>
    %30 = arith.addf %23, %29 : vector<4x256xf32>
    %c4 = arith.constant 4 : index
    %c0_31 = arith.constant 0 : index
    %c0_32 = arith.constant 0 : index
    %31 = vector.load %arg2[%c4, %c0_31, %c0_32] : memref<9x256x256xf32, #tpu.memory_space<vmem>>, vector<1x256x256xf32>
    %32 = vector.shape_cast %31 : vector<1x256x256xf32> to vector<256x256xf32>
    %cst_33 = arith.constant dense<0.000000e+00> : vector<4x256xf32>
    %33 = tpu.matmul %1, %32, %cst_33 {dimension_numbers = #tpu.dot_dimension_numbers<[1], [0], [0], [1], [0, 0, 1, 1], [], []>} : vector<4x256xf32>, vector<256x256xf32>, vector<4x256xf32> -> vector<4x256xf32>
    %c4_34 = arith.constant 4 : index
    %c0_35 = arith.constant 0 : index
    %c0_36 = arith.constant 0 : index
    %34 = vector.load %arg6[%c4_34, %c0_35, %c0_36] : memref<9x4x4xf32, #tpu.memory_space<vmem>>, vector<1x4x4xf32>
    %35 = vector.shape_cast %34 : vector<1x4x4xf32> to vector<4x4xf32>
    %cst_37 = arith.constant dense<0.000000e+00> : vector<4x256xf32>
    %36 = tpu.matmul %35, %33, %cst_37 {dimension_numbers = #tpu.dot_dimension_numbers<[1], [0], [0], [1], [0, 0, 1, 1], [], []>} : vector<4x4xf32>, vector<4x256xf32>, vector<4x256xf32> -> vector<4x256xf32>
    %37 = arith.addf %30, %36 : vector<4x256xf32>
    %c5 = arith.constant 5 : index
    %c0_38 = arith.constant 0 : index
    %c0_39 = arith.constant 0 : index
    %38 = vector.load %arg2[%c5, %c0_38, %c0_39] : memref<9x256x256xf32, #tpu.memory_space<vmem>>, vector<1x256x256xf32>
    %39 = vector.shape_cast %38 : vector<1x256x256xf32> to vector<256x256xf32>
    %cst_40 = arith.constant dense<0.000000e+00> : vector<4x256xf32>
    %40 = tpu.matmul %1, %39, %cst_40 {dimension_numbers = #tpu.dot_dimension_numbers<[1], [0], [0], [1], [0, 0, 1, 1], [], []>} : vector<4x256xf32>, vector<256x256xf32>, vector<4x256xf32> -> vector<4x256xf32>
    %c5_41 = arith.constant 5 : index
    %c0_42 = arith.constant 0 : index
    %c0_43 = arith.constant 0 : index
    %41 = vector.load %arg6[%c5_41, %c0_42, %c0_43] : memref<9x4x4xf32, #tpu.memory_space<vmem>>, vector<1x4x4xf32>
    %42 = vector.shape_cast %41 : vector<1x4x4xf32> to vector<4x4xf32>
    %cst_44 = arith.constant dense<0.000000e+00> : vector<4x256xf32>
    %43 = tpu.matmul %42, %40, %cst_44 {dimension_numbers = #tpu.dot_dimension_numbers<[1], [0], [0], [1], [0, 0, 1, 1], [], []>} : vector<4x4xf32>, vector<4x256xf32>, vector<4x256xf32> -> vector<4x256xf32>
    %44 = arith.addf %37, %43 : vector<4x256xf32>
    %c6 = arith.constant 6 : index
    %c0_45 = arith.constant 0 : index
    %c0_46 = arith.constant 0 : index
    %45 = vector.load %arg2[%c6, %c0_45, %c0_46] : memref<9x256x256xf32, #tpu.memory_space<vmem>>, vector<1x256x256xf32>
    %46 = vector.shape_cast %45 : vector<1x256x256xf32> to vector<256x256xf32>
    %cst_47 = arith.constant dense<0.000000e+00> : vector<4x256xf32>
    %47 = tpu.matmul %1, %46, %cst_47 {dimension_numbers = #tpu.dot_dimension_numbers<[1], [0], [0], [1], [0, 0, 1, 1], [], []>} : vector<4x256xf32>, vector<256x256xf32>, vector<4x256xf32> -> vector<4x256xf32>
    %c6_48 = arith.constant 6 : index
    %c0_49 = arith.constant 0 : index
    %c0_50 = arith.constant 0 : index
    %48 = vector.load %arg6[%c6_48, %c0_49, %c0_50] : memref<9x4x4xf32, #tpu.memory_space<vmem>>, vector<1x4x4xf32>
    %49 = vector.shape_cast %48 : vector<1x4x4xf32> to vector<4x4xf32>
    %cst_51 = arith.constant dense<0.000000e+00> : vector<4x256xf32>
    %50 = tpu.matmul %49, %47, %cst_51 {dimension_numbers = #tpu.dot_dimension_numbers<[1], [0], [0], [1], [0, 0, 1, 1], [], []>} : vector<4x4xf32>, vector<4x256xf32>, vector<4x256xf32> -> vector<4x256xf32>
    %51 = arith.addf %44, %50 : vector<4x256xf32>
    %c7 = arith.constant 7 : index
    %c0_52 = arith.constant 0 : index
    %c0_53 = arith.constant 0 : index
    %52 = vector.load %arg2[%c7, %c0_52, %c0_53] : memref<9x256x256xf32, #tpu.memory_space<vmem>>, vector<1x256x256xf32>
    %53 = vector.shape_cast %52 : vector<1x256x256xf32> to vector<256x256xf32>
    %cst_54 = arith.constant dense<0.000000e+00> : vector<4x256xf32>
    %54 = tpu.matmul %1, %53, %cst_54 {dimension_numbers = #tpu.dot_dimension_numbers<[1], [0], [0], [1], [0, 0, 1, 1], [], []>} : vector<4x256xf32>, vector<256x256xf32>, vector<4x256xf32> -> vector<4x256xf32>
    %c7_55 = arith.constant 7 : index
    %c0_56 = arith.constant 0 : index
    %c0_57 = arith.constant 0 : index
    %55 = vector.load %arg6[%c7_55, %c0_56, %c0_57] : memref<9x4x4xf32, #tpu.memory_space<vmem>>, vector<1x4x4xf32>
    %56 = vector.shape_cast %55 : vector<1x4x4xf32> to vector<4x4xf32>
    %cst_58 = arith.constant dense<0.000000e+00> : vector<4x256xf32>
    %57 = tpu.matmul %56, %54, %cst_58 {dimension_numbers = #tpu.dot_dimension_numbers<[1], [0], [0], [1], [0, 0, 1, 1], [], []>} : vector<4x4xf32>, vector<4x256xf32>, vector<4x256xf32> -> vector<4x256xf32>
    %58 = arith.addf %51, %57 : vector<4x256xf32>
    %c8 = arith.constant 8 : index
    %c0_59 = arith.constant 0 : index
    %c0_60 = arith.constant 0 : index
    %59 = vector.load %arg2[%c8, %c0_59, %c0_60] : memref<9x256x256xf32, #tpu.memory_space<vmem>>, vector<1x256x256xf32>
    %60 = vector.shape_cast %59 : vector<1x256x256xf32> to vector<256x256xf32>
    %cst_61 = arith.constant dense<0.000000e+00> : vector<4x256xf32>
    %61 = tpu.matmul %1, %60, %cst_61 {dimension_numbers = #tpu.dot_dimension_numbers<[1], [0], [0], [1], [0, 0, 1, 1], [], []>} : vector<4x256xf32>, vector<256x256xf32>, vector<4x256xf32> -> vector<4x256xf32>
    %c8_62 = arith.constant 8 : index
    %c0_63 = arith.constant 0 : index
    %c0_64 = arith.constant 0 : index
    %62 = vector.load %arg6[%c8_62, %c0_63, %c0_64] : memref<9x4x4xf32, #tpu.memory_space<vmem>>, vector<1x4x4xf32>
    %63 = vector.shape_cast %62 : vector<1x4x4xf32> to vector<4x4xf32>
    %cst_65 = arith.constant dense<0.000000e+00> : vector<4x256xf32>
    %64 = tpu.matmul %63, %61, %cst_65 {dimension_numbers = #tpu.dot_dimension_numbers<[1], [0], [0], [1], [0, 0, 1, 1], [], []>} : vector<4x4xf32>, vector<4x256xf32>, vector<4x256xf32> -> vector<4x256xf32>
    %65 = arith.addf %58, %64 : vector<4x256xf32>
    %c0_66 = arith.constant 0 : index
    %c0_67 = arith.constant 0 : index
    %66 = vector.load %arg7[%c0_66, %c0_67] : memref<4x1xf32, #tpu.memory_space<vmem>>, vector<4x1xf32>
    %67 = vector.broadcast %66 : vector<4x1xf32> to vector<4x256xf32>
    %68 = arith.addf %65, %67 : vector<4x256xf32>
    %cst_68 = arith.constant 0.000000e+00 : f32
    %69 = vector.broadcast %cst_68 : f32 to vector<4x256xf32>
    %70 = arith.maximumf %68, %69 : vector<4x256xf32>
    %c0_69 = arith.constant 0 : index
    %c0_70 = arith.constant 0 : index
    %71 = vector.load %arg5[%c0_69, %c0_70] : memref<24x4xf32, #tpu.memory_space<vmem>>, vector<24x4xf32>
    %cst_71 = arith.constant dense<0.000000e+00> : vector<24x256xf32>
    %72 = tpu.matmul %71, %70, %cst_71 {dimension_numbers = #tpu.dot_dimension_numbers<[1], [0], [0], [1], [0, 0, 1, 1], [], []>} : vector<24x4xf32>, vector<4x256xf32>, vector<24x256xf32> -> vector<24x256xf32>
    %cst_72 = arith.constant 0.000000e+00 : f32
    %73 = vector.broadcast %cst_72 : f32 to vector<24x64xf32>
    %c0_73 = arith.constant 0 : index
    %c0_74 = arith.constant 0 : index
    %c0_75 = arith.constant 0 : index
    %74 = vector.load %arg3[%c0_73, %c0_74, %c0_75] : memref<9x256x64xf32, #tpu.memory_space<vmem>>, vector<1x256x64xf32>
    %75 = vector.shape_cast %74 : vector<1x256x64xf32> to vector<256x64xf32>
    %cst_76 = arith.constant dense<0.000000e+00> : vector<24x64xf32>
    %76 = tpu.matmul %72, %75, %cst_76 {dimension_numbers = #tpu.dot_dimension_numbers<[1], [0], [0], [1], [0, 0, 1, 1], [], []>} : vector<24x256xf32>, vector<256x64xf32>, vector<24x64xf32> -> vector<24x64xf32>
    %c0_77 = arith.constant 0 : index
    %c0_78 = arith.constant 0 : index
    %c0_79 = arith.constant 0 : index
    %77 = vector.load %arg8[%c0_77, %c0_78, %c0_79] : memref<9x24x1xf32, #tpu.memory_space<vmem>>, vector<1x24x1xf32>
    %78 = vector.shape_cast %77 : vector<1x24x1xf32> to vector<24x1xf32>
    %79 = vector.broadcast %78 : vector<24x1xf32> to vector<24x64xf32>
    %80 = arith.mulf %79, %76 : vector<24x64xf32>
    %81 = arith.addf %73, %80 : vector<24x64xf32>
    %c1_80 = arith.constant 1 : index
    %c0_81 = arith.constant 0 : index
    %c0_82 = arith.constant 0 : index
    %82 = vector.load %arg3[%c1_80, %c0_81, %c0_82] : memref<9x256x64xf32, #tpu.memory_space<vmem>>, vector<1x256x64xf32>
    %83 = vector.shape_cast %82 : vector<1x256x64xf32> to vector<256x64xf32>
    %cst_83 = arith.constant dense<0.000000e+00> : vector<24x64xf32>
    %84 = tpu.matmul %72, %83, %cst_83 {dimension_numbers = #tpu.dot_dimension_numbers<[1], [0], [0], [1], [0, 0, 1, 1], [], []>} : vector<24x256xf32>, vector<256x64xf32>, vector<24x64xf32> -> vector<24x64xf32>
    %c1_84 = arith.constant 1 : index
    %c0_85 = arith.constant 0 : index
    %c0_86 = arith.constant 0 : index
    %85 = vector.load %arg8[%c1_84, %c0_85, %c0_86] : memref<9x24x1xf32, #tpu.memory_space<vmem>>, vector<1x24x1xf32>
    %86 = vector.shape_cast %85 : vector<1x24x1xf32> to vector<24x1xf32>
    %87 = vector.broadcast %86 : vector<24x1xf32> to vector<24x64xf32>
    %88 = arith.mulf %87, %84 : vector<24x64xf32>
    %89 = arith.addf %81, %88 : vector<24x64xf32>
    %c2_87 = arith.constant 2 : index
    %c0_88 = arith.constant 0 : index
    %c0_89 = arith.constant 0 : index
    %90 = vector.load %arg3[%c2_87, %c0_88, %c0_89] : memref<9x256x64xf32, #tpu.memory_space<vmem>>, vector<1x256x64xf32>
    %91 = vector.shape_cast %90 : vector<1x256x64xf32> to vector<256x64xf32>
    %cst_90 = arith.constant dense<0.000000e+00> : vector<24x64xf32>
    %92 = tpu.matmul %72, %91, %cst_90 {dimension_numbers = #tpu.dot_dimension_numbers<[1], [0], [0], [1], [0, 0, 1, 1], [], []>} : vector<24x256xf32>, vector<256x64xf32>, vector<24x64xf32> -> vector<24x64xf32>
    %c2_91 = arith.constant 2 : index
    %c0_92 = arith.constant 0 : index
    %c0_93 = arith.constant 0 : index
    %93 = vector.load %arg8[%c2_91, %c0_92, %c0_93] : memref<9x24x1xf32, #tpu.memory_space<vmem>>, vector<1x24x1xf32>
    %94 = vector.shape_cast %93 : vector<1x24x1xf32> to vector<24x1xf32>
    %95 = vector.broadcast %94 : vector<24x1xf32> to vector<24x64xf32>
    %96 = arith.mulf %95, %92 : vector<24x64xf32>
    %97 = arith.addf %89, %96 : vector<24x64xf32>
    %c3_94 = arith.constant 3 : index
    %c0_95 = arith.constant 0 : index
    %c0_96 = arith.constant 0 : index
    %98 = vector.load %arg3[%c3_94, %c0_95, %c0_96] : memref<9x256x64xf32, #tpu.memory_space<vmem>>, vector<1x256x64xf32>
    %99 = vector.shape_cast %98 : vector<1x256x64xf32> to vector<256x64xf32>
    %cst_97 = arith.constant dense<0.000000e+00> : vector<24x64xf32>
    %100 = tpu.matmul %72, %99, %cst_97 {dimension_numbers = #tpu.dot_dimension_numbers<[1], [0], [0], [1], [0, 0, 1, 1], [], []>} : vector<24x256xf32>, vector<256x64xf32>, vector<24x64xf32> -> vector<24x64xf32>
    %c3_98 = arith.constant 3 : index
    %c0_99 = arith.constant 0 : index
    %c0_100 = arith.constant 0 : index
    %101 = vector.load %arg8[%c3_98, %c0_99, %c0_100] : memref<9x24x1xf32, #tpu.memory_space<vmem>>, vector<1x24x1xf32>
    %102 = vector.shape_cast %101 : vector<1x24x1xf32> to vector<24x1xf32>
    %103 = vector.broadcast %102 : vector<24x1xf32> to vector<24x64xf32>
    %104 = arith.mulf %103, %100 : vector<24x64xf32>
    %105 = arith.addf %97, %104 : vector<24x64xf32>
    %c4_101 = arith.constant 4 : index
    %c0_102 = arith.constant 0 : index
    %c0_103 = arith.constant 0 : index
    %106 = vector.load %arg3[%c4_101, %c0_102, %c0_103] : memref<9x256x64xf32, #tpu.memory_space<vmem>>, vector<1x256x64xf32>
    %107 = vector.shape_cast %106 : vector<1x256x64xf32> to vector<256x64xf32>
    %cst_104 = arith.constant dense<0.000000e+00> : vector<24x64xf32>
    %108 = tpu.matmul %72, %107, %cst_104 {dimension_numbers = #tpu.dot_dimension_numbers<[1], [0], [0], [1], [0, 0, 1, 1], [], []>} : vector<24x256xf32>, vector<256x64xf32>, vector<24x64xf32> -> vector<24x64xf32>
    %c4_105 = arith.constant 4 : index
    %c0_106 = arith.constant 0 : index
    %c0_107 = arith.constant 0 : index
    %109 = vector.load %arg8[%c4_105, %c0_106, %c0_107] : memref<9x24x1xf32, #tpu.memory_space<vmem>>, vector<1x24x1xf32>
    %110 = vector.shape_cast %109 : vector<1x24x1xf32> to vector<24x1xf32>
    %111 = vector.broadcast %110 : vector<24x1xf32> to vector<24x64xf32>
    %112 = arith.mulf %111, %108 : vector<24x64xf32>
    %113 = arith.addf %105, %112 : vector<24x64xf32>
    %c5_108 = arith.constant 5 : index
    %c0_109 = arith.constant 0 : index
    %c0_110 = arith.constant 0 : index
    %114 = vector.load %arg3[%c5_108, %c0_109, %c0_110] : memref<9x256x64xf32, #tpu.memory_space<vmem>>, vector<1x256x64xf32>
    %115 = vector.shape_cast %114 : vector<1x256x64xf32> to vector<256x64xf32>
    %cst_111 = arith.constant dense<0.000000e+00> : vector<24x64xf32>
    %116 = tpu.matmul %72, %115, %cst_111 {dimension_numbers = #tpu.dot_dimension_numbers<[1], [0], [0], [1], [0, 0, 1, 1], [], []>} : vector<24x256xf32>, vector<256x64xf32>, vector<24x64xf32> -> vector<24x64xf32>
    %c5_112 = arith.constant 5 : index
    %c0_113 = arith.constant 0 : index
    %c0_114 = arith.constant 0 : index
    %117 = vector.load %arg8[%c5_112, %c0_113, %c0_114] : memref<9x24x1xf32, #tpu.memory_space<vmem>>, vector<1x24x1xf32>
    %118 = vector.shape_cast %117 : vector<1x24x1xf32> to vector<24x1xf32>
    %119 = vector.broadcast %118 : vector<24x1xf32> to vector<24x64xf32>
    %120 = arith.mulf %119, %116 : vector<24x64xf32>
    %121 = arith.addf %113, %120 : vector<24x64xf32>
    %c6_115 = arith.constant 6 : index
    %c0_116 = arith.constant 0 : index
    %c0_117 = arith.constant 0 : index
    %122 = vector.load %arg3[%c6_115, %c0_116, %c0_117] : memref<9x256x64xf32, #tpu.memory_space<vmem>>, vector<1x256x64xf32>
    %123 = vector.shape_cast %122 : vector<1x256x64xf32> to vector<256x64xf32>
    %cst_118 = arith.constant dense<0.000000e+00> : vector<24x64xf32>
    %124 = tpu.matmul %72, %123, %cst_118 {dimension_numbers = #tpu.dot_dimension_numbers<[1], [0], [0], [1], [0, 0, 1, 1], [], []>} : vector<24x256xf32>, vector<256x64xf32>, vector<24x64xf32> -> vector<24x64xf32>
    %c6_119 = arith.constant 6 : index
    %c0_120 = arith.constant 0 : index
    %c0_121 = arith.constant 0 : index
    %125 = vector.load %arg8[%c6_119, %c0_120, %c0_121] : memref<9x24x1xf32, #tpu.memory_space<vmem>>, vector<1x24x1xf32>
    %126 = vector.shape_cast %125 : vector<1x24x1xf32> to vector<24x1xf32>
    %127 = vector.broadcast %126 : vector<24x1xf32> to vector<24x64xf32>
    %128 = arith.mulf %127, %124 : vector<24x64xf32>
    %129 = arith.addf %121, %128 : vector<24x64xf32>
    %c7_122 = arith.constant 7 : index
    %c0_123 = arith.constant 0 : index
    %c0_124 = arith.constant 0 : index
    %130 = vector.load %arg3[%c7_122, %c0_123, %c0_124] : memref<9x256x64xf32, #tpu.memory_space<vmem>>, vector<1x256x64xf32>
    %131 = vector.shape_cast %130 : vector<1x256x64xf32> to vector<256x64xf32>
    %cst_125 = arith.constant dense<0.000000e+00> : vector<24x64xf32>
    %132 = tpu.matmul %72, %131, %cst_125 {dimension_numbers = #tpu.dot_dimension_numbers<[1], [0], [0], [1], [0, 0, 1, 1], [], []>} : vector<24x256xf32>, vector<256x64xf32>, vector<24x64xf32> -> vector<24x64xf32>
    %c7_126 = arith.constant 7 : index
    %c0_127 = arith.constant 0 : index
    %c0_128 = arith.constant 0 : index
    %133 = vector.load %arg8[%c7_126, %c0_127, %c0_128] : memref<9x24x1xf32, #tpu.memory_space<vmem>>, vector<1x24x1xf32>
    %134 = vector.shape_cast %133 : vector<1x24x1xf32> to vector<24x1xf32>
    %135 = vector.broadcast %134 : vector<24x1xf32> to vector<24x64xf32>
    %136 = arith.mulf %135, %132 : vector<24x64xf32>
    %137 = arith.addf %129, %136 : vector<24x64xf32>
    %c8_129 = arith.constant 8 : index
    %c0_130 = arith.constant 0 : index
    %c0_131 = arith.constant 0 : index
    %138 = vector.load %arg3[%c8_129, %c0_130, %c0_131] : memref<9x256x64xf32, #tpu.memory_space<vmem>>, vector<1x256x64xf32>
    %139 = vector.shape_cast %138 : vector<1x256x64xf32> to vector<256x64xf32>
    %cst_132 = arith.constant dense<0.000000e+00> : vector<24x64xf32>
    %140 = tpu.matmul %72, %139, %cst_132 {dimension_numbers = #tpu.dot_dimension_numbers<[1], [0], [0], [1], [0, 0, 1, 1], [], []>} : vector<24x256xf32>, vector<256x64xf32>, vector<24x64xf32> -> vector<24x64xf32>
    %c8_133 = arith.constant 8 : index
    %c0_134 = arith.constant 0 : index
    %c0_135 = arith.constant 0 : index
    %141 = vector.load %arg8[%c8_133, %c0_134, %c0_135] : memref<9x24x1xf32, #tpu.memory_space<vmem>>, vector<1x24x1xf32>
    %142 = vector.shape_cast %141 : vector<1x24x1xf32> to vector<24x1xf32>
    %143 = vector.broadcast %142 : vector<24x1xf32> to vector<24x64xf32>
    %144 = arith.mulf %143, %140 : vector<24x64xf32>
    %145 = arith.addf %137, %144 : vector<24x64xf32>
    %c0_136 = arith.constant 0 : index
    %c0_137 = arith.constant 0 : index
    %146 = vector.load %arg9[%c0_136, %c0_137] : memref<24x1xf32, #tpu.memory_space<vmem>>, vector<24x1xf32>
    %147 = vector.broadcast %146 : vector<24x1xf32> to vector<24x64xf32>
    %148 = arith.addf %145, %147 : vector<24x64xf32>
    %cst_138 = arith.constant 0.000000e+00 : f32
    %149 = vector.broadcast %cst_138 : f32 to vector<24x64xf32>
    %c0_139 = arith.constant 0 : index
    %c0_140 = arith.constant 0 : index
    %c0_141 = arith.constant 0 : index
    %150 = vector.load %arg4[%c0_139, %c0_140, %c0_141] : memref<9x64x64xf32, #tpu.memory_space<vmem>>, vector<1x64x64xf32>
    %151 = vector.shape_cast %150 : vector<1x64x64xf32> to vector<64x64xf32>
    %cst_142 = arith.constant dense<0.000000e+00> : vector<24x64xf32>
    %152 = tpu.matmul %148, %151, %cst_142 {dimension_numbers = #tpu.dot_dimension_numbers<[1], [0], [0], [1], [0, 0, 1, 1], [], []>} : vector<24x64xf32>, vector<64x64xf32>, vector<24x64xf32> -> vector<24x64xf32>
    %c0_143 = arith.constant 0 : index
    %c0_144 = arith.constant 0 : index
    %c0_145 = arith.constant 0 : index
    %153 = vector.load %arg10[%c0_143, %c0_144, %c0_145] : memref<9x24x1xf32, #tpu.memory_space<vmem>>, vector<1x24x1xf32>
    %154 = vector.shape_cast %153 : vector<1x24x1xf32> to vector<24x1xf32>
    %155 = vector.broadcast %154 : vector<24x1xf32> to vector<24x64xf32>
    %156 = arith.mulf %155, %152 : vector<24x64xf32>
    %157 = arith.addf %149, %156 : vector<24x64xf32>
    %c1_146 = arith.constant 1 : index
    %c0_147 = arith.constant 0 : index
    %c0_148 = arith.constant 0 : index
    %158 = vector.load %arg4[%c1_146, %c0_147, %c0_148] : memref<9x64x64xf32, #tpu.memory_space<vmem>>, vector<1x64x64xf32>
    %159 = vector.shape_cast %158 : vector<1x64x64xf32> to vector<64x64xf32>
    %cst_149 = arith.constant dense<0.000000e+00> : vector<24x64xf32>
    %160 = tpu.matmul %148, %159, %cst_149 {dimension_numbers = #tpu.dot_dimension_numbers<[1], [0], [0], [1], [0, 0, 1, 1], [], []>} : vector<24x64xf32>, vector<64x64xf32>, vector<24x64xf32> -> vector<24x64xf32>
    %c1_150 = arith.constant 1 : index
    %c0_151 = arith.constant 0 : index
    %c0_152 = arith.constant 0 : index
    %161 = vector.load %arg10[%c1_150, %c0_151, %c0_152] : memref<9x24x1xf32, #tpu.memory_space<vmem>>, vector<1x24x1xf32>
    %162 = vector.shape_cast %161 : vector<1x24x1xf32> to vector<24x1xf32>
    %163 = vector.broadcast %162 : vector<24x1xf32> to vector<24x64xf32>
    %164 = arith.mulf %163, %160 : vector<24x64xf32>
    %165 = arith.addf %157, %164 : vector<24x64xf32>
    %c2_153 = arith.constant 2 : index
    %c0_154 = arith.constant 0 : index
    %c0_155 = arith.constant 0 : index
    %166 = vector.load %arg4[%c2_153, %c0_154, %c0_155] : memref<9x64x64xf32, #tpu.memory_space<vmem>>, vector<1x64x64xf32>
    %167 = vector.shape_cast %166 : vector<1x64x64xf32> to vector<64x64xf32>
    %cst_156 = arith.constant dense<0.000000e+00> : vector<24x64xf32>
    %168 = tpu.matmul %148, %167, %cst_156 {dimension_numbers = #tpu.dot_dimension_numbers<[1], [0], [0], [1], [0, 0, 1, 1], [], []>} : vector<24x64xf32>, vector<64x64xf32>, vector<24x64xf32> -> vector<24x64xf32>
    %c2_157 = arith.constant 2 : index
    %c0_158 = arith.constant 0 : index
    %c0_159 = arith.constant 0 : index
    %169 = vector.load %arg10[%c2_157, %c0_158, %c0_159] : memref<9x24x1xf32, #tpu.memory_space<vmem>>, vector<1x24x1xf32>
    %170 = vector.shape_cast %169 : vector<1x24x1xf32> to vector<24x1xf32>
    %171 = vector.broadcast %170 : vector<24x1xf32> to vector<24x64xf32>
    %172 = arith.mulf %171, %168 : vector<24x64xf32>
    %173 = arith.addf %165, %172 : vector<24x64xf32>
    %c3_160 = arith.constant 3 : index
    %c0_161 = arith.constant 0 : index
    %c0_162 = arith.constant 0 : index
    %174 = vector.load %arg4[%c3_160, %c0_161, %c0_162] : memref<9x64x64xf32, #tpu.memory_space<vmem>>, vector<1x64x64xf32>
    %175 = vector.shape_cast %174 : vector<1x64x64xf32> to vector<64x64xf32>
    %cst_163 = arith.constant dense<0.000000e+00> : vector<24x64xf32>
    %176 = tpu.matmul %148, %175, %cst_163 {dimension_numbers = #tpu.dot_dimension_numbers<[1], [0], [0], [1], [0, 0, 1, 1], [], []>} : vector<24x64xf32>, vector<64x64xf32>, vector<24x64xf32> -> vector<24x64xf32>
    %c3_164 = arith.constant 3 : index
    %c0_165 = arith.constant 0 : index
    %c0_166 = arith.constant 0 : index
    %177 = vector.load %arg10[%c3_164, %c0_165, %c0_166] : memref<9x24x1xf32, #tpu.memory_space<vmem>>, vector<1x24x1xf32>
    %178 = vector.shape_cast %177 : vector<1x24x1xf32> to vector<24x1xf32>
    %179 = vector.broadcast %178 : vector<24x1xf32> to vector<24x64xf32>
    %180 = arith.mulf %179, %176 : vector<24x64xf32>
    %181 = arith.addf %173, %180 : vector<24x64xf32>
    %c4_167 = arith.constant 4 : index
    %c0_168 = arith.constant 0 : index
    %c0_169 = arith.constant 0 : index
    %182 = vector.load %arg4[%c4_167, %c0_168, %c0_169] : memref<9x64x64xf32, #tpu.memory_space<vmem>>, vector<1x64x64xf32>
    %183 = vector.shape_cast %182 : vector<1x64x64xf32> to vector<64x64xf32>
    %cst_170 = arith.constant dense<0.000000e+00> : vector<24x64xf32>
    %184 = tpu.matmul %148, %183, %cst_170 {dimension_numbers = #tpu.dot_dimension_numbers<[1], [0], [0], [1], [0, 0, 1, 1], [], []>} : vector<24x64xf32>, vector<64x64xf32>, vector<24x64xf32> -> vector<24x64xf32>
    %c4_171 = arith.constant 4 : index
    %c0_172 = arith.constant 0 : index
    %c0_173 = arith.constant 0 : index
    %185 = vector.load %arg10[%c4_171, %c0_172, %c0_173] : memref<9x24x1xf32, #tpu.memory_space<vmem>>, vector<1x24x1xf32>
    %186 = vector.shape_cast %185 : vector<1x24x1xf32> to vector<24x1xf32>
    %187 = vector.broadcast %186 : vector<24x1xf32> to vector<24x64xf32>
    %188 = arith.mulf %187, %184 : vector<24x64xf32>
    %189 = arith.addf %181, %188 : vector<24x64xf32>
    %c5_174 = arith.constant 5 : index
    %c0_175 = arith.constant 0 : index
    %c0_176 = arith.constant 0 : index
    %190 = vector.load %arg4[%c5_174, %c0_175, %c0_176] : memref<9x64x64xf32, #tpu.memory_space<vmem>>, vector<1x64x64xf32>
    %191 = vector.shape_cast %190 : vector<1x64x64xf32> to vector<64x64xf32>
    %cst_177 = arith.constant dense<0.000000e+00> : vector<24x64xf32>
    %192 = tpu.matmul %148, %191, %cst_177 {dimension_numbers = #tpu.dot_dimension_numbers<[1], [0], [0], [1], [0, 0, 1, 1], [], []>} : vector<24x64xf32>, vector<64x64xf32>, vector<24x64xf32> -> vector<24x64xf32>
    %c5_178 = arith.constant 5 : index
    %c0_179 = arith.constant 0 : index
    %c0_180 = arith.constant 0 : index
    %193 = vector.load %arg10[%c5_178, %c0_179, %c0_180] : memref<9x24x1xf32, #tpu.memory_space<vmem>>, vector<1x24x1xf32>
    %194 = vector.shape_cast %193 : vector<1x24x1xf32> to vector<24x1xf32>
    %195 = vector.broadcast %194 : vector<24x1xf32> to vector<24x64xf32>
    %196 = arith.mulf %195, %192 : vector<24x64xf32>
    %197 = arith.addf %189, %196 : vector<24x64xf32>
    %c6_181 = arith.constant 6 : index
    %c0_182 = arith.constant 0 : index
    %c0_183 = arith.constant 0 : index
    %198 = vector.load %arg4[%c6_181, %c0_182, %c0_183] : memref<9x64x64xf32, #tpu.memory_space<vmem>>, vector<1x64x64xf32>
    %199 = vector.shape_cast %198 : vector<1x64x64xf32> to vector<64x64xf32>
    %cst_184 = arith.constant dense<0.000000e+00> : vector<24x64xf32>
    %200 = tpu.matmul %148, %199, %cst_184 {dimension_numbers = #tpu.dot_dimension_numbers<[1], [0], [0], [1], [0, 0, 1, 1], [], []>} : vector<24x64xf32>, vector<64x64xf32>, vector<24x64xf32> -> vector<24x64xf32>
    %c6_185 = arith.constant 6 : index
    %c0_186 = arith.constant 0 : index
    %c0_187 = arith.constant 0 : index
    %201 = vector.load %arg10[%c6_185, %c0_186, %c0_187] : memref<9x24x1xf32, #tpu.memory_space<vmem>>, vector<1x24x1xf32>
    %202 = vector.shape_cast %201 : vector<1x24x1xf32> to vector<24x1xf32>
    %203 = vector.broadcast %202 : vector<24x1xf32> to vector<24x64xf32>
    %204 = arith.mulf %203, %200 : vector<24x64xf32>
    %205 = arith.addf %197, %204 : vector<24x64xf32>
    %c7_188 = arith.constant 7 : index
    %c0_189 = arith.constant 0 : index
    %c0_190 = arith.constant 0 : index
    %206 = vector.load %arg4[%c7_188, %c0_189, %c0_190] : memref<9x64x64xf32, #tpu.memory_space<vmem>>, vector<1x64x64xf32>
    %207 = vector.shape_cast %206 : vector<1x64x64xf32> to vector<64x64xf32>
    %cst_191 = arith.constant dense<0.000000e+00> : vector<24x64xf32>
    %208 = tpu.matmul %148, %207, %cst_191 {dimension_numbers = #tpu.dot_dimension_numbers<[1], [0], [0], [1], [0, 0, 1, 1], [], []>} : vector<24x64xf32>, vector<64x64xf32>, vector<24x64xf32> -> vector<24x64xf32>
    %c7_192 = arith.constant 7 : index
    %c0_193 = arith.constant 0 : index
    %c0_194 = arith.constant 0 : index
    %209 = vector.load %arg10[%c7_192, %c0_193, %c0_194] : memref<9x24x1xf32, #tpu.memory_space<vmem>>, vector<1x24x1xf32>
    %210 = vector.shape_cast %209 : vector<1x24x1xf32> to vector<24x1xf32>
    %211 = vector.broadcast %210 : vector<24x1xf32> to vector<24x64xf32>
    %212 = arith.mulf %211, %208 : vector<24x64xf32>
    %213 = arith.addf %205, %212 : vector<24x64xf32>
    %c8_195 = arith.constant 8 : index
    %c0_196 = arith.constant 0 : index
    %c0_197 = arith.constant 0 : index
    %214 = vector.load %arg4[%c8_195, %c0_196, %c0_197] : memref<9x64x64xf32, #tpu.memory_space<vmem>>, vector<1x64x64xf32>
    %215 = vector.shape_cast %214 : vector<1x64x64xf32> to vector<64x64xf32>
    %cst_198 = arith.constant dense<0.000000e+00> : vector<24x64xf32>
    %216 = tpu.matmul %148, %215, %cst_198 {dimension_numbers = #tpu.dot_dimension_numbers<[1], [0], [0], [1], [0, 0, 1, 1], [], []>} : vector<24x64xf32>, vector<64x64xf32>, vector<24x64xf32> -> vector<24x64xf32>
    %c8_199 = arith.constant 8 : index
    %c0_200 = arith.constant 0 : index
    %c0_201 = arith.constant 0 : index
    %217 = vector.load %arg10[%c8_199, %c0_200, %c0_201] : memref<9x24x1xf32, #tpu.memory_space<vmem>>, vector<1x24x1xf32>
    %218 = vector.shape_cast %217 : vector<1x24x1xf32> to vector<24x1xf32>
    %219 = vector.broadcast %218 : vector<24x1xf32> to vector<24x64xf32>
    %220 = arith.mulf %219, %216 : vector<24x64xf32>
    %221 = arith.addf %213, %220 : vector<24x64xf32>
    %c0_202 = arith.constant 0 : index
    %c0_203 = arith.constant 0 : index
    %222 = vector.load %arg11[%c0_202, %c0_203] : memref<24x1xf32, #tpu.memory_space<vmem>>, vector<24x1xf32>
    %223 = vector.broadcast %222 : vector<24x1xf32> to vector<24x64xf32>
    %224 = arith.addf %221, %223 : vector<24x64xf32>
    %cst_204 = arith.constant 0.000000e+00 : f32
    %225 = vector.broadcast %cst_204 : f32 to vector<24x64xf32>
    %226 = arith.maximumf %224, %225 : vector<24x64xf32>
    %cst_205 = arith.constant 0.000000e+00 : f32
    %227 = vector.broadcast %cst_205 : f32 to vector<4x64xf32>
    %c0_206 = arith.constant 0 : index
    %c0_207 = arith.constant 0 : index
    %c0_208 = arith.constant 0 : index
    %228 = vector.load %arg3[%c0_206, %c0_207, %c0_208] : memref<9x256x64xf32, #tpu.memory_space<vmem>>, vector<1x256x64xf32>
    %229 = vector.shape_cast %228 : vector<1x256x64xf32> to vector<256x64xf32>
    %cst_209 = arith.constant dense<0.000000e+00> : vector<4x64xf32>
    %230 = tpu.matmul %1, %229, %cst_209 {dimension_numbers = #tpu.dot_dimension_numbers<[1], [0], [0], [1], [0, 0, 1, 1], [], []>} : vector<4x256xf32>, vector<256x64xf32>, vector<4x64xf32> -> vector<4x64xf32>
    %c0_210 = arith.constant 0 : index
    %c0_211 = arith.constant 0 : index
    %c0_212 = arith.constant 0 : index
    %231 = vector.load %arg12[%c0_210, %c0_211, %c0_212] : memref<9x4x1xf32, #tpu.memory_space<vmem>>, vector<1x4x1xf32>
    %232 = vector.shape_cast %231 : vector<1x4x1xf32> to vector<4x1xf32>
    %233 = vector.broadcast %232 : vector<4x1xf32> to vector<4x64xf32>
    %234 = arith.mulf %233, %230 : vector<4x64xf32>
    %235 = arith.addf %227, %234 : vector<4x64xf32>
    %c1_213 = arith.constant 1 : index
    %c0_214 = arith.constant 0 : index
    %c0_215 = arith.constant 0 : index
    %236 = vector.load %arg3[%c1_213, %c0_214, %c0_215] : memref<9x256x64xf32, #tpu.memory_space<vmem>>, vector<1x256x64xf32>
    %237 = vector.shape_cast %236 : vector<1x256x64xf32> to vector<256x64xf32>
    %cst_216 = arith.constant dense<0.000000e+00> : vector<4x64xf32>
    %238 = tpu.matmul %1, %237, %cst_216 {dimension_numbers = #tpu.dot_dimension_numbers<[1], [0], [0], [1], [0, 0, 1, 1], [], []>} : vector<4x256xf32>, vector<256x64xf32>, vector<4x64xf32> -> vector<4x64xf32>
    %c1_217 = arith.constant 1 : index
    %c0_218 = arith.constant 0 : index
    %c0_219 = arith.constant 0 : index
    %239 = vector.load %arg12[%c1_217, %c0_218, %c0_219] : memref<9x4x1xf32, #tpu.memory_space<vmem>>, vector<1x4x1xf32>
    %240 = vector.shape_cast %239 : vector<1x4x1xf32> to vector<4x1xf32>
    %241 = vector.broadcast %240 : vector<4x1xf32> to vector<4x64xf32>
    %242 = arith.mulf %241, %238 : vector<4x64xf32>
    %243 = arith.addf %235, %242 : vector<4x64xf32>
    %c2_220 = arith.constant 2 : index
    %c0_221 = arith.constant 0 : index
    %c0_222 = arith.constant 0 : index
    %244 = vector.load %arg3[%c2_220, %c0_221, %c0_222] : memref<9x256x64xf32, #tpu.memory_space<vmem>>, vector<1x256x64xf32>
    %245 = vector.shape_cast %244 : vector<1x256x64xf32> to vector<256x64xf32>
    %cst_223 = arith.constant dense<0.000000e+00> : vector<4x64xf32>
    %246 = tpu.matmul %1, %245, %cst_223 {dimension_numbers = #tpu.dot_dimension_numbers<[1], [0], [0], [1], [0, 0, 1, 1], [], []>} : vector<4x256xf32>, vector<256x64xf32>, vector<4x64xf32> -> vector<4x64xf32>
    %c2_224 = arith.constant 2 : index
    %c0_225 = arith.constant 0 : index
    %c0_226 = arith.constant 0 : index
    %247 = vector.load %arg12[%c2_224, %c0_225, %c0_226] : memref<9x4x1xf32, #tpu.memory_space<vmem>>, vector<1x4x1xf32>
    %248 = vector.shape_cast %247 : vector<1x4x1xf32> to vector<4x1xf32>
    %249 = vector.broadcast %248 : vector<4x1xf32> to vector<4x64xf32>
    %250 = arith.mulf %249, %246 : vector<4x64xf32>
    %251 = arith.addf %243, %250 : vector<4x64xf32>
    %c3_227 = arith.constant 3 : index
    %c0_228 = arith.constant 0 : index
    %c0_229 = arith.constant 0 : index
    %252 = vector.load %arg3[%c3_227, %c0_228, %c0_229] : memref<9x256x64xf32, #tpu.memory_space<vmem>>, vector<1x256x64xf32>
    %253 = vector.shape_cast %252 : vector<1x256x64xf32> to vector<256x64xf32>
    %cst_230 = arith.constant dense<0.000000e+00> : vector<4x64xf32>
    %254 = tpu.matmul %1, %253, %cst_230 {dimension_numbers = #tpu.dot_dimension_numbers<[1], [0], [0], [1], [0, 0, 1, 1], [], []>} : vector<4x256xf32>, vector<256x64xf32>, vector<4x64xf32> -> vector<4x64xf32>
    %c3_231 = arith.constant 3 : index
    %c0_232 = arith.constant 0 : index
    %c0_233 = arith.constant 0 : index
    %255 = vector.load %arg12[%c3_231, %c0_232, %c0_233] : memref<9x4x1xf32, #tpu.memory_space<vmem>>, vector<1x4x1xf32>
    %256 = vector.shape_cast %255 : vector<1x4x1xf32> to vector<4x1xf32>
    %257 = vector.broadcast %256 : vector<4x1xf32> to vector<4x64xf32>
    %258 = arith.mulf %257, %254 : vector<4x64xf32>
    %259 = arith.addf %251, %258 : vector<4x64xf32>
    %c4_234 = arith.constant 4 : index
    %c0_235 = arith.constant 0 : index
    %c0_236 = arith.constant 0 : index
    %260 = vector.load %arg3[%c4_234, %c0_235, %c0_236] : memref<9x256x64xf32, #tpu.memory_space<vmem>>, vector<1x256x64xf32>
    %261 = vector.shape_cast %260 : vector<1x256x64xf32> to vector<256x64xf32>
    %cst_237 = arith.constant dense<0.000000e+00> : vector<4x64xf32>
    %262 = tpu.matmul %1, %261, %cst_237 {dimension_numbers = #tpu.dot_dimension_numbers<[1], [0], [0], [1], [0, 0, 1, 1], [], []>} : vector<4x256xf32>, vector<256x64xf32>, vector<4x64xf32> -> vector<4x64xf32>
    %c4_238 = arith.constant 4 : index
    %c0_239 = arith.constant 0 : index
    %c0_240 = arith.constant 0 : index
    %263 = vector.load %arg12[%c4_238, %c0_239, %c0_240] : memref<9x4x1xf32, #tpu.memory_space<vmem>>, vector<1x4x1xf32>
    %264 = vector.shape_cast %263 : vector<1x4x1xf32> to vector<4x1xf32>
    %265 = vector.broadcast %264 : vector<4x1xf32> to vector<4x64xf32>
    %266 = arith.mulf %265, %262 : vector<4x64xf32>
    %267 = arith.addf %259, %266 : vector<4x64xf32>
    %c5_241 = arith.constant 5 : index
    %c0_242 = arith.constant 0 : index
    %c0_243 = arith.constant 0 : index
    %268 = vector.load %arg3[%c5_241, %c0_242, %c0_243] : memref<9x256x64xf32, #tpu.memory_space<vmem>>, vector<1x256x64xf32>
    %269 = vector.shape_cast %268 : vector<1x256x64xf32> to vector<256x64xf32>
    %cst_244 = arith.constant dense<0.000000e+00> : vector<4x64xf32>
    %270 = tpu.matmul %1, %269, %cst_244 {dimension_numbers = #tpu.dot_dimension_numbers<[1], [0], [0], [1], [0, 0, 1, 1], [], []>} : vector<4x256xf32>, vector<256x64xf32>, vector<4x64xf32> -> vector<4x64xf32>
    %c5_245 = arith.constant 5 : index
    %c0_246 = arith.constant 0 : index
    %c0_247 = arith.constant 0 : index
    %271 = vector.load %arg12[%c5_245, %c0_246, %c0_247] : memref<9x4x1xf32, #tpu.memory_space<vmem>>, vector<1x4x1xf32>
    %272 = vector.shape_cast %271 : vector<1x4x1xf32> to vector<4x1xf32>
    %273 = vector.broadcast %272 : vector<4x1xf32> to vector<4x64xf32>
    %274 = arith.mulf %273, %270 : vector<4x64xf32>
    %275 = arith.addf %267, %274 : vector<4x64xf32>
    %c6_248 = arith.constant 6 : index
    %c0_249 = arith.constant 0 : index
    %c0_250 = arith.constant 0 : index
    %276 = vector.load %arg3[%c6_248, %c0_249, %c0_250] : memref<9x256x64xf32, #tpu.memory_space<vmem>>, vector<1x256x64xf32>
    %277 = vector.shape_cast %276 : vector<1x256x64xf32> to vector<256x64xf32>
    %cst_251 = arith.constant dense<0.000000e+00> : vector<4x64xf32>
    %278 = tpu.matmul %1, %277, %cst_251 {dimension_numbers = #tpu.dot_dimension_numbers<[1], [0], [0], [1], [0, 0, 1, 1], [], []>} : vector<4x256xf32>, vector<256x64xf32>, vector<4x64xf32> -> vector<4x64xf32>
    %c6_252 = arith.constant 6 : index
    %c0_253 = arith.constant 0 : index
    %c0_254 = arith.constant 0 : index
    %279 = vector.load %arg12[%c6_252, %c0_253, %c0_254] : memref<9x4x1xf32, #tpu.memory_space<vmem>>, vector<1x4x1xf32>
    %280 = vector.shape_cast %279 : vector<1x4x1xf32> to vector<4x1xf32>
    %281 = vector.broadcast %280 : vector<4x1xf32> to vector<4x64xf32>
    %282 = arith.mulf %281, %278 : vector<4x64xf32>
    %283 = arith.addf %275, %282 : vector<4x64xf32>
    %c7_255 = arith.constant 7 : index
    %c0_256 = arith.constant 0 : index
    %c0_257 = arith.constant 0 : index
    %284 = vector.load %arg3[%c7_255, %c0_256, %c0_257] : memref<9x256x64xf32, #tpu.memory_space<vmem>>, vector<1x256x64xf32>
    %285 = vector.shape_cast %284 : vector<1x256x64xf32> to vector<256x64xf32>
    %cst_258 = arith.constant dense<0.000000e+00> : vector<4x64xf32>
    %286 = tpu.matmul %1, %285, %cst_258 {dimension_numbers = #tpu.dot_dimension_numbers<[1], [0], [0], [1], [0, 0, 1, 1], [], []>} : vector<4x256xf32>, vector<256x64xf32>, vector<4x64xf32> -> vector<4x64xf32>
    %c7_259 = arith.constant 7 : index
    %c0_260 = arith.constant 0 : index
    %c0_261 = arith.constant 0 : index
    %287 = vector.load %arg12[%c7_259, %c0_260, %c0_261] : memref<9x4x1xf32, #tpu.memory_space<vmem>>, vector<1x4x1xf32>
    %288 = vector.shape_cast %287 : vector<1x4x1xf32> to vector<4x1xf32>
    %289 = vector.broadcast %288 : vector<4x1xf32> to vector<4x64xf32>
    %290 = arith.mulf %289, %286 : vector<4x64xf32>
    %291 = arith.addf %283, %290 : vector<4x64xf32>
    %c8_262 = arith.constant 8 : index
    %c0_263 = arith.constant 0 : index
    %c0_264 = arith.constant 0 : index
    %292 = vector.load %arg3[%c8_262, %c0_263, %c0_264] : memref<9x256x64xf32, #tpu.memory_space<vmem>>, vector<1x256x64xf32>
    %293 = vector.shape_cast %292 : vector<1x256x64xf32> to vector<256x64xf32>
    %cst_265 = arith.constant dense<0.000000e+00> : vector<4x64xf32>
    %294 = tpu.matmul %1, %293, %cst_265 {dimension_numbers = #tpu.dot_dimension_numbers<[1], [0], [0], [1], [0, 0, 1, 1], [], []>} : vector<4x256xf32>, vector<256x64xf32>, vector<4x64xf32> -> vector<4x64xf32>
    %c8_266 = arith.constant 8 : index
    %c0_267 = arith.constant 0 : index
    %c0_268 = arith.constant 0 : index
    %295 = vector.load %arg12[%c8_266, %c0_267, %c0_268] : memref<9x4x1xf32, #tpu.memory_space<vmem>>, vector<1x4x1xf32>
    %296 = vector.shape_cast %295 : vector<1x4x1xf32> to vector<4x1xf32>
    %297 = vector.broadcast %296 : vector<4x1xf32> to vector<4x64xf32>
    %298 = arith.mulf %297, %294 : vector<4x64xf32>
    %299 = arith.addf %291, %298 : vector<4x64xf32>
    %c0_269 = arith.constant 0 : index
    %c0_270 = arith.constant 0 : index
    %300 = vector.load %arg13[%c0_269, %c0_270] : memref<4x1xf32, #tpu.memory_space<vmem>>, vector<4x1xf32>
    %301 = vector.broadcast %300 : vector<4x1xf32> to vector<4x64xf32>
    %302 = arith.addf %299, %301 : vector<4x64xf32>
    %c0_271 = arith.constant 0 : index
    %c0_272 = arith.constant 0 : index
    %303 = vector.load %arg14[%c0_271, %c0_272] : memref<8x24xf32, #tpu.memory_space<vmem>>, vector<8x24xf32>
    %cst_273 = arith.constant dense<0.000000e+00> : vector<8x64xf32>
    %304 = tpu.matmul %303, %226, %cst_273 {dimension_numbers = #tpu.dot_dimension_numbers<[1], [0], [0], [1], [0, 0, 1, 1], [], []>} : vector<8x24xf32>, vector<24x64xf32>, vector<8x64xf32> -> vector<8x64xf32>
    %c0_274 = arith.constant 0 : index
    %c0_275 = arith.constant 0 : index
    %305 = vector.load %arg15[%c0_274, %c0_275] : memref<8x4xf32, #tpu.memory_space<vmem>>, vector<8x4xf32>
    %cst_276 = arith.constant dense<0.000000e+00> : vector<8x64xf32>
    %306 = tpu.matmul %305, %302, %cst_276 {dimension_numbers = #tpu.dot_dimension_numbers<[1], [0], [0], [1], [0, 0, 1, 1], [], []>} : vector<8x4xf32>, vector<4x64xf32>, vector<8x64xf32> -> vector<8x64xf32>
    %307 = arith.addf %304, %306 : vector<8x64xf32>
    %c0_277 = arith.constant 0 : index
    %c0_278 = arith.constant 0 : index
    %308 = vector.load %arg16[%c0_277, %c0_278] : memref<8x1xf32, #tpu.memory_space<vmem>>, vector<8x1xf32>
    %309 = vector.broadcast %308 : vector<8x1xf32> to vector<8x64xf32>
    %310 = arith.addf %307, %309 : vector<8x64xf32>
    %cst_279 = arith.constant 0.000000e+00 : f32
    %311 = vector.broadcast %cst_279 : f32 to vector<8x64xf32>
    %312 = arith.maximumf %310, %311 : vector<8x64xf32>
    %c0_280 = arith.constant 0 : index
    %c0_281 = arith.constant 0 : index
    %c0_282 = arith.constant 0 : index
    %313 = vector.load %arg17[%c0_280, %c0_281, %c0_282] : memref<1x8x64xf32, #tpu.memory_space<vmem>>, vector<1x8x64xf32>
    %314 = vector.shape_cast %313 : vector<1x8x64xf32> to vector<8x64xf32>
    %315 = vector.shape_cast %312 : vector<8x64xf32> to vector<1x8x64xf32>
    tpu.vector_store %arg17[%c0_280, %c0_281, %c0_282], %315 {strides = array<i32>} : memref<1x8x64xf32, #tpu.memory_space<vmem>>, vector<1x8x64xf32>,
    return
  }
  func.func @transform_0(%arg0: i32) -> (i32, i32, i32) {
    %c0_i32 = arith.constant 0 : i32
    %c0_i32_0 = arith.constant 0 : i32
    %c0_i32_1 = arith.constant 0 : i32
    return %arg0, %c0_i32, %c0_i32_0 : i32, i32, i32
  }
  func.func @transform_1(%arg0: i32) -> (i32, i32, i32) {
    %c0_i32 = arith.constant 0 : i32
    %c0_i32_0 = arith.constant 0 : i32
    %c0_i32_1 = arith.constant 0 : i32
    %c0_i32_2 = arith.constant 0 : i32
    return %c0_i32, %c0_i32_0, %c0_i32_1 : i32, i32, i32
  }
  func.func @transform_2(%arg0: i32) -> (i32, i32, i32) {
    %c0_i32 = arith.constant 0 : i32
    %c0_i32_0 = arith.constant 0 : i32
    %c0_i32_1 = arith.constant 0 : i32
    %c0_i32_2 = arith.constant 0 : i32
    return %c0_i32, %c0_i32_0, %c0_i32_1 : i32, i32, i32
  }
  func.func @transform_3(%arg0: i32) -> (i32, i32, i32) {
    %c0_i32 = arith.constant 0 : i32
    %c0_i32_0 = arith.constant 0 : i32
    %c0_i32_1 = arith.constant 0 : i32
    %c0_i32_2 = arith.constant 0 : i32
    return %c0_i32, %c0_i32_0, %c0_i32_1 : i32, i32, i32
  }
  func.func @transform_4(%arg0: i32) -> (i32, i32) {
    %c0_i32 = arith.constant 0 : i32
    %c0_i32_0 = arith.constant 0 : i32
    %c0_i32_1 = arith.constant 0 : i32
    return %c0_i32, %c0_i32_0 : i32, i32
  }
  func.func @transform_5(%arg0: i32) -> (i32, i32, i32) {
    %c0_i32 = arith.constant 0 : i32
    %c0_i32_0 = arith.constant 0 : i32
    %c0_i32_1 = arith.constant 0 : i32
    %c0_i32_2 = arith.constant 0 : i32
    return %c0_i32, %c0_i32_0, %c0_i32_1 : i32, i32, i32
  }
  func.func @transform_6(%arg0: i32) -> (i32, i32) {
    %c0_i32 = arith.constant 0 : i32
    %c0_i32_0 = arith.constant 0 : i32
    %c0_i32_1 = arith.constant 0 : i32
    return %c0_i32, %c0_i32_0 : i32, i32
  }
  func.func @transform_7(%arg0: i32) -> (i32, i32, i32) {
    %c0_i32 = arith.constant 0 : i32
    %c0_i32_0 = arith.constant 0 : i32
    %c0_i32_1 = arith.constant 0 : i32
    %c0_i32_2 = arith.constant 0 : i32
    return %c0_i32, %c0_i32_0, %c0_i32_1 : i32, i32, i32
  }
  func.func @transform_8(%arg0: i32) -> (i32, i32) {
    %c0_i32 = arith.constant 0 : i32
    %c0_i32_0 = arith.constant 0 : i32
    %c0_i32_1 = arith.constant 0 : i32
    return %c0_i32, %c0_i32_0 : i32, i32
  }
  func.func @transform_9(%arg0: i32) -> (i32, i32, i32) {
    %c0_i32 = arith.constant 0 : i32
    %c0_i32_0 = arith.constant 0 : i32
    %c0_i32_1 = arith.constant 0 : i32
    %c0_i32_2 = arith.constant 0 : i32
    return %c0_i32, %c0_i32_0, %c0_i32_1 : i32, i32, i32
  }
  func.func @transform_10(%arg0: i32) -> (i32, i32) {
    %c0_i32 = arith.constant 0 : i32
    %c0_i32_0 = arith.constant 0 : i32
    %c0_i32_1 = arith.constant 0 : i32
    return %c0_i32, %c0_i32_0 : i32, i32
  }
  func.func @transform_11(%arg0: i32) -> (i32, i32, i32) {
    %c0_i32 = arith.constant 0 : i32
    %c0_i32_0 = arith.constant 0 : i32
    %c0_i32_1 = arith.constant 0 : i32
    %c0_i32_2 = arith.constant 0 : i32
    return %c0_i32, %c0_i32_0, %c0_i32_1 : i32, i32, i32
  }
  func.func @transform_12(%arg0: i32) -> (i32, i32) {
    %c0_i32 = arith.constant 0 : i32
    %c0_i32_0 = arith.constant 0 : i32
    %c0_i32_1 = arith.constant 0 : i32
    return %c0_i32, %c0_i32_0 : i32, i32
  }
  func.func @transform_13(%arg0: i32) -> (i32, i32) {
    %c0_i32 = arith.constant 0 : i32
    %c0_i32_0 = arith.constant 0 : i32
    %c0_i32_1 = arith.constant 0 : i32
    return %c0_i32, %c0_i32_0 : i32, i32
  }
  func.func @transform_14(%arg0: i32) -> (i32, i32) {
    %c0_i32 = arith.constant 0 : i32
    %c0_i32_0 = arith.constant 0 : i32
    %c0_i32_1 = arith.constant 0 : i32
    return %c0_i32, %c0_i32_0 : i32, i32
  }
  func.func @transform_15(%arg0: i32) -> (i32, i32) {
    %c0_i32 = arith.constant 0 : i32
    %c0_i32_0 = arith.constant 0 : i32
    %c0_i32_1 = arith.constant 0 : i32
    return %c0_i32, %c0_i32_0 : i32, i32
  }
  func.func @transform_16(%arg0: i32) -> (i32, i32, i32) {
    %c0_i32 = arith.constant 0 : i32
    %c0_i32_0 = arith.constant 0 : i32
    %c0_i32_1 = arith.constant 0 : i32
    return %arg0, %c0_i32, %c0_i32_0 : i32, i32, i32
  }
}

</mosaic_0001>

<bundles_post_ra>
// kernel: tpu_custom_call.1
= control target key start
LH: loop header
LB: loop body
LE: loop exit
PB: predicated region body
PF: predicated region fallthrough
CT: control target
= control target key end

     0   :  { %s8659_s0 = inlined_call_operand.hbm [shape: f32[2,4,256], index: 0, kind: input, shape index: {}]   ;;  %s8660_s1 = inlined_call_operand.hbm [shape: f32[9,256,256], index: 1, kind: input, shape index: {}]   ;;  %s8661_s2 = inlined_call_operand.vmem [shape: f32[9,256,64], index: 2, kind: input, shape index: {}]   ;;  %s8662_s3 = inlined_call_operand.hbm [shape: f32[9,64,64], index: 3, kind: input, shape index: {}]   ;;  %s8663_s4 = inlined_call_operand.vmem [shape: f32[24,4], index: 4, kind: input, shape index: {}]   ;;  %s8664_s5 = inlined_call_operand.vmem [shape: f32[9,4,4], index: 5, kind: input, shape index: {}]   ;;  %s8665_s6 = inlined_call_operand.vmem [shape: f32[4,1], index: 6, kind: input, shape index: {}]   ;;  %s8666_s7 = inlined_call_operand.vmem [shape: f32[9,24,1], index: 7, kind: input, shape index: {}]   ;;  %s8667_s8 = inlined_call_operand.vmem [shape: f32[24,1], index: 8, kind: input, shape index: {}]   ;;  %s8668_s9 = inlined_call_operand.vmem [shape: f32[9,24,1], index: 9, kind: input, shape index: {}]   ;;  %s8669_s10 = inlined_call_operand.vmem [shape: f32[24,1], index: 10, kind: input, shape index: {}]   ;;  %s8670_s11 = inlined_call_operand.vmem [shape: f32[9,4,1], index: 11, kind: input, shape index: {}]   ;;  %s8671_s12 = inlined_call_operand.vmem [shape: f32[4,1], index: 12, kind: input, shape index: {}]   ;;  %s8672_s13 = inlined_call_operand.hbm [shape: f32[8,24], index: 13, kind: input, shape index: {}]   ;;  %s8673_s14 = inlined_call_operand.vmem [shape: f32[8,4], index: 14, kind: input, shape index: {}]   ;;  %s8674_s15 = inlined_call_operand.vmem [shape: f32[8,1], index: 15, kind: input, shape index: {}]   ;;  %s8675_s16 = inlined_call_operand.hbm [shape: f32[2,8,64], index: 16, kind: output, shape index: {}]  }
   0x1   :  { %8684 = sst [smem:[#allocation23_spill]] %s8659_s0 }
   0x2   :  { %8685 = sst [smem:[#allocation24_spill]] %s8660_s1 }
   0x3   :  { %8686 = sst [smem:[#allocation25_spill]] %s8662_s3 }
   0x4   :  { %8687 = sst [smem:[#allocation26_spill]] %s8672_s13 }
   0x5   :  { %8688 = sst [smem:[#allocation27_spill]] %s8673_s14 }
   0x6   :  { %8689 = sst [smem:[#allocation28_spill]] %s8674_s15 }
   0x7   :  { %8690 = sst [smem:[#allocation29_spill]] %s8675_s16 }
   0x8   :  { %21 = vsyncpa [#allocation3], 0 }
   0x9   :  { %23 = vsyncpa [#allocation3 + $0x1], 0 }
   0xa   :  { %24 = vsyncpa [#allocation6], 0 }
   0xb   :  { %25 = vsyncpa [#allocation9], 0 }
   0xc   :  { %26 = vsyncpa [#allocation4], 0 }
   0xd   :  { %28 = vsyncpa [#allocation4 + $0x1], 0  ;;  %s5818_s21 = smov 0   ;;  %s5820_s22 = smov 0  }
   0xe   :  { %s5822_s23 = smov 0   ;;  %s5824_s24 = smov 0  }
   0xf LB: > { %8691 = sst [smem:[#allocation15_spill]] %s5719_s23  ;;  %s5842_s28 = sadd.s32 4294967295, %s5723_s24   ;;  %s5723_s24 = sphi %s5824_s24, %s8718_s24   ;;  %s5719_s23 = sphi %s5822_s23, %s8720_s23   ;;  %s5715_s22 = sphi %s5820_s22, %s8722_s22   ;;  %s5711_s21 = sphi %s5818_s21, %s8721_s21  }
  0x10   : > { %s8692_s1 = sld [smem:[#allocation24_spill]]  ;;  %p4743_p0 = scmp.ge.s32.totalorder %s5723_s24, 1 }
  0x11   : > { %p55_p1 = scmp.eq.s32.totalorder %s5842_s28, 0  ;;  %p406_p2 = scmp.lt.s32.totalorder %s5723_s24, 3 }
  0x12   : > { %s5725_s30 = smov [#allocation5]   ;;  %s8694_s3 = sld [smem:[#allocation25_spill]] }
  0x13   : > { %p5847_p3 = pnand %p4743_p0, %p406_p2  ;;  %s419_s0 = sshll.u32 %s5725_s30, 4  ;;  %s420_s0 = int_to_ptr.vmem [resolvable:$true] %s419_s0 }
  0x14   : > { %s5726_s25 = smov [#allocation7]   ;;  %s5727_s30 = smov 256  }
  0x15   : > { %p5172_p4 = pneg %p5847_p3  ;;  %s436_s26 = sshll.u32 %s5726_s25, 4  ;;  %s437_s26 = int_to_ptr.vmem [resolvable:$true] %s436_s26 }
  0x16   : > { %s417_s27 = sshll.u32 %s8692_s1, 4  ;;  %s5728_s1 = smov 16   ;;  %s418_s27 = int_to_ptr.hbm [resolvable:$true] %s417_s27 }
  0x17   : > { %p5859_p6 = pnand %p5172_p4, %p55_p1  ;;  %s5729_s17 = smov 128  }
  0x18   : > { %s434_s19 = sshll.u32 %s8694_s3, 4  ;;  %s5730_s18 = smov 8   ;;  %s435_s19 = int_to_ptr.hbm [resolvable:$true] %s434_s19 }
  0x19   : > { %5175 = dma.hbm_to_vmem [thread:$0]  (!%p5859_p6), %s418_s27, 73728, %s420_s0, [#allocation6], %s5727_s30, %s5727_s30, %s5728_s1  }
  0x1a   : > { %5178 = dma.hbm_to_vmem [thread:$0]  (!%p5859_p6), %s435_s19, 9216, %s437_s26, [#allocation6], %s5729_s17, %s5729_s17, %s5730_s18  }
  0x1b   : > { %s8696_s13 = sld [smem:[#allocation26_spill]]  ;;  %s5731_s14 = smov [#allocation8]  }
  0x1c   : > { %s478_s15 = sshll.u32 %s5731_s14, 4  ;;  %s4742_s1 = sadd.s32 4294967294, %s5723_s24   ;;  %s479_s15 = int_to_ptr.vmem [resolvable:$true] %s478_s15 }
  0x1d   : > { %s5874_s27 = sadd.s32 1, %s5723_s24   ;;  %s41_s0 = sadd.s32 1, %s5719_s23 }
  0x1e   : > { %8697 = sst [smem:[#allocation16_spill]] %s5874_s27  ;;  %s38_s19 = ssub.s32 %s5723_s24, %s5874_s27 }
  0x1f   : > { %p48_p7 = scmp.ne.s32.totalorder %s5719_s23, %s5715_s22  ;;  %p39_p8 = scmp.eq.s32.totalorder %s38_s19, 0 }
  0x20   : > { %p49_p9 = scmp.eq.s32.totalorder %s5723_s24, 0  ;;  %p54_p10 = scmp.ne.s32.totalorder %s5715_s22, %s5711_s21 }
  0x21   : > { %s476_s25 = sshll.u32 %s8696_s13, 4  ;;  %p393_p11 = scmp.eq.s32.totalorder %s5842_s28, 1  ;;  %s477_s25 = int_to_ptr.hbm [resolvable:$true] %s476_s25 }
  0x22   : > { %5181 = dma.hbm_to_vmem [thread:$0]  (!%p5859_p6), %s477_s25, 128, %s479_s15, [#allocation9]  }
  0x23   : > { %s5886_s3 = scalar_select %p39_p8, %s5719_s23, %s41_s0  }
  0x24   : > { %p5890_p12 = por %p55_p1, %p54_p10  ;;  %p5894_p13 = por %p393_p11, %p48_p7 }
  0x25   : > { %8698 = sst [smem:[#allocation17_spill]] %s5886_s3  ;;  %p399_p0 = scmp.eq.s32.totalorder %s4742_s1, 1 }
  0x26   : > { %p50_p2 = por %p49_p9, %p48_p7  ;;  %s495_s16 = sand.u32 1, %s5719_s23  }
  0x27   : > { %p5899_p4 = por %p399_p0, %p54_p10  ;;  %p5193_p6 = scmp.lt.s32.totalorder %s5723_s24, 2 }
  0x28   : > { %s4748_s26 = sshll.u32 %s495_s16, 3  ;;  %s5155_s30 = sshll.u32 %s5723_s24, 3 }
  0x29   : > { %s8701_s20 = scalar_select %p5899_p4, 1, 0 }
  0x2a   : > { %s8703_s25 = sld [smem:[#allocation23_spill]]  ;;  %s499_s13 = scalar_lea.vmem [#allocation2], %s4748_s26 }
  0x2b   : > { %8702 = sst [smem:[#allocation18_spill]] %s8701_s20  ;;  %s508_s3 = sshll.u32 %s499_s13, 4  ;;  %s509_s3 = int_to_ptr.vmem [resolvable:$true] %s508_s3 }
  0x2c   : > { %p5908_p8 = pnand %p5193_p6, %p50_p2  ;;  %s496_s23 = scalar_lea.sflag [#allocation3], %s495_s16 }
  0x2e   : > { %p5623_p9 = pneg %p5908_p8 }
  0x30   : > { %s504_s0 = scalar_lea.hbm %s8703_s25, %s5155_s30  ;;  %s5626_s13 = scalar_lea.hbm %s8703_s25, 16 }
  0x31   : > { %s506_s19 = sshll.u32 %s504_s0, 4  ;;  %s507_s19 = int_to_ptr.hbm [resolvable:$true] %s506_s19 }
  0x32   : > { %s5619_s27 = sshra.s32 %s507_s19, 4  ;;  %s5620_s27 = int_to_ptr.hbm [resolvable:$true] %s5619_s27 }
  0x33   : > { %s5621_s20 = scalar_lea.hbm %s5620_s27, 8  ;;  %p5627_p0 = scmp.lt.s32.totalorder %s5620_s27, %s8703_s25 }
  0x34   : > { %p5622_p7 = scmp.ne.s32.totalorder %s5620_s27, %s5621_s20  ;;  %p5628_p2 = scmp.lt.s32.totalorder %s5626_s13, %s5621_s20 }
  0x36   : > { %p5624_p10 = pnand %p5623_p9, %p5622_p7  ;;  %p5629_p6 = por %p5628_p2, %p5627_p0 }
  0x38   : > { %p5625_p11 = pneg %p5624_p10 }
  0x3a   : > { %p5630_p5 = pnand %p5629_p6, %p5625_p11 }
  0x3c   : > { %5633 = shalt.err (!%p5630_p5)
}
  0x3d   : > { %5185 = dma.hbm_to_vmem [thread:$0]  (!%p5908_p8), %s507_s19, 128, %s509_s3, %s496_s23  }
  0x3e   : > { %517 = sbr.rel (%p5847_p3) target bundleno = 2384 (0x950), region = 84 }
  0x43   : > { %s5925_s16 = sand.u32 1, %s5715_s22  }
  0x44   : > { %s4752_s0 = sshll.u32 %s5925_s16, 3  ;;  %s520_s30 = scalar_lea.sflag [#allocation3], %s5925_s16 }
  0x45   : > { %s5931_s27 = scalar_lea.vmem [#allocation2], %s4752_s0 }
  0x46   : > { %5694 = dma.done.wait (%p5890_p12), %s520_s30, 128  }
  0x47   : > { %5696 = vsyncadd (%p5890_p12), %s520_s30, 4294967168 }
  0x48   : > { %5698 = dma.done.wait (%p55_p1), [#allocation6], 82944  }
  0x49   : > { %5700 = vsyncadd (%p55_p1), [#allocation6], 4294884352 }
  0x4a   : > { %5702 = dma.done.wait (%p55_p1), [#allocation9], 128  }
  0x4b   : > { %5704 = vsyncadd (%p55_p1), [#allocation9], 4294967168  ;;  %v620_v0 = vld [vmem:[#allocation5 + $0xf8] sm:$0xff]  ;;  %v618_v2 = vld [vmem:[#allocation5 + $0xe8] sm:$0xff]  ;;  %vm896_vm0 = vcmask 1043456   ;;  %vm892_vm1 = vcmask 31744  }
  0x4c   : > { %v652_v1 = vld [vmem:[#allocation5 + $0x1f8] sm:$0xff]  ;;  %699 = vmatpush.msra.mxu2 %v620_v0  ;;  %v650_v3 = vld [vmem:[#allocation5 + $0x1e8] sm:$0xff]  ;;  %v619_v6 = vld [vmem:[#allocation5 + $0xf0] sm:$0xff]  ;;  %vm3510_vm2 = vcmask 523264   ;;  %vm4594_vm3 = vcmask 195584   ;;  %s8714_s18 = sld [smem:[#allocation27_spill]] }
  0x4d   : > { %719 = vmatpush.msra.mxu3 %v652_v1  ;;  %v616_v4 = vld [vmem:[#allocation5 + $0xd8] sm:$0xff]  ;;  %v651_v7 = vld [vmem:[#allocation5 + $0x1f0] sm:$0xff]  ;;  %v617_v8 = vld [vmem:[#allocation5 + $0xe0] sm:$0xff]  ;;  %659 = vmatpush.msra.mxu0 %v619_v6  ;;  %s5152_s30 = sshll.u32 %s5842_s28, 3  ;;  %s8715_s29 = sld [smem:[#allocation29_spill]] }
  0x4e   : > { %v648_v5 = vld [vmem:[#allocation5 + $0x1d8] sm:$0xff]  ;;  %700 = vmatpush.msra.mxu2 %v618_v2  ;;  %v649_v9 = vld [vmem:[#allocation5 + $0x1e0] sm:$0xff]  ;;  %679 = vmatpush.msra.mxu1 %v651_v7  ;;  %v614_v10 = vld [vmem:[#allocation5 + $0xc8] sm:$0xff]  ;;  %s587_s14 = scalar_lea.vmem [#allocation10], %s4752_s0  ;;  %s4628_s28 = scalar_lea.sflag [#allocation4], %s5925_s16 }
  0x4f   : > { %720 = vmatpush.msra.mxu3 %v650_v3  ;;  %v646_v11 = vld [vmem:[#allocation5 + $0x1c8] sm:$0xff]  ;;  %v615_v12 = vld [vmem:[#allocation5 + $0xd0] sm:$0xff]  ;;  %660 = vmatpush.msra.mxu0 %v617_v8  ;;  %v612_v14 = vld [vmem:[#allocation5 + $0xb8] sm:$0xff]  ;;  %s4640_s20 = sshll.u32 %s587_s14, 4  ;;  %s4641_s20 = int_to_ptr.vmem [resolvable:$true] %s4640_s20 }
  0x50   : > { %701 = vmatpush.msra.mxu2 %v616_v4  ;;  %v647_v13 = vld [vmem:[#allocation5 + $0x1d0] sm:$0xff]  ;;  %680 = vmatpush.msra.mxu1 %v649_v9  ;;  %v644_v15 = vld [vmem:[#allocation5 + $0x1b8] sm:$0xff]  ;;  %v613_v16 = vld [vmem:[#allocation5 + $0xc0] sm:$0xff] }
  0x51   : > { %721 = vmatpush.msra.mxu3 %v648_v5  ;;  %v645_v17 = vld [vmem:[#allocation5 + $0x1c0] sm:$0xff]  ;;  %661 = vmatpush.msra.mxu0 %v615_v12  ;;  %v610_v18 = vld [vmem:[#allocation5 + $0xa8] sm:$0xff]  ;;  %v611_v20 = vld [vmem:[#allocation5 + $0xb0] sm:$0xff] }
  0x52   : > { %702 = vmatpush.msra.mxu2 %v614_v10  ;;  %681 = vmatpush.msra.mxu1 %v647_v13  ;;  %v642_v19 = vld [vmem:[#allocation5 + $0x1a8] sm:$0xff]  ;;  %v643_v21 = vld [vmem:[#allocation5 + $0x1b0] sm:$0xff]  ;;  %v608_v22 = vld [vmem:[#allocation5 + $0x98] sm:$0xff] }
  0x53   : > { %722 = vmatpush.msra.mxu3 %v646_v11  ;;  %662 = vmatpush.msra.mxu0 %v613_v16  ;;  %v640_v23 = vld [vmem:[#allocation5 + $0x198] sm:$0xff]  ;;  %v609_v24 = vld [vmem:[#allocation5 + $0xa0] sm:$0xff]  ;;  %v606_v26 = vld [vmem:[#allocation5 + $0x88] sm:$0xff]  ;;  %s4638_s3 = scalar_lea.hbm %s8715_s29, %s5152_s30  ;;  %s5669_s0 = scalar_lea.hbm %s8715_s29, 16 }
  0x54   : > { %703 = vmatpush.msra.mxu2 %v612_v14  ;;  %682 = vmatpush.msra.mxu1 %v645_v17  ;;  %v641_v25 = vld [vmem:[#allocation5 + $0x1a0] sm:$0xff]  ;;  %v638_v27 = vld [vmem:[#allocation5 + $0x188] sm:$0xff]  ;;  %v607_v28 = vld [vmem:[#allocation5 + $0x90] sm:$0xff]  ;;  %s4642_s19 = sshll.u32 %s4638_s3, 4  ;;  %s4643_s19 = int_to_ptr.hbm [resolvable:$true] %s4642_s19 }
  0x55   : > { %723 = vmatpush.msra.mxu3 %v644_v15  ;;  %663 = vmatpush.msra.mxu0 %v611_v20  ;;  %v639_v29 = vld [vmem:[#allocation5 + $0x190] sm:$0xff]  ;;  %v604_v30 = vld [vmem:[#allocation5 + $0x78] sm:$0xff]  ;;  %v605_v32 = vld [vmem:[#allocation5 + $0x80] sm:$0xff]  ;;  %s5663_s1 = sshra.s32 %s4643_s19, 4  ;;  %s5664_s1 = int_to_ptr.hbm [resolvable:$true] %s5663_s1 }
  0x56   : > { %704 = vmatpush.msra.mxu2 %v610_v18  ;;  %683 = vmatpush.msra.mxu1 %v643_v21  ;;  %v636_v31 = vld [vmem:[#allocation5 + $0x178] sm:$0xff]  ;;  %v637_v33 = vld [vmem:[#allocation5 + $0x180] sm:$0xff]  ;;  %v602_v34 = vld [vmem:[#allocation5 + $0x68] sm:$0xff]  ;;  %s5665_s17 = scalar_lea.hbm %s5664_s1, 8  ;;  %p5670_p12 = scmp.lt.s32.totalorder %s5664_s1, %s8715_s29 }
  0x57   : > { %724 = vmatpush.msra.mxu3 %v642_v19  ;;  %664 = vmatpush.msra.mxu0 %v609_v24  ;;  %v634_v35 = vld [vmem:[#allocation5 + $0x168] sm:$0xff]  ;;  %v603_v36 = vld [vmem:[#allocation5 + $0x70] sm:$0xff]  ;;  %v600_v38 = vld [vmem:[#allocation5 + $0x58] sm:$0xff]  ;;  %p5666_p1 = scmp.ne.s32.totalorder %s5664_s1, %s5665_s17  ;;  %p5671_p8 = scmp.lt.s32.totalorder %s5669_s0, %s5665_s17 }
  0x58   : > { %705 = vmatpush.msra.mxu2 %v608_v22  ;;  %684 = vmatpush.msra.mxu1 %v641_v25  ;;  %v635_v37 = vld [vmem:[#allocation5 + $0x170] sm:$0xff]  ;;  %v632_v39 = vld [vmem:[#allocation5 + $0x158] sm:$0xff]  ;;  %v601_v40 = vld [vmem:[#allocation5 + $0x60] sm:$0xff] }
  0x59   : > { %725 = vmatpush.msra.mxu3 %v640_v23  ;;  %665 = vmatpush.msra.mxu0 %v607_v28  ;;  %v633_v41 = vld [vmem:[#allocation5 + $0x160] sm:$0xff]  ;;  %v598_v42 = vld [vmem:[#allocation5 + $0x48] sm:$0xff]  ;;  %v5946_v44 = vld [vmem:[%s5931_s27] sm:$0xff]  ;;  %s8706_s27 = sld [smem:[#allocation28_spill]]  ;;  %p5667_p3 = pnand %p5666_p1, %p5894_p13 }
  0x5a   : > { %706 = vmatpush.msra.mxu2 %v606_v26  ;;  %685 = vmatpush.msra.mxu1 %v639_v29  ;;  %v630_v43 = vld [vmem:[#allocation5 + $0x148] sm:$0xff]  ;;  %8705 = vst [vmem:[#allocation19_spill] sm:$0xff] %v5946_v44  ;;  %v599_v45 = vld [vmem:[#allocation5 + $0x50] sm:$0xff]  ;;  %v596_v47 = vld [vmem:[#allocation5 + $0x38] sm:$0xff]  ;;  %p5672_p7 = por %p5671_p8, %p5670_p12 }
  0x5b   : > { %726 = vmatpush.msra.mxu3 %v638_v27  ;;  %666 = vmatpush.msra.mxu0 %v605_v32  ;;  %v631_v46 = vld [vmem:[#allocation5 + $0x150] sm:$0xff]  ;;  %654 = vst [vmem:[#allocation1] ss:$2 sm:$0xff] %v5946_v44  ;;  %v628_v48 = vld [vmem:[#allocation5 + $0x138] sm:$0xff]  ;;  %v597_v49 = vld [vmem:[#allocation5 + $0x40] sm:$0xff]  ;;  %p5668_p5 = pneg %p5667_p3 }
  0x5c   : > { %707 = vmatpush.msra.mxu2 %v604_v30  ;;  %686 = vmatpush.msra.mxu1 %v637_v33  ;;  %v629_v50 = vld [vmem:[#allocation5 + $0x140] sm:$0xff]  ;;  %v594_v51 = vld [vmem:[#allocation5 + $0x28] sm:$0xff]  ;;  %v595_v53 = vld [vmem:[#allocation5 + $0x30] sm:$0xff] }
  0x5d   : > { %727 = vmatpush.msra.mxu3 %v636_v31  ;;  %667 = vmatpush.msra.mxu0 %v603_v36  ;;  %v626_v52 = vld [vmem:[#allocation5 + $0x128] sm:$0xff]  ;;  %v627_v54 = vld [vmem:[#allocation5 + $0x130] sm:$0xff]  ;;  %v592_v55 = vld [vmem:[#allocation5 + $0x18] sm:$0xff]  ;;  %p5673_p9 = pnand %p5672_p7, %p5668_p5 }
  0x5e   : > { %708 = vmatpush.msra.mxu2 %v602_v34  ;;  %687 = vmatpush.msra.mxu1 %v635_v37  ;;  %v624_v56 = vld [vmem:[#allocation5 + $0x118] sm:$0xff]  ;;  %v590_v57 = vld [vmem:[#allocation5 + $0x8] sm:$0xff]  ;;  %v593_v59 = vld [vmem:[#allocation5 + $0x20] sm:$0xff] }
  0x5f   : > { %728 = vmatpush.msra.mxu3 %v634_v35  ;;  %668 = vmatpush.msra.mxu0 %v601_v40  ;;  %v622_v58 = vld [vmem:[#allocation5 + $0x108] sm:$0xff]  ;;  %v625_v60 = vld [vmem:[#allocation5 + $0x120] sm:$0xff]  ;;  %v772_v63 = vld [vmem:[#allocation5 + $0x2f8] sm:$0xff] }
  0x60   : > { %709 = vmatpush.msra.mxu2 %v600_v38  ;;  %688 = vmatpush.msra.mxu1 %v633_v41  ;;  %v804_v0 = vld [vmem:[#allocation5 + $0x3f8] sm:$0xff]  ;;  %v591_v1 = vld [vmem:[#allocation5 + $0x10] sm:$0xff]  ;;  %v770_v3 = vld [vmem:[#allocation5 + $0x2e8] sm:$0xff] }
  0x61   : > { %729 = vmatpush.msra.mxu3 %v632_v39  ;;  %669 = vmatpush.msra.mxu0 %v599_v45  ;;  %v623_v2 = vld [vmem:[#allocation5 + $0x110] sm:$0xff]  ;;  %v802_v4 = vld [vmem:[#allocation5 + $0x3e8] sm:$0xff]  ;;  %v589_v5 = vld [vmem:[#allocation5] sm:$0xff] }
  0x62   : > { %710 = vmatpush.msra.mxu2 %v598_v42  ;;  %689 = vmatpush.msra.mxu1 %v631_v46  ;;  %v655_v61 = vld.sshfl [vmem:[#allocation1] sm:$0xff pattern:$0x75316420]  ;;  %v656_v62 = vld.sshfl [vmem:[#allocation1 + $0x8] sm:$0xff pattern:$0x75316420] }
  0x63   : > { %730 = vmatpush.msra.mxu3 %v630_v43  ;;  %670 = vmatpush.msra.mxu0 %v597_v49  ;;  %805 = vst [vmem:[#allocation1] ss:$2 sm:$0xff] %v5946_v44  ;;  %v621_v6 = vld [vmem:[#allocation5 + $0x100] sm:$0xff]  ;;  %v768_v7 = vld [vmem:[#allocation5 + $0x2d8] sm:$0xff]  ;;  %v771_v9 = vld [vmem:[#allocation5 + $0x2f0] sm:$0xff] }
  0x64   : > { %711 = vmatpush.msra.mxu2 %v596_v47  ;;  %690 = vmatpush.msra.mxu1 %v629_v50  ;;  %v800_v8 = vld [vmem:[#allocation5 + $0x3d8] sm:$0xff]  ;;  %v803_v10 = vld [vmem:[#allocation5 + $0x3f0] sm:$0xff]  ;;  %v766_v11 = vld [vmem:[#allocation5 + $0x2c8] sm:$0xff] }
  0x65   : > { %731 = vmatpush.msra.mxu3 %v628_v48  ;;  %671 = vmatpush.msra.mxu0 %v595_v53  ;;  %v798_v12 = vld [vmem:[#allocation5 + $0x3c8] sm:$0xff]  ;;  %v769_v13 = vld [vmem:[#allocation5 + $0x2e0] sm:$0xff]  ;;  %v764_v15 = vld [vmem:[#allocation5 + $0x2b8] sm:$0xff] }
  0x66   : > { %712 = vmatpush.msra.mxu2 %v594_v51  ;;  %691 = vmatpush.msra.mxu1 %v627_v54  ;;  %v801_v14 = vld [vmem:[#allocation5 + $0x3e0] sm:$0xff]  ;;  %v796_v16 = vld [vmem:[#allocation5 + $0x3b8] sm:$0xff]  ;;  %v767_v17 = vld [vmem:[#allocation5 + $0x2d0] sm:$0xff] }
  0x67   : > { %732 = vmatpush.msra.mxu3 %v626_v52  ;;  %672 = vmatpush.msra.mxu0 %v593_v59  ;;  %v799_v18 = vld [vmem:[#allocation5 + $0x3d0] sm:$0xff]  ;;  %v762_v19 = vld [vmem:[#allocation5 + $0x2a8] sm:$0xff]  ;;  %v765_v21 = vld [vmem:[#allocation5 + $0x2c0] sm:$0xff] }
  0x68   : > { %713 = vmatpush.msra.mxu2 %v592_v55  ;;  %692 = vmatpush.msra.mxu1 %v625_v60  ;;  %v794_v20 = vld [vmem:[#allocation5 + $0x3a8] sm:$0xff]  ;;  %v797_v22 = vld [vmem:[#allocation5 + $0x3c0] sm:$0xff]  ;;  %v760_v25 = vld [vmem:[#allocation5 + $0x298] sm:$0xff] }
  0x69   : > { %733 = vmatpush.msra.mxu3 %v624_v56  ;;  %673 = vmatpush.msra.mxu0 %v591_v1  ;;  %v792_v26 = vld [vmem:[#allocation5 + $0x398] sm:$0xff]  ;;  %v763_v27 = vld [vmem:[#allocation5 + $0x2b0] sm:$0xff]  ;;  %v758_v29 = vld [vmem:[#allocation5 + $0x288] sm:$0xff] }
  0x6a   : > { %714 = vmatpush.msra.mxu2 %v590_v57  ;;  %693 = vmatpush.msra.mxu1 %v623_v2  ;;  %v5950_v23 = vld.sshfl [vmem:[#allocation1] sm:$0xff pattern:$0x75316420]  ;;  %v5952_v24 = vld.sshfl [vmem:[#allocation1 + $0x8] sm:$0xff pattern:$0x75316420] }
  0x6b   : > { %734 = vmatpush.msra.mxu3 %v622_v58  ;;  %715 = vmatmul.f32.vlgmr.msra.gmra.mxu2 %v655_v61  ;;  %1057 = vst [vmem:[#allocation1] ss:$2 sm:$0xff] %v5946_v44  ;;  %v795_v28 = vld [vmem:[#allocation5 + $0x3b0] sm:$0xff]  ;;  %v790_v30 = vld [vmem:[#allocation5 + $0x388] sm:$0xff]  ;;  %v761_v31 = vld [vmem:[#allocation5 + $0x2a0] sm:$0xff] }
  0x6c   : > { %735 = vmatmul.f32.vlgmr.msra.gmra.mxu3 %v656_v62  ;;  %850 = vmatpush.msrb.mxu2 %v772_v63  ;;  %v793_v32 = vld [vmem:[#allocation5 + $0x3a0] sm:$0xff]  ;;  %v756_v33 = vld [vmem:[#allocation5 + $0x278] sm:$0xff]  ;;  %v759_v35 = vld [vmem:[#allocation5 + $0x290] sm:$0xff] }
  0x6d   : > { %870 = vmatpush.msrb.mxu3 %v804_v0  ;;  %674 = vmatpush.msra.mxu0 %v589_v5  ;;  %v788_v34 = vld [vmem:[#allocation5 + $0x378] sm:$0xff]  ;;  %v791_v36 = vld [vmem:[#allocation5 + $0x390] sm:$0xff]  ;;  %v754_v37 = vld [vmem:[#allocation5 + $0x268] sm:$0xff] }
  0x6e   : > { %851 = vmatpush.msrb.mxu2 %v770_v3  ;;  %694 = vmatpush.msra.mxu1 %v621_v6  ;;  %v786_v38 = vld [vmem:[#allocation5 + $0x368] sm:$0xff]  ;;  %v757_v39 = vld [vmem:[#allocation5 + $0x280] sm:$0xff]  ;;  %v752_v41 = vld [vmem:[#allocation5 + $0x258] sm:$0xff] }
  0x6f   : > { %871 = vmatpush.msrb.mxu3 %v802_v4  ;;  %675 = vmatmul.f32.vlgmr.msra.gmra.mxu0 %v655_v61  ;;  %v789_v40 = vld [vmem:[#allocation5 + $0x380] sm:$0xff]  ;;  %v784_v42 = vld [vmem:[#allocation5 + $0x358] sm:$0xff]  ;;  %v755_v43 = vld [vmem:[#allocation5 + $0x270] sm:$0xff] }
  0x70   : > { %852 = vmatpush.msrb.mxu2 %v768_v7  ;;  %695 = vmatmul.f32.vlgmr.msra.gmra.mxu1 %v656_v62  ;;  %v787_v45 = vld [vmem:[#allocation5 + $0x370] sm:$0xff]  ;;  %v750_v46 = vld [vmem:[#allocation5 + $0x248] sm:$0xff]  ;;  %v753_v48 = vld [vmem:[#allocation5 + $0x260] sm:$0xff] }
  0x71   : > { %872 = vmatpush.msrb.mxu3 %v800_v8  ;;  %810 = vmatpush.msrb.mxu0 %v771_v9  ;;  %v782_v47 = vld [vmem:[#allocation5 + $0x348] sm:$0xff]  ;;  %v785_v49 = vld [vmem:[#allocation5 + $0x360] sm:$0xff]  ;;  %v748_v50 = vld [vmem:[#allocation5 + $0x238] sm:$0xff] }
  0x72   : > { %830 = vmatpush.msrb.mxu1 %v803_v10  ;;  %853 = vmatpush.msrb.mxu2 %v766_v11  ;;  %v780_v51 = vld [vmem:[#allocation5 + $0x338] sm:$0xff]  ;;  %v751_v52 = vld [vmem:[#allocation5 + $0x250] sm:$0xff]  ;;  %v746_v54 = vld [vmem:[#allocation5 + $0x228] sm:$0xff] }
  0x73   : > { %873 = vmatpush.msrb.mxu3 %v798_v12  ;;  %811 = vmatpush.msrb.mxu0 %v769_v13  ;;  %v783_v53 = vld [vmem:[#allocation5 + $0x350] sm:$0xff]  ;;  %v778_v55 = vld [vmem:[#allocation5 + $0x328] sm:$0xff]  ;;  %v749_v56 = vld [vmem:[#allocation5 + $0x240] sm:$0xff] }
  0x74   : > { %831 = vmatpush.msrb.mxu1 %v801_v14  ;;  %854 = vmatpush.msrb.mxu2 %v764_v15  ;;  %v781_v57 = vld [vmem:[#allocation5 + $0x340] sm:$0xff]  ;;  %v744_v58 = vld [vmem:[#allocation5 + $0x218] sm:$0xff]  ;;  %v747_v60 = vld [vmem:[#allocation5 + $0x230] sm:$0xff] }
  0x75   : > { %874 = vmatpush.msrb.mxu3 %v796_v16  ;;  %812 = vmatpush.msrb.mxu0 %v767_v17  ;;  %v776_v59 = vld [vmem:[#allocation5 + $0x318] sm:$0xff]  ;;  %v779_v61 = vld [vmem:[#allocation5 + $0x330] sm:$0xff]  ;;  %v742_v62 = vld [vmem:[#allocation5 + $0x208] sm:$0xff] }
  0x76   : > { %832 = vmatpush.msrb.mxu1 %v799_v18  ;;  %855 = vmatpush.msrb.mxu2 %v762_v19  ;;  %v774_v63 = vld [vmem:[#allocation5 + $0x308] sm:$0xff]  ;;  %v745_v0 = vld [vmem:[#allocation5 + $0x220] sm:$0xff]  ;;  %v743_v2 = vld [vmem:[#allocation5 + $0x210] sm:$0xff] }
  0x77   : > { %875 = vmatpush.msrb.mxu3 %v794_v20  ;;  %813 = vmatpush.msrb.mxu0 %v765_v21  ;;  %v777_v1 = vld [vmem:[#allocation5 + $0x320] sm:$0xff]  ;;  %v775_v3 = vld [vmem:[#allocation5 + $0x310] sm:$0xff]  ;;  %v1024_v6 = vld [vmem:[#allocation5 + $0x4f8] sm:$0xff] }
  0x78   : > { %833 = vmatpush.msrb.mxu1 %v797_v22  ;;  %856 = vmatpush.msrb.mxu2 %v760_v25  ;;  %v741_v4 = vld [vmem:[#allocation5 + $0x200] sm:$0xff]  ;;  %v1022_v7 = vld [vmem:[#allocation5 + $0x4e8] sm:$0xff]  ;;  %v1020_v8 = vld [vmem:[#allocation5 + $0x4d8] sm:$0xff] }
  0x79   : > { %876 = vmatpush.msrb.mxu3 %v792_v26  ;;  %814 = vmatpush.msrb.mxu0 %v763_v27  ;;  %v773_v5 = vld [vmem:[#allocation5 + $0x300] sm:$0xff]  ;;  %v1018_v9 = vld [vmem:[#allocation5 + $0x4c8] sm:$0xff]  ;;  %v1016_v10 = vld [vmem:[#allocation5 + $0x4b8] sm:$0xff] }
  0x7a   : > { %834 = vmatpush.msrb.mxu1 %v795_v28  ;;  %857 = vmatpush.msrb.mxu2 %v758_v29  ;;  %v1014_v11 = vld [vmem:[#allocation5 + $0x4a8] sm:$0xff]  ;;  %v1012_v12 = vld [vmem:[#allocation5 + $0x498] sm:$0xff] }
  0x7b   : > { %877 = vmatpush.msrb.mxu3 %v790_v30  ;;  %815 = vmatpush.msrb.mxu0 %v761_v31  ;;  %v1010_v13 = vld [vmem:[#allocation5 + $0x488] sm:$0xff]  ;;  %v1008_v14 = vld [vmem:[#allocation5 + $0x478] sm:$0xff] }
  0x7c   : > { %835 = vmatpush.msrb.mxu1 %v793_v32  ;;  %858 = vmatpush.msrb.mxu2 %v756_v33  ;;  %v1006_v15 = vld [vmem:[#allocation5 + $0x468] sm:$0xff]  ;;  %v1004_v16 = vld [vmem:[#allocation5 + $0x458] sm:$0xff]  ;;  %v5967_v32 = vld.sshfl [vmem:[#allocation1 + $0x8] sm:$0xff pattern:$0x75316420] }
  0x7d   : > { %878 = vmatpush.msrb.mxu3 %v788_v34  ;;  %816 = vmatpush.msrb.mxu0 %v759_v35  ;;  %v1002_v17 = vld [vmem:[#allocation5 + $0x448] sm:$0xff]  ;;  %v1000_v18 = vld [vmem:[#allocation5 + $0x438] sm:$0xff]  ;;  %v1226_v34 = vld [vmem:[#allocation5 + $0x6f0] sm:$0xff] }
  0x7e   : > { %836 = vmatpush.msrb.mxu1 %v791_v36  ;;  %859 = vmatpush.msrb.mxu2 %v754_v37  ;;  %v998_v19 = vld [vmem:[#allocation5 + $0x428] sm:$0xff]  ;;  %v996_v27 = vld [vmem:[#allocation5 + $0x418] sm:$0xff]  ;;  %v1224_v36 = vld [vmem:[#allocation5 + $0x6e0] sm:$0xff] }
  0x7f   : > { %879 = vmatpush.msrb.mxu3 %v786_v38  ;;  %817 = vmatpush.msrb.mxu0 %v757_v39  ;;  %v739_v26 = vld [vmem:[%s8664_s5] sm:$0xf]  ;;  %v1056_v28 = vld [vmem:[#allocation5 + $0x5f8] sm:$0xff]  ;;  %v1222_v38 = vld [vmem:[#allocation5 + $0x6d0] sm:$0xff] }
  0x80   : > { %837 = vmatpush.msrb.mxu1 %v789_v40  ;;  %860 = vmatpush.msrb.mxu2 %v752_v41  ;;  %v994_v29 = vld [vmem:[#allocation5 + $0x408] sm:$0xff]  ;;  %v1052_v33 = vld [vmem:[#allocation5 + $0x5d8] sm:$0xff]  ;;  %v1220_v40 = vld [vmem:[#allocation5 + $0x6c0] sm:$0xff] }
  0x81   : > { %880 = vmatpush.msrb.mxu3 %v784_v42  ;;  %818 = vmatpush.msrb.mxu0 %v755_v43  ;;  %v1054_v30 = vld [vmem:[#allocation5 + $0x5e8] sm:$0xff]  ;;  %v1048_v37 = vld [vmem:[#allocation5 + $0x5b8] sm:$0xff]  ;;  %v1218_v42 = vld [vmem:[#allocation5 + $0x6b0] sm:$0xff] }
  0x82   : > { %838 = vmatpush.msrb.mxu1 %v787_v45  ;;  %861 = vmatpush.msrb.mxu2 %v750_v46  ;;  %v5965_v31 = vld.sshfl [vmem:[#allocation1] sm:$0xff pattern:$0x75316420]  ;;  %v1044_v41 = vld [vmem:[#allocation5 + $0x598] sm:$0xff]  ;;  %v1216_v45 = vld [vmem:[#allocation5 + $0x6a0] sm:$0xff] }
  0x83   : > { %881 = vmatpush.msrb.mxu3 %v782_v47  ;;  %819 = vmatpush.msrb.mxu0 %v753_v48  ;;  %1260 = vst [vmem:[#allocation1] ss:$2 sm:$0xff] %v5946_v44  ;;  %v1050_v35 = vld [vmem:[#allocation5 + $0x5c8] sm:$0xff]  ;;  %v1040_v46 = vld [vmem:[#allocation5 + $0x578] sm:$0xff]  ;;  %v1214_v47 = vld [vmem:[#allocation5 + $0x690] sm:$0xff] }
  0x84   : > { %839 = vmatpush.msrb.mxu1 %v785_v49  ;;  %862 = vmatpush.msrb.mxu2 %v748_v50  ;;  %v1046_v39 = vld [vmem:[#allocation5 + $0x5a8] sm:$0xff]  ;;  %v1212_v49 = vld [vmem:[#allocation5 + $0x680] sm:$0xff]  ;;  %v1036_v50 = vld [vmem:[#allocation5 + $0x558] sm:$0xff] }
  0x85   : > { %882 = vmatpush.msrb.mxu3 %v780_v51  ;;  %820 = vmatpush.msrb.mxu0 %v751_v52  ;;  %v1042_v43 = vld [vmem:[#allocation5 + $0x588] sm:$0xff]  ;;  %v1210_v51 = vld [vmem:[#allocation5 + $0x670] sm:$0xff] }
  0x86   : > { %840 = vmatpush.msrb.mxu1 %v783_v53  ;;  %863 = vmatpush.msrb.mxu2 %v746_v54  ;;  %v1038_v48 = vld [vmem:[#allocation5 + $0x568] sm:$0xff]  ;;  %v1208_v53 = vld [vmem:[#allocation5 + $0x660] sm:$0xff]  ;;  %v1032_v54 = vld [vmem:[#allocation5 + $0x538] sm:$0xff] }
  0x87   : > { %883 = vmatpush.msrb.mxu3 %v778_v55  ;;  %821 = vmatpush.msrb.mxu0 %v749_v56  ;;  %v1034_v52 = vld [vmem:[#allocation5 + $0x548] sm:$0xff]  ;;  %v1206_v55 = vld [vmem:[#allocation5 + $0x650] sm:$0xff] }
  0x88   : > { %841 = vmatpush.msrb.mxu1 %v781_v57  ;;  %864 = vmatpush.msrb.mxu2 %v744_v58  ;;  %v1030_v56 = vld [vmem:[#allocation5 + $0x528] sm:$0xff]  ;;  %v1204_v57 = vld [vmem:[#allocation5 + $0x640] sm:$0xff]  ;;  %v1028_v58 = vld [vmem:[#allocation5 + $0x518] sm:$0xff] }
  0x89   : > { %884 = vmatpush.msrb.mxu3 %v776_v59  ;;  %822 = vmatpush.msrb.mxu0 %v747_v60  ;;  %v1202_v59 = vld [vmem:[#allocation5 + $0x630] sm:$0xff] }
  0x8a   : > { %842 = vmatpush.msrb.mxu1 %v779_v61  ;;  %865 = vmatpush.msrb.mxu2 %v742_v62  ;;  %v1026_v62 = vld [vmem:[#allocation5 + $0x508] sm:$0xff] }
  0x8b   : > { %885 = vmatpush.msrb.mxu3 %v774_v63  ;;  %866 = vmatmul.f32.vlgmr.msrb.gmra.mxu2 %v5950_v23  ;;  %v1200_v63 = vld [vmem:[#allocation5 + $0x620] sm:$0xff] }
  0x8c   : > { %886 = vmatmul.f32.vlgmr.msrb.gmra.mxu3 %v5952_v24  ;;  %823 = vmatpush.msrb.mxu0 %v745_v0 }
  0x8d   : > { %843 = vmatpush.msrb.mxu1 %v777_v1  ;;  %1102 = vmatpush.msra.mxu2 %v1024_v6  ;;  %v1055_v6 = vld [vmem:[#allocation5 + $0x5f0] sm:$0xff] }
  0x8e   : > { %824 = vmatpush.msrb.mxu0 %v743_v2 }
  0x8f   : > { %844 = vmatpush.msrb.mxu1 %v775_v3  ;;  %1103 = vmatpush.msra.mxu2 %v1022_v7  ;;  %v4757_v3 = vld [vmem:[%s8664_s5 + $0x4] sm:$0xf]  ;;  %v1258_v7 = vld [vmem:[#allocation5 + $0x7f0] sm:$0xff] }
  0x90   : > { %825 = vmatpush.msrb.mxu0 %v741_v4 }
  0x91   : > { %845 = vmatpush.msrb.mxu1 %v773_v5  ;;  %826 = vmatmul.f32.vlgmr.msrb.gmra.mxu0 %v5950_v23  ;;  %v1023_v5 = vld [vmem:[#allocation5 + $0x4f0] sm:$0xff] }
  0x92   : > { %846 = vmatmul.f32.vlgmr.msrb.gmra.mxu1 %v5952_v24  ;;  %1104 = vmatpush.msra.mxu2 %v1020_v8  ;;  %v1021_v8 = vld [vmem:[#allocation5 + $0x4e0] sm:$0xff] }
  0x94   : > { %1105 = vmatpush.msra.mxu2 %v1018_v9  ;;  %v1053_v9 = vld [vmem:[#allocation5 + $0x5e0] sm:$0xff] }
  0x96   : > { %1106 = vmatpush.msra.mxu2 %v1016_v10  ;;  %v1198_v10 = vld [vmem:[#allocation5 + $0x610] sm:$0xff] }
  0x98   : > { %1107 = vmatpush.msra.mxu2 %v1014_v11  ;;  %v5978_v11 = vld.sshfl [vmem:[#allocation1] sm:$0xff pattern:$0x75316420] }
  0x9a   : > { %1108 = vmatpush.msra.mxu2 %v1012_v12  ;;  %v5980_v12 = vld.sshfl [vmem:[#allocation1 + $0x8] sm:$0xff pattern:$0x75316420] }
  0x9b   : > { %1463 = vst [vmem:[#allocation1] ss:$2 sm:$0xff] %v5946_v44 }
  0x9c   : > { %1109 = vmatpush.msra.mxu2 %v1010_v13  ;;  %v1256_v13 = vld [vmem:[#allocation5 + $0x7e0] sm:$0xff] }
  0x9e   : > { %1110 = vmatpush.msra.mxu2 %v1008_v14  ;;  %v1019_v14 = vld [vmem:[#allocation5 + $0x4d0] sm:$0xff] }
  0xa0   : > { %1111 = vmatpush.msra.mxu2 %v1006_v15  ;;  %v1051_v15 = vld [vmem:[#allocation5 + $0x5d0] sm:$0xff] }
  0xa2   : > { %1112 = vmatpush.msra.mxu2 %v1004_v16  ;;  %v1196_v16 = vld [vmem:[#allocation5 + $0x600] sm:$0xff] }
  0xa4   : > { %1113 = vmatpush.msra.mxu2 %v1002_v17  ;;  %v1254_v17 = vld [vmem:[#allocation5 + $0x7d0] sm:$0xff] }
  0xa6   : > { %1114 = vmatpush.msra.mxu2 %v1000_v18  ;;  %v1017_v18 = vld [vmem:[#allocation5 + $0x4c0] sm:$0xff] }
  0xa8   : > { %1115 = vmatpush.msra.mxu2 %v998_v19  ;;  %v1049_v19 = vld [vmem:[#allocation5 + $0x5c0] sm:$0xff] }
  0xaa   : > { %1116 = vmatpush.msra.mxu2 %v996_v27  ;;  %v1011_v27 = vld [vmem:[#allocation5 + $0x490] sm:$0xff] }
  0xac   : > { %1117 = vmatpush.msra.mxu2 %v994_v29  ;;  %v1246_v29 = vld [vmem:[#allocation5 + $0x790] sm:$0xff] }
  0xad   : > { %1118 = vmatmul.f32.vlgmr.msra.gmra.mxu2 %v5965_v31 }
  0xae   : > { %1265 = vmatpush.msrb.mxu2 %v1226_v34  ;;  %v1244_v34 = vld [vmem:[#allocation5 + $0x780] sm:$0xff] }
  0xb0   : > { %1266 = vmatpush.msrb.mxu2 %v1224_v36  ;;  %v1039_v36 = vld [vmem:[#allocation5 + $0x570] sm:$0xff] }
  0xb2   : > { %1267 = vmatpush.msrb.mxu2 %v1222_v38  ;;  %v1005_v38 = vld [vmem:[#allocation5 + $0x460] sm:$0xff] }
  0xb4   : > { %1268 = vmatpush.msrb.mxu2 %v1220_v40  ;;  %v1240_v40 = vld [vmem:[#allocation5 + $0x760] sm:$0xff] }
  0xb6   : > { %1269 = vmatpush.msrb.mxu2 %v1218_v42  ;;  %v1035_v42 = vld [vmem:[#allocation5 + $0x550] sm:$0xff] }
  0xb8   : > { %1270 = vmatpush.msrb.mxu2 %v1216_v45  ;;  %v1001_v45 = vld [vmem:[#allocation5 + $0x440] sm:$0xff] }
  0xba   : > { %1271 = vmatpush.msrb.mxu2 %v1214_v47  ;;  %v1236_v47 = vld [vmem:[#allocation5 + $0x740] sm:$0xff] }
  0xbc   : > { %1272 = vmatpush.msrb.mxu2 %v1212_v49  ;;  %v1031_v49 = vld [vmem:[#allocation5 + $0x530] sm:$0xff] }
  0xbe   : > { %1273 = vmatpush.msrb.mxu2 %v1210_v51  ;;  %v997_v51 = vld [vmem:[#allocation5 + $0x420] sm:$0xff] }
  0xc0   : > { %1274 = vmatpush.msrb.mxu2 %v1208_v53  ;;  %v1232_v53 = vld [vmem:[#allocation5 + $0x720] sm:$0xff] }
  0xc2   : > { %1275 = vmatpush.msrb.mxu2 %v1206_v55  ;;  %v1027_v55 = vld [vmem:[#allocation5 + $0x510] sm:$0xff] }
  0xc4   : > { %1276 = vmatpush.msrb.mxu2 %v1204_v57  ;;  %v993_v57 = vld [vmem:[#allocation5 + $0x400] sm:$0xff] }
  0xc6   : > { %1277 = vmatpush.msrb.mxu2 %v1202_v59  ;;  %v1228_v59 = vld [vmem:[#allocation5 + $0x700] sm:$0xff] }
  0xc8   : > { %1278 = vmatpush.msrb.mxu2 %v1200_v63 }
  0xca   : > { %1279 = vmatpush.msrb.mxu2 %v1198_v10  ;;  %v1243_v10 = vld [vmem:[#allocation5 + $0x778] sm:$0xff] }
  0xcc   : > { %1280 = vmatpush.msrb.mxu2 %v1196_v16  ;;  %v1237_v16 = vld [vmem:[#allocation5 + $0x748] sm:$0xff] }
  0xcd   : > { %1281 = vmatmul.f32.vlgmr.msrb.gmra.mxu2 %v5978_v11 }
  0xec   : > { %v676_v20 = vpop.f32.mrf.mxu0 }
  0xed   : > { %v696_v21 = vpop.f32.mrf.mxu1 }
  0xee   : > { %v697_v22 = vadd.f32 %v696_v21, %v676_v20  ;;  %v716_v23 = vpop.f32.mrf.mxu2  ;;  %v1252_v20 = vld [vmem:[#allocation5 + $0x7c0] sm:$0xff]  ;;  %v1015_v21 = vld [vmem:[#allocation5 + $0x4b0] sm:$0xff] }
  0xef   : > { %v736_v24 = vpop.f32.mrf.mxu3 }
  0xf0   : > { %v737_v25 = vadd.f32 %v736_v24, %v716_v23  ;;  %4762 = vmatpush.msk.msra.mxu3 %vm896_vm0, %v697_v22  ;;  %v1047_v22 = vld [vmem:[#allocation5 + $0x5b0] sm:$0xff]  ;;  %v1013_v24 = vld [vmem:[#allocation5 + $0x4a0] sm:$0xff] }
  0xf1   : > { %4763 = vmatmul.msk.f32.vlgmr.msra.gmra.mxu3 %vm892_vm1, %v739_v26  ;;  %v1250_v23 = vld [vmem:[#allocation5 + $0x7b0] sm:$0xff] }
  0xf2   : > { %4764 = vmatpush.msk.msrb.mxu3 %vm896_vm0, %v737_v25  ;;  %v1045_v25 = vld [vmem:[#allocation5 + $0x5a0] sm:$0xff] }
  0xf4   : > { %1122 = vmatpush.msra.mxu3 %v1056_v28  ;;  %v1043_v28 = vld [vmem:[#allocation5 + $0x590] sm:$0xff] }
  0xf6   : > { %1123 = vmatpush.msra.mxu3 %v1054_v30  ;;  %v1009_v30 = vld [vmem:[#allocation5 + $0x480] sm:$0xff] }
  0xf8   : > { %1124 = vmatpush.msra.mxu3 %v1052_v33  ;;  %v1041_v33 = vld [vmem:[#allocation5 + $0x580] sm:$0xff] }
  0xf9   : > { %4765 = vmatmul.msk.f32.vlgmr.msrb.gmra.mxu3 %vm892_vm1, %v739_v26  ;;  %v1248_v26 = vld [vmem:[#allocation5 + $0x7a0] sm:$0xff] }
  0xfa   : > { %1125 = vmatpush.msra.mxu3 %v1050_v35  ;;  %v1007_v35 = vld [vmem:[#allocation5 + $0x470] sm:$0xff] }
  0xfc   : > { %1126 = vmatpush.msra.mxu3 %v1048_v37  ;;  %v1242_v37 = vld [vmem:[#allocation5 + $0x770] sm:$0xff] }
  0xfe   : > { %1127 = vmatpush.msra.mxu3 %v1046_v39  ;;  %v1037_v39 = vld [vmem:[#allocation5 + $0x560] sm:$0xff] }
 0x100   : > { %1128 = vmatpush.msra.mxu3 %v1044_v41  ;;  %v1003_v41 = vld [vmem:[#allocation5 + $0x450] sm:$0xff] }
 0x102   : > { %1129 = vmatpush.msra.mxu3 %v1042_v43  ;;  %v1238_v43 = vld [vmem:[#allocation5 + $0x750] sm:$0xff] }
 0x104   : > { %1130 = vmatpush.msra.mxu3 %v1040_v46  ;;  %v1033_v46 = vld [vmem:[#allocation5 + $0x540] sm:$0xff] }
 0x106   : > { %1131 = vmatpush.msra.mxu3 %v1038_v48  ;;  %v999_v48 = vld [vmem:[#allocation5 + $0x430] sm:$0xff] }
 0x108   : > { %1132 = vmatpush.msra.mxu3 %v1036_v50  ;;  %v1234_v50 = vld [vmem:[#allocation5 + $0x730] sm:$0xff] }
 0x10a   : > { %1133 = vmatpush.msra.mxu3 %v1034_v52  ;;  %v1029_v52 = vld [vmem:[#allocation5 + $0x520] sm:$0xff] }
 0x10c   : > { %1134 = vmatpush.msra.mxu3 %v1032_v54  ;;  %v995_v54 = vld [vmem:[#allocation5 + $0x410] sm:$0xff] }
 0x10e   : > { %1135 = vmatpush.msra.mxu3 %v1030_v56  ;;  %v827_v60 = vpop.f32.mrf.mxu0  ;;  %v867_v1 = vpop.f32.mrf.mxu2  ;;  %v1230_v56 = vld [vmem:[#allocation5 + $0x710] sm:$0xff] }
 0x10f   : > { %v847_v61 = vpop.f32.mrf.mxu1  ;;  %v887_v2 = vpop.f32.mrf.mxu3 }
 0x110   : > { %v848_v0 = vadd.f32 %v847_v61, %v827_v60  ;;  %1136 = vmatpush.msra.mxu3 %v1028_v58  ;;  %v888_v4 = vadd.f32 %v887_v2, %v867_v1  ;;  %v1025_v58 = vld [vmem:[#allocation5 + $0x500] sm:$0xff]  ;;  %v4766_v1 = vld [vmem:[%s8664_s5 + $0x8] sm:$0xf]  ;;  %v1259_v2 = vld [vmem:[#allocation5 + $0x7f8] sm:$0xff] }
 0x112   : > { %4758 = vmatpush.msk.msra.mxu0 %vm896_vm0, %v848_v0  ;;  %1137 = vmatpush.msra.mxu3 %v1026_v62 }
 0x113   : > { %4760 = vmatpush.msk.msra.mxu1 %vm896_vm0, %v888_v4  ;;  %4759 = vmatmul.msk.f32.vlgmr.msra.gmra.mxu0 %vm892_vm1, %v4757_v3  ;;  %v1251_v4 = vld [vmem:[#allocation5 + $0x7b8] sm:$0xff] }
 0x114   : > { %1062 = vmatpush.msrb.mxu0 %v1023_v5  ;;  %1138 = vmatmul.f32.vlgmr.msra.gmra.mxu3 %v5967_v32  ;;  %v1249_v5 = vld [vmem:[#allocation5 + $0x7a8] sm:$0xff] }
 0x115   : > { %1082 = vmatpush.msrb.mxu1 %v1055_v6  ;;  %1285 = vmatpush.msrb.mxu3 %v1258_v7  ;;  %v1247_v6 = vld [vmem:[#allocation5 + $0x798] sm:$0xff] }
 0x116   : > { %4761 = vmatmul.msk.f32.vlgmr.msra.gmra.mxu1 %vm892_vm1, %v4757_v3  ;;  %1063 = vmatpush.msrb.mxu0 %v1021_v8  ;;  %v1253_v3 = vld [vmem:[#allocation5 + $0x7c8] sm:$0xff] }
 0x117   : > { %1083 = vmatpush.msrb.mxu1 %v1053_v9  ;;  %1286 = vmatpush.msrb.mxu3 %v1256_v13  ;;  %v1245_v9 = vld [vmem:[#allocation5 + $0x788] sm:$0xff] }
 0x118   : > { %1064 = vmatpush.msrb.mxu0 %v1019_v14  ;;  %v1241_v13 = vld [vmem:[#allocation5 + $0x768] sm:$0xff]  ;;  %v1239_v14 = vld [vmem:[#allocation5 + $0x758] sm:$0xff] }
 0x119   : > { %1084 = vmatpush.msrb.mxu1 %v1051_v15  ;;  %1287 = vmatpush.msrb.mxu3 %v1254_v17 }
 0x11a   : > { %1065 = vmatpush.msrb.mxu0 %v1017_v18 }
 0x11b   : > { %1085 = vmatpush.msrb.mxu1 %v1049_v19  ;;  %1288 = vmatpush.msrb.mxu3 %v1252_v20  ;;  %v1235_v19 = vld [vmem:[#allocation5 + $0x738] sm:$0xff] }
 0x11c   : > { %1066 = vmatpush.msrb.mxu0 %v1015_v21  ;;  %v1227_v20 = vld [vmem:[#allocation5 + $0x6f8] sm:$0xff]  ;;  %v1233_v21 = vld [vmem:[#allocation5 + $0x728] sm:$0xff] }
 0x11d   : > { %1086 = vmatpush.msrb.mxu1 %v1047_v22  ;;  %1289 = vmatpush.msrb.mxu3 %v1250_v23  ;;  %v1225_v22 = vld [vmem:[#allocation5 + $0x6e8] sm:$0xff] }
 0x11e   : > { %1067 = vmatpush.msrb.mxu0 %v1013_v24  ;;  %v1231_v24 = vld [vmem:[#allocation5 + $0x718] sm:$0xff] }
 0x11f   : > { %1087 = vmatpush.msrb.mxu1 %v1045_v25  ;;  %1290 = vmatpush.msrb.mxu3 %v1248_v26  ;;  %v1223_v25 = vld [vmem:[#allocation5 + $0x6d8] sm:$0xff] }
 0x120   : > { %1068 = vmatpush.msrb.mxu0 %v1011_v27  ;;  %v1229_v27 = vld [vmem:[#allocation5 + $0x708] sm:$0xff] }
 0x121   : > { %1088 = vmatpush.msrb.mxu1 %v1043_v28  ;;  %1291 = vmatpush.msrb.mxu3 %v1246_v29  ;;  %v1221_v29 = vld [vmem:[#allocation5 + $0x6c8] sm:$0xff] }
 0x122   : > { %1069 = vmatpush.msrb.mxu0 %v1009_v30  ;;  %v6007_v30 = vld [vmem:[%s8664_s5 + $0xc] sm:$0xf] }
 0x123   : > { %1089 = vmatpush.msrb.mxu1 %v1041_v33  ;;  %1292 = vmatpush.msrb.mxu3 %v1244_v34  ;;  %v1219_v33 = vld [vmem:[#allocation5 + $0x6b8] sm:$0xff]  ;;  %v1461_v34 = vld [vmem:[#allocation5 + $0x9f0] sm:$0xff] }
 0x124   : > { %1070 = vmatpush.msrb.mxu0 %v1007_v35  ;;  %v1217_v35 = vld [vmem:[#allocation5 + $0x6a8] sm:$0xff] }
 0x125   : > { %1090 = vmatpush.msrb.mxu1 %v1039_v36  ;;  %1293 = vmatpush.msrb.mxu3 %v1242_v37  ;;  %v1459_v36 = vld [vmem:[#allocation5 + $0x9e0] sm:$0xff]  ;;  %v1215_v37 = vld [vmem:[#allocation5 + $0x698] sm:$0xff] }
 0x126   : > { %1071 = vmatpush.msrb.mxu0 %v1005_v38  ;;  %v1457_v38 = vld [vmem:[#allocation5 + $0x9d0] sm:$0xff] }
 0x127   : > { %1091 = vmatpush.msrb.mxu1 %v1037_v39  ;;  %1294 = vmatpush.msrb.mxu3 %v1240_v40  ;;  %v1213_v39 = vld [vmem:[#allocation5 + $0x688] sm:$0xff]  ;;  %v1455_v40 = vld [vmem:[#allocation5 + $0x9c0] sm:$0xff] }
 0x128   : > { %1072 = vmatpush.msrb.mxu0 %v1003_v41  ;;  %v1211_v41 = vld [vmem:[#allocation5 + $0x678] sm:$0xff] }
 0x129   : > { %1092 = vmatpush.msrb.mxu1 %v1035_v42  ;;  %1295 = vmatpush.msrb.mxu3 %v1238_v43  ;;  %v1453_v42 = vld [vmem:[#allocation5 + $0x9b0] sm:$0xff]  ;;  %v1209_v43 = vld [vmem:[#allocation5 + $0x668] sm:$0xff] }
 0x12a   : > { %1073 = vmatpush.msrb.mxu0 %v1001_v45  ;;  %v1451_v45 = vld [vmem:[#allocation5 + $0x9a0] sm:$0xff] }
 0x12b   : > { %1093 = vmatpush.msrb.mxu1 %v1033_v46  ;;  %1296 = vmatpush.msrb.mxu3 %v1236_v47  ;;  %v1449_v46 = vld [vmem:[#allocation5 + $0x990] sm:$0xff]  ;;  %v1205_v47 = vld [vmem:[#allocation5 + $0x648] sm:$0xff] }
 0x12c   : > { %1074 = vmatpush.msrb.mxu0 %v999_v48  ;;  %v1447_v48 = vld [vmem:[#allocation5 + $0x980] sm:$0xff] }
 0x12d   : > { %1094 = vmatpush.msrb.mxu1 %v1031_v49  ;;  %1297 = vmatpush.msrb.mxu3 %v1234_v50  ;;  %v1203_v49 = vld [vmem:[#allocation5 + $0x638] sm:$0xff]  ;;  %v1445_v50 = vld [vmem:[#allocation5 + $0x970] sm:$0xff] }
 0x12e   : > { %1075 = vmatpush.msrb.mxu0 %v997_v51  ;;  %v1201_v51 = vld [vmem:[#allocation5 + $0x628] sm:$0xff] }
 0x12f   : > { %1095 = vmatpush.msrb.mxu1 %v1029_v52  ;;  %1298 = vmatpush.msrb.mxu3 %v1232_v53  ;;  %v1443_v52 = vld [vmem:[#allocation5 + $0x960] sm:$0xff]  ;;  %v1199_v53 = vld [vmem:[#allocation5 + $0x618] sm:$0xff] }
 0x130   : > { %1076 = vmatpush.msrb.mxu0 %v995_v54  ;;  %v1119_v62 = vpop.f32.mrf.mxu2  ;;  %v1441_v54 = vld [vmem:[#allocation5 + $0x950] sm:$0xff] }
 0x131   : > { %1096 = vmatpush.msrb.mxu1 %v1027_v55  ;;  %1299 = vmatpush.msrb.mxu3 %v1230_v56  ;;  %v1197_v55 = vld [vmem:[#allocation5 + $0x608] sm:$0xff]  ;;  %v1439_v56 = vld [vmem:[#allocation5 + $0x940] sm:$0xff] }
 0x132   : > { %1077 = vmatpush.msrb.mxu0 %v993_v57  ;;  %v1429_v57 = vld [vmem:[#allocation5 + $0x8f0] sm:$0xff] }
 0x133   : > { %1097 = vmatpush.msrb.mxu1 %v1025_v58  ;;  %1078 = vmatmul.f32.vlgmr.msrb.gmra.mxu0 %v5965_v31  ;;  %v1257_v31 = vld [vmem:[#allocation5 + $0x7e8] sm:$0xff]  ;;  %v1437_v58 = vld [vmem:[#allocation5 + $0x930] sm:$0xff] }
 0x134   : > { %1300 = vmatpush.msrb.mxu3 %v1228_v59  ;;  %1098 = vmatmul.f32.vlgmr.msrb.gmra.mxu1 %v5967_v32  ;;  %v1255_v32 = vld [vmem:[#allocation5 + $0x7d8] sm:$0xff]  ;;  %v6013_v59 = vld.sshfl [vmem:[#allocation1] sm:$0xff pattern:$0x75316420] }
 0x135   : > { %1301 = vmatmul.f32.vlgmr.msrb.gmra.mxu3 %v5980_v12 }
 0x150   : > { %v1282_v23 = vpop.f32.mrf.mxu2 }
 0x174   : > { %v5989_v60 = vpop.f32.mrf.mxu3 }
 0x17c   : > { %v5991_v61 = vpop.f32.mrf.mxu3 }
 0x190   : > { %v6000_v8 = vpop.f32.mrf.mxu0 }
 0x193   : > { %v5998_v7 = vpop.f32.mrf.mxu1 }
 0x197   : > { %v1139_v63 = vpop.f32.mrf.mxu3 }
 0x198   : > { %v1140_v0 = vadd.f32 %v1139_v63, %v1119_v62  ;;  %v6015_v62 = vld.sshfl [vmem:[#allocation1 + $0x8] sm:$0xff pattern:$0x75316420]  ;;  %v1427_v63 = vld [vmem:[#allocation5 + $0x8e0] sm:$0xff] }
 0x199   : > { %1666 = vst [vmem:[#allocation1] ss:$2 sm:$0xff] %v5946_v44 }
 0x19a   : > { %4769 = vmatpush.msk.msra.mxu1 %vm896_vm0, %v1140_v0  ;;  %v1435_v0 = vld [vmem:[#allocation5 + $0x920] sm:$0xff] }
 0x19b   : > { %4770 = vmatmul.msk.f32.vlgmr.msra.gmra.mxu1 %vm892_vm1, %v4766_v1 }
 0x19c   : > { %1325 = vmatpush.msrb.mxu1 %v1259_v2  ;;  %v1433_v2 = vld [vmem:[#allocation5 + $0x910] sm:$0xff] }
 0x19e   : > { %1326 = vmatpush.msrb.mxu1 %v1257_v31  ;;  %v1423_v31 = vld [vmem:[#allocation5 + $0x8c0] sm:$0xff] }
 0x1a0   : > { %1327 = vmatpush.msrb.mxu1 %v1255_v32  ;;  %v1431_v32 = vld [vmem:[#allocation5 + $0x900] sm:$0xff] }
 0x1a2   : > { %1328 = vmatpush.msrb.mxu1 %v1253_v3  ;;  %v1421_v3 = vld [vmem:[#allocation5 + $0x8b0] sm:$0xff] }
 0x1a4   : > { %1329 = vmatpush.msrb.mxu1 %v1251_v4  ;;  %v1419_v4 = vld [vmem:[#allocation5 + $0x8a0] sm:$0xff] }
 0x1a6   : > { %1330 = vmatpush.msrb.mxu1 %v1249_v5  ;;  %v1415_v5 = vld [vmem:[#allocation5 + $0x880] sm:$0xff] }
 0x1a8   : > { %1331 = vmatpush.msrb.mxu1 %v1247_v6  ;;  %v1413_v6 = vld [vmem:[#allocation5 + $0x870] sm:$0xff] }
 0x1aa   : > { %1332 = vmatpush.msrb.mxu1 %v1245_v9  ;;  %v1411_v9 = vld [vmem:[#allocation5 + $0x860] sm:$0xff] }
 0x1ac   : > { %1333 = vmatpush.msrb.mxu1 %v1243_v10  ;;  %v1409_v10 = vld [vmem:[#allocation5 + $0x850] sm:$0xff] }
 0x1ae   : > { %1334 = vmatpush.msrb.mxu1 %v1241_v13  ;;  %v1407_v13 = vld [vmem:[#allocation5 + $0x840] sm:$0xff] }
 0x1b0   : > { %v1079_v15 = vpop.f32.mrf.mxu0  ;;  %1335 = vmatpush.msrb.mxu1 %v1239_v14  ;;  %v1405_v14 = vld [vmem:[#allocation5 + $0x830] sm:$0xff] }
 0x1b1   : > { %v1099_v17 = vpop.f32.mrf.mxu1 }
 0x1b2   : > { %v1100_v18 = vadd.f32 %v1099_v17, %v1079_v15  ;;  %1336 = vmatpush.msrb.mxu1 %v1237_v16  ;;  %v1403_v15 = vld [vmem:[#allocation5 + $0x820] sm:$0xff]  ;;  %v1401_v16 = vld [vmem:[#allocation5 + $0x810] sm:$0xff] }
 0x1b3   : > { %v1399_v17 = vld [vmem:[#allocation5 + $0x800] sm:$0xff] }
 0x1b4   : > { %4767 = vmatpush.msk.msra.mxu0 %vm896_vm0, %v1100_v18  ;;  %1337 = vmatpush.msrb.mxu1 %v1235_v19  ;;  %v1430_v18 = vld [vmem:[#allocation5 + $0x8f8] sm:$0xff]  ;;  %v1428_v19 = vld [vmem:[#allocation5 + $0x8e8] sm:$0xff] }
 0x1b5   : > { %4768 = vmatmul.msk.f32.vlgmr.msra.gmra.mxu0 %vm892_vm1, %v4766_v1  ;;  %v1425_v1 = vld [vmem:[#allocation5 + $0x8d0] sm:$0xff] }
 0x1b6   : > { %1305 = vmatpush.msrb.mxu0 %v1227_v20  ;;  %1338 = vmatpush.msrb.mxu1 %v1233_v21  ;;  %v1426_v20 = vld [vmem:[#allocation5 + $0x8d8] sm:$0xff]  ;;  %v1424_v21 = vld [vmem:[#allocation5 + $0x8c8] sm:$0xff] }
 0x1b8   : > { %v1302_v26 = vpop.f32.mrf.mxu3  ;;  %1306 = vmatpush.msrb.mxu0 %v1225_v22  ;;  %1339 = vmatpush.msrb.mxu1 %v1231_v24  ;;  %v1422_v22 = vld [vmem:[#allocation5 + $0x8b8] sm:$0xff] }
 0x1b9   : > { %v1303_v28 = vadd.f32 %v1302_v26, %v1282_v23  ;;  %v1420_v23 = vld [vmem:[#allocation5 + $0x8a8] sm:$0xff]  ;;  %v1418_v24 = vld [vmem:[#allocation5 + $0x898] sm:$0xff] }
 0x1ba   : > { %1307 = vmatpush.msrb.mxu0 %v1223_v25  ;;  %1340 = vmatpush.msrb.mxu1 %v1229_v27  ;;  %v1416_v25 = vld [vmem:[#allocation5 + $0x888] sm:$0xff]  ;;  %v1414_v26 = vld [vmem:[#allocation5 + $0x878] sm:$0xff] }
 0x1bb   : > { %4772 = vmatpush.msk.msra.mxu2 %vm896_vm0, %v1303_v28  ;;  %1341 = vmatmul.f32.vlgmr.msrb.gmra.mxu1 %v5980_v12  ;;  %v1207_v12 = vld [vmem:[#allocation5 + $0x658] sm:$0xff]  ;;  %v1412_v27 = vld [vmem:[#allocation5 + $0x868] sm:$0xff] }
 0x1bc   : > { %1308 = vmatpush.msrb.mxu0 %v1221_v29  ;;  %4773 = vmatmul.msk.f32.vlgmr.msra.gmra.mxu2 %vm892_vm1, %v6007_v30  ;;  %v1410_v29 = vld [vmem:[#allocation5 + $0x858] sm:$0xff] }
 0x1bd   : > { %1488 = vmatpush.msra.mxu1 %v1461_v34  ;;  %1508 = vmatpush.msrb.mxu2 %v1430_v18  ;;  %v1408_v34 = vld [vmem:[#allocation5 + $0x848] sm:$0xff] }
 0x1be   : > { %1309 = vmatpush.msrb.mxu0 %v1219_v33  ;;  %v6035_v18 = vld.sshfl [vmem:[#allocation1] sm:$0xff pattern:$0x75316420] }
 0x1bf   : > { %1489 = vmatpush.msra.mxu1 %v1459_v36  ;;  %1509 = vmatpush.msrb.mxu2 %v1428_v19  ;;  %v1404_v36 = vld [vmem:[#allocation5 + $0x828] sm:$0xff]  ;;  %v6037_v19 = vld.sshfl [vmem:[#allocation1 + $0x8] sm:$0xff pattern:$0x75316420] }
 0x1c0   : > { %1310 = vmatpush.msrb.mxu0 %v1217_v35  ;;  %v1406_v35 = vld [vmem:[#allocation5 + $0x838] sm:$0xff]  ;;  %1869 = vst [vmem:[#allocation1] ss:$2 sm:$0xff] %v5946_v44 }
 0x1c1   : > { %1490 = vmatpush.msra.mxu1 %v1457_v38  ;;  %1510 = vmatpush.msrb.mxu2 %v1426_v20  ;;  %v1662_v20 = vld [vmem:[#allocation5 + $0xbe0] sm:$0xff] }
 0x1c2   : > { %1311 = vmatpush.msrb.mxu0 %v1215_v37 }
 0x1c3   : > { %1491 = vmatpush.msra.mxu1 %v1455_v40  ;;  %1511 = vmatpush.msrb.mxu2 %v1424_v21  ;;  %v1660_v21 = vld [vmem:[#allocation5 + $0xbd0] sm:$0xff] }
 0x1c4   : > { %1312 = vmatpush.msrb.mxu0 %v1213_v39  ;;  %v1402_v39 = vld [vmem:[#allocation5 + $0x818] sm:$0xff] }
 0x1c5   : > { %1492 = vmatpush.msra.mxu1 %v1453_v42  ;;  %1512 = vmatpush.msrb.mxu2 %v1422_v22  ;;  %v1462_v42 = vld [vmem:[#allocation5 + $0x9f8] sm:$0xff]  ;;  %v1658_v22 = vld [vmem:[#allocation5 + $0xbc0] sm:$0xff] }
 0x1c6   : > { %1313 = vmatpush.msrb.mxu0 %v1211_v41  ;;  %v1400_v41 = vld [vmem:[#allocation5 + $0x808] sm:$0xff] }
 0x1c7   : > { %1493 = vmatpush.msra.mxu1 %v1451_v45  ;;  %1513 = vmatpush.msrb.mxu2 %v1420_v23  ;;  %v1460_v45 = vld [vmem:[#allocation5 + $0x9e8] sm:$0xff]  ;;  %v1656_v23 = vld [vmem:[#allocation5 + $0xbb0] sm:$0xff] }
 0x1c8   : > { %1314 = vmatpush.msrb.mxu0 %v1209_v43  ;;  %v1632_v43 = vld [vmem:[#allocation5 + $0xaf0] sm:$0xff] }
 0x1c9   : > { %1494 = vmatpush.msra.mxu1 %v1449_v46  ;;  %1514 = vmatpush.msrb.mxu2 %v1418_v24  ;;  %v1458_v46 = vld [vmem:[#allocation5 + $0x9d8] sm:$0xff]  ;;  %v1654_v24 = vld [vmem:[#allocation5 + $0xba0] sm:$0xff] }
 0x1ca   : > { %1315 = vmatpush.msrb.mxu0 %v1207_v12  ;;  %v1630_v12 = vld [vmem:[#allocation5 + $0xae0] sm:$0xff] }
 0x1cb   : > { %1495 = vmatpush.msra.mxu1 %v1447_v48  ;;  %1515 = vmatpush.msrb.mxu2 %v1416_v25  ;;  %v1456_v48 = vld [vmem:[#allocation5 + $0x9c8] sm:$0xff]  ;;  %v1652_v25 = vld [vmem:[#allocation5 + $0xb90] sm:$0xff] }
 0x1cc   : > { %1316 = vmatpush.msrb.mxu0 %v1205_v47  ;;  %v1628_v47 = vld [vmem:[#allocation5 + $0xad0] sm:$0xff] }
 0x1cd   : > { %1496 = vmatpush.msra.mxu1 %v1445_v50  ;;  %1516 = vmatpush.msrb.mxu2 %v1414_v26  ;;  %v1454_v50 = vld [vmem:[#allocation5 + $0x9b8] sm:$0xff]  ;;  %v1648_v26 = vld [vmem:[#allocation5 + $0xb70] sm:$0xff] }
 0x1ce   : > { %1317 = vmatpush.msrb.mxu0 %v1203_v49  ;;  %v1626_v49 = vld [vmem:[#allocation5 + $0xac0] sm:$0xff] }
 0x1cf   : > { %1497 = vmatpush.msra.mxu1 %v1443_v52  ;;  %1517 = vmatpush.msrb.mxu2 %v1412_v27  ;;  %v1452_v52 = vld [vmem:[#allocation5 + $0x9a8] sm:$0xff]  ;;  %v1646_v27 = vld [vmem:[#allocation5 + $0xb60] sm:$0xff] }
 0x1d0   : > { %1318 = vmatpush.msrb.mxu0 %v1201_v51  ;;  %v1624_v51 = vld [vmem:[#allocation5 + $0xab0] sm:$0xff] }
 0x1d1   : > { %1498 = vmatpush.msra.mxu1 %v1441_v54  ;;  %1518 = vmatpush.msrb.mxu2 %v1410_v29  ;;  %v1620_v54 = vld [vmem:[#allocation5 + $0xa90] sm:$0xff] }
 0x1d2   : > { %1319 = vmatpush.msrb.mxu0 %v1199_v53  ;;  %v1450_v53 = vld [vmem:[#allocation5 + $0x998] sm:$0xff]  ;;  %v1644_v29 = vld [vmem:[#allocation5 + $0xb50] sm:$0xff] }
 0x1d3   : > { %1499 = vmatpush.msra.mxu1 %v1439_v56  ;;  %1519 = vmatpush.msrb.mxu2 %v1408_v34  ;;  %v1618_v56 = vld [vmem:[#allocation5 + $0xa80] sm:$0xff] }
 0x1d4   : > { %1320 = vmatpush.msrb.mxu0 %v1197_v55  ;;  %v1448_v55 = vld [vmem:[#allocation5 + $0x988] sm:$0xff]  ;;  %v1642_v34 = vld [vmem:[#allocation5 + $0xb40] sm:$0xff] }
 0x1d5   : > { %1321 = vmatmul.f32.vlgmr.msrb.gmra.mxu0 %v5978_v11  ;;  %1500 = vmatpush.msra.mxu1 %v1437_v58  ;;  %v1417_v11 = vld [vmem:[#allocation5 + $0x890] sm:$0xff] }
 0x1d6   : > { %1468 = vmatpush.msra.mxu0 %v1429_v57  ;;  %1520 = vmatpush.msrb.mxu2 %v1406_v35  ;;  %v1446_v57 = vld [vmem:[#allocation5 + $0x978] sm:$0xff]  ;;  %v1616_v58 = vld [vmem:[#allocation5 + $0xa70] sm:$0xff] }
 0x1d7   : > { %1501 = vmatpush.msra.mxu1 %v1435_v0  ;;  %v1442_v0 = vld [vmem:[#allocation5 + $0x958] sm:$0xff]  ;;  %v1640_v35 = vld [vmem:[#allocation5 + $0xb30] sm:$0xff] }
 0x1d8   : > { %1469 = vmatpush.msra.mxu0 %v1427_v63  ;;  %1521 = vmatpush.msrb.mxu2 %v1404_v36  ;;  %v1614_v63 = vld [vmem:[#allocation5 + $0xa60] sm:$0xff] }
 0x1d9   : > { %1502 = vmatpush.msra.mxu1 %v1433_v2  ;;  %v1440_v2 = vld [vmem:[#allocation5 + $0x948] sm:$0xff]  ;;  %v1638_v36 = vld [vmem:[#allocation5 + $0xb20] sm:$0xff] }
 0x1da   : > { %1470 = vmatpush.msra.mxu0 %v1425_v1  ;;  %1522 = vmatpush.msrb.mxu2 %v1402_v39  ;;  %v1612_v1 = vld [vmem:[#allocation5 + $0xa50] sm:$0xff]  ;;  %v1633_v39 = vld [vmem:[#allocation5 + $0xaf8] sm:$0xff] }
 0x1db   : > { %1503 = vmatpush.msra.mxu1 %v1431_v32  ;;  %v1438_v32 = vld [vmem:[#allocation5 + $0x938] sm:$0xff] }
 0x1dc   : > { %1471 = vmatpush.msra.mxu0 %v1423_v31  ;;  %1504 = vmatmul.f32.vlgmr.msra.gmra.mxu1 %v6015_v62  ;;  %v1610_v31 = vld [vmem:[#allocation5 + $0xa40] sm:$0xff] }
 0x1dd   : > { %1523 = vmatpush.msrb.mxu2 %v1400_v41  ;;  %v1629_v41 = vld [vmem:[#allocation5 + $0xad8] sm:$0xff] }
 0x1de   : > { %1472 = vmatpush.msra.mxu0 %v1421_v3  ;;  %1524 = vmatmul.f32.vlgmr.msrb.gmra.mxu2 %v6013_v59  ;;  %v1608_v3 = vld [vmem:[#allocation5 + $0xa30] sm:$0xff] }
 0x1df   : > { %1671 = vmatpush.msra.mxu2 %v1632_v43  ;;  %v1625_v43 = vld [vmem:[#allocation5 + $0xab8] sm:$0xff] }
 0x1e0   : > { %1473 = vmatpush.msra.mxu0 %v1419_v4  ;;  %v1436_v4 = vld [vmem:[#allocation5 + $0x928] sm:$0xff] }
 0x1e1   : > { %1672 = vmatpush.msra.mxu2 %v1630_v12  ;;  %v1621_v12 = vld [vmem:[#allocation5 + $0xa98] sm:$0xff] }
 0x1e2   : > { %1474 = vmatpush.msra.mxu0 %v1417_v11  ;;  %v1606_v11 = vld [vmem:[#allocation5 + $0xa20] sm:$0xff] }
 0x1e3   : > { %1673 = vmatpush.msra.mxu2 %v1628_v47  ;;  %v1617_v47 = vld [vmem:[#allocation5 + $0xa78] sm:$0xff] }
 0x1e4   : > { %1475 = vmatpush.msra.mxu0 %v1415_v5 }
 0x1e5   : > { %1674 = vmatpush.msra.mxu2 %v1626_v49 }
 0x1e6   : > { %1476 = vmatpush.msra.mxu0 %v1413_v6  ;;  %v1434_v6 = vld [vmem:[#allocation5 + $0x918] sm:$0xff] }
 0x1e7   : > { %1675 = vmatpush.msra.mxu2 %v1624_v51 }
 0x1e8   : > { %1477 = vmatpush.msra.mxu0 %v1411_v9  ;;  %v1604_v9 = vld [vmem:[#allocation5 + $0xa10] sm:$0xff] }
 0x1ea   : > { %1478 = vmatpush.msra.mxu0 %v1409_v10 }
 0x1ec   : > { %1479 = vmatpush.msra.mxu0 %v1407_v13  ;;  %v1432_v13 = vld [vmem:[#allocation5 + $0x908] sm:$0xff] }
 0x1ee   : > { %1480 = vmatpush.msra.mxu0 %v1405_v14 }
 0x1f0   : > { %1481 = vmatpush.msra.mxu0 %v1403_v15  ;;  %v6032_v15 = vld [vmem:[%s8664_s5 + $0x10] sm:$0xf] }
 0x1f2   : > { %1482 = vmatpush.msra.mxu0 %v1401_v16  ;;  %v1664_v16 = vld [vmem:[#allocation5 + $0xbf0] sm:$0xff] }
 0x1f4   : > { %1483 = vmatpush.msra.mxu0 %v1399_v17  ;;  %v1602_v17 = vld [vmem:[#allocation5 + $0xa00] sm:$0xff] }
 0x1f5   : > { %1484 = vmatmul.f32.vlgmr.msra.gmra.mxu0 %v6013_v59  ;;  %v1444_v59 = vld [vmem:[#allocation5 + $0x968] sm:$0xff] }
 0x218   : > { %v6021_v28 = vpop.f32.mrf.mxu1 }
 0x232   : > { %v6023_v33 = vpop.f32.mrf.mxu0 }
 0x238   : > { %v1342_v37 = vpop.f32.mrf.mxu1 }
 0x23f   : > { %v6045_v49 = vpop.f32.mrf.mxu2 }
 0x252   : > { %v1322_v38 = vpop.f32.mrf.mxu0 }
 0x253   : > { %v1343_v40 = vadd.f32 %v1342_v37, %v1322_v38  ;;  %v1636_v37 = vld [vmem:[#allocation5 + $0xb10] sm:$0xff]  ;;  %v1634_v38 = vld [vmem:[#allocation5 + $0xb00] sm:$0xff] }
 0x255   : > { %4774 = vmatpush.msk.msra.mxu3 %vm896_vm0, %v1343_v40  ;;  %v1631_v40 = vld [vmem:[#allocation5 + $0xae8] sm:$0xff] }
 0x256   : > { %4775 = vmatmul.msk.f32.vlgmr.msra.gmra.mxu3 %vm892_vm1, %v6007_v30  ;;  %v1622_v30 = vld [vmem:[#allocation5 + $0xaa0] sm:$0xff] }
 0x257   : > { %1528 = vmatpush.msrb.mxu3 %v1462_v42  ;;  %1676 = vmatpush.msra.mxu2 %v1622_v30  ;;  %v1627_v42 = vld [vmem:[#allocation5 + $0xac8] sm:$0xff]  ;;  %v1609_v30 = vld [vmem:[#allocation5 + $0xa38] sm:$0xff] }
 0x259   : > { %1529 = vmatpush.msrb.mxu3 %v1460_v45  ;;  %1677 = vmatpush.msra.mxu2 %v1620_v54  ;;  %v1505_v5 = vpop.f32.mrf.mxu1  ;;  %v1623_v45 = vld [vmem:[#allocation5 + $0xaa8] sm:$0xff] }
 0x25b   : > { %1530 = vmatpush.msrb.mxu3 %v1458_v46  ;;  %1678 = vmatpush.msra.mxu2 %v1618_v56  ;;  %v1619_v46 = vld [vmem:[#allocation5 + $0xa88] sm:$0xff]  ;;  %v1605_v56 = vld [vmem:[#allocation5 + $0xa18] sm:$0xff] }
 0x25d   : > { %1531 = vmatpush.msrb.mxu3 %v1456_v48  ;;  %1679 = vmatpush.msra.mxu2 %v1616_v58  ;;  %v1615_v48 = vld [vmem:[#allocation5 + $0xa68] sm:$0xff] }
 0x25e   : > { %v1603_v58 = vld [vmem:[#allocation5 + $0xa08] sm:$0xff] }
 0x25f   : > { %1532 = vmatpush.msrb.mxu3 %v1454_v50  ;;  %1680 = vmatpush.msra.mxu2 %v1614_v63  ;;  %v1613_v50 = vld [vmem:[#allocation5 + $0xa58] sm:$0xff]  ;;  %v1835_v63 = vld [vmem:[#allocation5 + $0xcf0] sm:$0xff] }
 0x261   : > { %1533 = vmatpush.msrb.mxu3 %v1452_v52  ;;  %1681 = vmatpush.msra.mxu2 %v1612_v1  ;;  %v1611_v52 = vld [vmem:[#allocation5 + $0xa48] sm:$0xff]  ;;  %v1525_v54 = vpop.f32.mrf.mxu2  ;;  %v1833_v1 = vld [vmem:[#allocation5 + $0xce0] sm:$0xff] }
 0x263   : > { %1534 = vmatpush.msrb.mxu3 %v1450_v53  ;;  %1682 = vmatpush.msra.mxu2 %v1610_v31  ;;  %v1607_v53 = vld [vmem:[#allocation5 + $0xa28] sm:$0xff]  ;;  %v1831_v31 = vld [vmem:[#allocation5 + $0xcd0] sm:$0xff] }
 0x265   : > { %1535 = vmatpush.msrb.mxu3 %v1448_v55  ;;  %1683 = vmatpush.msra.mxu2 %v1608_v3  ;;  %v1829_v3 = vld [vmem:[#allocation5 + $0xcc0] sm:$0xff] }
 0x267   : > { %1536 = vmatpush.msrb.mxu3 %v1446_v57  ;;  %1684 = vmatpush.msra.mxu2 %v1606_v11  ;;  %v1827_v11 = vld [vmem:[#allocation5 + $0xcb0] sm:$0xff] }
 0x269   : > { %1537 = vmatpush.msrb.mxu3 %v1444_v59  ;;  %1685 = vmatpush.msra.mxu2 %v1604_v9  ;;  %v1665_v59 = vld [vmem:[#allocation5 + $0xbf8] sm:$0xff] }
 0x26a   : > { %v1653_v9 = vld [vmem:[#allocation5 + $0xb98] sm:$0xff] }
 0x26b   : > { %1538 = vmatpush.msrb.mxu3 %v1442_v0  ;;  %1686 = vmatpush.msra.mxu2 %v1602_v17  ;;  %v1663_v0 = vld [vmem:[#allocation5 + $0xbe8] sm:$0xff] }
 0x26c   : > { %1687 = vmatmul.f32.vlgmr.msra.gmra.mxu2 %v6035_v18  ;;  %v1647_v17 = vld [vmem:[#allocation5 + $0xb68] sm:$0xff] }
 0x26d   : > { %1539 = vmatpush.msrb.mxu3 %v1440_v2  ;;  %v1661_v2 = vld [vmem:[#allocation5 + $0xbd8] sm:$0xff] }
 0x26f   : > { %1540 = vmatpush.msrb.mxu3 %v1438_v32  ;;  %v1659_v32 = vld [vmem:[#allocation5 + $0xbc8] sm:$0xff] }
 0x271   : > { %1541 = vmatpush.msrb.mxu3 %v1436_v4  ;;  %v1657_v4 = vld [vmem:[#allocation5 + $0xbb8] sm:$0xff] }
 0x272   : > { %v1485_v10 = vpop.f32.mrf.mxu0 }
 0x273   : > { %v1506_v14 = vadd.f32 %v1505_v5, %v1485_v10  ;;  %1542 = vmatpush.msrb.mxu3 %v1434_v6  ;;  %v1655_v5 = vld [vmem:[#allocation5 + $0xba8] sm:$0xff]  ;;  %v1825_v6 = vld [vmem:[#allocation5 + $0xca0] sm:$0xff]  ;;  %v1823_v10 = vld [vmem:[#allocation5 + $0xc90] sm:$0xff] }
 0x275   : > { %1543 = vmatpush.msrb.mxu3 %v1432_v13  ;;  %4777 = vmatpush.msk.msrb.mxu0 %vm896_vm0, %v1506_v14  ;;  %v1651_v13 = vld [vmem:[#allocation5 + $0xb88] sm:$0xff]  ;;  %v1821_v14 = vld [vmem:[#allocation5 + $0xc80] sm:$0xff] }
 0x276   : > { %1544 = vmatmul.f32.vlgmr.msrb.gmra.mxu3 %v6015_v62  ;;  %4778 = vmatmul.msk.f32.vlgmr.msrb.gmra.mxu0 %vm892_vm1, %v6032_v15  ;;  %v1650_v62 = vld [vmem:[#allocation5 + $0xb80] sm:$0xff] }
 0x277   : > { %1691 = vmatpush.msra.mxu3 %v1664_v16  ;;  %1711 = vmatpush.msra.mxu0 %v1633_v39  ;;  %v1819_v16 = vld [vmem:[#allocation5 + $0xc70] sm:$0xff] }
 0x278   : > { %v1867_v39 = vld [vmem:[#allocation5 + $0xdf0] sm:$0xff] }
 0x279   : > { %1692 = vmatpush.msra.mxu3 %v1662_v20  ;;  %1712 = vmatpush.msra.mxu0 %v1631_v40  ;;  %v1645_v20 = vld [vmem:[#allocation5 + $0xb58] sm:$0xff]  ;;  %v1805_v40 = vld [vmem:[#allocation5 + $0xc00] sm:$0xff] }
 0x27b   : > { %1693 = vmatpush.msra.mxu3 %v1660_v21  ;;  %1713 = vmatpush.msra.mxu0 %v1629_v41  ;;  %v1815_v21 = vld [vmem:[#allocation5 + $0xc50] sm:$0xff]  ;;  %v6059_v41 = vld.sshfl [vmem:[#allocation1] sm:$0xff pattern:$0x75316420] }
 0x27d   : > { %1694 = vmatpush.msra.mxu3 %v1658_v22  ;;  %1714 = vmatpush.msra.mxu0 %v1627_v42  ;;  %v1643_v22 = vld [vmem:[#allocation5 + $0xb48] sm:$0xff]  ;;  %v6061_v42 = vld.sshfl [vmem:[#allocation1 + $0x8] sm:$0xff pattern:$0x75316420] }
 0x27e   : > { %2072 = vst [vmem:[#allocation1] ss:$2 sm:$0xff] %v5946_v44 }
 0x27f   : > { %1695 = vmatpush.msra.mxu3 %v1656_v23  ;;  %1715 = vmatpush.msra.mxu0 %v1625_v43  ;;  %v1813_v23 = vld [vmem:[#allocation5 + $0xc40] sm:$0xff] }
 0x280   : > { %v1865_v43 = vld [vmem:[#allocation5 + $0xde0] sm:$0xff] }
 0x281   : > { %1696 = vmatpush.msra.mxu3 %v1654_v24  ;;  %1716 = vmatpush.msra.mxu0 %v1623_v45  ;;  %v1641_v24 = vld [vmem:[#allocation5 + $0xb38] sm:$0xff]  ;;  %v1863_v45 = vld [vmem:[#allocation5 + $0xdd0] sm:$0xff] }
 0x283   : > { %1697 = vmatpush.msra.mxu3 %v1652_v25  ;;  %1717 = vmatpush.msra.mxu0 %v1621_v12  ;;  %v1811_v25 = vld [vmem:[#allocation5 + $0xc30] sm:$0xff]  ;;  %v1861_v12 = vld [vmem:[#allocation5 + $0xdc0] sm:$0xff] }
 0x285   : > { %1698 = vmatpush.msra.mxu3 %v1650_v62  ;;  %1718 = vmatpush.msra.mxu0 %v1619_v46  ;;  %v1639_v62 = vld [vmem:[#allocation5 + $0xb28] sm:$0xff]  ;;  %v1859_v46 = vld [vmem:[#allocation5 + $0xdb0] sm:$0xff] }
 0x287   : > { %1699 = vmatpush.msra.mxu3 %v1648_v26  ;;  %1719 = vmatpush.msra.mxu0 %v1617_v47  ;;  %v1809_v26 = vld [vmem:[#allocation5 + $0xc20] sm:$0xff] }
 0x288   : > { %v1857_v47 = vld [vmem:[#allocation5 + $0xda0] sm:$0xff] }
 0x289   : > { %1700 = vmatpush.msra.mxu3 %v1646_v27  ;;  %1720 = vmatpush.msra.mxu0 %v1615_v48  ;;  %v1855_v48 = vld [vmem:[#allocation5 + $0xd90] sm:$0xff] }
 0x28b   : > { %1701 = vmatpush.msra.mxu3 %v1644_v29  ;;  %1721 = vmatpush.msra.mxu0 %v1613_v50  ;;  %v1637_v29 = vld [vmem:[#allocation5 + $0xb18] sm:$0xff]  ;;  %v1851_v50 = vld [vmem:[#allocation5 + $0xd70] sm:$0xff] }
 0x28d   : > { %1702 = vmatpush.msra.mxu3 %v1642_v34  ;;  %1722 = vmatpush.msra.mxu0 %v1611_v52  ;;  %v1807_v34 = vld [vmem:[#allocation5 + $0xc10] sm:$0xff]  ;;  %v1849_v52 = vld [vmem:[#allocation5 + $0xd60] sm:$0xff] }
 0x28f   : > { %1703 = vmatpush.msra.mxu3 %v1640_v35  ;;  %1723 = vmatpush.msra.mxu0 %v1609_v30  ;;  %v1847_v30 = vld [vmem:[#allocation5 + $0xd50] sm:$0xff] }
 0x291   : > { %1704 = vmatpush.msra.mxu3 %v1638_v36  ;;  %1724 = vmatpush.msra.mxu0 %v1607_v53  ;;  %v1635_v36 = vld [vmem:[#allocation5 + $0xb08] sm:$0xff]  ;;  %v1845_v53 = vld [vmem:[#allocation5 + $0xd40] sm:$0xff] }
 0x293   : > { %1705 = vmatpush.msra.mxu3 %v1636_v37  ;;  %1725 = vmatpush.msra.mxu0 %v1605_v56  ;;  %v1839_v56 = vld [vmem:[#allocation5 + $0xd10] sm:$0xff] }
 0x295   : > { %1706 = vmatpush.msra.mxu3 %v1634_v38  ;;  %1726 = vmatpush.msra.mxu0 %v1603_v58  ;;  %v6056_v38 = vld [vmem:[%s8664_s5 + $0x14] sm:$0xf] }
 0x296   : > { %1707 = vmatmul.f32.vlgmr.msra.gmra.mxu3 %v6037_v19  ;;  %1727 = vmatmul.f32.vlgmr.msra.gmra.mxu0 %v6035_v18  ;;  %v1817_v18 = vld [vmem:[#allocation5 + $0xc60] sm:$0xff]  ;;  %v1836_v58 = vld [vmem:[#allocation5 + $0xcf8] sm:$0xff] }
 0x297   : > { %1874 = vmatpush.msrb.mxu0 %v1835_v63  ;;  %v1832_v63 = vld [vmem:[#allocation5 + $0xcd8] sm:$0xff] }
 0x299   : > { %1875 = vmatpush.msrb.mxu0 %v1833_v1  ;;  %v1828_v1 = vld [vmem:[#allocation5 + $0xcb8] sm:$0xff] }
 0x29b   : > { %1876 = vmatpush.msrb.mxu0 %v1831_v31  ;;  %v1824_v31 = vld [vmem:[#allocation5 + $0xc98] sm:$0xff] }
 0x29d   : > { %1877 = vmatpush.msrb.mxu0 %v1829_v3  ;;  %v1820_v3 = vld [vmem:[#allocation5 + $0xc78] sm:$0xff] }
 0x29f   : > { %1878 = vmatpush.msrb.mxu0 %v1827_v11 }
 0x2a1   : > { %1879 = vmatpush.msrb.mxu0 %v1825_v6 }
 0x2a3   : > { %1880 = vmatpush.msrb.mxu0 %v1823_v10  ;;  %v1812_v10 = vld [vmem:[#allocation5 + $0xc38] sm:$0xff] }
 0x2a5   : > { %1881 = vmatpush.msrb.mxu0 %v1821_v14 }
 0x2a7   : > { %1882 = vmatpush.msrb.mxu0 %v1819_v16  ;;  %v1808_v16 = vld [vmem:[#allocation5 + $0xc18] sm:$0xff] }
 0x2a9   : > { %1883 = vmatpush.msrb.mxu0 %v1817_v18  ;;  %v1806_v18 = vld [vmem:[#allocation5 + $0xc08] sm:$0xff] }
 0x2ab   : > { %1884 = vmatpush.msrb.mxu0 %v1815_v21  ;;  %v2038_v21 = vld [vmem:[#allocation5 + $0xef0] sm:$0xff] }
 0x2ad   : > { %1885 = vmatpush.msrb.mxu0 %v1813_v23  ;;  %v2036_v23 = vld [vmem:[#allocation5 + $0xee0] sm:$0xff] }
 0x2af   : > { %1886 = vmatpush.msrb.mxu0 %v1811_v25  ;;  %v2034_v25 = vld [vmem:[#allocation5 + $0xed0] sm:$0xff] }
 0x2b1   : > { %1887 = vmatpush.msrb.mxu0 %v1809_v26  ;;  %v2032_v26 = vld [vmem:[#allocation5 + $0xec0] sm:$0xff] }
 0x2b3   : > { %1888 = vmatpush.msrb.mxu0 %v1807_v34  ;;  %v1858_v34 = vld [vmem:[#allocation5 + $0xda8] sm:$0xff] }
 0x2b5   : > { %1889 = vmatpush.msrb.mxu0 %v1805_v40  ;;  %v1852_v40 = vld [vmem:[#allocation5 + $0xd78] sm:$0xff] }
 0x2b6   : > { %1890 = vmatmul.f32.vlgmr.msrb.gmra.mxu0 %v6059_v41 }
 0x2d9   : > { %v6047_v51 = vpop.f32.mrf.mxu3 }
 0x2ef   : > { %v1688_v27 = vpop.f32.mrf.mxu2 }
 0x2f3   : > { %v6069_v11 = vpop.f32.mrf.mxu0 }
 0x2f9   : > { %v1545_v55 = vpop.f32.mrf.mxu3 }
 0x2fa   : > { %v1546_v57 = vadd.f32 %v1545_v55, %v1525_v54  ;;  %v1843_v54 = vld [vmem:[#allocation5 + $0xd30] sm:$0xff]  ;;  %v1841_v55 = vld [vmem:[#allocation5 + $0xd20] sm:$0xff] }
 0x2fc   : > { %4779 = vmatpush.msk.msrb.mxu1 %vm896_vm0, %v1546_v57  ;;  %v1837_v57 = vld [vmem:[#allocation5 + $0xd00] sm:$0xff] }
 0x2fd   : > { %4780 = vmatmul.msk.f32.vlgmr.msrb.gmra.mxu1 %vm892_vm1, %v6032_v15  ;;  %v1649_v15 = vld [vmem:[#allocation5 + $0xb78] sm:$0xff] }
 0x2fe   : > { %1731 = vmatpush.msra.mxu1 %v1665_v59  ;;  %v1834_v59 = vld [vmem:[#allocation5 + $0xce8] sm:$0xff] }
 0x300   : > { %1732 = vmatpush.msra.mxu1 %v1663_v0  ;;  %v1830_v0 = vld [vmem:[#allocation5 + $0xcc8] sm:$0xff] }
 0x302   : > { %1733 = vmatpush.msra.mxu1 %v1661_v2  ;;  %v1826_v2 = vld [vmem:[#allocation5 + $0xca8] sm:$0xff] }
 0x304   : > { %1734 = vmatpush.msra.mxu1 %v1659_v32  ;;  %v1822_v32 = vld [vmem:[#allocation5 + $0xc88] sm:$0xff] }
 0x306   : > { %1735 = vmatpush.msra.mxu1 %v1657_v4  ;;  %v1818_v4 = vld [vmem:[#allocation5 + $0xc68] sm:$0xff] }
 0x308   : > { %1736 = vmatpush.msra.mxu1 %v1655_v5  ;;  %v1816_v5 = vld [vmem:[#allocation5 + $0xc58] sm:$0xff] }
 0x30a   : > { %1737 = vmatpush.msra.mxu1 %v1653_v9  ;;  %v1814_v9 = vld [vmem:[#allocation5 + $0xc48] sm:$0xff] }
 0x30c   : > { %1738 = vmatpush.msra.mxu1 %v1651_v13  ;;  %v1810_v13 = vld [vmem:[#allocation5 + $0xc28] sm:$0xff] }
 0x30e   : > { %1739 = vmatpush.msra.mxu1 %v1649_v15 }
 0x310   : > { %1740 = vmatpush.msra.mxu1 %v1647_v17 }
 0x312   : > { %1741 = vmatpush.msra.mxu1 %v1645_v20  ;;  %v1868_v20 = vld [vmem:[#allocation5 + $0xdf8] sm:$0xff] }
 0x313   : > { %v1728_v14 = vpop.f32.mrf.mxu0 }
 0x314   : > { %1742 = vmatpush.msra.mxu1 %v1643_v22  ;;  %v1866_v22 = vld [vmem:[#allocation5 + $0xde8] sm:$0xff] }
 0x316   : > { %1743 = vmatpush.msra.mxu1 %v1641_v24  ;;  %v1864_v24 = vld [vmem:[#allocation5 + $0xdd8] sm:$0xff] }
 0x318   : > { %1744 = vmatpush.msra.mxu1 %v1639_v62  ;;  %v1862_v62 = vld [vmem:[#allocation5 + $0xdc8] sm:$0xff] }
 0x319   : > { %v1708_v35 = vpop.f32.mrf.mxu3 }
 0x31a   : > { %v1709_v37 = vadd.f32 %v1708_v35, %v1688_v27  ;;  %1745 = vmatpush.msra.mxu1 %v1637_v29  ;;  %v1860_v27 = vld [vmem:[#allocation5 + $0xdb8] sm:$0xff]  ;;  %v2030_v29 = vld [vmem:[#allocation5 + $0xeb0] sm:$0xff]  ;;  %v2028_v35 = vld [vmem:[#allocation5 + $0xea0] sm:$0xff] }
 0x31c   : > { %1746 = vmatpush.msra.mxu1 %v1635_v36  ;;  %4782 = vmatpush.msk.msrb.mxu2 %vm896_vm0, %v1709_v37  ;;  %v1856_v36 = vld [vmem:[#allocation5 + $0xd98] sm:$0xff]  ;;  %v2026_v37 = vld [vmem:[#allocation5 + $0xe90] sm:$0xff] }
 0x31d   : > { %1747 = vmatmul.f32.vlgmr.msra.gmra.mxu1 %v6037_v19  ;;  %4783 = vmatmul.msk.f32.vlgmr.msrb.gmra.mxu2 %vm892_vm1, %v6056_v38  ;;  %v1853_v19 = vld [vmem:[#allocation5 + $0xd80] sm:$0xff] }
 0x31e   : > { %1894 = vmatpush.msrb.mxu1 %v1867_v39  ;;  %1914 = vmatpush.msra.mxu2 %v1836_v58  ;;  %v2024_v39 = vld [vmem:[#allocation5 + $0xe80] sm:$0xff] }
 0x320   : > { %1895 = vmatpush.msrb.mxu1 %v1865_v43  ;;  %1915 = vmatpush.msra.mxu2 %v1834_v59  ;;  %v1850_v43 = vld [vmem:[#allocation5 + $0xd68] sm:$0xff]  ;;  %v6080_v59 = vld [vmem:[%s8664_s5 + $0x18] sm:$0xf] }
 0x322   : > { %1896 = vmatpush.msrb.mxu1 %v1863_v45  ;;  %1916 = vmatpush.msra.mxu2 %v1832_v63  ;;  %v2020_v45 = vld [vmem:[#allocation5 + $0xe60] sm:$0xff]  ;;  %v2070_v63 = vld [vmem:[#allocation5 + $0xff0] sm:$0xff] }
 0x324   : > { %1897 = vmatpush.msrb.mxu1 %v1861_v12  ;;  %1917 = vmatpush.msra.mxu2 %v1830_v0  ;;  %v1848_v12 = vld [vmem:[#allocation5 + $0xd58] sm:$0xff]  ;;  %v2008_v0 = vld [vmem:[#allocation5 + $0xe00] sm:$0xff] }
 0x326   : > { %1898 = vmatpush.msrb.mxu1 %v1859_v46  ;;  %1918 = vmatpush.msra.mxu2 %v1828_v1  ;;  %v2018_v46 = vld [vmem:[#allocation5 + $0xe50] sm:$0xff]  ;;  %v6083_v1 = vld.sshfl [vmem:[#allocation1] sm:$0xff pattern:$0x75316420] }
 0x328   : > { %1899 = vmatpush.msrb.mxu1 %v1857_v47  ;;  %1919 = vmatpush.msra.mxu2 %v1826_v2  ;;  %v1846_v47 = vld [vmem:[#allocation5 + $0xd48] sm:$0xff]  ;;  %v6085_v2 = vld.sshfl [vmem:[#allocation1 + $0x8] sm:$0xff pattern:$0x75316420] }
 0x329   : > { %2275 = vst [vmem:[#allocation1] ss:$2 sm:$0xff] %v5946_v44 }
 0x32a   : > { %1900 = vmatpush.msrb.mxu1 %v1855_v48  ;;  %1920 = vmatpush.msra.mxu2 %v1824_v31  ;;  %v2016_v48 = vld [vmem:[#allocation5 + $0xe40] sm:$0xff] }
 0x32b   : > { %v2068_v31 = vld [vmem:[#allocation5 + $0xfe0] sm:$0xff] }
 0x32c   : > { %1901 = vmatpush.msrb.mxu1 %v1853_v19  ;;  %1921 = vmatpush.msra.mxu2 %v1822_v32  ;;  %v1844_v19 = vld [vmem:[#allocation5 + $0xd38] sm:$0xff]  ;;  %v2066_v32 = vld [vmem:[#allocation5 + $0xfd0] sm:$0xff] }
 0x32e   : > { %1902 = vmatpush.msrb.mxu1 %v1851_v50  ;;  %1922 = vmatpush.msra.mxu2 %v1820_v3  ;;  %v2014_v50 = vld [vmem:[#allocation5 + $0xe30] sm:$0xff]  ;;  %v2064_v3 = vld [vmem:[#allocation5 + $0xfc0] sm:$0xff] }
 0x330   : > { %1903 = vmatpush.msrb.mxu1 %v1849_v52  ;;  %1923 = vmatpush.msra.mxu2 %v1818_v4  ;;  %v1842_v52 = vld [vmem:[#allocation5 + $0xd28] sm:$0xff]  ;;  %v2062_v4 = vld [vmem:[#allocation5 + $0xfb0] sm:$0xff] }
 0x332   : > { %1904 = vmatpush.msrb.mxu1 %v1847_v30  ;;  %1924 = vmatpush.msra.mxu2 %v1816_v5  ;;  %v2012_v30 = vld [vmem:[#allocation5 + $0xe20] sm:$0xff] }
 0x333   : > { %v2060_v5 = vld [vmem:[#allocation5 + $0xfa0] sm:$0xff] }
 0x334   : > { %1905 = vmatpush.msrb.mxu1 %v1845_v53  ;;  %1925 = vmatpush.msra.mxu2 %v1814_v9  ;;  %v1891_v53 = vpop.f32.mrf.mxu0  ;;  %v2058_v9 = vld [vmem:[#allocation5 + $0xf90] sm:$0xff] }
 0x336   : > { %1906 = vmatpush.msrb.mxu1 %v1843_v54  ;;  %1926 = vmatpush.msra.mxu2 %v1812_v10  ;;  %v1840_v54 = vld [vmem:[#allocation5 + $0xd18] sm:$0xff]  ;;  %v2054_v10 = vld [vmem:[#allocation5 + $0xf70] sm:$0xff] }
 0x338   : > { %1907 = vmatpush.msrb.mxu1 %v1841_v55  ;;  %1927 = vmatpush.msra.mxu2 %v1810_v13  ;;  %v2010_v55 = vld [vmem:[#allocation5 + $0xe10] sm:$0xff]  ;;  %v2052_v13 = vld [vmem:[#allocation5 + $0xf60] sm:$0xff] }
 0x33a   : > { %1908 = vmatpush.msrb.mxu1 %v1839_v56  ;;  %1928 = vmatpush.msra.mxu2 %v1808_v16  ;;  %v2046_v16 = vld [vmem:[#allocation5 + $0xf30] sm:$0xff] }
 0x33c   : > { %1909 = vmatpush.msrb.mxu1 %v1837_v57  ;;  %1929 = vmatpush.msra.mxu2 %v1806_v18  ;;  %v1838_v57 = vld [vmem:[#allocation5 + $0xd08] sm:$0xff]  ;;  %v2042_v18 = vld [vmem:[#allocation5 + $0xf10] sm:$0xff] }
 0x33d   : > { %1910 = vmatmul.f32.vlgmr.msrb.gmra.mxu1 %v6061_v42  ;;  %1930 = vmatmul.f32.vlgmr.msra.gmra.mxu2 %v6059_v41  ;;  %v2022_v41 = vld [vmem:[#allocation5 + $0xe70] sm:$0xff] }
 0x33e   : > { %2077 = vmatpush.msrb.mxu2 %v2038_v21  ;;  %v2039_v21 = vld [vmem:[#allocation5 + $0xef8] sm:$0xff] }
 0x340   : > { %2078 = vmatpush.msrb.mxu2 %v2036_v23  ;;  %v2035_v23 = vld [vmem:[#allocation5 + $0xed8] sm:$0xff] }
 0x342   : > { %2079 = vmatpush.msrb.mxu2 %v2034_v25  ;;  %v2031_v25 = vld [vmem:[#allocation5 + $0xeb8] sm:$0xff] }
 0x344   : > { %2080 = vmatpush.msrb.mxu2 %v2032_v26  ;;  %v2027_v26 = vld [vmem:[#allocation5 + $0xe98] sm:$0xff] }
 0x346   : > { %2081 = vmatpush.msrb.mxu2 %v2030_v29  ;;  %v2023_v29 = vld [vmem:[#allocation5 + $0xe78] sm:$0xff] }
 0x348   : > { %2082 = vmatpush.msrb.mxu2 %v2028_v35 }
 0x34a   : > { %2083 = vmatpush.msrb.mxu2 %v2026_v37 }
 0x34c   : > { %2084 = vmatpush.msrb.mxu2 %v2024_v39  ;;  %v2015_v39 = vld [vmem:[#allocation5 + $0xe38] sm:$0xff] }
 0x34e   : > { %2085 = vmatpush.msrb.mxu2 %v2022_v41 }
 0x350   : > { %2086 = vmatpush.msrb.mxu2 %v2020_v45  ;;  %v2011_v45 = vld [vmem:[#allocation5 + $0xe18] sm:$0xff] }
 0x352   : > { %2087 = vmatpush.msrb.mxu2 %v2018_v46  ;;  %v2009_v46 = vld [vmem:[#allocation5 + $0xe08] sm:$0xff] }
 0x354   : > { %2088 = vmatpush.msrb.mxu2 %v2016_v48  ;;  %v2241_v48 = vld [vmem:[#allocation5 + $0x10f0] sm:$0xff] }
 0x356   : > { %2089 = vmatpush.msrb.mxu2 %v2014_v50  ;;  %v2239_v50 = vld [vmem:[#allocation5 + $0x10e0] sm:$0xff] }
 0x358   : > { %2090 = vmatpush.msrb.mxu2 %v2012_v30  ;;  %v2237_v30 = vld [vmem:[#allocation5 + $0x10d0] sm:$0xff] }
 0x35a   : > { %2091 = vmatpush.msrb.mxu2 %v2010_v55  ;;  %v2063_v55 = vld [vmem:[#allocation5 + $0xfb8] sm:$0xff] }
 0x35c   : > { %2092 = vmatpush.msrb.mxu2 %v2008_v0  ;;  %v2057_v0 = vld [vmem:[#allocation5 + $0xf88] sm:$0xff] }
 0x35d   : > { %2093 = vmatmul.f32.vlgmr.msrb.gmra.mxu2 %v6083_v1 }
 0x37a   : > { %v6071_v6 = vpop.f32.mrf.mxu1 }
 0x39a   : > { %v1748_v15 = vpop.f32.mrf.mxu1 }
 0x39b   : > { %v1749_v17 = vadd.f32 %v1748_v15, %v1728_v14  ;;  %v2050_v14 = vld [vmem:[#allocation5 + $0xf50] sm:$0xff]  ;;  %v2048_v15 = vld [vmem:[#allocation5 + $0xf40] sm:$0xff] }
 0x39d   : > { %4784 = vmatpush.msk.msrb.mxu3 %vm896_vm0, %v1749_v17  ;;  %v2044_v17 = vld [vmem:[#allocation5 + $0xf20] sm:$0xff] }
 0x39e   : > { %4785 = vmatmul.msk.f32.vlgmr.msrb.gmra.mxu3 %vm892_vm1, %v6056_v38  ;;  %v1854_v38 = vld [vmem:[#allocation5 + $0xd88] sm:$0xff] }
 0x39f   : > { %1934 = vmatpush.msra.mxu3 %v1868_v20  ;;  %v2040_v20 = vld [vmem:[#allocation5 + $0xf00] sm:$0xff] }
 0x3a0   : > { %v6093_v35 = vpop.f32.mrf.mxu2 }
 0x3a1   : > { %1935 = vmatpush.msra.mxu3 %v1866_v22  ;;  %v2037_v22 = vld [vmem:[#allocation5 + $0xee8] sm:$0xff] }
 0x3a3   : > { %1936 = vmatpush.msra.mxu3 %v1864_v24  ;;  %v2033_v24 = vld [vmem:[#allocation5 + $0xec8] sm:$0xff] }
 0x3a5   : > { %1937 = vmatpush.msra.mxu3 %v1862_v62  ;;  %v2029_v62 = vld [vmem:[#allocation5 + $0xea8] sm:$0xff] }
 0x3a7   : > { %1938 = vmatpush.msra.mxu3 %v1860_v27  ;;  %v2025_v27 = vld [vmem:[#allocation5 + $0xe88] sm:$0xff] }
 0x3a9   : > { %1939 = vmatpush.msra.mxu3 %v1858_v34  ;;  %v2021_v34 = vld [vmem:[#allocation5 + $0xe68] sm:$0xff] }
 0x3ab   : > { %1940 = vmatpush.msra.mxu3 %v1856_v36  ;;  %v2019_v36 = vld [vmem:[#allocation5 + $0xe58] sm:$0xff] }
 0x3ad   : > { %1941 = vmatpush.msra.mxu3 %v1854_v38  ;;  %v2017_v38 = vld [vmem:[#allocation5 + $0xe48] sm:$0xff] }
 0x3af   : > { %1942 = vmatpush.msra.mxu3 %v1852_v40  ;;  %v2013_v40 = vld [vmem:[#allocation5 + $0xe28] sm:$0xff] }
 0x3b1   : > { %1943 = vmatpush.msra.mxu3 %v1850_v43 }
 0x3b3   : > { %1944 = vmatpush.msra.mxu3 %v1848_v12 }
 0x3b5   : > { %1945 = vmatpush.msra.mxu3 %v1846_v47  ;;  %v2071_v47 = vld [vmem:[#allocation5 + $0xff8] sm:$0xff] }
 0x3b7   : > { %1946 = vmatpush.msra.mxu3 %v1844_v19  ;;  %v2069_v19 = vld [vmem:[#allocation5 + $0xfe8] sm:$0xff] }
 0x3b9   : > { %1947 = vmatpush.msra.mxu3 %v1842_v52  ;;  %v2067_v52 = vld [vmem:[#allocation5 + $0xfd8] sm:$0xff] }
 0x3ba   : > { %v1911_v56 = vpop.f32.mrf.mxu1 }
 0x3bb   : > { %v1912_v58 = vadd.f32 %v1911_v56, %v1891_v53  ;;  %1948 = vmatpush.msra.mxu3 %v1840_v54  ;;  %v2065_v53 = vld [vmem:[#allocation5 + $0xfc8] sm:$0xff]  ;;  %v2235_v54 = vld [vmem:[#allocation5 + $0x10c0] sm:$0xff]  ;;  %v2233_v56 = vld [vmem:[#allocation5 + $0x10b0] sm:$0xff] }
 0x3bd   : > { %1949 = vmatpush.msra.mxu3 %v1838_v57  ;;  %4787 = vmatpush.msk.msra.mxu0 %vm896_vm0, %v1912_v58  ;;  %v2061_v57 = vld [vmem:[#allocation5 + $0xfa8] sm:$0xff]  ;;  %v2231_v58 = vld [vmem:[#allocation5 + $0x10a0] sm:$0xff] }
 0x3be   : > { %1950 = vmatmul.f32.vlgmr.msra.gmra.mxu3 %v6061_v42  ;;  %4788 = vmatmul.msk.f32.vlgmr.msra.gmra.mxu0 %vm892_vm1, %v6080_v59  ;;  %v2056_v42 = vld [vmem:[#allocation5 + $0xf80] sm:$0xff] }
 0x3bf   : > { %2097 = vmatpush.msrb.mxu3 %v2070_v63  ;;  %2117 = vmatpush.msrb.mxu0 %v2039_v21  ;;  %v2229_v63 = vld [vmem:[#allocation5 + $0x1090] sm:$0xff] }
 0x3c0   : > { %v1931_v41 = vpop.f32.mrf.mxu2 }
 0x3c1   : > { %2098 = vmatpush.msrb.mxu3 %v2068_v31  ;;  %2118 = vmatpush.msrb.mxu0 %v2037_v22  ;;  %v2055_v31 = vld [vmem:[#allocation5 + $0xf78] sm:$0xff]  ;;  %v2041_v22 = vld [vmem:[#allocation5 + $0xf08] sm:$0xff] }
 0x3c3   : > { %2099 = vmatpush.msrb.mxu3 %v2066_v32  ;;  %2119 = vmatpush.msrb.mxu0 %v2035_v23  ;;  %v2225_v32 = vld [vmem:[#allocation5 + $0x1070] sm:$0xff] }
 0x3c5   : > { %2100 = vmatpush.msrb.mxu3 %v2064_v3  ;;  %2120 = vmatpush.msrb.mxu0 %v2033_v24  ;;  %v2053_v3 = vld [vmem:[#allocation5 + $0xf68] sm:$0xff]  ;;  %v6104_v24 = vld [vmem:[%s8664_s5 + $0x1c] sm:$0xf] }
 0x3c7   : > { %2101 = vmatpush.msrb.mxu3 %v2062_v4  ;;  %2121 = vmatpush.msrb.mxu0 %v2031_v25  ;;  %v2223_v4 = vld [vmem:[#allocation5 + $0x1060] sm:$0xff]  ;;  %v2273_v25 = vld [vmem:[#allocation5 + $0x11f0] sm:$0xff] }
 0x3c9   : > { %2102 = vmatpush.msrb.mxu3 %v2060_v5  ;;  %2122 = vmatpush.msrb.mxu0 %v2029_v62  ;;  %v2051_v5 = vld [vmem:[#allocation5 + $0xf58] sm:$0xff]  ;;  %v2211_v62 = vld [vmem:[#allocation5 + $0x1000] sm:$0xff] }
 0x3cb   : > { %2103 = vmatpush.msrb.mxu3 %v2058_v9  ;;  %2123 = vmatpush.msrb.mxu0 %v2027_v26  ;;  %v2221_v9 = vld [vmem:[#allocation5 + $0x1050] sm:$0xff]  ;;  %v6107_v26 = vld.sshfl [vmem:[#allocation1] sm:$0xff pattern:$0x75316420] }
 0x3cd   : > { %2104 = vmatpush.msrb.mxu3 %v2056_v42  ;;  %2124 = vmatpush.msrb.mxu0 %v2025_v27  ;;  %v2049_v42 = vld [vmem:[#allocation5 + $0xf48] sm:$0xff]  ;;  %v6109_v27 = vld.sshfl [vmem:[#allocation1 + $0x8] sm:$0xff pattern:$0x75316420] }
 0x3ce   : > { %4074 = vst [vmem:[#allocation1] ss:$2 sm:$0xff] %v5946_v44 }
 0x3cf   : > { %2105 = vmatpush.msrb.mxu3 %v2054_v10  ;;  %2125 = vmatpush.msrb.mxu0 %v2023_v29  ;;  %v2219_v10 = vld [vmem:[#allocation5 + $0x1040] sm:$0xff] }
 0x3d0   : > { %v2271_v29 = vld [vmem:[#allocation5 + $0x11e0] sm:$0xff] }
 0x3d1   : > { %2106 = vmatpush.msrb.mxu3 %v2052_v13  ;;  %2126 = vmatpush.msrb.mxu0 %v2021_v34  ;;  %v2047_v13 = vld [vmem:[#allocation5 + $0xf38] sm:$0xff]  ;;  %v2269_v34 = vld [vmem:[#allocation5 + $0x11d0] sm:$0xff] }
 0x3d3   : > { %2107 = vmatpush.msrb.mxu3 %v2050_v14  ;;  %2127 = vmatpush.msrb.mxu0 %v2019_v36  ;;  %v2217_v14 = vld [vmem:[#allocation5 + $0x1030] sm:$0xff]  ;;  %v2267_v36 = vld [vmem:[#allocation5 + $0x11c0] sm:$0xff] }
 0x3d5   : > { %2108 = vmatpush.msrb.mxu3 %v2048_v15  ;;  %2128 = vmatpush.msrb.mxu0 %v2017_v38  ;;  %v2045_v15 = vld [vmem:[#allocation5 + $0xf28] sm:$0xff]  ;;  %v2265_v38 = vld [vmem:[#allocation5 + $0x11b0] sm:$0xff] }
 0x3d7   : > { %2109 = vmatpush.msrb.mxu3 %v2046_v16  ;;  %2129 = vmatpush.msrb.mxu0 %v2015_v39  ;;  %v2215_v16 = vld [vmem:[#allocation5 + $0x1020] sm:$0xff] }
 0x3d8   : > { %v2263_v39 = vld [vmem:[#allocation5 + $0x11a0] sm:$0xff] }
 0x3d9   : > { %2110 = vmatpush.msrb.mxu3 %v2044_v17  ;;  %2130 = vmatpush.msrb.mxu0 %v2013_v40  ;;  %v2261_v40 = vld [vmem:[#allocation5 + $0x1190] sm:$0xff] }
 0x3db   : > { %2111 = vmatpush.msrb.mxu3 %v2042_v18  ;;  %2131 = vmatpush.msrb.mxu0 %v2011_v45  ;;  %v2043_v18 = vld [vmem:[#allocation5 + $0xf18] sm:$0xff]  ;;  %v2253_v45 = vld [vmem:[#allocation5 + $0x1150] sm:$0xff] }
 0x3dd   : > { %2112 = vmatpush.msrb.mxu3 %v2040_v20  ;;  %2132 = vmatpush.msrb.mxu0 %v2009_v46  ;;  %v2213_v20 = vld [vmem:[#allocation5 + $0x1010] sm:$0xff] }
 0x3de   : > { %2113 = vmatmul.f32.vlgmr.msrb.gmra.mxu3 %v6085_v2  ;;  %2133 = vmatmul.f32.vlgmr.msrb.gmra.mxu0 %v6083_v1  ;;  %v2227_v1 = vld [vmem:[#allocation5 + $0x1080] sm:$0xff]  ;;  %v2249_v46 = vld [vmem:[#allocation5 + $0x1130] sm:$0xff] }
 0x3df   : > { %2280 = vmatpush.msra.mxu0 %v2241_v48  ;;  %v2245_v48 = vld [vmem:[#allocation5 + $0x1110] sm:$0xff] }
 0x3e0   : > { %v2094_v17 = vpop.f32.mrf.mxu2 }
 0x3e1   : > { %2281 = vmatpush.msra.mxu0 %v2239_v50  ;;  %v2413_v50 = vld [vmem:[%s8665_s6] sm:$0xf] }
 0x3e3   : > { %2282 = vmatpush.msra.mxu0 %v2237_v30  ;;  %v2242_v30 = vld [vmem:[#allocation5 + $0x10f8] sm:$0xff] }
 0x3e5   : > { %2283 = vmatpush.msra.mxu0 %v2235_v54  ;;  %v2577_v54 = vld [vmem:[%s8666_s7] sm:$0xff] }
 0x3e7   : > { %2284 = vmatpush.msra.mxu0 %v2233_v56  ;;  %v2236_v56 = vld [vmem:[#allocation5 + $0x10c8] sm:$0xff] }
 0x3e9   : > { %2285 = vmatpush.msra.mxu0 %v2231_v58  ;;  %v2232_v58 = vld [vmem:[#allocation5 + $0x10a8] sm:$0xff] }
 0x3eb   : > { %2286 = vmatpush.msra.mxu0 %v2229_v63  ;;  %v2230_v63 = vld [vmem:[#allocation5 + $0x1098] sm:$0xff] }
 0x3ed   : > { %2287 = vmatpush.msra.mxu0 %v2227_v1  ;;  %v2226_v1 = vld [vmem:[#allocation5 + $0x1078] sm:$0xff] }
 0x3ef   : > { %2288 = vmatpush.msra.mxu0 %v2225_v32 }
 0x3f1   : > { %2289 = vmatpush.msra.mxu0 %v2223_v4  ;;  %v2222_v4 = vld [vmem:[#allocation5 + $0x1058] sm:$0xff] }
 0x3f3   : > { %2290 = vmatpush.msra.mxu0 %v2221_v9  ;;  %v2220_v9 = vld [vmem:[#allocation5 + $0x1048] sm:$0xff] }
 0x3f5   : > { %2291 = vmatpush.msra.mxu0 %v2219_v10  ;;  %v2216_v10 = vld [vmem:[#allocation5 + $0x1028] sm:$0xff] }
 0x3f7   : > { %2292 = vmatpush.msra.mxu0 %v2217_v14  ;;  %v5051_v14 = vld [vmem:[%s8666_s7 + $0xa8] sm:$0xff] }
 0x3f9   : > { %2293 = vmatpush.msra.mxu0 %v2215_v16  ;;  %v2214_v16 = vld [vmem:[#allocation5 + $0x1018] sm:$0xff] }
 0x3fb   : > { %2294 = vmatpush.msra.mxu0 %v2213_v20  ;;  %v2274_v20 = vld [vmem:[#allocation5 + $0x11f8] sm:$0xff] }
 0x3fd   : > { %2295 = vmatpush.msra.mxu0 %v2211_v62  ;;  %v2266_v62 = vld [vmem:[#allocation5 + $0x11b8] sm:$0xff] }
 0x3fe   : > { %2296 = vmatmul.f32.vlgmr.msra.gmra.mxu0 %v6107_v26 }
 0x421   : > { %v6095_v37 = vpop.f32.mrf.mxu3 }
 0x43b   : > { %v6126_v32 = vpop.f32.mrf.mxu0 }
 0x441   : > { %v1951_v43 = vpop.f32.mrf.mxu3 }
 0x442   : > { %v1952_v12 = vadd.f32 %v1951_v43, %v1931_v41  ;;  %v2257_v41 = vld [vmem:[#allocation5 + $0x1170] sm:$0xff]  ;;  %v2255_v43 = vld [vmem:[#allocation5 + $0x1160] sm:$0xff] }
 0x444   : > { %4789 = vmatpush.msk.msra.mxu1 %vm896_vm0, %v1952_v12  ;;  %v2251_v12 = vld [vmem:[#allocation5 + $0x1140] sm:$0xff] }
 0x445   : > { %4790 = vmatmul.msk.f32.vlgmr.msra.gmra.mxu1 %vm892_vm1, %v6080_v59  ;;  %v2059_v59 = vld [vmem:[#allocation5 + $0xf98] sm:$0xff] }
 0x446   : > { %2137 = vmatpush.msrb.mxu1 %v2071_v47  ;;  %v2247_v47 = vld [vmem:[#allocation5 + $0x1120] sm:$0xff] }
 0x448   : > { %2138 = vmatpush.msrb.mxu1 %v2069_v19  ;;  %v2243_v19 = vld [vmem:[#allocation5 + $0x1100] sm:$0xff] }
 0x44a   : > { %2139 = vmatpush.msrb.mxu1 %v2067_v52  ;;  %v5732_v52 = vmov 0  }
 0x44b   : > { %5238 = vset.pattern.permute.xlu0 %v5732_v52  ;;  %5239 = vset.pattern.permute.xlu1 %v5732_v52 }
 0x44c   : > { %2140 = vmatpush.msrb.mxu1 %v2065_v53  ;;  %2416 = vperm.xlu0 %5238, %v2413_v50   ;;  %v2240_v53 = vld [vmem:[#allocation5 + $0x10e8] sm:$0xff] }
 0x44d   : > { %5240 = vset.pattern.permute.xlu2 %v5732_v52  ;;  %v4796_v50 = vld [vmem:[%s8664_s5 + $0x20] sm:$0xf]  ;;  %v3482_v52 = vld [vmem:[%s8667_s8 + $0x8] sm:$0xff] }
 0x44e   : > { %2141 = vmatpush.msrb.mxu1 %v2063_v55  ;;  %v2238_v55 = vld [vmem:[#allocation5 + $0x10d8] sm:$0xff] }
 0x450   : > { %2142 = vmatpush.msrb.mxu1 %v2061_v57  ;;  %v2234_v57 = vld [vmem:[#allocation5 + $0x10b8] sm:$0xff] }
 0x452   : > { %2143 = vmatpush.msrb.mxu1 %v2059_v59  ;;  %v2578_v59 = vld [vmem:[%s8666_s7 + $0x8] sm:$0xff] }
 0x454   : > { %2144 = vmatpush.msrb.mxu1 %v2057_v0  ;;  %2582 = vperm.xlu0 %5238, %v2577_v54   ;;  %v2228_v0 = vld [vmem:[#allocation5 + $0x1088] sm:$0xff] }
 0x455   : > { %v4119_v54 = vld [vmem:[%s8670_s11] sm:$0xf] }
 0x456   : > { %2145 = vmatpush.msrb.mxu1 %v2055_v31  ;;  %v2224_v31 = vld [vmem:[#allocation5 + $0x1068] sm:$0xff] }
 0x458   : > { %2146 = vmatpush.msrb.mxu1 %v2053_v3  ;;  %v4877_v3 = vld [vmem:[%s8666_s7 + $0x38] sm:$0xff] }
 0x45a   : > { %2147 = vmatpush.msrb.mxu1 %v2051_v5 }
 0x45c   : > { %2148 = vmatpush.msrb.mxu1 %v2049_v42  ;;  %2587 = vperm.xlu0 %5238, %v2578_v59   ;;  %v2218_v42 = vld [vmem:[#allocation5 + $0x1038] sm:$0xff]  ;;  %v5127_v59 = vld [vmem:[%s8668_s9 + $0xa0] sm:$0xff] }
 0x45e   : > { %2149 = vmatpush.msrb.mxu1 %v2047_v13  ;;  %v2134_v13 = vpop.f32.mrf.mxu0 }
 0x460   : > { %2150 = vmatpush.msrb.mxu1 %v2045_v15 }
 0x461   : > { %v2114_v21 = vpop.f32.mrf.mxu3 }
 0x462   : > { %v2115_v23 = vadd.f32 %v2114_v21, %v2094_v17  ;;  %2151 = vmatpush.msrb.mxu1 %v2043_v18  ;;  %v2212_v18 = vld [vmem:[#allocation5 + $0x1008] sm:$0xff] }
 0x463   : > { %v2272_v21 = vld [vmem:[#allocation5 + $0x11e8] sm:$0xff] }
 0x464   : > { %2152 = vmatpush.msrb.mxu1 %v2041_v22  ;;  %4792 = vmatpush.msk.msra.mxu2 %vm896_vm0, %v2115_v23  ;;  %v2579_v22 = vld [vmem:[%s8666_s7 + $0x10] sm:$0xff] }
 0x465   : > { %2153 = vmatmul.f32.vlgmr.msrb.gmra.mxu1 %v6085_v2  ;;  %4793 = vmatmul.msk.f32.vlgmr.msra.gmra.mxu2 %vm892_vm1, %v6104_v24  ;;  %v2259_v2 = vld [vmem:[#allocation5 + $0x1180] sm:$0xff]  ;;  %v2270_v23 = vld [vmem:[#allocation5 + $0x11d8] sm:$0xff] }
 0x466   : > { %2300 = vmatpush.msra.mxu1 %v2273_v25  ;;  %2320 = vmatpush.msrb.mxu2 %v2242_v30  ;;  %v2268_v25 = vld [vmem:[#allocation5 + $0x11c8] sm:$0xff]  ;;  %v3483_v30 = vld [vmem:[%s8667_s8 + $0x10] sm:$0xff] }
 0x467   : > { %2807 = vperm.xlu0 %5238, %v4877_v3   ;;  %v970_v3 = vadd.f32 %v5989_v60, %v6000_v8 }
 0x468   : > { %2301 = vmatpush.msra.mxu1 %v2271_v29  ;;  %2321 = vmatpush.msrb.mxu2 %v2240_v53  ;;  %v2264_v29 = vld [vmem:[#allocation5 + $0x11a8] sm:$0xff]  ;;  %v3548_v53 = vld [vmem:[%s8668_s9 + $0x10] sm:$0xff] }
 0x46a   : > { %2302 = vmatpush.msra.mxu1 %v2269_v34  ;;  %2322 = vmatpush.msrb.mxu2 %v2238_v55  ;;  %v2262_v34 = vld [vmem:[#allocation5 + $0x1198] sm:$0xff]  ;;  %v5141_v55 = vld [vmem:[%s8670_s11 + $0x8] sm:$0xf] }
 0x46c   : > { %2303 = vmatpush.msra.mxu1 %v2267_v36  ;;  %2323 = vmatpush.msrb.mxu2 %v2236_v56  ;;  %v2258_v36 = vld [vmem:[#allocation5 + $0x1178] sm:$0xff] }
 0x46d   : > { %v5108_v56 = vld [vmem:[%s8668_s9 + $0x50] sm:$0xff] }
 0x46e   : > { %2304 = vmatpush.msra.mxu1 %v2265_v38  ;;  %2324 = vmatpush.msrb.mxu2 %v2234_v57  ;;  %v2256_v38 = vld [vmem:[#allocation5 + $0x1168] sm:$0xff]  ;;  %v5107_v57 = vld [vmem:[%s8668_s9 + $0x48] sm:$0xff] }
 0x46f   : > { %3352 = vperm.xlu0 %5238, %v5051_v14  }
 0x470   : > { %2305 = vmatpush.msra.mxu1 %v2263_v39  ;;  %2325 = vmatpush.msrb.mxu2 %v2232_v58  ;;  %v4913_v39 = vld [vmem:[%s8666_s7 + $0x58] sm:$0xff]  ;;  %v5144_v58 = vld [vmem:[%s8670_s11 + $0x14] sm:$0xf] }
 0x472   : > { %2306 = vmatpush.msra.mxu1 %v2261_v40  ;;  %2326 = vmatpush.msrb.mxu2 %v2230_v63  ;;  %v2254_v40 = vld [vmem:[#allocation5 + $0x1158] sm:$0xff]  ;;  %v5126_v63 = vld [vmem:[%s8668_s9 + $0x98] sm:$0xff] }
 0x474   : > { %2307 = vmatpush.msra.mxu1 %v2259_v2  ;;  %2327 = vmatpush.msrb.mxu2 %v2228_v0  ;;  %v2252_v2 = vld [vmem:[#allocation5 + $0x1148] sm:$0xff]  ;;  %v5125_v0 = vld [vmem:[%s8668_s9 + $0x90] sm:$0xff] }
 0x476   : > { %2308 = vmatpush.msra.mxu1 %v2257_v41  ;;  %2328 = vmatpush.msrb.mxu2 %v2226_v1  ;;  %v2250_v41 = vld [vmem:[#allocation5 + $0x1138] sm:$0xff]  ;;  %v5147_v1 = vld [vmem:[%s8670_s11 + $0x20] sm:$0xf] }
 0x477   : > { %2592 = vperm.xlu0 %5238, %v2579_v22   ;;  %v6235_v22 = vld [vmem:[%s8663_s4 + $0x10] sm:$0xff] }
 0x478   : > { %2309 = vmatpush.msra.mxu1 %v2255_v43  ;;  %2329 = vmatpush.msrb.mxu2 %v2224_v31  ;;  %v2248_v43 = vld [vmem:[#allocation5 + $0x1128] sm:$0xff] }
 0x479   : > { %v5137_v31 = vld [vmem:[%s8668_s9 + $0xc0] sm:$0xff] }
 0x47a   : > { %2310 = vmatpush.msra.mxu1 %v2253_v45  ;;  %2330 = vmatpush.msrb.mxu2 %v2222_v4  ;;  %v5087_v45 = vld [vmem:[%s8666_s7 + $0xc8] sm:$0xff] }
 0x47b   : > { %v4051_v4 = vld [vmem:[%s8669_s10 + $0x8] sm:$0xff] }
 0x47c   : > { %2311 = vmatpush.msra.mxu1 %v2251_v12  ;;  %2331 = vmatpush.msrb.mxu2 %v2220_v9  ;;  %v2297_v12 = vpop.f32.mrf.mxu0  ;;  %v1193_v9 = vadd.f32 %v6023_v33, %v970_v3  ;;  %v4911_v3 = vld [vmem:[%s8666_s7 + $0x48] sm:$0xff] }
 0x47d   : > { %2912 = vperm.xlu2 %5240, %v4911_v3   ;;  %v2519_v3 = vld [vmem:[%s8661_s2 + $0xd0] sm:$0xff] }
 0x47e   : > { %2312 = vmatpush.msra.mxu1 %v2249_v46  ;;  %2332 = vmatpush.msrb.mxu2 %v2218_v42  ;;  %v2246_v46 = vld [vmem:[#allocation5 + $0x1118] sm:$0xff]  ;;  %v1396_v42 = vadd.f32 %v6045_v49, %v1193_v9  ;;  %v6218_v49 = vld [vmem:[%s8663_s4] sm:$0xff]  ;;  %v4816_v9 = vld [vmem:[%s8661_s2 + $0x138] sm:$0xff] }
 0x480   : > { %2313 = vmatpush.msra.mxu1 %v2247_v47  ;;  %2333 = vmatpush.msrb.mxu2 %v2216_v10  ;;  %v1599_v10 = vadd.f32 %v6069_v11, %v1396_v42  ;;  %v4851_v42 = vld [vmem:[%s8661_s2 + $0x238] sm:$0xff] }
 0x482   : > { %2314 = vmatpush.msra.mxu1 %v2245_v48  ;;  %2334 = vmatpush.msrb.mxu2 %v2214_v16  ;;  %v2244_v48 = vld [vmem:[#allocation5 + $0x1108] sm:$0xff] }
 0x484   : > { %2315 = vmatpush.msra.mxu1 %v2243_v19  ;;  %2335 = vmatpush.msrb.mxu2 %v2212_v18 }
 0x485   : > { %2316 = vmatmul.f32.vlgmr.msra.gmra.mxu1 %v6109_v27  ;;  %2336 = vmatmul.f32.vlgmr.msrb.gmra.mxu2 %v6107_v26  ;;  %v2260_v26 = vld [vmem:[#allocation5 + $0x1188] sm:$0xff] }
 0x4be   : > { %v6212_v18 = vpop.permute.xlu0 %2416 }
 0x4c2   : > { %v6131_v5 = vpop.f32.mrf.mxu1 }
 0x4e2   : > { %v2154_v15 = vpop.f32.mrf.mxu1 }
 0x4e3   : > { %v2155_v17 = vadd.f32 %v2154_v15, %v2134_v13  ;;  %v1802_v13 = vadd.f32 %v6093_v35, %v1599_v10 }
 0x4e5   : > { %4794 = vmatpush.msk.msra.mxu3 %vm896_vm0, %v2155_v17  ;;  %v2005_v15 = vadd.f32 %v6126_v32, %v1802_v13  ;;  %v6228_v32 = vld [vmem:[%s8663_s4 + $0x8] sm:$0xff]  ;;  %v4815_v13 = vld [vmem:[%s8661_s2 + $0x130] sm:$0xff] }
 0x4e6   : > { %4795 = vmatmul.msk.f32.vlgmr.msra.gmra.mxu3 %vm892_vm1, %v6104_v24  ;;  %v4878_v24 = vld [vmem:[%s8666_s7 + $0x40] sm:$0xff] }
 0x4e7   : > { %2340 = vmatpush.msrb.mxu3 %v2274_v20  ;;  %2812 = vperm.xlu0 %5238, %v4878_v24   ;;  %v2504_v24 = vld [vmem:[%s8661_s2 + $0x58] sm:$0xff] }
 0x4e8   : > { %v2185_v14 = vpop.f32.mrf.mxu2 }
 0x4e9   : > { %2341 = vmatpush.msrb.mxu3 %v2272_v21  ;;  %v2208_v17 = vadd.f32 %v2185_v14, %v2005_v15 }
 0x4eb   : > { %2342 = vmatpush.msrb.mxu3 %v2270_v23  ;;  %v2508_v23 = vld [vmem:[%s8661_s2 + $0x78] sm:$0xff] }
 0x4ed   : > { %2343 = vmatpush.msrb.mxu3 %v2268_v25  ;;  %v2507_v25 = vld [vmem:[%s8661_s2 + $0x70] sm:$0xff] }
 0x4ef   : > { %2344 = vmatpush.msrb.mxu3 %v2266_v62  ;;  %2922 = vperm.xlu0 %5238, %v4913_v39   ;;  %v2506_v62 = vld [vmem:[%s8661_s2 + $0x68] sm:$0xff]  ;;  %v2499_v39 = vld [vmem:[%s8661_s2 + $0x30] sm:$0xff] }
 0x4f1   : > { %2345 = vmatpush.msrb.mxu3 %v2264_v29  ;;  %v2505_v29 = vld [vmem:[%s8661_s2 + $0x60] sm:$0xff] }
 0x4f3   : > { %2346 = vmatpush.msrb.mxu3 %v2262_v34  ;;  %v2503_v34 = vld [vmem:[%s8661_s2 + $0x50] sm:$0xff] }
 0x4f5   : > { %2347 = vmatpush.msrb.mxu3 %v2260_v26  ;;  %v2502_v26 = vld [vmem:[%s8661_s2 + $0x48] sm:$0xff] }
 0x4f7   : > { %2348 = vmatpush.msrb.mxu3 %v2258_v36  ;;  %3467 = vperm.xlu0 %5238, %v5087_v45   ;;  %v2501_v36 = vld [vmem:[%s8661_s2 + $0x40] sm:$0xff]  ;;  %v2495_v45 = vld [vmem:[%s8661_s2 + $0x10] sm:$0xff] }
 0x4f9   : > { %2349 = vmatpush.msrb.mxu3 %v2256_v38  ;;  %v2500_v38 = vld [vmem:[%s8661_s2 + $0x38] sm:$0xff] }
 0x4fb   : > { %2350 = vmatpush.msrb.mxu3 %v2254_v40  ;;  %v2498_v40 = vld [vmem:[%s8661_s2 + $0x28] sm:$0xff] }
 0x4fd   : > { %2351 = vmatpush.msrb.mxu3 %v2252_v2  ;;  %v4841_v2 = vld [vmem:[%s8666_s7 + $0x18] sm:$0xff] }
 0x4fe   : > { %2692 = vperm.xlu1 %5239, %v4841_v2   ;;  %v4893_v2 = vld [vmem:[%s8661_s2 + $0x370] sm:$0xff] }
 0x4ff   : > { %2352 = vmatpush.msrb.mxu3 %v2250_v41  ;;  %3491 = vperm.xlu0 %5238, %v3482_v52   ;;  %v2497_v41 = vld [vmem:[%s8661_s2 + $0x20] sm:$0xff]  ;;  %v4858_v52 = vld [vmem:[%s8661_s2 + $0x270] sm:$0xff] }
 0x501   : > { %2353 = vmatpush.msrb.mxu3 %v2248_v43  ;;  %v2496_v43 = vld [vmem:[%s8661_s2 + $0x18] sm:$0xff] }
 0x502   : > { %v2317_v47 = vpop.f32.mrf.mxu1 }
 0x503   : > { %v2318_v19 = vadd.f32 %v2317_v47, %v2297_v12  ;;  %2354 = vmatpush.msrb.mxu3 %v2246_v46  ;;  %v2494_v12 = vld [vmem:[%s8661_s2 + $0x8] sm:$0xff]  ;;  %v4876_v46 = vld [vmem:[%s8666_s7 + $0x30] sm:$0xff]  ;;  %v2493_v47 = vld [vmem:[%s8661_s2] sm:$0xff] }
 0x505   : > { %2355 = vmatpush.msrb.mxu3 %v2244_v48  ;;  %4797 = vmatpush.msk.msrb.mxu0 %vm896_vm0, %v2318_v19  ;;  %v4824_v48 = vld [vmem:[%s8661_s2 + $0x178] sm:$0xff] }
 0x506   : > { %2356 = vmatmul.f32.vlgmr.msrb.gmra.mxu3 %v6109_v27  ;;  %4798 = vmatmul.msk.f32.vlgmr.msrb.gmra.mxu0 %vm892_vm1, %v4796_v50  ;;  %v5097_v27 = vld [vmem:[%s8668_s9 + $0x28] sm:$0xff]  ;;  %v4859_v19 = vld [vmem:[%s8661_s2 + $0x278] sm:$0xff] }
 0x507   : > { %3496 = vperm.xlu0 %5238, %v3483_v30   ;;  %2525 = vmatpush.msra.mxu0 %v2508_v23  ;;  %v4822_v30 = vld [vmem:[%s8661_s2 + $0x168] sm:$0xff]  ;;  %v4847_v23 = vld [vmem:[%s8661_s2 + $0x218] sm:$0xff] }
 0x508   : > { %v2337_v33 = vpop.f32.mrf.mxu2  ;;  %2802 = vperm.xlu1 %5239, %v4876_v46   ;;  %v4891_v46 = vld [vmem:[%s8661_s2 + $0x360] sm:$0xff] }
 0x509   : > { %2526 = vmatpush.msra.mxu0 %v2507_v25  ;;  %v4811_v25 = vld [vmem:[%s8661_s2 + $0x110] sm:$0xff] }
 0x50b   : > { %2527 = vmatpush.msra.mxu0 %v2506_v62  ;;  %v4846_v62 = vld [vmem:[%s8661_s2 + $0x210] sm:$0xff] }
 0x50d   : > { %2528 = vmatpush.msra.mxu0 %v2505_v29  ;;  %v4810_v29 = vld [vmem:[%s8661_s2 + $0x108] sm:$0xff] }
 0x50f   : > { %3561 = vperm.xlu0 %5238, %v3548_v53   ;;  %2529 = vmatpush.msra.mxu0 %v2504_v24  ;;  %v4857_v53 = vld [vmem:[%s8661_s2 + $0x268] sm:$0xff] }
 0x510   : > { %v4845_v24 = vld [vmem:[%s8661_s2 + $0x208] sm:$0xff] }
 0x511   : > { %2530 = vmatpush.msra.mxu0 %v2503_v34  ;;  %v4981_v34 = vld [vmem:[%s8666_s7 + $0x78] sm:$0xff] }
 0x513   : > { %2531 = vmatpush.msra.mxu0 %v2502_v26  ;;  %v4844_v26 = vld [vmem:[%s8661_s2 + $0x200] sm:$0xff] }
 0x515   : > { %2532 = vmatpush.msra.mxu0 %v2501_v36  ;;  %v4843_v36 = vld [vmem:[%s8666_s7 + $0x28] sm:$0xff] }
 0x517   : > { %3621 = vperm.xlu0 %5238, %v5097_v27   ;;  %2533 = vmatpush.msra.mxu0 %v2500_v38  ;;  %v990_v27 = vadd.f32 %v5991_v61, %v5998_v7  ;;  %v4820_v7 = vld [vmem:[%s8661_s2 + $0x158] sm:$0xff] }
 0x519   : > { %2534 = vmatpush.msra.mxu0 %v2499_v39  ;;  %v4894_v39 = vld [vmem:[%s8661_s2 + $0x378] sm:$0xff] }
 0x51b   : > { %2535 = vmatpush.msra.mxu0 %v2498_v40  ;;  %v4929_v40 = vld [vmem:[%s8661_s2 + $0x478] sm:$0xff] }
 0x51d   : > { %2536 = vmatpush.msra.mxu0 %v2497_v41  ;;  %v4928_v41 = vld [vmem:[%s8661_s2 + $0x470] sm:$0xff] }
 0x51f   : > { %4122 = vperm.xlu0 %5238, %v4119_v54   ;;  %2537 = vmatpush.msra.mxu0 %v2496_v43  ;;  %v4821_v54 = vld [vmem:[%s8661_s2 + $0x160] sm:$0xff]  ;;  %v4892_v43 = vld [vmem:[%s8661_s2 + $0x368] sm:$0xff] }
 0x521   : > { %2538 = vmatpush.msra.mxu0 %v2495_v45  ;;  %v4927_v45 = vld [vmem:[%s8661_s2 + $0x468] sm:$0xff] }
 0x523   : > { %2539 = vmatpush.msra.mxu0 %v2494_v12  ;;  %v2524_v12 = vld [vmem:[%s8661_s2 + $0xf8] sm:$0xff] }
 0x525   : > { %2540 = vmatpush.msra.mxu0 %v2493_v47  ;;  %v4926_v47 = vld [vmem:[%s8661_s2 + $0x460] sm:$0xff] }
 0x527   : > { %4230 = vperm.xlu0 %5238, %v5141_v55   ;;  %2744 = vmatpush.msrb.mxu0 %v4859_v19  ;;  %v4856_v55 = vld [vmem:[%s8661_s2 + $0x260] sm:$0xff] }
 0x529   : > { %2745 = vmatpush.msrb.mxu0 %v4858_v52  ;;  %v4925_v52 = vld [vmem:[%s8661_s2 + $0x458] sm:$0xff] }
 0x52b   : > { %2746 = vmatpush.msrb.mxu0 %v4857_v53  ;;  %v2523_v53 = vld [vmem:[%s8661_s2 + $0xf0] sm:$0xff] }
 0x52d   : > { %2747 = vmatpush.msrb.mxu0 %v4856_v55  ;;  %v4888_v55 = vld [vmem:[%s8661_s2 + $0x348] sm:$0xff] }
 0x52f   : > { %3736 = vperm.xlu0 %5238, %v5108_v56   ;;  %v4842_v56 = vld [vmem:[%s8666_s7 + $0x20] sm:$0xff] }
 0x530   : > { %2697 = vperm.xlu1 %5239, %v4842_v56   ;;  %v4923_v56 = vld [vmem:[%s8661_s2 + $0x448] sm:$0xff] }
 0x537   : > { %3731 = vperm.xlu0 %5238, %v5107_v57   ;;  %v1194_v57 = vadd.f32 %v6021_v28, %v990_v27  ;;  %v4854_v28 = vld [vmem:[%s8661_s2 + $0x250] sm:$0xff] }
 0x538   : > { %v4924_v27 = vld [vmem:[%s8661_s2 + $0x450] sm:$0xff] }
 0x539   : > { %v1397_v61 = vadd.f32 %v6047_v51, %v1194_v57  ;;  %v5086_v57 = vld [vmem:[%s8666_s7 + $0xc0] sm:$0xff] }
 0x53b   : > { %v1600_v51 = vadd.f32 %v6071_v6, %v1397_v61  ;;  %v4852_v6 = vld [vmem:[%s8661_s2 + $0x240] sm:$0xff] }
 0x53c   : > { %v4887_v61 = vld [vmem:[%s8661_s2 + $0x340] sm:$0xff] }
 0x53f   : > { %4392 = vperm.xlu0 %5238, %v5144_v58   ;;  %v4855_v58 = vld [vmem:[%s8661_s2 + $0x258] sm:$0xff] }
 0x540   : > { %2748 = vmatpush.msrb.mxu0 %v4855_v58  ;;  %v5052_v58 = vld [vmem:[%s8666_s7 + $0xb0] sm:$0xff] }
 0x542   : > { %2749 = vmatpush.msrb.mxu0 %v4854_v28  ;;  %v2521_v28 = vld [vmem:[%s8661_s2 + $0xe0] sm:$0xff] }
 0x547   : > { %3921 = vperm.xlu0 %5238, %v5127_v59   ;;  %v4819_v59 = vld [vmem:[%s8661_s2 + $0x150] sm:$0xff] }
 0x54f   : > { %3916 = vperm.xlu0 %5238, %v5126_v63   ;;  %v4818_v63 = vld [vmem:[%s8661_s2 + $0x148] sm:$0xff] }
 0x557   : > { %3911 = vperm.xlu0 %5238, %v5125_v0   ;;  %v4853_v0 = vld [vmem:[%s8661_s2 + $0x248] sm:$0xff] }
 0x558   : > { %2750 = vmatpush.msrb.mxu0 %v4853_v0  ;;  %v2520_v0 = vld [vmem:[%s8661_s2 + $0xd8] sm:$0xff] }
 0x55a   : > { %2751 = vmatpush.msrb.mxu0 %v4852_v6  ;;  %v4884_v6 = vld [vmem:[%s8661_s2 + $0x328] sm:$0xff] }
 0x55c   : > { %2752 = vmatpush.msrb.mxu0 %v4851_v42  ;;  %v4918_v42 = vld [vmem:[%s8661_s2 + $0x420] sm:$0xff] }
 0x55f   : > { %4554 = vperm.xlu0 %5238, %v5147_v1   ;;  %v1803_v1 = vadd.f32 %v6095_v37, %v1600_v51  ;;  %v4921_v51 = vld [vmem:[%s8661_s2 + $0x438] sm:$0xff] }
 0x561   : > { %v2006_v37 = vadd.f32 %v6131_v5, %v1803_v1  ;;  %v4850_v5 = vld [vmem:[%s8661_s2 + $0x230] sm:$0xff] }
 0x562   : > { %2753 = vmatpush.msrb.mxu0 %v4850_v5  ;;  %v4920_v1 = vld [vmem:[%s8661_s2 + $0x430] sm:$0xff]  ;;  %v4838_v5 = vld [vmem:[%s8661_s2 + $0x1e8] sm:$0xff] }
 0x567   : > { %4031 = vperm.xlu0 %5238, %v5137_v31   ;;  %v4817_v31 = vld [vmem:[%s8661_s2 + $0x140] sm:$0xff] }
 0x569   : > { %v6210_v16 = vpop.f32.mrf.mxu3 }
 0x56a   : > { %v2209_v10 = vadd.f32 %v6210_v16, %v2006_v37  ;;  %v4849_v16 = vld [vmem:[%s8661_s2 + $0x228] sm:$0xff]  ;;  %v4982_v37 = vld [vmem:[%s8666_s7 + $0x80] sm:$0xff] }
 0x56b   : > { %2754 = vmatpush.msrb.mxu0 %v4849_v16  ;;  %v4837_v16 = vld [vmem:[%s8661_s2 + $0x1e0] sm:$0xff] }
 0x56f   : > { %4060 = vperm.xlu0 %5238, %v4051_v4   ;;  %v5016_v4 = vld [vmem:[%s8666_s7 + $0x90] sm:$0xff] }
 0x570   : > { %3242 = vperm.xlu1 %5239, %v5016_v4   ;;  %v4919_v4 = vld [vmem:[%s8661_s2 + $0x428] sm:$0xff] }
 0x583   : > { %v2388_v60 = vpop.f32.mrf.mxu0 }
 0x584   : > { %v2411_v8 = vadd.f32 %v2388_v60, %v2208_v17  ;;  %v4814_v17 = vld [vmem:[%s8661_s2 + $0x128] sm:$0xff]  ;;  %v4946_v60 = vld [vmem:[%s8666_s7 + $0x60] sm:$0xff] }
 0x585   : > { %3022 = vperm.xlu2 %5240, %v4946_v60   ;;  %v4916_v60 = vld [vmem:[%s8661_s2 + $0x410] sm:$0xff] }
 0x586   : > { %v2419_v20 = vadd.f32 %v6212_v18, %v2411_v8 }
 0x588   : > { %v2421_v21 = vmax.f32 %v2419_v20, 0.0  ;;  %v4813_v20 = vld [vmem:[%s8661_s2 + $0x120] sm:$0xff] }
 0x589   : > { %v2357_v11 = vpop.f32.mrf.mxu3 }
 0x58a   : > { %v2358_v35 = vadd.f32 %v2357_v11, %v2337_v33  ;;  %4801 = vmatpush.msk.msra.mxu2 %vm896_vm0, %v2421_v21  ;;  %v4848_v33 = vld [vmem:[%s8661_s2 + $0x220] sm:$0xff]  ;;  %v4947_v21 = vld [vmem:[%s8666_s7 + $0x68] sm:$0xff] }
 0x58b   : > { %4802 = vmatmul.msk.f32.vlgmr.msra.gmra.mxu2 %vm892_vm1, %v6218_v49  ;;  %2755 = vmatpush.msrb.mxu0 %v4848_v33  ;;  %v4836_v33 = vld [vmem:[%s8661_s2 + $0x1d8] sm:$0xff] }
 0x58c   : > { %4799 = vmatpush.msk.msrb.mxu1 %vm896_vm0, %v2358_v35  ;;  %2634 = vmatpush.msrb.mxu2 %v4824_v48  ;;  %v5017_v48 = vld [vmem:[%s8666_s7 + $0x98] sm:$0xff] }
 0x58d   : > { %4800 = vmatmul.msk.f32.vlgmr.msrb.gmra.mxu1 %vm892_vm1, %v4796_v50  ;;  %v4823_v50 = vld [vmem:[%s8661_s2 + $0x170] sm:$0xff]  ;;  %3027 = vperm.xlu1 %5239, %v4947_v21   ;;  %v4915_v21 = vld [vmem:[%s8661_s2 + $0x408] sm:$0xff] }
 0x58e   : > { %2635 = vmatpush.msrb.mxu2 %v4823_v50  ;;  %2756 = vmatpush.msrb.mxu0 %v4847_v23  ;;  %v4890_v50 = vld [vmem:[%s8661_s2 + $0x358] sm:$0xff]  ;;  %v4914_v23 = vld [vmem:[%s8661_s2 + $0x400] sm:$0xff] }
 0x58f   : > { %3132 = vperm.xlu2 %5240, %v4981_v34   ;;  %2551 = vmatpush.msra.mxu1 %v2524_v12  ;;  %v2516_v34 = vld [vmem:[%s8661_s2 + $0xb8] sm:$0xff] }
 0x590   : > { %2636 = vmatpush.msrb.mxu2 %v4822_v30  ;;  %2757 = vmatpush.msrb.mxu0 %v4846_v62  ;;  %v4889_v30 = vld [vmem:[%s8661_s2 + $0x350] sm:$0xff]  ;;  %v4999_v62 = vld [vmem:[%s8661_s2 + $0x678] sm:$0xff] }
 0x591   : > { %2552 = vmatpush.msra.mxu1 %v2523_v53  ;;  %v4995_v12 = vld [vmem:[%s8661_s2 + $0x658] sm:$0xff]  ;;  %v4993_v53 = vld [vmem:[%s8661_s2 + $0x648] sm:$0xff] }
 0x592   : > { %2637 = vmatpush.msrb.mxu2 %v4821_v54  ;;  %2758 = vmatpush.msrb.mxu0 %v4845_v24  ;;  %v4840_v54 = vld [vmem:[%s8661_s2 + $0x1f8] sm:$0xff]  ;;  %v4963_v24 = vld [vmem:[%s8661_s2 + $0x570] sm:$0xff] }
 0x593   : > { %4803 = vmatmul.msk.f32.gmra.mxu2 %vm892_vm1, %v6228_v32 }
 0x594   : > { %2638 = vmatpush.msrb.mxu2 %v4820_v7  ;;  %2759 = vmatpush.msrb.mxu0 %v4844_v26  ;;  %v4922_v7 = vld [vmem:[%s8661_s2 + $0x440] sm:$0xff]  ;;  %v4962_v26 = vld [vmem:[%s8661_s2 + $0x568] sm:$0xff] }
 0x595   : > { %2702 = vperm.xlu1 %5239, %v4843_v36   ;;  %v4835_v36 = vld [vmem:[%s8661_s2 + $0x1d0] sm:$0xff] }
 0x596   : > { %2639 = vmatpush.msrb.mxu2 %v4819_v59  ;;  %v4886_v59 = vld [vmem:[%s8661_s2 + $0x338] sm:$0xff] }
 0x598   : > { %2640 = vmatpush.msrb.mxu2 %v4818_v63  ;;  %v4885_v63 = vld [vmem:[%s8661_s2 + $0x330] sm:$0xff] }
 0x59a   : > { %2641 = vmatpush.msrb.mxu2 %v4817_v31  ;;  %v4839_v31 = vld [vmem:[%s8661_s2 + $0x1f0] sm:$0xff] }
 0x59b   : > { %4804 = vmatmul.msk.f32.gmra.mxu2 %vm892_vm1, %v6235_v22 }
 0x59c   : > { %2642 = vmatpush.msrb.mxu2 %v4816_v9  ;;  %v4883_v9 = vld [vmem:[%s8661_s2 + $0x320] sm:$0xff] }
 0x59d   : > { %3247 = vperm.xlu1 %5239, %v5017_v48   ;;  %v2514_v48 = vld [vmem:[%s8661_s2 + $0xa8] sm:$0xff] }
 0x59e   : > { %2643 = vmatpush.msrb.mxu2 %v4815_v13  ;;  %v4882_v13 = vld [vmem:[%s8661_s2 + $0x318] sm:$0xff] }
 0x5a0   : > { %2644 = vmatpush.msrb.mxu2 %v4814_v17  ;;  %v4881_v17 = vld [vmem:[%s8661_s2 + $0x310] sm:$0xff] }
 0x5a2   : > { %2645 = vmatpush.msrb.mxu2 %v4813_v20  ;;  %v4880_v20 = vld [vmem:[%s8661_s2 + $0x308] sm:$0xff] }
 0x5a5   : > { %3357 = vperm.xlu1 %5239, %v5052_v58   ;;  %v4955_v58 = vld [vmem:[%s8661_s2 + $0x530] sm:$0xff] }
 0x60a   : > { %v2408_v14 = vpop.f32.mrf.mxu1 }
 0x60b   : > { %v2412_v15 = vadd.f32 %v2408_v14, %v2209_v10  ;;  %v4983_v10 = vld [vmem:[%s8666_s7 + $0x88] sm:$0xff]  ;;  %v4917_v14 = vld [vmem:[%s8661_s2 + $0x418] sm:$0xff] }
 0x60c   : > { %3142 = vperm.xlu1 %5239, %v4983_v10   ;;  %v4951_v10 = vld [vmem:[%s8661_s2 + $0x510] sm:$0xff] }
 0x60d   : > { %v2420_v8 = vadd.f32 %v6212_v18, %v2412_v15  ;;  %v4812_v18 = vld [vmem:[%s8661_s2 + $0x118] sm:$0xff]  ;;  %v2518_v15 = vld [vmem:[%s8661_s2 + $0xc8] sm:$0xff] }
 0x60e   : > { %v6389_v11 = vpop.f32.mrf.mxu2  ;;  %2646 = vmatpush.msrb.mxu2 %v4812_v18  ;;  %v4879_v18 = vld [vmem:[%s8661_s2 + $0x300] sm:$0xff] }
 0x60f   : > { %v2422_v35 = vmax.f32 %v2420_v8, 0.0  ;;  %2541 = vmatmul.f32.vlgmr.msra.gmra.mxu0 %v6389_v11  ;;  %v2517_v8 = vld [vmem:[%s8661_s2 + $0xc0] sm:$0xff] }
 0x610   : > { %2647 = vmatpush.msrb.mxu2 %v4811_v25  ;;  %2964 = vmatpush.msra.mxu0 %v4929_v40  ;;  %v4964_v25 = vld [vmem:[%s8661_s2 + $0x578] sm:$0xff]  ;;  %v2515_v40 = vld [vmem:[%s8661_s2 + $0xb0] sm:$0xff] }
 0x611   : > { %4805 = vmatpush.msk.msra.mxu3 %vm896_vm0, %v2422_v35  ;;  %v3481_v35 = vld [vmem:[%s8667_s8] sm:$0xff] }
 0x612   : > { %4806 = vmatmul.msk.f32.vlgmr.msra.gmra.mxu3 %vm892_vm1, %v6218_v49  ;;  %v4809_v49 = vld [vmem:[%s8661_s2 + $0x100] sm:$0xff]  ;;  %2648 = vmatpush.msrb.mxu2 %v4810_v29  ;;  %v5053_v29 = vld [vmem:[%s8666_s7 + $0xb8] sm:$0xff] }
 0x613   : > { %2965 = vmatpush.msra.mxu0 %v4928_v41  ;;  %2660 = vmatpush.msrb.mxu3 %v4840_v54  ;;  %v4948_v41 = vld [vmem:[%s8666_s7 + $0x70] sm:$0xff]  ;;  %v4957_v54 = vld [vmem:[%s8661_s2 + $0x540] sm:$0xff] }
 0x614   : > { %2649 = vmatpush.msrb.mxu2 %v4809_v49  ;;  %v4998_v49 = vld [vmem:[%s8661_s2 + $0x670] sm:$0xff]  ;;  %3362 = vperm.xlu1 %5239, %v5053_v29  }
 0x615   : > { %2650 = vmatmul.f32.vlgmr.msrb.gmra.mxu2 %v6389_v11  ;;  %2966 = vmatpush.msra.mxu0 %v4927_v45  ;;  %v4834_v45 = vld [vmem:[%s8661_s2 + $0x1c8] sm:$0xff]  ;;  %v4827_v29 = vld [vmem:[%s8661_s2 + $0x190] sm:$0xff] }
 0x616   : > { %v6425_v38 = vpop.f32.mrf.mxu2  ;;  %2854 = vmatpush.msra.mxu2 %v4894_v39  ;;  %2661 = vmatpush.msrb.mxu3 %v4839_v31  ;;  %v4997_v39 = vld [vmem:[%s8661_s2 + $0x668] sm:$0xff] }
 0x617   : > { %2544 = vmatmul.f32.gmra.mxu0 %v6425_v38  ;;  %v4830_v31 = vld [vmem:[%s8661_s2 + $0x1a8] sm:$0xff] }
 0x618   : > { %2855 = vmatpush.msra.mxu2 %v4893_v2  ;;  %2967 = vmatpush.msra.mxu0 %v4926_v47  ;;  %v4961_v2 = vld [vmem:[%s8661_s2 + $0x560] sm:$0xff]  ;;  %v4959_v47 = vld [vmem:[%s8661_s2 + $0x550] sm:$0xff] }
 0x619   : > { %2662 = vmatpush.msrb.mxu3 %v4838_v5  ;;  %v4986_v5 = vld [vmem:[%s8661_s2 + $0x610] sm:$0xff] }
 0x61a   : > { %4807 = vmatmul.msk.f32.gmra.mxu3 %vm892_vm1, %v6228_v32  ;;  %v4912_v32 = vld [vmem:[%s8666_s7 + $0x50] sm:$0xff]  ;;  %2856 = vmatpush.msra.mxu2 %v4892_v43  ;;  %v4996_v43 = vld [vmem:[%s8661_s2 + $0x660] sm:$0xff] }
 0x61b   : > { %2917 = vperm.xlu2 %5240, %v4912_v32   ;;  %2968 = vmatpush.msra.mxu0 %v4925_v52  ;;  %v4960_v32 = vld [vmem:[%s8661_s2 + $0x558] sm:$0xff]  ;;  %v4958_v52 = vld [vmem:[%s8661_s2 + $0x548] sm:$0xff] }
 0x61c   : > { %2857 = vmatpush.msra.mxu2 %v4891_v46  ;;  %2663 = vmatpush.msrb.mxu3 %v4837_v16  ;;  %v3546_v46 = vld [vmem:[%s8668_s9] sm:$0xff]  ;;  %v4985_v16 = vld [vmem:[%s8661_s2 + $0x608] sm:$0xff] }
 0x61d   : > { %2653 = vmatmul.f32.gmra.mxu2 %v6425_v38  ;;  %2969 = vmatpush.msra.mxu0 %v4924_v27  ;;  %v2513_v27 = vld [vmem:[%s8661_s2 + $0xa0] sm:$0xff] }
 0x61e   : > { %v6464_v19 = vpop.f32.mrf.mxu2  ;;  %2858 = vmatpush.msra.mxu2 %v4890_v50  ;;  %2664 = vmatpush.msrb.mxu3 %v4836_v33  ;;  %v4994_v50 = vld [vmem:[%s8661_s2 + $0x650] sm:$0xff]  ;;  %v4984_v33 = vld [vmem:[%s8661_s2 + $0x600] sm:$0xff] }
 0x61f   : > { %2547 = vmatmul.f32.gmra.mxu0 %v6464_v19  ;;  %3551 = vperm.xlu1 %5239, %v3546_v46   ;;  %v5029_v46 = vld [vmem:[%s8661_s2 + $0x750] sm:$0xff] }
 0x620   : > { %2859 = vmatpush.msra.mxu2 %v4889_v30  ;;  %2970 = vmatpush.msra.mxu0 %v4923_v56  ;;  %v4833_v30 = vld [vmem:[%s8661_s2 + $0x1c0] sm:$0xff]  ;;  %v4832_v56 = vld [vmem:[%s8661_s2 + $0x1b8] sm:$0xff] }
 0x621   : > { %2665 = vmatpush.msrb.mxu3 %v4835_v36  ;;  %v5031_v36 = vld [vmem:[%s8661_s2 + $0x760] sm:$0xff] }
 0x622   : > { %4808 = vmatmul.msk.f32.gmra.mxu3 %vm892_vm1, %v6235_v22  ;;  %v2522_v22 = vld [vmem:[%s8661_s2 + $0xe8] sm:$0xff]  ;;  %2860 = vmatpush.msra.mxu2 %v4888_v55  ;;  %v5018_v55 = vld [vmem:[%s8666_s7 + $0xa0] sm:$0xff] }
 0x623   : > { %2553 = vmatpush.msra.mxu1 %v2522_v22  ;;  %3462 = vperm.xlu2 %5240, %v5086_v57   ;;  %v4992_v22 = vld [vmem:[%s8661_s2 + $0x640] sm:$0xff]  ;;  %v4956_v57 = vld [vmem:[%s8661_s2 + $0x538] sm:$0xff] }
 0x624   : > { %2861 = vmatpush.msra.mxu2 %v4887_v61  ;;  %2971 = vmatpush.msra.mxu0 %v4922_v7  ;;  %v4991_v61 = vld [vmem:[%s8661_s2 + $0x638] sm:$0xff] }
 0x625   : > { %2554 = vmatpush.msra.mxu1 %v2521_v28  ;;  %2656 = vmatmul.f32.gmra.mxu2 %v6464_v19  ;;  %v5095_v7 = vld [vmem:[%s8668_s9 + $0x18] sm:$0xff]  ;;  %v4990_v28 = vld [vmem:[%s8661_s2 + $0x630] sm:$0xff] }
 0x626   : > { %2862 = vmatpush.msra.mxu2 %v4886_v59  ;;  %2972 = vmatpush.msra.mxu0 %v4921_v51  ;;  %v2512_v59 = vld [vmem:[%s8661_s2 + $0x98] sm:$0xff]  ;;  %v4831_v51 = vld [vmem:[%s8661_s2 + $0x1b0] sm:$0xff] }
 0x627   : > { %2760 = vmatmul.f32.vlgmr.msrb.gmra.mxu0 %v6389_v11  ;;  %2555 = vmatpush.msra.mxu1 %v2520_v0  ;;  %v2511_v0 = vld [vmem:[%s8661_s2 + $0x90] sm:$0xff] }
 0x628   : > { %2863 = vmatpush.msra.mxu2 %v4885_v63  ;;  %2973 = vmatpush.msra.mxu0 %v4920_v1  ;;  %v4954_v63 = vld [vmem:[%s8661_s2 + $0x528] sm:$0xff] }
 0x629   : > { %2556 = vmatpush.msra.mxu1 %v2519_v3  ;;  %2666 = vmatpush.msrb.mxu3 %v4834_v45  ;;  %v4989_v1 = vld [vmem:[%s8661_s2 + $0x628] sm:$0xff]  ;;  %v5088_v3 = vld [vmem:[%s8666_s7 + $0xd0] sm:$0xff]  ;;  %v4872_v45 = vld [vmem:[%s8661_s2 + $0x2e0] sm:$0xff] }
 0x62a   : > { %2864 = vmatpush.msra.mxu2 %v4884_v6  ;;  %2974 = vmatpush.msra.mxu0 %v4919_v4  ;;  %v4953_v6 = vld [vmem:[%s8661_s2 + $0x520] sm:$0xff] }
 0x62b   : > { %3137 = vperm.xlu2 %5240, %v4982_v37   ;;  %2557 = vmatpush.msra.mxu1 %v2518_v15  ;;  %v4988_v4 = vld [vmem:[%s8661_s2 + $0x620] sm:$0xff]  ;;  %v4952_v37 = vld [vmem:[%s8661_s2 + $0x518] sm:$0xff]  ;;  %v4950_v15 = vld [vmem:[%s8661_s2 + $0x508] sm:$0xff] }
 0x62c   : > { %2865 = vmatpush.msra.mxu2 %v4883_v9  ;;  %2975 = vmatpush.msra.mxu0 %v4918_v42  ;;  %v4987_v9 = vld [vmem:[%s8661_s2 + $0x618] sm:$0xff]  ;;  %v5101_v42 = vld [vmem:[%s8668_s9 + $0x30] sm:$0xff] }
 0x62d   : > { %2558 = vmatpush.msra.mxu1 %v2517_v8  ;;  %2667 = vmatpush.msrb.mxu3 %v4833_v30  ;;  %v4949_v8 = vld [vmem:[%s8661_s2 + $0x500] sm:$0xff]  ;;  %v5028_v30 = vld [vmem:[%s8661_s2 + $0x748] sm:$0xff] }
 0x62e   : > { %2866 = vmatpush.msra.mxu2 %v4882_v13  ;;  %2976 = vmatpush.msra.mxu0 %v4917_v14  ;;  %v2510_v13 = vld [vmem:[%s8661_s2 + $0x88] sm:$0xff]  ;;  %v4829_v14 = vld [vmem:[%s8661_s2 + $0x1a0] sm:$0xff] }
 0x62f   : > { %2763 = vmatmul.f32.gmra.mxu0 %v6425_v38  ;;  %2559 = vmatpush.msra.mxu1 %v2516_v34  ;;  %v4874_v34 = vld [vmem:[%s8661_s2 + $0x2f0] sm:$0xff] }
 0x630   : > { %2867 = vmatpush.msra.mxu2 %v4881_v17  ;;  %2977 = vmatpush.msra.mxu0 %v4916_v60  ;;  %v2509_v17 = vld [vmem:[%s8661_s2 + $0x80] sm:$0xff]  ;;  %v4828_v60 = vld [vmem:[%s8661_s2 + $0x198] sm:$0xff] }
 0x631   : > { %2560 = vmatpush.msra.mxu1 %v2515_v40  ;;  %2668 = vmatpush.msrb.mxu3 %v4832_v56  ;;  %v5066_v40 = vld [vmem:[%s8661_s2 + $0x860] sm:$0xff]  ;;  %v4869_v56 = vld [vmem:[%s8661_s2 + $0x2c8] sm:$0xff] }
 0x632   : > { %2868 = vmatpush.msra.mxu2 %v4880_v20  ;;  %2978 = vmatpush.msra.mxu0 %v4915_v21  ;;  %v4875_v20 = vld [vmem:[%s8661_s2 + $0x2f8] sm:$0xff] }
 0x633   : > { %3486 = vperm.xlu2 %5240, %v3481_v35   ;;  %2561 = vmatpush.msra.mxu1 %v2514_v48  ;;  %v5034_v21 = vld [vmem:[%s8661_s2 + $0x778] sm:$0xff] }
 0x634   : > { %2869 = vmatpush.msra.mxu2 %v4879_v18  ;;  %2979 = vmatpush.msra.mxu0 %v4914_v23  ;;  %v5069_v35 = vld [vmem:[%s8661_s2 + $0x878] sm:$0xff]  ;;  %v3547_v18 = vld [vmem:[%s8668_s9 + $0x8] sm:$0xff]  ;;  %v5140_v23 = vld [vmem:[%s8670_s11 + $0x4] sm:$0xf] }
 0x635   : > { %2870 = vmatmul.f32.vlgmr.msra.gmra.mxu2 %v6389_v11  ;;  %2562 = vmatpush.msra.mxu1 %v2513_v27  ;;  %v4871_v48 = vld [vmem:[%s8661_s2 + $0x2d8] sm:$0xff]  ;;  %v4870_v27 = vld [vmem:[%s8661_s2 + $0x2d0] sm:$0xff] }
 0x636   : > { %3074 = vmatpush.msrb.mxu2 %v4964_v25  ;;  %3184 = vmatpush.msrb.mxu0 %v4999_v62  ;;  %v5033_v25 = vld [vmem:[%s8661_s2 + $0x770] sm:$0xff] }
 0x637   : > { %2766 = vmatmul.f32.gmra.mxu0 %v6464_v19  ;;  %3611 = vperm.xlu1 %5239, %v5095_v7   ;;  %v5068_v62 = vld [vmem:[%s8661_s2 + $0x870] sm:$0xff]  ;;  %v5061_v7 = vld [vmem:[%s8661_s2 + $0x838] sm:$0xff] }
 0x638   : > { %3075 = vmatpush.msrb.mxu2 %v4963_v24  ;;  %3185 = vmatpush.msrb.mxu0 %v4998_v49  ;;  %v5032_v24 = vld [vmem:[%s8661_s2 + $0x768] sm:$0xff] }
 0x639   : > { %2563 = vmatpush.msra.mxu1 %v2512_v59  ;;  %2669 = vmatpush.msrb.mxu3 %v4831_v51  ;;  %v5067_v49 = vld [vmem:[%s8661_s2 + $0x868] sm:$0xff]  ;;  %v5115_v59 = vld [vmem:[%s8668_s9 + $0x70] sm:$0xff] }
 0x63a   : > { %3076 = vmatpush.msrb.mxu2 %v4962_v26  ;;  %3186 = vmatpush.msrb.mxu0 %v4997_v39  ;;  %v4826_v26 = vld [vmem:[%s8661_s2 + $0x188] sm:$0xff]  ;;  %v5025_v51 = vld [vmem:[%s8661_s2 + $0x730] sm:$0xff] }
 0x63b   : > { %3032 = vperm.xlu2 %5240, %v4948_v41   ;;  %2564 = vmatpush.msra.mxu1 %v2511_v0  ;;  %v4873_v39 = vld [vmem:[%s8661_s2 + $0x2e8] sm:$0xff]  ;;  %v5065_v41 = vld [vmem:[%s8661_s2 + $0x858] sm:$0xff] }
 0x63c   : > { %3077 = vmatpush.msrb.mxu2 %v4961_v2  ;;  %3187 = vmatpush.msrb.mxu0 %v4996_v43  ;;  %v5030_v2 = vld [vmem:[%s8661_s2 + $0x758] sm:$0xff]  ;;  %v4825_v43 = vld [vmem:[%s8661_s2 + $0x180] sm:$0xff] }
 0x63d   : > { %2873 = vmatmul.f32.gmra.mxu2 %v6425_v38  ;;  %2670 = vmatpush.msrb.mxu3 %v4830_v31  ;;  %v4867_v0 = vld [vmem:[%s8661_s2 + $0x2b8] sm:$0xff]  ;;  %v4905_v31 = vld [vmem:[%s8661_s2 + $0x3d0] sm:$0xff] }
 0x63e   : > { %3078 = vmatpush.msrb.mxu2 %v4960_v32  ;;  %3188 = vmatpush.msrb.mxu0 %v4995_v12  ;;  %v5109_v32 = vld [vmem:[%s8668_s9 + $0x58] sm:$0xff] }
 0x63f   : > { %2980 = vmatmul.f32.vlgmr.msra.gmra.mxu0 %v6389_v11  ;;  %3671 = vperm.xlu1 %5239, %v5101_v42   ;;  %v4910_v12 = vld [vmem:[%s8661_s2 + $0x3f8] sm:$0xff]  ;;  %v5058_v42 = vld [vmem:[%s8661_s2 + $0x820] sm:$0xff] }
 0x640   : > { %3079 = vmatpush.msrb.mxu2 %v4959_v47  ;;  %3189 = vmatpush.msrb.mxu0 %v4994_v50  ;;  %v5064_v47 = vld [vmem:[%s8661_s2 + $0x850] sm:$0xff]  ;;  %v5096_v50 = vld [vmem:[%s8668_s9 + $0x20] sm:$0xff] }
 0x641   : > { %2565 = vmatpush.msra.mxu1 %v2510_v13  ;;  %2671 = vmatpush.msrb.mxu3 %v4829_v14  ;;  %v4903_v13 = vld [vmem:[%s8661_s2 + $0x3c0] sm:$0xff]  ;;  %v5057_v14 = vld [vmem:[%s8661_s2 + $0x818] sm:$0xff] }
 0x642   : > { %3080 = vmatpush.msrb.mxu2 %v4958_v52  ;;  %3190 = vmatpush.msrb.mxu0 %v4993_v53  ;;  %v4909_v52 = vld [vmem:[%s8661_s2 + $0x3f0] sm:$0xff]  ;;  %v5063_v53 = vld [vmem:[%s8661_s2 + $0x848] sm:$0xff] }
 0x643   : > { %3252 = vperm.xlu2 %5240, %v5018_v55   ;;  %2566 = vmatpush.msra.mxu1 %v2509_v17  ;;  %v5027_v55 = vld [vmem:[%s8661_s2 + $0x740] sm:$0xff]  ;;  %v5114_v17 = vld [vmem:[%s8668_s9 + $0x68] sm:$0xff] }
 0x644   : > { %3081 = vmatpush.msrb.mxu2 %v4957_v54  ;;  %3191 = vmatpush.msrb.mxu0 %v4992_v22  ;;  %v4908_v54 = vld [vmem:[%s8661_s2 + $0x3e8] sm:$0xff]  ;;  %v5062_v22 = vld [vmem:[%s8661_s2 + $0x840] sm:$0xff] }
 0x645   : > { %2876 = vmatmul.f32.gmra.mxu2 %v6464_v19  ;;  %2672 = vmatpush.msrb.mxu3 %v4828_v60  ;;  %v5021_v60 = vld [vmem:[%s8661_s2 + $0x710] sm:$0xff] }
 0x646   : > { %3082 = vmatpush.msrb.mxu2 %v4956_v57  ;;  %3192 = vmatpush.msrb.mxu0 %v4991_v61  ;;  %v4907_v57 = vld [vmem:[%s8661_s2 + $0x3e0] sm:$0xff]  ;;  %v5026_v61 = vld [vmem:[%s8661_s2 + $0x738] sm:$0xff] }
 0x647   : > { %2983 = vmatmul.f32.gmra.mxu0 %v6425_v38  ;;  %2770 = vmatpush.msrb.mxu1 %v4875_v20  ;;  %v4863_v20 = vld [vmem:[%s8661_s2 + $0x298] sm:$0xff] }
 0x648   : > { %3083 = vmatpush.msrb.mxu2 %v4955_v58  ;;  %3193 = vmatpush.msrb.mxu0 %v4990_v28  ;;  %v4868_v58 = vld [vmem:[%s8661_s2 + $0x2c0] sm:$0xff]  ;;  %v4906_v28 = vld [vmem:[%s8661_s2 + $0x3d8] sm:$0xff] }
 0x649   : > { %4176 = vperm.xlu1 %5239, %v5140_v23   ;;  %2673 = vmatpush.msrb.mxu3 %v4827_v29  ;;  %v4862_v23 = vld [vmem:[%s8661_s2 + $0x290] sm:$0xff]  ;;  %v5054_v29 = vld [vmem:[%s8661_s2 + $0x800] sm:$0xff] }
 0x64a   : > { %3084 = vmatpush.msrb.mxu2 %v4954_v63  ;;  %3194 = vmatpush.msrb.mxu0 %v4989_v1  ;;  %v5060_v63 = vld [vmem:[%s8661_s2 + $0x830] sm:$0xff]  ;;  %v5102_v1 = vld [vmem:[%s8668_s9 + $0x38] sm:$0xff] }
 0x64b   : > { %3472 = vperm.xlu2 %5240, %v5088_v3   ;;  %2771 = vmatpush.msrb.mxu1 %v4874_v34  ;;  %v5059_v3 = vld [vmem:[%s8661_s2 + $0x828] sm:$0xff]  ;;  %v4899_v34 = vld [vmem:[%s8661_s2 + $0x3a0] sm:$0xff] }
 0x64c   : > { %3085 = vmatpush.msrb.mxu2 %v4953_v6  ;;  %3195 = vmatpush.msrb.mxu0 %v4988_v4  ;;  %v5024_v6 = vld [vmem:[%s8661_s2 + $0x728] sm:$0xff]  ;;  %v4866_v4 = vld [vmem:[%s8661_s2 + $0x2b0] sm:$0xff] }
 0x64d   : > { %2674 = vmatpush.msrb.mxu3 %v4826_v26  ;;  %2772 = vmatpush.msrb.mxu1 %v4873_v39  ;;  %v5113_v26 = vld [vmem:[%s8668_s9 + $0x60] sm:$0xff]  ;;  %v5142_v39 = vld [vmem:[%s8670_s11 + $0xc] sm:$0xf] }
 0x64e   : > { %3086 = vmatpush.msrb.mxu2 %v4952_v37  ;;  %3196 = vmatpush.msrb.mxu0 %v4987_v9  ;;  %v4904_v37 = vld [vmem:[%s8661_s2 + $0x3c8] sm:$0xff]  ;;  %v5023_v9 = vld [vmem:[%s8661_s2 + $0x720] sm:$0xff] }
 0x64f   : > { %2986 = vmatmul.f32.gmra.mxu0 %v6464_v19  ;;  %2675 = vmatpush.msrb.mxu3 %v4825_v43  ;;  %v5143_v43 = vld [vmem:[%s8670_s11 + $0x10] sm:$0xf] }
 0x650   : > { %3087 = vmatpush.msrb.mxu2 %v4951_v10  ;;  %3197 = vmatpush.msrb.mxu0 %v4986_v5  ;;  %v4865_v10 = vld [vmem:[%s8661_s2 + $0x2a8] sm:$0xff]  ;;  %v5022_v5 = vld [vmem:[%s8661_s2 + $0x718] sm:$0xff] }
 0x651   : > { %2773 = vmatpush.msrb.mxu1 %v4872_v45  ;;  %3741 = vperm.xlu1 %5239, %v5109_v32   ;;  %v5133_v45 = vld [vmem:[%s8668_s9 + $0xb8] sm:$0xff]  ;;  %v5121_v32 = vld [vmem:[%s8668_s9 + $0x88] sm:$0xff] }
 0x652   : > { %3088 = vmatpush.msrb.mxu2 %v4950_v15  ;;  %3198 = vmatpush.msrb.mxu0 %v4985_v16  ;;  %v4864_v15 = vld [vmem:[%s8661_s2 + $0x2a0] sm:$0xff]  ;;  %v4902_v16 = vld [vmem:[%s8661_s2 + $0x3b8] sm:$0xff] }
 0x653   : > { %3556 = vperm.xlu2 %5240, %v3547_v18   ;;  %2880 = vmatpush.msra.mxu3 %v4910_v12  ;;  %v5055_v18 = vld [vmem:[%s8661_s2 + $0x808] sm:$0xff]  ;;  %v4980_v12 = vld [vmem:[%s8661_s2 + $0x5f8] sm:$0xff] }
 0x654   : > { %3089 = vmatpush.msrb.mxu2 %v4949_v8  ;;  %3199 = vmatpush.msrb.mxu0 %v4984_v33  ;;  %v5056_v8 = vld [vmem:[%s8661_s2 + $0x810] sm:$0xff]  ;;  %v5103_v33 = vld [vmem:[%s8668_s9 + $0x40] sm:$0xff] }
 0x655   : > { %3090 = vmatmul.f32.vlgmr.msrb.gmra.mxu2 %v6389_v11  ;;  %2774 = vmatpush.msrb.mxu1 %v4871_v48  ;;  %v4979_v48 = vld [vmem:[%s8661_s2 + $0x5f0] sm:$0xff] }
 0x656   : > { %3294 = vmatpush.msra.mxu2 %v5034_v21  ;;  %3404 = vmatpush.msra.mxu0 %v5069_v35  ;;  %v4901_v21 = vld [vmem:[%s8661_s2 + $0x3b0] sm:$0xff]  ;;  %v5020_v35 = vld [vmem:[%s8661_s2 + $0x708] sm:$0xff] }
 0x657   : > { %3200 = vmatmul.f32.vlgmr.msrb.gmra.mxu0 %v6389_v11  ;;  %2881 = vmatpush.msra.mxu3 %v4909_v52  ;;  %v4943_v52 = vld [vmem:[%s8661_s2 + $0x4e8] sm:$0xff] }
 0x658   : > { %3295 = vmatpush.msra.mxu2 %v5033_v25  ;;  %3405 = vmatpush.msra.mxu0 %v5068_v62  ;;  %v4900_v25 = vld [vmem:[%s8661_s2 + $0x3a8] sm:$0xff]  ;;  %v5019_v62 = vld [vmem:[%s8661_s2 + $0x700] sm:$0xff] }
 0x659   : > { %2775 = vmatpush.msrb.mxu1 %v4870_v27  ;;  %2882 = vmatpush.msra.mxu3 %v4908_v54  ;;  %v4977_v27 = vld [vmem:[%s8661_s2 + $0x5e0] sm:$0xff]  ;;  %v4941_v54 = vld [vmem:[%s8661_s2 + $0x4d8] sm:$0xff] }
 0x65a   : > { %3296 = vmatpush.msra.mxu2 %v5032_v24  ;;  %3406 = vmatpush.msra.mxu0 %v5067_v49  ;;  %v4861_v24 = vld [vmem:[%s8661_s2 + $0x288] sm:$0xff]  ;;  %v4860_v49 = vld [vmem:[%s8661_s2 + $0x280] sm:$0xff] }
 0x65b   : > { %3616 = vperm.xlu2 %5240, %v5096_v50   ;;  %2776 = vmatpush.msrb.mxu1 %v4869_v56  ;;  %v5120_v50 = vld [vmem:[%s8668_s9 + $0x80] sm:$0xff]  ;;  %v5131_v56 = vld [vmem:[%s8668_s9 + $0xa8] sm:$0xff] }
 0x65c   : > { %3297 = vmatpush.msra.mxu2 %v5031_v36  ;;  %3407 = vmatpush.msra.mxu0 %v5066_v40  ;;  %v4898_v36 = vld [vmem:[%s8661_s2 + $0x398] sm:$0xff]  ;;  %v4897_v40 = vld [vmem:[%s8661_s2 + $0x390] sm:$0xff] }
 0x65d   : > { %3093 = vmatmul.f32.gmra.mxu2 %v6425_v38  ;;  %2883 = vmatpush.msra.mxu3 %v4907_v57  ;;  %v4940_v57 = vld [vmem:[%s8661_s2 + $0x4d0] sm:$0xff] }
 0x65e   : > { %3298 = vmatpush.msra.mxu2 %v5030_v2  ;;  %3408 = vmatpush.msra.mxu0 %v5065_v41  ;;  %v4896_v2 = vld [vmem:[%s8661_s2 + $0x388] sm:$0xff]  ;;  %v5145_v41 = vld [vmem:[%s8670_s11 + $0x18] sm:$0xf] }
 0x65f   : > { %3203 = vmatmul.f32.gmra.mxu0 %v6425_v38  ;;  %2777 = vmatpush.msrb.mxu1 %v4868_v58  ;;  %v4939_v58 = vld [vmem:[%s8661_s2 + $0x4c8] sm:$0xff] }
 0x660   : > { %3299 = vmatpush.msra.mxu2 %v5029_v46  ;;  %3409 = vmatpush.msra.mxu0 %v5064_v47  ;;  %v4944_v47 = vld [vmem:[%s8661_s2 + $0x4f0] sm:$0xff] }
 0x661   : > { %3801 = vperm.xlu1 %5239, %v5115_v59   ;;  %2884 = vmatpush.msra.mxu3 %v4906_v28  ;;  %v4974_v59 = vld [vmem:[%s8661_s2 + $0x5c8] sm:$0xff]  ;;  %v4938_v28 = vld [vmem:[%s8661_s2 + $0x4c0] sm:$0xff] }
 0x662   : > { %3300 = vmatpush.msra.mxu2 %v5028_v30  ;;  %3410 = vmatpush.msra.mxu0 %v5063_v53  ;;  %v4978_v30 = vld [vmem:[%s8661_s2 + $0x5e8] sm:$0xff]  ;;  %v4942_v53 = vld [vmem:[%s8661_s2 + $0x4e0] sm:$0xff] }
 0x663   : > { %2778 = vmatpush.msrb.mxu1 %v4867_v0  ;;  %3676 = vperm.xlu2 %5240, %v5102_v1   ;;  %v4972_v0 = vld [vmem:[%s8661_s2 + $0x5b8] sm:$0xff] }
 0x664   : > { %3301 = vmatpush.msra.mxu2 %v5027_v55  ;;  %3411 = vmatpush.msra.mxu0 %v5062_v22  ;;  %v4976_v55 = vld [vmem:[%s8661_s2 + $0x5d8] sm:$0xff] }
 0x665   : > { %2885 = vmatpush.msra.mxu3 %v4905_v31  ;;  %2779 = vmatpush.msrb.mxu1 %v4866_v4  ;;  %v4052_v31 = vld [vmem:[%s8669_s10 + $0x10] sm:$0xff]  ;;  %v5146_v4 = vld [vmem:[%s8670_s11 + $0x1c] sm:$0xf] }
 0x666   : > { %3302 = vmatpush.msra.mxu2 %v5026_v61  ;;  %3412 = vmatpush.msra.mxu0 %v5061_v7  ;;  %v4975_v61 = vld [vmem:[%s8661_s2 + $0x5d0] sm:$0xff]  ;;  %v5119_v7 = vld [vmem:[%s8668_s9 + $0x78] sm:$0xff] }
 0x667   : > { %2886 = vmatpush.msra.mxu3 %v4904_v37  ;;  %2780 = vmatpush.msrb.mxu1 %v4865_v10  ;;  %v4935_v37 = vld [vmem:[%s8661_s2 + $0x4a8] sm:$0xff]  ;;  %v4969_v10 = vld [vmem:[%s8661_s2 + $0x5a0] sm:$0xff] }
 0x668   : > { %3303 = vmatpush.msra.mxu2 %v5025_v51  ;;  %3413 = vmatpush.msra.mxu0 %v5060_v63  ;;  %v4973_v51 = vld [vmem:[%s8661_s2 + $0x5c0] sm:$0xff]  ;;  %v4937_v63 = vld [vmem:[%s8661_s2 + $0x4b8] sm:$0xff] }
 0x669   : > { %3096 = vmatmul.f32.gmra.mxu2 %v6464_v19  ;;  %3206 = vmatmul.f32.gmra.mxu0 %v6464_v19 }
 0x66a   : > { %3304 = vmatpush.msra.mxu2 %v5024_v6  ;;  %3414 = vmatpush.msra.mxu0 %v5059_v3  ;;  %v4936_v6 = vld [vmem:[%s8661_s2 + $0x4b0] sm:$0xff] }
 0x66b   : > { %2887 = vmatpush.msra.mxu3 %v4903_v13  ;;  %2781 = vmatpush.msrb.mxu1 %v4864_v15  ;;  %v4971_v3 = vld [vmem:[%s8661_s2 + $0x5b0] sm:$0xff]  ;;  %v4933_v13 = vld [vmem:[%s8661_s2 + $0x498] sm:$0xff] }
 0x66c   : > { %3305 = vmatpush.msra.mxu2 %v5023_v9  ;;  %3415 = vmatpush.msra.mxu0 %v5058_v42  ;;  %v4970_v9 = vld [vmem:[%s8661_s2 + $0x5a8] sm:$0xff]  ;;  %v4934_v42 = vld [vmem:[%s8661_s2 + $0x4a0] sm:$0xff]  ;;  %v4932_v15 = vld [vmem:[%s8661_s2 + $0x490] sm:$0xff] }
 0x66d   : > { %3796 = vperm.xlu1 %5239, %v5114_v17   ;;  %2888 = vmatpush.msra.mxu3 %v4902_v16  ;;  %v4967_v17 = vld [vmem:[%s8661_s2 + $0x590] sm:$0xff] }
 0x66e   : > { %3306 = vmatpush.msra.mxu2 %v5022_v5  ;;  %3416 = vmatpush.msra.mxu0 %v5057_v14  ;;  %v4968_v5 = vld [vmem:[%s8661_s2 + $0x598] sm:$0xff]  ;;  %v4050_v14 = vld [vmem:[%s8669_s10] sm:$0xff]  ;;  %v5139_v16 = vld [vmem:[%s8668_s9 + $0xd0] sm:$0xff] }
 0x66f   : > { %2782 = vmatpush.msrb.mxu1 %v4863_v20  ;;  %3681 = vperm.xlu2 %5240, %v5103_v33   ;;  %v4930_v20 = vld [vmem:[%s8661_s2 + $0x480] sm:$0xff] }
 0x670   : > { %3307 = vmatpush.msra.mxu2 %v5021_v60  ;;  %3417 = vmatpush.msra.mxu0 %v5056_v8  ;;  %v4931_v60 = vld [vmem:[%s8661_s2 + $0x488] sm:$0xff]  ;;  %v4965_v33 = vld [vmem:[%s8661_s2 + $0x580] sm:$0xff] }
 0x671   : > { %2889 = vmatpush.msra.mxu3 %v4901_v21  ;;  %2783 = vmatpush.msrb.mxu1 %v4862_v23  ;;  %v4966_v8 = vld [vmem:[%s8661_s2 + $0x588] sm:$0xff]  ;;  %v5015_v21 = vld [vmem:[%s8661_s2 + $0x6f8] sm:$0xff]  ;;  %v5049_v23 = vld [vmem:[%s8661_s2 + $0x7f0] sm:$0xff] }
 0x672   : > { %3308 = vmatpush.msra.mxu2 %v5020_v35  ;;  %3418 = vmatpush.msra.mxu0 %v5055_v18  ;;  %v5050_v35 = vld [vmem:[%s8661_s2 + $0x7f8] sm:$0xff]  ;;  %v5014_v18 = vld [vmem:[%s8661_s2 + $0x6f0] sm:$0xff] }
 0x673   : > { %2890 = vmatpush.msra.mxu3 %v4900_v25  ;;  %2784 = vmatpush.msrb.mxu1 %v4861_v24  ;;  %v5138_v25 = vld [vmem:[%s8668_s9 + $0xc8] sm:$0xff]  ;;  %v5012_v24 = vld [vmem:[%s8661_s2 + $0x6e0] sm:$0xff] }
 0x674   : > { %3309 = vmatpush.msra.mxu2 %v5019_v62  ;;  %3419 = vmatpush.msra.mxu0 %v5054_v29  ;;  %v5013_v62 = vld [vmem:[%s8661_s2 + $0x6e8] sm:$0xff] }
 0x675   : > { %3310 = vmatmul.f32.vlgmr.msra.gmra.mxu2 %v6389_v11  ;;  %3420 = vmatmul.f32.vlgmr.msra.gmra.mxu0 %v6389_v11  ;;  %v4895_v11 = vld [vmem:[%s8661_s2 + $0x380] sm:$0xff]  ;;  %v5048_v29 = vld [vmem:[%s8661_s2 + $0x7e8] sm:$0xff] }
 0x676   : > { %2891 = vmatpush.msra.mxu3 %v4899_v34  ;;  %2785 = vmatpush.msrb.mxu1 %v4860_v49  ;;  %v5047_v34 = vld [vmem:[%s8661_s2 + $0x7e0] sm:$0xff]  ;;  %v5011_v49 = vld [vmem:[%s8661_s2 + $0x6d8] sm:$0xff] }
 0x677   : > { %3791 = vperm.xlu1 %5239, %v5113_v26   ;;  %4284 = vperm.xlu2 %5240, %v5142_v39   ;;  %v5046_v26 = vld [vmem:[%s8661_s2 + $0x7d8] sm:$0xff]  ;;  %v5045_v39 = vld [vmem:[%s8661_s2 + $0x7d0] sm:$0xff] }
 0x678   : > { %2892 = vmatpush.msra.mxu3 %v4898_v36  ;;  %v5010_v36 = vld [vmem:[%s8661_s2 + $0x6d0] sm:$0xff] }
 0x67a   : > { %2893 = vmatpush.msra.mxu3 %v4897_v40  ;;  %v4559_v40 = vld [vmem:[%s8671_s12] sm:$0xf] }
 0x67c   : > { %2894 = vmatpush.msra.mxu3 %v4896_v2  ;;  %v5009_v2 = vld [vmem:[%s8661_s2 + $0x6c8] sm:$0xff] }
 0x67d   : > { %3313 = vmatmul.f32.gmra.mxu2 %v6425_v38  ;;  %3423 = vmatmul.f32.gmra.mxu0 %v6425_v38  ;;  %v4945_v38 = vld [vmem:[%s8661_s2 + $0x4f8] sm:$0xff] }
 0x67e   : > { %2895 = vmatpush.msra.mxu3 %v4895_v11  ;;  %v5044_v11 = vld [vmem:[%s8661_s2 + $0x7c8] sm:$0xff] }
 0x67f   : > { %4446 = vperm.xlu1 %5239, %v5145_v41   ;;  %4338 = vperm.xlu2 %5240, %v5143_v43   ;;  %v5008_v41 = vld [vmem:[%s8661_s2 + $0x6c0] sm:$0xff] }
 0x680   : > { %v5043_v43 = vld [vmem:[%s8661_s2 + $0x7c0] sm:$0xff] }
 0x685   : > { %3316 = vmatmul.f32.gmra.mxu2 %v6464_v19  ;;  %3426 = vmatmul.f32.gmra.mxu0 %v6464_v19  ;;  %v5132_v19 = vld [vmem:[%s8668_s9 + $0xb0] sm:$0xff] }
 0x687   : > { %3981 = vperm.xlu1 %5239, %v5133_v45   ;;  %3861 = vperm.xlu2 %5240, %v5121_v32   ;;  %v5007_v45 = vld [vmem:[%s8661_s2 + $0x6b8] sm:$0xff] }
 0x688   : > { %v5042_v32 = vld [vmem:[%s8661_s2 + $0x7b8] sm:$0xff] }
 0x68f   : > { %3976 = vperm.xlu1 %5239, %v5132_v19   ;;  %3856 = vperm.xlu2 %5240, %v5120_v50   ;;  %v4618_v19 = vld [vmem:[%s8706_s27] sm:$0xff] }
 0x690   : > { %v5004_v50 = vld [vmem:[%s8661_s2 + $0x6a0] sm:$0xff] }
 0x695   : > { %v7029_v46 = vpop.f32.mrf.mxu3 }
 0x696   : > { %2567 = vmatmul.f32.vlgmr.msra.gmra.mxu1 %v7029_v46  ;;  %2676 = vmatmul.f32.vlgmr.msrb.gmra.mxu3 %v7029_v46 }
 0x697   : > { %2990 = vmatpush.msra.mxu1 %v4945_v38  ;;  %3100 = vmatpush.msrb.mxu3 %v4980_v12  ;;  %v5006_v38 = vld [vmem:[%s8661_s2 + $0x6b0] sm:$0xff] }
 0x698   : > { %3971 = vperm.xlu1 %5239, %v5131_v56   ;;  %3851 = vperm.xlu2 %5240, %v5119_v7   ;;  %v5041_v12 = vld [vmem:[%s8661_s2 + $0x7b0] sm:$0xff]  ;;  %v5036_v56 = vld [vmem:[%s8661_s2 + $0x788] sm:$0xff]  ;;  %v5085_v7 = vld [vmem:[%s8661_s2 + $0x8f8] sm:$0xff] }
 0x699   : > { %2991 = vmatpush.msra.mxu1 %v4944_v47  ;;  %3101 = vmatpush.msrb.mxu3 %v4979_v48  ;;  %v5005_v47 = vld [vmem:[%s8661_s2 + $0x6a8] sm:$0xff] }
 0x69a   : > { %v5040_v48 = vld [vmem:[%s8661_s2 + $0x7a8] sm:$0xff] }
 0x69b   : > { %2992 = vmatpush.msra.mxu1 %v4943_v52  ;;  %3102 = vmatpush.msrb.mxu3 %v4978_v30  ;;  %v5039_v52 = vld [vmem:[%s8661_s2 + $0x7a0] sm:$0xff]  ;;  %v5003_v30 = vld [vmem:[%s8661_s2 + $0x698] sm:$0xff] }
 0x69d   : > { %v7063_v22 = vpop.f32.mrf.mxu3  ;;  %2993 = vmatpush.msra.mxu1 %v4942_v53  ;;  %3103 = vmatpush.msrb.mxu3 %v4977_v27  ;;  %v5038_v53 = vld [vmem:[%s8661_s2 + $0x798] sm:$0xff]  ;;  %v5002_v27 = vld [vmem:[%s8661_s2 + $0x690] sm:$0xff] }
 0x69e   : > { %2570 = vmatmul.f32.gmra.mxu1 %v7063_v22  ;;  %2679 = vmatmul.f32.gmra.mxu3 %v7063_v22 }
 0x69f   : > { %2994 = vmatpush.msra.mxu1 %v4941_v54  ;;  %3104 = vmatpush.msrb.mxu3 %v4976_v55  ;;  %v5037_v54 = vld [vmem:[%s8661_s2 + $0x790] sm:$0xff]  ;;  %v5001_v55 = vld [vmem:[%s8661_s2 + $0x688] sm:$0xff] }
 0x6a0   : > { %4065 = vperm.xlu1 %5239, %v4052_v31   ;;  %4500 = vperm.xlu2 %5240, %v5146_v4   ;;  %v5078_v31 = vld [vmem:[%s8661_s2 + $0x8c0] sm:$0xff]  ;;  %v5075_v4 = vld [vmem:[%s8661_s2 + $0x8a8] sm:$0xff] }
 0x6a1   : > { %2995 = vmatpush.msra.mxu1 %v4940_v57  ;;  %3105 = vmatpush.msrb.mxu3 %v4975_v61  ;;  %v5000_v57 = vld [vmem:[%s8661_s2 + $0x680] sm:$0xff] }
 0x6a2   : > { %v5035_v61 = vld [vmem:[%s8661_s2 + $0x780] sm:$0xff] }
 0x6a3   : > { %2996 = vmatpush.msra.mxu1 %v4939_v58  ;;  %3106 = vmatpush.msrb.mxu3 %v4974_v59  ;;  %v5084_v58 = vld [vmem:[%s8661_s2 + $0x8f0] sm:$0xff]  ;;  %v5083_v59 = vld [vmem:[%s8661_s2 + $0x8e8] sm:$0xff] }
 0x6a5   : > { %v7097_v1 = vpop.f32.mrf.mxu3  ;;  %2997 = vmatpush.msra.mxu1 %v4938_v28  ;;  %3107 = vmatpush.msrb.mxu3 %v4973_v51  ;;  %v5082_v28 = vld [vmem:[%s8661_s2 + $0x8e0] sm:$0xff]  ;;  %v5081_v51 = vld [vmem:[%s8661_s2 + $0x8d8] sm:$0xff] }
 0x6a6   : > { %2573 = vmatmul.f32.gmra.mxu1 %v7097_v1  ;;  %2682 = vmatmul.f32.gmra.mxu3 %v7097_v1 }
 0x6a7   : > { %2998 = vmatpush.msra.mxu1 %v4937_v63  ;;  %3108 = vmatpush.msrb.mxu3 %v4972_v0  ;;  %v5080_v63 = vld [vmem:[%s8661_s2 + $0x8d0] sm:$0xff]  ;;  %v5079_v0 = vld [vmem:[%s8661_s2 + $0x8c8] sm:$0xff] }
 0x6a8   : > { %4055 = vperm.xlu1 %5239, %v4050_v14   ;;  %4041 = vperm.xlu2 %5240, %v5139_v16  }
 0x6a9   : > { %2999 = vmatpush.msra.mxu1 %v4936_v6  ;;  %3109 = vmatpush.msrb.mxu3 %v4971_v3  ;;  %v5077_v6 = vld [vmem:[%s8661_s2 + $0x8b8] sm:$0xff]  ;;  %v5076_v3 = vld [vmem:[%s8661_s2 + $0x8b0] sm:$0xff] }
 0x6ab   : > { %3000 = vmatpush.msra.mxu1 %v4935_v37  ;;  %3110 = vmatpush.msrb.mxu3 %v4970_v9  ;;  %v5074_v37 = vld [vmem:[%s8661_s2 + $0x8a0] sm:$0xff]  ;;  %v5073_v9 = vld [vmem:[%s8661_s2 + $0x898] sm:$0xff] }
 0x6ad   : > { %3001 = vmatpush.msra.mxu1 %v4934_v42  ;;  %3111 = vmatpush.msrb.mxu3 %v4969_v10  ;;  %v5072_v42 = vld [vmem:[%s8661_s2 + $0x890] sm:$0xff]  ;;  %v5071_v10 = vld [vmem:[%s8661_s2 + $0x888] sm:$0xff] }
 0x6ae   : > { %2786 = vmatmul.f32.vlgmr.msrb.gmra.mxu1 %v7029_v46  ;;  %2896 = vmatmul.f32.vlgmr.msra.gmra.mxu3 %v7029_v46 }
 0x6af   : > { %3002 = vmatpush.msra.mxu1 %v4933_v13  ;;  %3112 = vmatpush.msrb.mxu3 %v4968_v5  ;;  %v5070_v13 = vld [vmem:[%s8661_s2 + $0x880] sm:$0xff]  ;;  %v7327_v5 = vpop.f32.mrf.mxu0 }
 0x6b0   : > { %4036 = vperm.xlu2 %5240, %v5138_v25   ;;  %v7361_v25 = vpop.permute.xlu2 %2912 }
 0x6b1   : > { %3003 = vmatpush.msra.mxu1 %v4932_v15  ;;  %3113 = vmatpush.msrb.mxu3 %v4967_v17  ;;  %v7335_v17 = vpop.f32.mrf.mxu2 }
 0x6b3   : > { %3004 = vmatpush.msra.mxu1 %v4931_v60  ;;  %3114 = vmatpush.msrb.mxu3 %v4966_v8 }
 0x6b5   : > { %3005 = vmatpush.msra.mxu1 %v4930_v20  ;;  %3115 = vmatpush.msrb.mxu3 %v4965_v33 }
 0x6b6   : > { %2789 = vmatmul.f32.gmra.mxu1 %v7063_v22  ;;  %2899 = vmatmul.f32.gmra.mxu3 %v7063_v22 }
 0x6b7   : > { %3210 = vmatpush.msrb.mxu1 %v5015_v21  ;;  %3320 = vmatpush.msra.mxu3 %v5050_v35  ;;  %v7330_v14 = vpop.f32.mrf.mxu0  ;;  %v7355_v35 = vpop.permute.xlu1 %2692 }
 0x6b8   : > { %4562 = vperm.xlu2 %5240, %v4559_v40  }
 0x6b9   : > { %3211 = vmatpush.msrb.mxu1 %v5014_v18  ;;  %3321 = vmatpush.msra.mxu3 %v5049_v23  ;;  %v7341_v8 = vpop.f32.mrf.mxu2 }
 0x6bb   : > { %3212 = vmatpush.msrb.mxu1 %v5013_v62  ;;  %3322 = vmatpush.msra.mxu3 %v5048_v29 }
 0x6bd   : > { %3213 = vmatpush.msrb.mxu1 %v5012_v24  ;;  %3323 = vmatpush.msra.mxu3 %v5047_v34  ;;  %v7367_v24 = vpop.permute.xlu0 %2582 }
 0x6be   : > { %2792 = vmatmul.f32.gmra.mxu1 %v7097_v1  ;;  %2902 = vmatmul.f32.gmra.mxu3 %v7097_v1 }
 0x6bf   : > { %3214 = vmatpush.msrb.mxu1 %v5011_v49  ;;  %3324 = vmatpush.msra.mxu3 %v5046_v26  ;;  %v7333_v15 = vpop.f32.mrf.mxu0  ;;  %v7369_v34 = vpop.permute.xlu1 %2802 }
 0x6c0   : > { %4621 = vperm.xlu2 %5240, %v4618_v19  }
 0x6c1   : > { %3215 = vmatpush.msrb.mxu1 %v5010_v36  ;;  %3325 = vmatpush.msra.mxu3 %v5045_v39  ;;  %v7351_v21 = vpop.f32.mrf.mxu2  ;;  %v7377_v39 = vpop.permute.xlu2 %3022 }
 0x6c3   : > { %3216 = vmatpush.msrb.mxu1 %v5009_v2  ;;  %3326 = vmatpush.msra.mxu3 %v5044_v11 }
 0x6c5   : > { %3217 = vmatpush.msrb.mxu1 %v5008_v41  ;;  %3327 = vmatpush.msra.mxu3 %v5043_v43  ;;  %v7381_v2 = vpop.permute.xlu0 %2587 }
 0x6c6   : > { %3006 = vmatmul.f32.vlgmr.msra.gmra.mxu1 %v7029_v46  ;;  %3116 = vmatmul.f32.vlgmr.msrb.gmra.mxu3 %v7029_v46 }
 0x6c7   : > { %3218 = vmatpush.msrb.mxu1 %v5007_v45  ;;  %3328 = vmatpush.msra.mxu3 %v5042_v32  ;;  %v7339_v60 = vpop.f32.mrf.mxu0  ;;  %v7385_v41 = vpop.permute.xlu1 %2697 }
 0x6c9   : > { %3219 = vmatpush.msrb.mxu1 %v5006_v38  ;;  %3329 = vmatpush.msra.mxu3 %v5041_v12  ;;  %v7365_v29 = vpop.f32.mrf.mxu2  ;;  %v7391_v32 = vpop.permute.xlu2 %3132 }
 0x6cb   : > { %3220 = vmatpush.msrb.mxu1 %v5005_v47  ;;  %3330 = vmatpush.msra.mxu3 %v5040_v48 }
 0x6cd   : > { %3221 = vmatpush.msrb.mxu1 %v5004_v50  ;;  %3331 = vmatpush.msra.mxu3 %v5039_v52  ;;  %v7397_v19 = vpop.permute.xlu0 %2807  ;;  %v3509_v50 = vld [vmem:[#allocation7 + $0x38] sm:$0xff] }
 0x6ce   : > { %3009 = vmatmul.f32.gmra.mxu1 %v7063_v22  ;;  %3119 = vmatmul.f32.gmra.mxu3 %v7063_v22  ;;  %v3578_v52 = vld [vmem:[#allocation7 + $0x78] sm:$0xff] }
 0x6cf   : > { %3222 = vmatpush.msrb.mxu1 %v5003_v30  ;;  %3332 = vmatpush.msra.mxu3 %v5038_v53  ;;  %v7347_v33 = vpop.f32.mrf.mxu0  ;;  %v7401_v48 = vpop.permute.xlu1 %3242 }
 0x6d0   : > { %3528 = vmatpush.msrb.mxu2 %v3509_v50 }
 0x6d1   : > { %3223 = vmatpush.msrb.mxu1 %v5002_v27  ;;  %3333 = vmatpush.msra.mxu3 %v5037_v54  ;;  %v7379_v40 = vpop.f32.mrf.mxu2  ;;  %v7405_v53 = vpop.permute.xlu2 %2917  ;;  %v3508_v27 = vld [vmem:[#allocation7 + $0x30] sm:$0xff] }
 0x6d2   : > { %v3577_v54 = vld [vmem:[#allocation7 + $0x70] sm:$0xff]  ;;  %3529 = vmatpush.msrb.mxu2 %v3508_v27  ;;  %v3572_v27 = vld [vmem:[#allocation7 + $0x48] sm:$0xff] }
 0x6d3   : > { %3224 = vmatpush.msrb.mxu1 %v5001_v55  ;;  %3334 = vmatpush.msra.mxu3 %v5036_v56  ;;  %v3507_v56 = vld [vmem:[#allocation7 + $0x28] sm:$0xff] }
 0x6d4   : > { %3530 = vmatpush.msrb.mxu2 %v3507_v56 }
 0x6d5   : > { %3225 = vmatpush.msrb.mxu1 %v5000_v57  ;;  %3335 = vmatpush.msra.mxu3 %v5035_v61  ;;  %v3576_v57 = vld [vmem:[#allocation7 + $0x68] sm:$0xff] }
 0x6d6   : > { %3012 = vmatmul.f32.gmra.mxu1 %v7097_v1  ;;  %3122 = vmatmul.f32.gmra.mxu3 %v7097_v1 }
 0x6d7   : > { %3430 = vmatpush.msra.mxu1 %v5085_v7  ;;  %v7357_v18 = vpop.f32.mrf.mxu0  ;;  %3587 = vmatpush.msrb.mxu3 %v3578_v52  ;;  %v3503_v52 = vld [vmem:[#allocation7 + $0x8] sm:$0xff] }
 0x6d9   : > { %3431 = vmatpush.msra.mxu1 %v5084_v58  ;;  %v7393_v38 = vpop.f32.mrf.mxu2  ;;  %3588 = vmatpush.msrb.mxu3 %v3577_v54  ;;  %v3506_v58 = vld [vmem:[#allocation7 + $0x20] sm:$0xff]  ;;  %v7419_v50 = vpop.permute.xlu2 %3462 }
 0x6da   : > { %3531 = vmatpush.msrb.mxu2 %v3506_v58  ;;  %v3755_v54 = vld [vmem:[#allocation7 + $0x120] sm:$0xff] }
 0x6db   : > { %3432 = vmatpush.msra.mxu1 %v5083_v59  ;;  %3589 = vmatpush.msrb.mxu3 %v3576_v57  ;;  %v3575_v59 = vld [vmem:[#allocation7 + $0x60] sm:$0xff] }
 0x6dc   : > { %v3815_v58 = vld [vmem:[#allocation7 + $0x160] sm:$0xff] }
 0x6dd   : > { %3433 = vmatpush.msra.mxu1 %v5082_v28  ;;  %v3758_v28 = vld [vmem:[#allocation7 + $0x138] sm:$0xff]  ;;  %3590 = vmatpush.msrb.mxu3 %v3575_v59  ;;  %v3502_v59 = vld [vmem:[#allocation7] sm:$0xff] }
 0x6de   : > { %3226 = vmatmul.f32.vlgmr.msrb.gmra.mxu1 %v7029_v46  ;;  %3336 = vmatmul.f32.vlgmr.msra.gmra.mxu3 %v7029_v46 }
 0x6df   : > { %3434 = vmatpush.msra.mxu1 %v5081_v51  ;;  %v7373_v26 = vpop.f32.mrf.mxu0  ;;  %v7413_v51 = vpop.permute.xlu0 %3352  ;;  %3767 = vmatpush.msrb.mxu0 %v3758_v28  ;;  %v3571_v28 = vld [vmem:[#allocation7 + $0x40] sm:$0xff] }
 0x6e1   : > { %3435 = vmatpush.msra.mxu1 %v5080_v63  ;;  %v7409_v61 = vpop.f32.mrf.mxu2  ;;  %v3818_v63 = vld [vmem:[#allocation7 + $0x178] sm:$0xff] }
 0x6e3   : > { %3436 = vmatpush.msra.mxu1 %v5079_v0  ;;  %v3505_v0 = vld [vmem:[#allocation7 + $0x18] sm:$0xff] }
 0x6e4   : > { %3532 = vmatpush.msrb.mxu2 %v3505_v0 }
 0x6e5   : > { %3437 = vmatpush.msra.mxu1 %v5078_v31  ;;  %v3574_v31 = vld [vmem:[#allocation7 + $0x58] sm:$0xff] }
 0x6e6   : > { %3229 = vmatmul.f32.gmra.mxu1 %v7063_v22  ;;  %3339 = vmatmul.f32.gmra.mxu3 %v7063_v22 }
 0x6e7   : > { %3438 = vmatpush.msra.mxu1 %v5077_v6  ;;  %v7389_v45 = vpop.f32.mrf.mxu0  ;;  %v3757_v6 = vld [vmem:[#allocation7 + $0x130] sm:$0xff]  ;;  %3591 = vmatpush.msrb.mxu3 %v3574_v31  ;;  %v3814_v31 = vld [vmem:[#allocation7 + $0x158] sm:$0xff] }
 0x6e8   : > { %3768 = vmatpush.msrb.mxu0 %v3757_v6  ;;  %v3638_v6 = vld [vmem:[#allocation7 + $0xb8] sm:$0xff] }
 0x6e9   : > { %3439 = vmatpush.msra.mxu1 %v5076_v3  ;;  %v7415_v3 = vpop.permute.xlu1 %3027  ;;  %v7425_v0 = vpop.f32.mrf.mxu2 }
 0x6eb   : > { %3440 = vmatpush.msra.mxu1 %v5075_v4  ;;  %v3817_v4 = vld [vmem:[#allocation7 + $0x170] sm:$0xff] }
 0x6ed   : > { %3441 = vmatpush.msra.mxu1 %v5074_v37  ;;  %v3504_v37 = vld [vmem:[#allocation7 + $0x10] sm:$0xff] }
 0x6ee   : > { %3232 = vmatmul.f32.gmra.mxu1 %v7097_v1  ;;  %3342 = vmatmul.f32.gmra.mxu3 %v7097_v1 }
 0x6ef   : > { %3442 = vmatpush.msra.mxu1 %v5073_v9  ;;  %v7403_v30 = vpop.f32.mrf.mxu0  ;;  %v3573_v9 = vld [vmem:[#allocation7 + $0x50] sm:$0xff]  ;;  %3533 = vmatpush.msrb.mxu2 %v3504_v37 }
 0x6f0   : > { %3592 = vmatpush.msrb.mxu3 %v3573_v9  ;;  %v3753_v37 = vld [vmem:[#allocation7 + $0x110] sm:$0xff] }
 0x6f1   : > { %3443 = vmatpush.msra.mxu1 %v5072_v42  ;;  %v3756_v42 = vld [vmem:[#allocation7 + $0x128] sm:$0xff]  ;;  %3534 = vmatpush.msrb.mxu2 %v3503_v52  ;;  %v3813_v9 = vld [vmem:[#allocation7 + $0x150] sm:$0xff] }
 0x6f2   : > { %3769 = vmatpush.msrb.mxu0 %v3756_v42  ;;  %3593 = vmatpush.msrb.mxu3 %v3572_v27  ;;  %v7427_v42 = vpop.permute.xlu0 %2592  ;;  %v3697_v52 = vld [vmem:[#allocation7 + $0xf0] sm:$0xff]  ;;  %v3752_v27 = vld [vmem:[#allocation7 + $0x108] sm:$0xff] }
 0x6f3   : > { %3444 = vmatpush.msra.mxu1 %v5071_v10  ;;  %3535 = vmatpush.msrb.mxu2 %v3502_v59  ;;  %v3636_v59 = vld [vmem:[#allocation7 + $0xa8] sm:$0xff] }
 0x6f4   : > { %3770 = vmatpush.msrb.mxu0 %v3755_v54  ;;  %3594 = vmatpush.msrb.mxu3 %v3571_v28  ;;  %v3812_v54 = vld [vmem:[#allocation7 + $0x148] sm:$0xff] }
 0x6f5   : > { %3445 = vmatpush.msra.mxu1 %v5070_v13  ;;  %v3816_v13 = vld [vmem:[#allocation7 + $0x168] sm:$0xff]  ;;  %3647 = vmatpush.msra.mxu2 %v3638_v6 }
 0x6f6   : > { %3446 = vmatmul.f32.vlgmr.msra.gmra.mxu1 %v7029_v46  ;;  %v3696_v28 = vld [vmem:[#allocation7 + $0xe8] sm:$0xff] }
 0x6f7   : > { %3827 = vmatpush.msrb.mxu1 %v3818_v63  ;;  %v7417_v10 = vpop.f32.mrf.mxu0  ;;  %v3754_v63 = vld [vmem:[#allocation7 + $0x118] sm:$0xff] }
 0x6f8   : > { %3771 = vmatpush.msrb.mxu0 %v3754_v63  ;;  %v3751_v63 = vld [vmem:[#allocation7 + $0x100] sm:$0xff] }
 0x6f9   : > { %3828 = vmatpush.msrb.mxu1 %v3817_v4  ;;  %v3698_v4 = vld [vmem:[#allocation7 + $0xf8] sm:$0xff] }
 0x6fa   : > { %3707 = vmatpush.msra.mxu3 %v3698_v4  ;;  %3772 = vmatpush.msrb.mxu0 %v3753_v37  ;;  %v3635_v4 = vld [vmem:[#allocation7 + $0xa0] sm:$0xff] }
 0x6fb   : > { %3829 = vmatpush.msrb.mxu1 %v3816_v13  ;;  %v3637_v13 = vld [vmem:[#allocation7 + $0xb0] sm:$0xff]  ;;  %v3695_v37 = vld [vmem:[#allocation7 + $0xe0] sm:$0xff] }
 0x6fc   : > { %3648 = vmatpush.msra.mxu2 %v3637_v13  ;;  %3708 = vmatpush.msra.mxu3 %v3697_v52  ;;  %v3634_v52 = vld [vmem:[#allocation7 + $0x98] sm:$0xff] }
 0x6fd   : > { %3830 = vmatpush.msrb.mxu1 %v3815_v58  ;;  %v7429_v58 = vpop.permute.xlu1 %2702  ;;  %3773 = vmatpush.msrb.mxu0 %v3752_v27  ;;  %v3694_v27 = vld [vmem:[#allocation7 + $0xd8] sm:$0xff] }
 0x6fe   : > { %3449 = vmatmul.f32.gmra.mxu1 %v7063_v22  ;;  %3649 = vmatpush.msra.mxu2 %v3636_v59  ;;  %v3633_v59 = vld [vmem:[#allocation7 + $0x90] sm:$0xff] }
 0x6ff   : > { %3831 = vmatpush.msrb.mxu1 %v3814_v31  ;;  %v3811_v31 = vld [vmem:[#allocation7 + $0x140] sm:$0xff]  ;;  %v7431_v44 = vpop.f32.mrf.mxu0  ;;  %3709 = vmatpush.msra.mxu3 %v3696_v28  ;;  %v3693_v28 = vld [vmem:[#allocation7 + $0xd0] sm:$0xff] }
 0x700   : > { %3774 = vmatpush.msrb.mxu0 %v3751_v63  ;;  %3650 = vmatpush.msra.mxu2 %v3635_v4  ;;  %v5242_v63 = vld [vmem:[%s8661_s2 + $0x70] sm:$0xff] }
 0x701   : > { %3832 = vmatpush.msrb.mxu1 %v3813_v9  ;;  %v7435_v9 = vpop.permute.xlu2 %3137  ;;  %3710 = vmatpush.msra.mxu3 %v3695_v37  ;;  %v3632_v37 = vld [vmem:[#allocation7 + $0x88] sm:$0xff] }
 0x702   : > { %3651 = vmatpush.msra.mxu2 %v3634_v52  ;;  %v5243_v52 = vld [vmem:[%s8661_s2 + $0x68] sm:$0xff] }
 0x703   : > { %3833 = vmatpush.msrb.mxu1 %v3812_v54  ;;  %v5241_v54 = vld [vmem:[%s8661_s2 + $0x78] sm:$0xff]  ;;  %3711 = vmatpush.msra.mxu3 %v3694_v27 }
 0x704   : > { %3652 = vmatpush.msra.mxu2 %v3633_v59 }
 0x705   : > { %3834 = vmatpush.msrb.mxu1 %v3811_v31  ;;  %v7447_v31 = vpop.permute.xlu0 %2812  ;;  %3712 = vmatpush.msra.mxu3 %v3693_v28  ;;  %v7454_v27 = vpop.permute.xlu1 %3247 }
 0x706   : > { %3452 = vmatmul.f32.gmra.mxu1 %v7097_v1  ;;  %3653 = vmatpush.msra.mxu2 %v3632_v37 }
 0x707   : > { %4079 = vmatpush.msra.mxu1 %v5241_v54  ;;  %v3692_v54 = vld [vmem:[#allocation7 + $0xc8] sm:$0xff] }
 0x708   : > { %3713 = vmatpush.msra.mxu3 %v3692_v54 }
 0x709   : > { %4080 = vmatpush.msra.mxu1 %v5242_v63  ;;  %v5244_v63 = vld [vmem:[%s8661_s2 + $0x60] sm:$0xff]  ;;  %v7467_v37 = vpop.permute.xlu2 %3486 }
 0x70b   : > { %4081 = vmatpush.msra.mxu1 %v5243_v52  ;;  %v7465_v52 = vpop.f32.mrf.mxu0 }
 0x70d   : > { %4082 = vmatpush.msra.mxu1 %v5244_v63 }
 0x713   : > { %v7337_v16 = vpop.f32.mrf.mxu1 }
 0x714   : > { %v2569_v59 = vadd.f32 %v7337_v16, %v7327_v5  ;;  %v5245_v16 = vld [vmem:[%s8661_s2 + $0x58] sm:$0xff] }
 0x715   : > { %4083 = vmatpush.msra.mxu1 %v5245_v16 }
 0x716   : > { %v2595_v63 = vmul.f32 %v7367_v24, %v2569_v59 }
 0x719   : > { %v7343_v20 = vpop.f32.mrf.mxu3 }
 0x71a   : > { %v2678_v4 = vadd.f32 %v7343_v20, %v7335_v17  ;;  %v3631_v17 = vld [vmem:[#allocation7 + $0x80] sm:$0xff] }
 0x71b   : > { %v7345_v46 = vpop.f32.mrf.mxu1  ;;  %v3691_v20 = vld [vmem:[#allocation7 + $0xc0] sm:$0xff]  ;;  %3654 = vmatpush.msra.mxu2 %v3631_v17 }
 0x71c   : > { %3714 = vmatpush.msra.mxu3 %v3691_v20  ;;  %v2705_v54 = vmul.f32 %v7355_v35, %v2678_v4  ;;  %v5246_v35 = vld [vmem:[%s8661_s2 + $0x50] sm:$0xff]  ;;  %v2572_v59 = vadd.f32 %v7345_v46, %v7330_v14 }
 0x71d   : > { %4084 = vmatpush.msra.mxu1 %v5246_v35 }
 0x71e   : > { %v2708_v4 = vadd.f32 %v2705_v54, %v2595_v63  ;;  %v7504_v54 = vpop.permute.xlu1 %3357  ;;  %v2596_v63 = vmul.f32 %v7381_v2, %v2572_v59 }
 0x721   : > { %v7349_v22 = vpop.f32.mrf.mxu3 }
 0x723   : > { %v7353_v1 = vpop.f32.mrf.mxu1 }
 0x729   : > { %v7359_v23 = vpop.f32.mrf.mxu3 }
 0x72a   : > { %v2684_v2 = vadd.f32 %v7359_v23, %v7351_v21  ;;  %v2575_v21 = vadd.f32 %v7353_v1, %v7333_v15 }
 0x72b   : > { %v7363_v62 = vpop.f32.mrf.mxu1 }
 0x72c   : > { %v2788_v28 = vadd.f32 %v7363_v62, %v7339_v60  ;;  %v3997_v62 = vld [vmem:[#allocation7 + $0x230] sm:$0xff]  ;;  %v2707_v15 = vmul.f32 %v7429_v58, %v2684_v2 }
 0x72e   : > { %v2815_v17 = vmul.f32 %v7369_v34, %v2788_v28  ;;  %v3995_v34 = vld [vmem:[#allocation7 + $0x220] sm:$0xff]  ;;  %v5248_v28 = vld [vmem:[%s8661_s2 + $0x40] sm:$0xff] }
 0x731   : > { %v7371_v49 = vpop.f32.mrf.mxu3 }
 0x732   : > { %v2898_v5 = vadd.f32 %v7371_v49, %v7365_v29  ;;  %v2681_v49 = vadd.f32 %v7349_v22, %v7341_v8 }
 0x733   : > { %v7375_v36 = vpop.f32.mrf.mxu1 }
 0x734   : > { %v2925_v16 = vmul.f32 %v7361_v25, %v2898_v5  ;;  %v2791_v8 = vadd.f32 %v7375_v36, %v7347_v33  ;;  %v2818_v25 = vadd.f32 %v2815_v17, %v2708_v4  ;;  %v2706_v14 = vmul.f32 %v7385_v41, %v2681_v49  ;;  %v3994_v33 = vld [vmem:[#allocation7 + $0x218] sm:$0xff]  ;;  %v3033_v17 = vpop.permute.xlu2 %3032  ;;  %v3991_v49 = vld [vmem:[#allocation7 + $0x200] sm:$0xff] }
 0x736   : > { %v2928_v36 = vadd.f32 %v2925_v16, %v2818_v25  ;;  %v2816_v41 = vmul.f32 %v7397_v19, %v2791_v8  ;;  %v2709_v35 = vadd.f32 %v2706_v14, %v2596_v63  ;;  %v3143_v8 = vpop.permute.xlu1 %3142  ;;  %v2597_v25 = vmul.f32 %v7427_v42, %v2575_v21  ;;  %v3878_v63 = vld [vmem:[#allocation7 + $0x1b8] sm:$0xff] }
 0x737   : > { %v5258_v21 = vld [vmem:[%s8661_s2 + $0x1f0] sm:$0xff] }
 0x738   : > { %v2819_v23 = vadd.f32 %v2816_v41, %v2709_v35  ;;  %v2710_v14 = vadd.f32 %v2707_v15, %v2597_v25  ;;  %v3938_v41 = vld [vmem:[#allocation7 + $0x1f8] sm:$0xff]  ;;  %v3933_v25 = vld [vmem:[#allocation7 + $0x1d0] sm:$0xff] }
 0x739   : > { %v7383_v11 = vpop.f32.mrf.mxu3  ;;  %v5261_v15 = vld [vmem:[%s8661_s2 + $0x270] sm:$0xff] }
 0x73a   : > { %v2901_v46 = vadd.f32 %v7383_v11, %v7379_v40  ;;  %v3992_v11 = vld [vmem:[#allocation7 + $0x208] sm:$0xff] }
 0x73b   : > { %v7387_v43 = vpop.f32.mrf.mxu1 }
 0x73c   : > { %v2926_v19 = vmul.f32 %v7405_v53, %v2901_v46  ;;  %v2794_v53 = vadd.f32 %v7387_v43, %v7357_v18 }
 0x73e   : > { %v2929_v1 = vadd.f32 %v2926_v19, %v2819_v23  ;;  %v2817_v58 = vmul.f32 %v7447_v31, %v2794_v53  ;;  %v3253_v31 = vpop.permute.xlu2 %3252  ;;  %v3876_v19 = vld [vmem:[#allocation7 + $0x1a8] sm:$0xff]  ;;  %v5259_v23 = vld [vmem:[%s8661_s2 + $0x278] sm:$0xff] }
 0x741   : > { %v7395_v12 = vpop.f32.mrf.mxu3 }
 0x742   : > { %v2904_v18 = vadd.f32 %v7395_v12, %v7393_v38 }
 0x743   : > { %v7399_v47 = vpop.f32.mrf.mxu1 }
 0x744   : > { %v3008_v20 = vadd.f32 %v7399_v47, %v7373_v26  ;;  %v5247_v26 = vld [vmem:[%s8661_s2 + $0x48] sm:$0xff]  ;;  %v7490_v47 = vpop.permute.xlu0 %2922 }
 0x745   : > { %4085 = vmatpush.msra.mxu1 %v5247_v26  ;;  %v2927_v46 = vmul.f32 %v7490_v47, %v2904_v18 }
 0x747   : > { %4086 = vmatpush.msra.mxu1 %v5248_v28 }
 0x749   : > { %v7407_v55 = vpop.f32.mrf.mxu3 }
 0x74a   : > { %v3118_v24 = vadd.f32 %v7407_v55, %v7409_v61  ;;  %v3035_v55 = vmul.f32 %v7377_v39, %v3008_v20 }
 0x74b   : > { %v7411_v7 = vpop.f32.mrf.mxu1 }
 0x74c   : > { %v3145_v39 = vmul.f32 %v7391_v32, %v3118_v24  ;;  %v3011_v40 = vadd.f32 %v7411_v7, %v7389_v45  ;;  %v3038_v20 = vadd.f32 %v3035_v55, %v2928_v36  ;;  %v3468_v26 = vpop.permute.xlu0 %3467 }
 0x74e   : > { %v3148_v45 = vadd.f32 %v3145_v39, %v3038_v20  ;;  %v3036_v16 = vmul.f32 %v7415_v3, %v3011_v40 }
 0x750   : > { %v3039_v38 = vadd.f32 %v3036_v16, %v2929_v1 }
 0x751   : > { %v7421_v56 = vpop.f32.mrf.mxu3 }
 0x752   : > { %v3121_v7 = vadd.f32 %v7421_v56, %v7425_v0 }
 0x753   : > { %v7423_v57 = vpop.f32.mrf.mxu1 }
 0x754   : > { %8707 = vst [vmem:[#allocation20_spill] sm:$0xff] %v7423_v57  ;;  %v7442_v57 = vpop.f32.mrf.mxu2  ;;  %v3146_v43 = vmul.f32 %v7435_v9, %v3121_v7  ;;  %v3492_v2 = vpop.permute.xlu0 %3491 }
 0x755   : > { %8709 = vst [vmem:[#allocation22_spill] sm:$0xff] %v7442_v57  ;;  %v3998_v57 = vld [vmem:[#allocation7 + $0x238] sm:$0xff] }
 0x756   : > { %4007 = vmatpush.msra.mxu0 %v3998_v57  ;;  %v3996_v57 = vld [vmem:[#allocation7 + $0x228] sm:$0xff]  ;;  %v3149_v39 = vadd.f32 %v3146_v43, %v3039_v38  ;;  %v3473_v43 = vpop.permute.xlu2 %3472 }
 0x758   : > { %4008 = vmatpush.msra.mxu0 %v3997_v62  ;;  %v3421_v62 = vpop.f32.mrf.mxu0 }
 0x759   : > { %v7437_v13 = vpop.f32.mrf.mxu3 }
 0x75a   : > { %8708 = vst [vmem:[#allocation21_spill] sm:$0xff] %v7437_v13  ;;  %4009 = vmatpush.msra.mxu0 %v3996_v57  ;;  %v5251_v57 = vld [vmem:[%s8661_s2 + $0x28] sm:$0xff] }
 0x75b   : > { %v7433_v6 = vpop.f32.mrf.mxu1  ;;  %v8710_v55 = vld [vmem:[#allocation20_spill] sm:$0xff] }
 0x75c   : > { %v3311_v29 = vpop.f32.mrf.mxu2  ;;  %v3228_v61 = vadd.f32 %v7433_v6, %v7417_v10  ;;  %4010 = vmatpush.msra.mxu0 %v3995_v34  ;;  %v3993_v10 = vld [vmem:[#allocation7 + $0x210] sm:$0xff]  ;;  %v5249_v6 = vld [vmem:[%s8661_s2 + $0x38] sm:$0xff]  ;;  %v5252_v34 = vld [vmem:[%s8661_s2 + $0x20] sm:$0xff]  ;;  %v3497_v38 = vpop.permute.xlu0 %3496 }
 0x75d   : > { %4087 = vmatpush.msra.mxu1 %v5249_v6 }
 0x75e   : > { %4011 = vmatpush.msra.mxu0 %v3994_v33  ;;  %v3255_v32 = vmul.f32 %v7401_v48, %v3228_v61  ;;  %v3014_v61 = vadd.f32 %v8710_v55, %v7403_v30  ;;  %v8711_v33 = vld [vmem:[#allocation22_spill] sm:$0xff] }
 0x75f   : > { %v5263_v55 = vld [vmem:[%s8661_s2 + $0x268] sm:$0xff] }
 0x760   : > { %4012 = vmatpush.msra.mxu0 %v3993_v10  ;;  %v3258_v56 = vadd.f32 %v3255_v32, %v3148_v45  ;;  %v3424_v28 = vpop.f32.mrf.mxu0  ;;  %v2820_v10 = vadd.f32 %v2817_v58, %v2710_v14  ;;  %v3037_v6 = vmul.f32 %v3033_v17, %v3014_v61  ;;  %v3877_v17 = vld [vmem:[#allocation7 + $0x1b0] sm:$0xff]  ;;  %v5257_v45 = vld [vmem:[%s8661_s2] sm:$0xff] }
 0x761   : > { %v3337_v60 = vpop.f32.mrf.mxu3  ;;  %v8712_v42 = vld [vmem:[#allocation21_spill] sm:$0xff] }
 0x762   : > { %v3338_v5 = vadd.f32 %v3337_v60, %v3311_v29  ;;  %v5250_v60 = vld [vmem:[%s8661_s2 + $0x30] sm:$0xff]  ;;  %4013 = vmatpush.msra.mxu0 %v3992_v11  ;;  %v3124_v36 = vadd.f32 %v8712_v42, %v8711_v33  ;;  %v5262_v58 = vld [vmem:[%s8661_s2 + $0x1e0] sm:$0xff]  ;;  %v5267_v33 = vld [vmem:[%s8661_s2 + $0x258] sm:$0xff] }
 0x763   : > { %v7456_v13 = vpop.f32.mrf.mxu1  ;;  %4088 = vmatpush.msra.mxu1 %v5250_v60  ;;  %v3937_v60 = vld [vmem:[#allocation7 + $0x1f0] sm:$0xff]  ;;  %v3932_v14 = vld [vmem:[#allocation7 + $0x1c8] sm:$0xff]  ;;  %v3871_v42 = vld [vmem:[#allocation7 + $0x180] sm:$0xff] }
 0x764   : > { %v3365_v48 = vmul.f32 %v7413_v51, %v3338_v5  ;;  %v3314_v4 = vpop.f32.mrf.mxu2  ;;  %v3231_v51 = vadd.f32 %v7456_v13, %v7431_v44  ;;  %4014 = vmatpush.msra.mxu0 %v3991_v49  ;;  %v5253_v13 = vld [vmem:[%s8661_s2 + $0x18] sm:$0xff]  ;;  %v5255_v5 = vld [vmem:[%s8661_s2 + $0x8] sm:$0xff]  ;;  %v3147_v32 = vmul.f32 %v3143_v8, %v3124_v36 }
 0x765   : > { %4089 = vmatpush.msra.mxu1 %v5251_v57  ;;  %v5256_v49 = vld [vmem:[%s8661_s2 + $0x1f8] sm:$0xff]  ;;  %v3873_v8 = vld [vmem:[#allocation7 + $0x190] sm:$0xff] }
 0x766   : > { %v3368_v3 = vadd.f32 %v3365_v48, %v3258_v56  ;;  %v3256_v12 = vmul.f32 %v7454_v27, %v3231_v51  ;;  %v3931_v36 = vld [vmem:[#allocation7 + $0x1c0] sm:$0xff] }
 0x767   : > { %4090 = vmatpush.msra.mxu1 %v5252_v34  ;;  %v3935_v34 = vld [vmem:[#allocation7 + $0x1e0] sm:$0xff] }
 0x768   : > { %v3259_v40 = vadd.f32 %v3256_v12, %v3149_v39  ;;  %v3427_v56 = vpop.f32.mrf.mxu0  ;;  %v5264_v12 = vld [vmem:[%s8661_s2 + $0x1d8] sm:$0xff]  ;;  %v5269_v39 = vld [vmem:[%s8661_s2 + $0x250] sm:$0xff] }
 0x769   : > { %v3340_v29 = vpop.f32.mrf.mxu3  ;;  %4091 = vmatpush.msra.mxu1 %v5253_v13 }
 0x76a   : > { %v3341_v59 = vadd.f32 %v3340_v29, %v3314_v4  ;;  %v3936_v29 = vld [vmem:[#allocation7 + $0x1e8] sm:$0xff]  ;;  %v3363_v4 = vpop.permute.xlu1 %3362 }
 0x76b   : > { %v7496_v22 = vpop.f32.mrf.mxu1 }
 0x76c   : > { %v3366_v30 = vmul.f32 %v7504_v54, %v3341_v59  ;;  %v3234_v11 = vadd.f32 %v7496_v22, %v7465_v52  ;;  %v2930_v54 = vadd.f32 %v2927_v46, %v2820_v10  ;;  %v3934_v59 = vld [vmem:[#allocation7 + $0x1d8] sm:$0xff]  ;;  %v5272_v10 = vld [vmem:[%s8661_s2 + $0x1b8] sm:$0xff] }
 0x76d   : > { %v5266_v46 = vld [vmem:[%s8661_s2 + $0x1d0] sm:$0xff] }
 0x76e   : > { %v3369_v35 = vadd.f32 %v3366_v30, %v3259_v40  ;;  %v3040_v7 = vadd.f32 %v3037_v6, %v2930_v54  ;;  %v3257_v48 = vmul.f32 %v3253_v31, %v3234_v11  ;;  %v5268_v31 = vld [vmem:[%s8661_s2 + $0x1c8] sm:$0xff]  ;;  %v5270_v30 = vld [vmem:[%s8661_s2 + $0x1c0] sm:$0xff]  ;;  %v5278_v40 = vld [vmem:[%s8661_s2 + $0x238] sm:$0xff] }
 0x76f   : > { %v5273_v6 = vld [vmem:[%s8661_s2 + $0x240] sm:$0xff]  ;;  %v5281_v54 = vld [vmem:[%s8661_s2 + $0xe8] sm:$0xff] }
 0x770   : > { %v3150_v53 = vadd.f32 %v3147_v32, %v3040_v7  ;;  %v4075_v11 = vld.sshfl [vmem:[#allocation1] sm:$0xff pattern:$0x75316420]  ;;  %v5282_v32 = vld [vmem:[%s8661_s2 + $0x168] sm:$0xff]  ;;  %v5291_v7 = vld [vmem:[%s8661_s2 + $0xd0] sm:$0xff] }
 0x772   : > { %v3260_v1 = vadd.f32 %v3257_v48, %v3150_v53  ;;  %v5292_v48 = vld [vmem:[%s8661_s2 + $0x150] sm:$0xff]  ;;  %v5297_v53 = vld [vmem:[%s8661_s2 + $0x188] sm:$0xff] }
 0x773   : > { %v3447_v24 = vpop.f32.mrf.mxu1 }
 0x774   : > { %v3448_v0 = vadd.f32 %v3447_v24, %v3421_v62  ;;  %v3343_v62 = vpop.f32.mrf.mxu3 }
 0x776   : > { %v3475_v44 = vmul.f32 %v7419_v50, %v3448_v0  ;;  %v5254_v50 = vld [vmem:[%s8661_s2 + $0x10] sm:$0xff]  ;;  %v3875_v0 = vld [vmem:[#allocation7 + $0x1a0] sm:$0xff] }
 0x777   : > { %4092 = vmatpush.msra.mxu1 %v5254_v50 }
 0x778   : > { %v3478_v9 = vadd.f32 %v3475_v44, %v3368_v3  ;;  %v3874_v3 = vld [vmem:[#allocation7 + $0x198] sm:$0xff] }
 0x779   : > { %4093 = vmatpush.msra.mxu1 %v5255_v5  ;;  %v5271_v5 = vld [vmem:[%s8661_s2 + $0x248] sm:$0xff] }
 0x77a   : > { %v7561_v27 = vadd.f32 %v7467_v37, %v3478_v9  ;;  %v3317_v37 = vpop.f32.mrf.mxu2  ;;  %v5265_v9 = vld [vmem:[%s8661_s2 + $0x260] sm:$0xff] }
 0x77b   : > { %v3450_v47 = vpop.f32.mrf.mxu1  ;;  %v3344_v52 = vadd.f32 %v3343_v62, %v3317_v37  ;;  %4094 = vmatpush.msra.mxu1 %v5257_v45  ;;  %v5274_v62 = vld [vmem:[%s8661_s2 + $0xf8] sm:$0xff]  ;;  %v5280_v37 = vld [vmem:[%s8661_s2 + $0x1a8] sm:$0xff] }
 0x77c   : > { %v3451_v20 = vadd.f32 %v3450_v47, %v3424_v28  ;;  %5089 = vmatmul.msk.f32.vlgmr.msrb.gmra.mxu2 %vm3510_vm2, %v7561_v27  ;;  %5092 = vmatmul.msk.f32.vlgmr.msrb.gmra.mxu3 %vm3510_vm2, %v7561_v27  ;;  %v3872_v28 = vld [vmem:[#allocation7 + $0x188] sm:$0xff]  ;;  %v5275_v47 = vld [vmem:[%s8661_s2 + $0x178] sm:$0xff]  ;;  %v5290_v45 = vld [vmem:[%s8661_s2 + $0x228] sm:$0xff] }
 0x77d   : > { %5110 = vmatmul.msk.f32.vlgmr.msrb.gmra.mxu0 %vm3510_vm2, %v7561_v27  ;;  %5116 = vmatmul.msk.f32.vlgmr.msrb.gmra.mxu1 %vm3510_vm2, %v7561_v27  ;;  %v3367_v16 = vmul.f32 %v3363_v4, %v3344_v52  ;;  %v5286_v52 = vld [vmem:[%s8661_s2 + $0x160] sm:$0xff] }
 0x77e   : > { %v3476_v22 = vmul.f32 %v3468_v26, %v3451_v20  ;;  %3887 = vmatpush.msrb.mxu2 %v3878_v63  ;;  %3947 = vmatpush.msrb.mxu3 %v3938_v41  ;;  %v5260_v26 = vld [vmem:[%s8661_s2 + $0x1e8] sm:$0xff]  ;;  %v5276_v63 = vld [vmem:[%s8661_s2 + $0x1b0] sm:$0xff]  ;;  %v5294_v4 = vld [vmem:[%s8661_s2 + $0x220] sm:$0xff] }
 0x77f   : > { %4152 = vmatpush.msrb.mxu0 %v5256_v49  ;;  %4186 = vmatpush.msrb.mxu1 %v5259_v23  ;;  %v3370_v44 = vadd.f32 %v3367_v16, %v3260_v1  ;;  %v5277_v41 = vld [vmem:[%s8661_s2 + $0xf0] sm:$0xff]  ;;  %v5289_v49 = vld [vmem:[%s8661_s2 + $0x198] sm:$0xff]  ;;  %v5296_v23 = vld [vmem:[%s8661_s2 + $0x148] sm:$0xff] }
 0x780   : > { %v3479_v57 = vadd.f32 %v3476_v22, %v3369_v35  ;;  %3888 = vmatpush.msrb.mxu2 %v3877_v17  ;;  %3948 = vmatpush.msrb.mxu3 %v3937_v60  ;;  %v5279_v20 = vld [vmem:[%s8661_s2 + $0x170] sm:$0xff]  ;;  %v5283_v17 = vld [vmem:[%s8661_s2 + $0x1a0] sm:$0xff]  ;;  %v7697_v22 = vld.sshfl [vmem:[#allocation1 + $0x8] sm:$0xff pattern:$0x75316420] }
 0x781   : > { %4153 = vmatpush.msrb.mxu0 %v5258_v21  ;;  %4187 = vmatpush.msrb.mxu1 %v5261_v15  ;;  %v5284_v60 = vld [vmem:[%s8661_s2 + $0xe0] sm:$0xff]  ;;  %v5285_v35 = vld [vmem:[%s8661_s2 + $0x230] sm:$0xff]  ;;  %v5295_v21 = vld [vmem:[%s8661_s2 + $0xc8] sm:$0xff] }
 0x782   : > { %v7588_v24 = vadd.f32 %v3492_v2, %v3479_v57  ;;  %3889 = vmatpush.msrb.mxu2 %v3876_v19  ;;  %3949 = vmatpush.msrb.mxu3 %v3936_v29  ;;  %v8713_v2 = vld [vmem:[#allocation19_spill] sm:$0xff]  ;;  %v5287_v19 = vld [vmem:[%s8661_s2 + $0xd8] sm:$0xff]  ;;  %v5303_v1 = vld [vmem:[%s8661_s2 + $0x180] sm:$0xff] }
 0x783   : > { %v3453_v51 = vpop.f32.mrf.mxu1  ;;  %4154 = vmatpush.msrb.mxu0 %v5260_v26  ;;  %4188 = vmatpush.msrb.mxu1 %v5263_v55  ;;  %4127 = vst [vmem:[#allocation1] ss:$2 sm:$0xff] %v8713_v2  ;;  %v5288_v29 = vld [vmem:[%s8661_s2 + $0x158] sm:$0xff]  ;;  %v5293_v57 = vld [vmem:[%s8661_s2 + $0x190] sm:$0xff]  ;;  %v5313_v55 = vld [vmem:[%s8661_s2 + $0x3e8] sm:$0xff] }
 0x784   : > { %v3454_v18 = vadd.f32 %v3453_v51, %v3427_v56  ;;  %5090 = vmatmul.msk.f32.gmra.mxu2 %vm3510_vm2, %v7588_v24  ;;  %5093 = vmatmul.msk.f32.gmra.mxu3 %vm3510_vm2, %v7588_v24  ;;  %v5298_v16 = vld [vmem:[%s8661_s2 + $0x218] sm:$0xff]  ;;  %v5299_v56 = vld [vmem:[%s8661_s2 + $0xc0] sm:$0xff] }
 0x785   : > { %5111 = vmatmul.msk.f32.gmra.mxu0 %vm3510_vm2, %v7588_v24  ;;  %5117 = vmatmul.msk.f32.gmra.mxu1 %vm3510_vm2, %v7588_v24  ;;  %v5300_v51 = vld [vmem:[%s8661_s2 + $0x140] sm:$0xff]  ;;  %v5301_v26 = vld [vmem:[%s8661_s2 + $0xb8] sm:$0xff] }
 0x786   : > { %v3477_v13 = vmul.f32 %v3473_v43, %v3454_v18  ;;  %3890 = vmatpush.msrb.mxu2 %v3875_v0  ;;  %3950 = vmatpush.msrb.mxu3 %v3935_v34  ;;  %v5302_v15 = vld [vmem:[%s8661_s2 + $0x138] sm:$0xff]  ;;  %v5304_v18 = vld [vmem:[%s8661_s2 + $0xb0] sm:$0xff] }
 0x787   : > { %4155 = vmatpush.msrb.mxu0 %v5262_v58  ;;  %4189 = vmatpush.msrb.mxu1 %v5265_v9  ;;  %v5305_v43 = vld [vmem:[%s8661_s2 + $0x3f8] sm:$0xff]  ;;  %v5312_v58 = vld [vmem:[%s8661_s2 + $0xa0] sm:$0xff] }
 0x788   : > { %v3480_v61 = vadd.f32 %v3477_v13, %v3370_v44  ;;  %3891 = vmatpush.msrb.mxu2 %v3874_v3  ;;  %3951 = vmatpush.msrb.mxu3 %v3934_v59  ;;  %v5306_v3 = vld [vmem:[%s8661_s2 + $0x130] sm:$0xff]  ;;  %v5308_v44 = vld [vmem:[%s8661_s2 + $0xa8] sm:$0xff]  ;;  %v5315_v9 = vld [vmem:[%s8661_s2 + $0x98] sm:$0xff] }
 0x789   : > { %4156 = vmatpush.msrb.mxu0 %v5264_v12  ;;  %4190 = vmatpush.msrb.mxu1 %v5267_v33  ;;  %v5307_v59 = vld [vmem:[%s8661_s2 + $0x210] sm:$0xff]  ;;  %v5314_v12 = vld [vmem:[%s8661_s2 + $0x120] sm:$0xff]  ;;  %v5320_v33 = vld [vmem:[%s8661_s2 + $0x3d8] sm:$0xff] }
 0x78a   : > { %v7616_v50 = vadd.f32 %v3497_v38, %v3480_v61  ;;  %3892 = vmatpush.msrb.mxu2 %v3873_v8  ;;  %3952 = vmatpush.msrb.mxu3 %v3933_v25  ;;  %v7746_v0 = vld.sshfl [vmem:[#allocation1] sm:$0xff pattern:$0x75316420]  ;;  %v4129_v34 = vld.sshfl [vmem:[#allocation1 + $0x8] sm:$0xff pattern:$0x75316420] }
 0x78b   : > { %4157 = vmatpush.msrb.mxu0 %v5266_v46  ;;  %4191 = vmatpush.msrb.mxu1 %v5269_v39  ;;  %4181 = vst [vmem:[#allocation1] ss:$2 sm:$0xff] %v8713_v2  ;;  %v5309_v13 = vld [vmem:[%s8661_s2 + $0x3f0] sm:$0xff]  ;;  %v5310_v8 = vld [vmem:[%s8661_s2 + $0x128] sm:$0xff] }
 0x78c   : > { %5091 = vmatmul.msk.f32.gmra.mxu2 %vm3510_vm2, %v7616_v50  ;;  %5094 = vmatmul.msk.f32.gmra.mxu3 %vm3510_vm2, %v7616_v50  ;;  %v5311_v25 = vld [vmem:[%s8661_s2 + $0x208] sm:$0xff]  ;;  %v5318_v46 = vld [vmem:[%s8661_s2 + $0x90] sm:$0xff] }
 0x78d   : > { %5112 = vmatmul.msk.f32.gmra.mxu0 %vm3510_vm2, %v7616_v50  ;;  %5118 = vmatmul.msk.f32.gmra.mxu1 %vm3510_vm2, %v7616_v50  ;;  %v5324_v39 = vld [vmem:[%s8661_s2 + $0x3d0] sm:$0xff] }
 0x78e   : > { %3893 = vmatpush.msrb.mxu2 %v3872_v28  ;;  %3953 = vmatpush.msrb.mxu3 %v3932_v14  ;;  %v5316_v28 = vld [vmem:[%s8661_s2 + $0x118] sm:$0xff]  ;;  %v5317_v14 = vld [vmem:[%s8661_s2 + $0x3e0] sm:$0xff] }
 0x78f   : > { %4158 = vmatpush.msrb.mxu0 %v5268_v31  ;;  %4192 = vmatpush.msrb.mxu1 %v5271_v5  ;;  %v5323_v31 = vld [vmem:[%s8661_s2 + $0x108] sm:$0xff]  ;;  %v5326_v5 = vld [vmem:[%s8661_s2 + $0x100] sm:$0xff] }
 0x790   : > { %3894 = vmatpush.msrb.mxu2 %v3871_v42  ;;  %3954 = vmatpush.msrb.mxu3 %v3931_v36  ;;  %v5321_v42 = vld [vmem:[%s8661_s2 + $0x88] sm:$0xff]  ;;  %v5322_v36 = vld [vmem:[%s8661_s2 + $0x200] sm:$0xff] }
 0x791   : > { %4159 = vmatpush.msrb.mxu0 %v5270_v30  ;;  %4193 = vmatpush.msrb.mxu1 %v5273_v6  ;;  %v5325_v30 = vld [vmem:[%s8661_s2 + $0x80] sm:$0xff]  ;;  %v5328_v6 = vld [vmem:[%s8661_s2 + $0x378] sm:$0xff] }
 0x792   : > { %v4182_v61 = vld.sshfl [vmem:[#allocation1] sm:$0xff pattern:$0x75316420]  ;;  %v7794_v38 = vld.sshfl [vmem:[#allocation1 + $0x8] sm:$0xff pattern:$0x75316420] }
 0x793   : > { %4160 = vmatpush.msrb.mxu0 %v5272_v10  ;;  %4194 = vmatpush.msrb.mxu1 %v5278_v40  ;;  %4235 = vst [vmem:[#allocation1] ss:$2 sm:$0xff] %v8713_v2  ;;  %v5327_v10 = vld [vmem:[%s8661_s2 + $0x2f8] sm:$0xff]  ;;  %v5334_v40 = vld [vmem:[%s8661_s2 + $0x368] sm:$0xff] }
 0x794   : > { %5098 = vmatmul.msk.f32.vlgmr.msra.gmra.mxu2 %vm3510_vm2, %v7561_v27  ;;  %5104 = vmatmul.msk.f32.vlgmr.msra.gmra.mxu3 %vm3510_vm2, %v7561_v27 }
 0x795   : > { %5134 = vmatmul.msk.f32.vlgmr.msra.gmra.mxu0 %vm3510_vm2, %v7561_v27  ;;  %4099 = vmatpush.msra.mxu2 %v5274_v62  ;;  %v5329_v62 = vld [vmem:[%s8661_s2 + $0x2f0] sm:$0xff] }
 0x796   : > { %4132 = vmatpush.msra.mxu3 %v5275_v47  ;;  %4161 = vmatpush.msrb.mxu0 %v5276_v63  ;;  %v5330_v47 = vld [vmem:[%s8661_s2 + $0x370] sm:$0xff]  ;;  %v5331_v63 = vld [vmem:[%s8661_s2 + $0x3c8] sm:$0xff] }
 0x797   : > { %4100 = vmatpush.msra.mxu2 %v5277_v41  ;;  %4095 = vmatmul.f32.vlgmr.msra.gmra.mxu1 %v4075_v11  ;;  %v5332_v41 = vld [vmem:[%s8661_s2 + $0x2e8] sm:$0xff]  ;;  %v5335_v11 = vld [vmem:[%s8661_s2 + $0x3c0] sm:$0xff] }
 0x798   : > { %4133 = vmatpush.msra.mxu3 %v5279_v20  ;;  %4162 = vmatpush.msrb.mxu0 %v5280_v37 }
 0x799   : > { %4101 = vmatpush.msra.mxu2 %v5281_v54  ;;  %4195 = vmatpush.msrb.mxu1 %v5285_v35  ;;  %v5336_v54 = vld [vmem:[%s8661_s2 + $0x2e0] sm:$0xff]  ;;  %v5340_v35 = vld [vmem:[%s8661_s2 + $0x2d8] sm:$0xff] }
 0x79a   : > { %4134 = vmatpush.msra.mxu3 %v5282_v32  ;;  %4163 = vmatpush.msrb.mxu0 %v5283_v17  ;;  %v7871_v20 = vld.sshfl [vmem:[#allocation1] sm:$0xff pattern:$0x75316420]  ;;  %v7873_v37 = vld.sshfl [vmem:[#allocation1 + $0x8] sm:$0xff pattern:$0x75316420] }
 0x79b   : > { %4102 = vmatpush.msra.mxu2 %v5284_v60  ;;  %4196 = vmatpush.msrb.mxu1 %v5290_v45  ;;  %4289 = vst [vmem:[#allocation1] ss:$2 sm:$0xff] %v8713_v2  ;;  %v5337_v32 = vld [vmem:[%s8661_s2 + $0x470] sm:$0xff]  ;;  %v5338_v17 = vld [vmem:[%s8661_s2 + $0x360] sm:$0xff]  ;;  %v5339_v60 = vld [vmem:[%s8661_s2 + $0x3b8] sm:$0xff] }
 0x79c   : > { %4135 = vmatpush.msra.mxu3 %v5286_v52  ;;  %5099 = vmatmul.msk.f32.gmra.mxu2 %vm3510_vm2, %v7588_v24  ;;  %v5341_v52 = vld [vmem:[%s8661_s2 + $0x468] sm:$0xff]  ;;  %v5345_v45 = vld [vmem:[%s8661_s2 + $0x3b0] sm:$0xff] }
 0x79d   : > { %5105 = vmatmul.msk.f32.gmra.mxu3 %vm3510_vm2, %v7588_v24  ;;  %5135 = vmatmul.msk.f32.gmra.mxu0 %vm3510_vm2, %v7588_v24 }
 0x79e   : > { %4103 = vmatpush.msra.mxu2 %v5287_v19  ;;  %4136 = vmatpush.msra.mxu3 %v5288_v29  ;;  %v5342_v19 = vld [vmem:[%s8661_s2 + $0x358] sm:$0xff]  ;;  %v5343_v29 = vld [vmem:[%s8661_s2 + $0x2d0] sm:$0xff] }
 0x79f   : > { %4164 = vmatpush.msrb.mxu0 %v5289_v49  ;;  %4197 = vmatpush.msrb.mxu1 %v5294_v4  ;;  %v5344_v49 = vld [vmem:[%s8661_s2 + $0x350] sm:$0xff]  ;;  %v5350_v4 = vld [vmem:[%s8661_s2 + $0x2c0] sm:$0xff] }
 0x7a0   : > { %4104 = vmatpush.msra.mxu2 %v5291_v7  ;;  %4137 = vmatpush.msra.mxu3 %v5292_v48  ;;  %v5346_v7 = vld [vmem:[%s8661_s2 + $0x2c8] sm:$0xff] }
 0x7a1   : > { %4165 = vmatpush.msrb.mxu0 %v5293_v57  ;;  %4198 = vmatpush.msrb.mxu1 %v5298_v16  ;;  %v5348_v48 = vld [vmem:[%s8661_s2 + $0x348] sm:$0xff]  ;;  %v5354_v16 = vld [vmem:[%s8661_s2 + $0x2b8] sm:$0xff] }
 0x7a2   : > { %4105 = vmatpush.msra.mxu2 %v5295_v21  ;;  %4138 = vmatpush.msra.mxu3 %v5296_v23  ;;  %v5349_v57 = vld [vmem:[%s8661_s2 + $0x3a8] sm:$0xff]  ;;  %v5351_v21 = vld [vmem:[%s8661_s2 + $0x458] sm:$0xff]  ;;  %v5352_v23 = vld [vmem:[%s8661_s2 + $0x340] sm:$0xff] }
 0x7a3   : > { %4166 = vmatpush.msrb.mxu0 %v5297_v53  ;;  %4199 = vmatpush.msrb.mxu1 %v5307_v59  ;;  %v5353_v53 = vld [vmem:[%s8661_s2 + $0x3a0] sm:$0xff] }
 0x7a4   : > { %4106 = vmatpush.msra.mxu2 %v5299_v56  ;;  %4139 = vmatpush.msra.mxu3 %v5300_v51  ;;  %v5355_v56 = vld [vmem:[%s8661_s2 + $0x450] sm:$0xff]  ;;  %v5356_v51 = vld [vmem:[%s8661_s2 + $0x338] sm:$0xff]  ;;  %v5365_v59 = vld [vmem:[%s8661_s2 + $0x440] sm:$0xff] }
 0x7a5   : > { %5100 = vmatmul.msk.f32.gmra.mxu2 %vm3510_vm2, %v7616_v50  ;;  %5106 = vmatmul.msk.f32.gmra.mxu3 %vm3510_vm2, %v7616_v50 }
 0x7a6   : > { %5136 = vmatmul.msk.f32.gmra.mxu0 %vm3510_vm2, %v7616_v50  ;;  %4107 = vmatpush.msra.mxu2 %v5301_v26  ;;  %v7948_v26 = vpop.permute.xlu1 %3551 }
 0x7a7   : > { %4140 = vmatpush.msra.mxu3 %v5302_v15  ;;  %4167 = vmatpush.msrb.mxu0 %v5303_v1  ;;  %v5358_v15 = vld [vmem:[%s8661_s2 + $0x330] sm:$0xff]  ;;  %v5359_v1 = vld [vmem:[%s8661_s2 + $0x398] sm:$0xff] }
 0x7a8   : > { %4108 = vmatpush.msra.mxu2 %v5304_v18  ;;  %4200 = vmatpush.msrb.mxu1 %v5311_v25  ;;  %v5362_v18 = vld [vmem:[%s8661_s2 + $0x328] sm:$0xff]  ;;  %v7982_v25 = vld.sshfl [vmem:[#allocation1] sm:$0xff pattern:$0x75316420] }
 0x7a9   : > { %4260 = vmatpush.msra.mxu0 %v5305_v43  ;;  %4141 = vmatpush.msra.mxu3 %v5306_v3  ;;  %v5363_v43 = vld [vmem:[%s8661_s2 + $0x390] sm:$0xff]  ;;  %v5364_v3 = vld [vmem:[%s8661_s2 + $0x2a0] sm:$0xff] }
 0x7aa   : > { %4109 = vmatpush.msra.mxu2 %v5308_v44  ;;  %4201 = vmatpush.msrb.mxu1 %v5322_v36  ;;  %v5366_v44 = vld [vmem:[%s8661_s2 + $0x320] sm:$0xff]  ;;  %v5377_v36 = vld [vmem:[%s8661_s2 + $0x308] sm:$0xff] }
 0x7ab   : > { %4261 = vmatpush.msra.mxu0 %v5309_v13  ;;  %4142 = vmatpush.msra.mxu3 %v5310_v8  ;;  %v5367_v13 = vld [vmem:[%s8661_s2 + $0x388] sm:$0xff] }
 0x7ac   : > { %4110 = vmatpush.msra.mxu2 %v5312_v58  ;;  %4202 = vmatmul.f32.vlgmr.msrb.gmra.mxu1 %v4182_v61  ;;  %v7980_v8 = vld.sshfl [vmem:[#allocation1 + $0x8] sm:$0xff pattern:$0x75316420]  ;;  %v5368_v58 = vld [vmem:[%s8661_s2 + $0x298] sm:$0xff] }
 0x7ad   : > { %4262 = vmatpush.msra.mxu0 %v5313_v55  ;;  %4143 = vmatpush.msra.mxu3 %v5314_v12  ;;  %v5369_v55 = vld [vmem:[%s8661_s2 + $0x438] sm:$0xff]  ;;  %4343 = vst [vmem:[#allocation1] ss:$2 sm:$0xff] %v8713_v2  ;;  %v5371_v12 = vld [vmem:[%s8661_s2 + $0x380] sm:$0xff] }
 0x7ae   : > { %5122 = vmatmul.msk.f32.vlgmr.msrb.gmra.mxu2 %vm3510_vm2, %v7561_v27  ;;  %5128 = vmatmul.msk.f32.vlgmr.msrb.gmra.mxu3 %vm3510_vm2, %v7561_v27  ;;  %v5319_v27 = vld [vmem:[%s8661_s2 + $0x110] sm:$0xff]  ;;  %v5370_v61 = vld [vmem:[%s8661_s2 + $0x318] sm:$0xff] }
 0x7af   : > { %4111 = vmatpush.msra.mxu2 %v5315_v9  ;;  %4144 = vmatpush.msra.mxu3 %v5316_v28  ;;  %v5372_v9 = vld [vmem:[%s8661_s2 + $0x290] sm:$0xff]  ;;  %v8001_v28 = vpop.permute.xlu0 %3561 }
 0x7b0   : > { %4263 = vmatpush.msra.mxu0 %v5317_v14  ;;  %v5373_v14 = vld [vmem:[%s8661_s2 + $0x310] sm:$0xff] }
 0x7b1   : > { %4112 = vmatpush.msra.mxu2 %v5318_v46  ;;  %4168 = vmatmul.f32.vlgmr.msrb.gmra.mxu0 %v4129_v34  ;;  %v5357_v34 = vld [vmem:[%s8661_s2 + $0x2b0] sm:$0xff]  ;;  %v5374_v46 = vld [vmem:[%s8661_s2 + $0x5f8] sm:$0xff] }
 0x7b2   : > { %4145 = vmatpush.msra.mxu3 %v5319_v27  ;;  %4264 = vmatpush.msra.mxu0 %v5320_v33  ;;  %v5375_v27 = vld [vmem:[%s8661_s2 + $0x288] sm:$0xff]  ;;  %v5376_v33 = vld [vmem:[%s8661_s2 + $0x430] sm:$0xff] }
 0x7b3   : > { %4113 = vmatpush.msra.mxu2 %v5321_v42  ;;  %v8015_v42 = vpop.permute.xlu1 %3611 }
 0x7b4   : > { %4146 = vmatpush.msra.mxu3 %v5323_v31  ;;  %4265 = vmatpush.msra.mxu0 %v5324_v39  ;;  %v5378_v31 = vld [vmem:[%s8661_s2 + $0x5f0] sm:$0xff]  ;;  %v5379_v39 = vld [vmem:[%s8661_s2 + $0x280] sm:$0xff] }
 0x7b5   : > { %4114 = vmatpush.msra.mxu2 %v5325_v30  ;;  %v5380_v30 = vld [vmem:[%s8661_s2 + $0x428] sm:$0xff] }
 0x7b6   : > { %4147 = vmatpush.msra.mxu3 %v5326_v5  ;;  %5123 = vmatmul.msk.f32.gmra.mxu2 %vm3510_vm2, %v7588_v24  ;;  %v8029_v5 = vpop.permute.xlu2 %3556 }
 0x7b7   : > { %4206 = vmatpush.msrb.mxu2 %v5327_v10  ;;  %5129 = vmatmul.msk.f32.gmra.mxu3 %vm3510_vm2, %v7588_v24  ;;  %v5333_v24 = vld [vmem:[%s8661_s2 + $0x478] sm:$0xff]  ;;  %v5381_v10 = vld [vmem:[%s8661_s2 + $0x300] sm:$0xff] }
 0x7b8   : > { %4240 = vmatpush.msrb.mxu3 %v5328_v6  ;;  %4266 = vmatpush.msra.mxu0 %v5331_v63  ;;  %v5382_v6 = vld [vmem:[%s8661_s2 + $0x4f8] sm:$0xff]  ;;  %v5386_v63 = vld [vmem:[%s8661_s2 + $0x420] sm:$0xff] }
 0x7b9   : > { %4207 = vmatpush.msrb.mxu2 %v5329_v62  ;;  %4294 = vmatpush.msra.mxu1 %v5333_v24  ;;  %v5383_v62 = vld [vmem:[%s8661_s2 + $0x578] sm:$0xff]  ;;  %v5388_v24 = vld [vmem:[%s8661_s2 + $0x5e0] sm:$0xff] }
 0x7ba   : > { %4241 = vmatpush.msrb.mxu3 %v5330_v47  ;;  %4267 = vmatpush.msra.mxu0 %v5335_v11  ;;  %v5384_v47 = vld [vmem:[%s8661_s2 + $0x5e8] sm:$0xff]  ;;  %v5390_v11 = vld [vmem:[%s8661_s2 + $0x418] sm:$0xff] }
 0x7bb   : > { %4208 = vmatpush.msrb.mxu2 %v5332_v41  ;;  %4295 = vmatpush.msra.mxu1 %v5337_v32  ;;  %v5387_v41 = vld [vmem:[%s8661_s2 + $0x570] sm:$0xff]  ;;  %v8071_v32 = vld.sshfl [vmem:[#allocation1] sm:$0xff pattern:$0x75316420] }
 0x7bc   : > { %4242 = vmatpush.msrb.mxu3 %v5334_v40  ;;  %4268 = vmatpush.msra.mxu0 %v5339_v60  ;;  %v5389_v40 = vld [vmem:[%s8661_s2 + $0x4e8] sm:$0xff]  ;;  %v5393_v60 = vld [vmem:[%s8661_s2 + $0x4e0] sm:$0xff] }
 0x7bd   : > { %4209 = vmatpush.msrb.mxu2 %v5336_v54  ;;  %4296 = vmatpush.msra.mxu1 %v5341_v52  ;;  %v5392_v54 = vld [vmem:[%s8661_s2 + $0x5d8] sm:$0xff]  ;;  %v8082_v52 = vpop.permute.xlu1 %3671 }
 0x7be   : > { %4243 = vmatpush.msrb.mxu3 %v5338_v17  ;;  %5124 = vmatmul.msk.f32.gmra.mxu2 %vm3510_vm2, %v7616_v50  ;;  %v8073_v17 = vld.sshfl [vmem:[#allocation1 + $0x8] sm:$0xff pattern:$0x75316420] }
 0x7bf   : > { %4210 = vmatpush.msrb.mxu2 %v5340_v35  ;;  %5130 = vmatmul.msk.f32.gmra.mxu3 %vm3510_vm2, %v7616_v50  ;;  %v5347_v50 = vld [vmem:[%s8661_s2 + $0x460] sm:$0xff]  ;;  %v5394_v35 = vld [vmem:[%s8661_s2 + $0x410] sm:$0xff]  ;;  %4397 = vst [vmem:[#allocation1] ss:$2 sm:$0xff] %v8713_v2 }
 0x7c0   : > { %4244 = vmatpush.msrb.mxu3 %v5342_v19  ;;  %4269 = vmatpush.msra.mxu0 %v5345_v45  ;;  %v5395_v19 = vld [vmem:[%s8661_s2 + $0x560] sm:$0xff]  ;;  %v5398_v45 = vld [vmem:[%s8661_s2 + $0x408] sm:$0xff] }
 0x7c1   : > { %4211 = vmatpush.msrb.mxu2 %v5343_v29  ;;  %4297 = vmatpush.msra.mxu1 %v5347_v50  ;;  %v5396_v29 = vld [vmem:[%s8661_s2 + $0x5d0] sm:$0xff]  ;;  %v5399_v50 = vld [vmem:[%s8661_s2 + $0x558] sm:$0xff] }
 0x7c2   : > { %4245 = vmatpush.msrb.mxu3 %v5344_v49  ;;  %4270 = vmatpush.msra.mxu0 %v5349_v57  ;;  %v5397_v49 = vld [vmem:[%s8661_s2 + $0x4d8] sm:$0xff]  ;;  %v5401_v57 = vld [vmem:[%s8661_s2 + $0x4d0] sm:$0xff] }
 0x7c3   : > { %4212 = vmatpush.msrb.mxu2 %v5346_v7  ;;  %4298 = vmatpush.msra.mxu1 %v5351_v21  ;;  %v8096_v7 = vpop.permute.xlu2 %3616  ;;  %v5403_v21 = vld [vmem:[%s8661_s2 + $0x550] sm:$0xff] }
 0x7c4   : > { %4246 = vmatpush.msrb.mxu3 %v5348_v48  ;;  %4271 = vmatpush.msra.mxu0 %v5353_v53  ;;  %v5400_v48 = vld [vmem:[%s8661_s2 + $0x5c8] sm:$0xff] }
 0x7c5   : > { %4213 = vmatpush.msrb.mxu2 %v5350_v4  ;;  %4299 = vmatpush.msra.mxu1 %v5355_v56  ;;  %v5402_v4 = vld [vmem:[%s8661_s2 + $0x400] sm:$0xff]  ;;  %v5405_v53 = vld [vmem:[%s8661_s2 + $0x4c8] sm:$0xff]  ;;  %v5407_v56 = vld [vmem:[%s8661_s2 + $0x5b8] sm:$0xff] }
 0x7c6   : > { %4247 = vmatpush.msrb.mxu3 %v5352_v23  ;;  %4115 = vmatmul.f32.vlgmr.msra.gmra.mxu2 %v7697_v22  ;;  %v5360_v22 = vld [vmem:[%s8661_s2 + $0x2a8] sm:$0xff]  ;;  %v5404_v23 = vld [vmem:[%s8661_s2 + $0x5c0] sm:$0xff] }
 0x7c7   : > { %4214 = vmatpush.msrb.mxu2 %v5354_v16  ;;  %4148 = vmatmul.f32.vlgmr.msra.gmra.mxu3 %v7746_v0  ;;  %v5361_v0 = vld [vmem:[%s8661_s2 + $0x448] sm:$0xff] }
 0x7c8   : > { %4248 = vmatpush.msrb.mxu3 %v5356_v51  ;;  %4272 = vmatpush.msra.mxu0 %v5359_v1  ;;  %v5406_v16 = vld [vmem:[%s8661_s2 + $0x548] sm:$0xff]  ;;  %v5408_v51 = vld [vmem:[%s8661_s2 + $0x4c0] sm:$0xff] }
 0x7c9   : > { %4215 = vmatpush.msrb.mxu2 %v5357_v34  ;;  %4300 = vmatpush.msra.mxu1 %v5361_v0  ;;  %v5409_v34 = vld [vmem:[%s8661_s2 + $0x678] sm:$0xff]  ;;  %v5410_v1 = vld [vmem:[%s8661_s2 + $0x540] sm:$0xff] }
 0x7ca   : > { %4249 = vmatpush.msrb.mxu3 %v5358_v15  ;;  %4273 = vmatpush.msra.mxu0 %v5363_v43  ;;  %v5412_v0 = vld [vmem:[%s8661_s2 + $0x4b8] sm:$0xff]  ;;  %v8146_v43 = vpop.permute.xlu1 %4176 }
 0x7cb   : > { %4216 = vmatpush.msrb.mxu2 %v5360_v22  ;;  %4301 = vmatpush.msra.mxu1 %v5365_v59  ;;  %v5411_v22 = vld [vmem:[%s8661_s2 + $0x5b0] sm:$0xff]  ;;  %v5415_v59 = vld [vmem:[%s8661_s2 + $0x5a8] sm:$0xff] }
 0x7cc   : > { %4250 = vmatpush.msrb.mxu3 %v5362_v18  ;;  %4274 = vmatpush.msra.mxu0 %v5367_v13  ;;  %v5413_v18 = vld [vmem:[%s8661_s2 + $0x670] sm:$0xff]  ;;  %v5417_v13 = vld [vmem:[%s8661_s2 + $0x668] sm:$0xff] }
 0x7cd   : > { %4217 = vmatpush.msrb.mxu2 %v5364_v3  ;;  %4302 = vmatpush.msra.mxu1 %v5369_v55  ;;  %v5414_v3 = vld [vmem:[%s8661_s2 + $0x538] sm:$0xff]  ;;  %v5419_v55 = vld [vmem:[%s8661_s2 + $0x5a0] sm:$0xff] }
 0x7ce   : > { %4251 = vmatpush.msrb.mxu3 %v5366_v44  ;;  %4275 = vmatpush.msra.mxu0 %v5371_v12  ;;  %v5416_v44 = vld [vmem:[%s8661_s2 + $0x4b0] sm:$0xff]  ;;  %v5421_v12 = vld [vmem:[%s8661_s2 + $0x660] sm:$0xff] }
 0x7cf   : > { %4218 = vmatpush.msrb.mxu2 %v5368_v58  ;;  %4276 = vmatmul.f32.vlgmr.msra.gmra.mxu0 %v7873_v37  ;;  %v5391_v37 = vld [vmem:[%s8661_s2 + $0x568] sm:$0xff]  ;;  %v5418_v58 = vld [vmem:[%s8661_s2 + $0x530] sm:$0xff] }
 0x7d0   : > { %4252 = vmatpush.msrb.mxu3 %v5370_v61  ;;  %4368 = vmatpush.msrb.mxu0 %v5374_v46  ;;  %v5420_v61 = vld [vmem:[%s8661_s2 + $0x4a8] sm:$0xff]  ;;  %v5424_v46 = vld [vmem:[%s8661_s2 + $0x4a0] sm:$0xff] }
 0x7d1   : > { %4219 = vmatpush.msrb.mxu2 %v5372_v9  ;;  %4303 = vmatpush.msra.mxu1 %v5376_v33  ;;  %v5422_v9 = vld [vmem:[%s8661_s2 + $0x528] sm:$0xff]  ;;  %v5426_v33 = vld [vmem:[%s8661_s2 + $0x520] sm:$0xff] }
 0x7d2   : > { %4253 = vmatpush.msrb.mxu3 %v5373_v14  ;;  %4369 = vmatpush.msrb.mxu0 %v5378_v31  ;;  %v5423_v14 = vld [vmem:[%s8661_s2 + $0x598] sm:$0xff]  ;;  %v8192_v31 = vld.sshfl [vmem:[#allocation1 + $0x8] sm:$0xff pattern:$0x75316420] }
 0x7d3   : > { %4220 = vmatpush.msrb.mxu2 %v5375_v27  ;;  %4304 = vmatpush.msra.mxu1 %v5380_v30  ;;  %v5425_v27 = vld [vmem:[%s8661_s2 + $0x658] sm:$0xff] }
 0x7d4   : > { %4254 = vmatpush.msrb.mxu3 %v5377_v36  ;;  %4370 = vmatpush.msrb.mxu0 %v5384_v47  ;;  %v5427_v36 = vld [vmem:[%s8661_s2 + $0x590] sm:$0xff]  ;;  %v5428_v30 = vld [vmem:[%s8661_s2 + $0x498] sm:$0xff]  ;;  %v5431_v47 = vld [vmem:[%s8661_s2 + $0x588] sm:$0xff] }
 0x7d5   : > { %4221 = vmatpush.msrb.mxu2 %v5379_v39  ;;  %4305 = vmatpush.msra.mxu1 %v5386_v63  ;;  %v8194_v39 = vld.sshfl [vmem:[#allocation1] sm:$0xff pattern:$0x75316420]  ;;  %v5433_v63 = vld [vmem:[%s8661_s2 + $0x648] sm:$0xff] }
 0x7d6   : > { %4255 = vmatpush.msrb.mxu3 %v5381_v10  ;;  %4222 = vmatmul.f32.vlgmr.msrb.gmra.mxu2 %v7794_v38  ;;  %v5385_v38 = vld [vmem:[%s8661_s2 + $0x4f0] sm:$0xff]  ;;  %4451 = vst [vmem:[#allocation1] ss:$2 sm:$0xff] %v8713_v2 }
 0x7d7   : > { %4256 = vmatmul.f32.vlgmr.msrb.gmra.mxu3 %v7871_v20  ;;  %4314 = vmatpush.msra.mxu2 %v5382_v6  ;;  %v8063_v20 = vpop.permute.xlu0 %3621  ;;  %v5429_v10 = vld [vmem:[%s8661_s2 + $0x650] sm:$0xff] }
 0x7d8   : > { %4348 = vmatpush.msra.mxu3 %v5383_v62  ;;  %4371 = vmatpush.msrb.mxu0 %v5388_v24  ;;  %v5430_v62 = vld [vmem:[%s8661_s2 + $0x518] sm:$0xff]  ;;  %v5434_v24 = vld [vmem:[%s8661_s2 + $0x510] sm:$0xff] }
 0x7d9   : > { %4315 = vmatpush.msra.mxu2 %v5385_v38  ;;  %4306 = vmatpush.msra.mxu1 %v5390_v11  ;;  %v5432_v38 = vld [vmem:[%s8661_s2 + $0x490] sm:$0xff]  ;;  %v5436_v11 = vld [vmem:[%s8661_s2 + $0x488] sm:$0xff] }
 0x7da   : > { %4349 = vmatpush.msra.mxu3 %v5387_v41  ;;  %4372 = vmatpush.msrb.mxu0 %v5392_v54  ;;  %v8217_v41 = vpop.permute.xlu1 %3741  ;;  %v5437_v54 = vld [vmem:[%s8661_s2 + $0x508] sm:$0xff] }
 0x7db   : > { %4316 = vmatpush.msra.mxu2 %v5389_v40  ;;  %4307 = vmatpush.msra.mxu1 %v5394_v35  ;;  %v5435_v40 = vld [vmem:[%s8661_s2 + $0x580] sm:$0xff] }
 0x7dc   : > { %4350 = vmatpush.msra.mxu3 %v5391_v37  ;;  %4373 = vmatpush.msrb.mxu0 %v5396_v29  ;;  %v5439_v35 = vld [vmem:[%s8661_s2 + $0x480] sm:$0xff]  ;;  %v5442_v29 = vld [vmem:[%s8661_s2 + $0x6f8] sm:$0xff] }
 0x7dd   : > { %4317 = vmatpush.msra.mxu2 %v5393_v60  ;;  %4308 = vmatpush.msra.mxu1 %v5398_v45  ;;  %v5438_v60 = vld [vmem:[%s8661_s2 + $0x7f8] sm:$0xff]  ;;  %v5444_v45 = vld [vmem:[%s8661_s2 + $0x7f0] sm:$0xff] }
 0x7de   : > { %4351 = vmatpush.msra.mxu3 %v5395_v19  ;;  %4374 = vmatpush.msrb.mxu0 %v5400_v48  ;;  %v5441_v19 = vld [vmem:[%s8661_s2 + $0x500] sm:$0xff]  ;;  %v5447_v48 = vld [vmem:[%s8661_s2 + $0x770] sm:$0xff] }
 0x7df   : > { %4318 = vmatpush.msra.mxu2 %v5397_v49  ;;  %4309 = vmatpush.msra.mxu1 %v5402_v4  ;;  %v8132_v15 = vpop.permute.xlu0 %4122  ;;  %v5443_v49 = vld [vmem:[%s8661_s2 + $0x778] sm:$0xff]  ;;  %v5449_v4 = vld [vmem:[%s8661_s2 + $0x6e8] sm:$0xff] }
 0x7e0   : > { %4352 = vmatpush.msra.mxu3 %v5399_v50  ;;  %4375 = vmatpush.msrb.mxu0 %v5404_v23  ;;  %v8277_v23 = vld.sshfl [vmem:[#allocation1] sm:$0xff pattern:$0x75316420] }
 0x7e1   : > { %4319 = vmatpush.msra.mxu2 %v5401_v57  ;;  %4310 = vmatmul.f32.vlgmr.msra.gmra.mxu1 %v7982_v25  ;;  %v8160_v25 = vpop.permute.xlu2 %3676  ;;  %v5448_v57 = vld [vmem:[%s8661_s2 + $0x7e8] sm:$0xff] }
 0x7e2   : > { %4353 = vmatpush.msra.mxu3 %v5403_v21  ;;  %4376 = vmatpush.msrb.mxu0 %v5407_v56  ;;  %v5450_v21 = vld [vmem:[%s8661_s2 + $0x630] sm:$0xff]  ;;  %v5451_v56 = vld [vmem:[%s8661_s2 + $0x768] sm:$0xff] }
 0x7e3   : > { %4320 = vmatpush.msra.mxu2 %v5405_v53  ;;  %4402 = vmatpush.msrb.mxu1 %v5409_v34  ;;  %v8279_v53 = vld.sshfl [vmem:[#allocation1 + $0x8] sm:$0xff pattern:$0x75316420]  ;;  %v5453_v34 = vld [vmem:[%s8661_s2 + $0x6e0] sm:$0xff] }
 0x7e4   : > { %4354 = vmatpush.msra.mxu3 %v5406_v16  ;;  %4377 = vmatpush.msrb.mxu0 %v5411_v22  ;;  %v8281_v16 = vpop.permute.xlu1 %3801  ;;  %4505 = vst [vmem:[#allocation1] ss:$2 sm:$0xff] %v8713_v2  ;;  %v5456_v2 = vld [vmem:[%s8661_s2 + $0x7d8] sm:$0xff] }
 0x7e5   : > { %4321 = vmatpush.msra.mxu2 %v5408_v51  ;;  %4403 = vmatpush.msrb.mxu1 %v5413_v18  ;;  %v5452_v51 = vld [vmem:[%s8661_s2 + $0x7e0] sm:$0xff]  ;;  %v5457_v18 = vld [vmem:[%s8661_s2 + $0x6d8] sm:$0xff] }
 0x7e6   : > { %4355 = vmatpush.msra.mxu3 %v5410_v1  ;;  %4378 = vmatpush.msrb.mxu0 %v5415_v59  ;;  %v5454_v1 = vld [vmem:[%s8661_s2 + $0x628] sm:$0xff]  ;;  %v5459_v59 = vld [vmem:[%s8661_s2 + $0x758] sm:$0xff] }
 0x7e7   : > { %4322 = vmatpush.msra.mxu2 %v5412_v0  ;;  %4404 = vmatpush.msrb.mxu1 %v5417_v13  ;;  %v8203_v6 = vpop.permute.xlu0 %4230  ;;  %v5455_v0 = vld [vmem:[%s8661_s2 + $0x760] sm:$0xff]  ;;  %v5461_v13 = vld [vmem:[%s8661_s2 + $0x6d0] sm:$0xff] }
 0x7e8   : > { %4356 = vmatpush.msra.mxu3 %v5414_v3  ;;  %4379 = vmatpush.msrb.mxu0 %v5419_v55  ;;  %v5458_v3 = vld [vmem:[%s8661_s2 + $0x620] sm:$0xff] }
 0x7e9   : > { %4323 = vmatpush.msra.mxu2 %v5416_v44  ;;  %4405 = vmatpush.msrb.mxu1 %v5421_v12  ;;  %v8229_v37 = vpop.permute.xlu2 %3681  ;;  %v5460_v44 = vld [vmem:[%s8661_s2 + $0x7d0] sm:$0xff] }
 0x7ea   : > { %4357 = vmatpush.msra.mxu3 %v5418_v58  ;;  %4380 = vmatpush.msrb.mxu0 %v5423_v14  ;;  %v5463_v12 = vld [vmem:[%s8661_s2 + $0x750] sm:$0xff]  ;;  %v5465_v14 = vld [vmem:[%s8661_s2 + $0x6c8] sm:$0xff] }
 0x7eb   : > { %4324 = vmatpush.msra.mxu2 %v5420_v61  ;;  %4406 = vmatpush.msrb.mxu1 %v5425_v27  ;;  %v5462_v61 = vld [vmem:[%s8661_s2 + $0x618] sm:$0xff] }
 0x7ec   : > { %4358 = vmatpush.msra.mxu3 %v5422_v9  ;;  %4381 = vmatpush.msrb.mxu0 %v5427_v36  ;;  %v5464_v9 = vld [vmem:[%s8661_s2 + $0x7c8] sm:$0xff]  ;;  %v5468_v36 = vld [vmem:[%s8661_s2 + $0x7c0] sm:$0xff] }
 0x7ed   : > { %4325 = vmatpush.msra.mxu2 %v5424_v46  ;;  %4407 = vmatpush.msrb.mxu1 %v5429_v10  ;;  %v5466_v46 = vld [vmem:[%s8661_s2 + $0x610] sm:$0xff]  ;;  %v5470_v10 = vld [vmem:[%s8661_s2 + $0x608] sm:$0xff] }
 0x7ee   : > { %4359 = vmatpush.msra.mxu3 %v5426_v33  ;;  %4382 = vmatpush.msrb.mxu0 %v5431_v47  ;;  %v5467_v33 = vld [vmem:[%s8661_s2 + $0x748] sm:$0xff]  ;;  %v5471_v47 = vld [vmem:[%s8661_s2 + $0x740] sm:$0xff] }
 0x7ef   : > { %4326 = vmatpush.msra.mxu2 %v5428_v30  ;;  %4408 = vmatpush.msrb.mxu1 %v5433_v63  ;;  %v8263_v50 = vpop.permute.xlu0 %3736  ;;  %v5469_v30 = vld [vmem:[%s8661_s2 + $0x6c0] sm:$0xff]  ;;  %v5473_v63 = vld [vmem:[%s8661_s2 + $0x6b8] sm:$0xff] }
 0x7f0   : > { %4360 = vmatpush.msra.mxu3 %v5430_v62  ;;  %4383 = vmatpush.msrb.mxu0 %v5435_v40  ;;  %v8352_v62 = vpop.permute.xlu1 %3796 }
 0x7f1   : > { %4327 = vmatpush.msra.mxu2 %v5432_v38  ;;  %4384 = vmatmul.f32.vlgmr.msrb.gmra.mxu0 %v8073_v17  ;;  %v5440_v17 = vld [vmem:[%s8661_s2 + $0x640] sm:$0xff]  ;;  %v8296_v22 = vpop.permute.xlu2 %4284  ;;  %v5472_v38 = vld [vmem:[%s8661_s2 + $0x7b8] sm:$0xff] }
 0x7f2   : > { %4361 = vmatpush.msra.mxu3 %v5434_v24  ;;  %4476 = vmatpush.msra.mxu0 %v5438_v60  ;;  %v5474_v24 = vld [vmem:[%s8661_s2 + $0x600] sm:$0xff]  ;;  %v5477_v60 = vld [vmem:[%s8661_s2 + $0x6b0] sm:$0xff] }
 0x7f3   : > { %4328 = vmatpush.msra.mxu2 %v5436_v11  ;;  %4409 = vmatpush.msrb.mxu1 %v5440_v17  ;;  %v5475_v11 = vld [vmem:[%s8661_s2 + $0x738] sm:$0xff] }
 0x7f4   : > { %4362 = vmatpush.msra.mxu3 %v5437_v54  ;;  %4477 = vmatpush.msra.mxu0 %v5444_v45  ;;  %v5476_v54 = vld [vmem:[%s8661_s2 + $0x7b0] sm:$0xff]  ;;  %v5481_v45 = vld [vmem:[%s8661_s2 + $0x878] sm:$0xff] }
 0x7f5   : > { %4329 = vmatpush.msra.mxu2 %v5439_v35 }
 0x7f6   : > { %4363 = vmatpush.msra.mxu3 %v5441_v19  ;;  %4330 = vmatmul.f32.vlgmr.msra.gmra.mxu2 %v7980_v8  ;;  %v5445_v8 = vld [vmem:[%s8661_s2 + $0x6f0] sm:$0xff] }
 0x7f7   : > { %4364 = vmatmul.f32.vlgmr.msra.gmra.mxu3 %v8071_v32  ;;  %4422 = vmatpush.msrb.mxu2 %v5442_v29  ;;  %v5446_v32 = vld [vmem:[%s8661_s2 + $0x638] sm:$0xff]  ;;  %v8338_v27 = vpop.permute.xlu0 %3731  ;;  %v5478_v19 = vld [vmem:[%s8661_s2 + $0x730] sm:$0xff]  ;;  %v5479_v29 = vld [vmem:[%s8661_s2 + $0x7a8] sm:$0xff] }
 0x7f8   : > { %4456 = vmatpush.msrb.mxu3 %v5443_v49  ;;  %4410 = vmatpush.msrb.mxu1 %v5446_v32  ;;  %v5480_v49 = vld [vmem:[%s8661_s2 + $0x6a8] sm:$0xff]  ;;  %v5484_v32 = vld [vmem:[%s8661_s2 + $0x6a0] sm:$0xff] }
 0x7f9   : > { %4423 = vmatpush.msrb.mxu2 %v5445_v8  ;;  %4478 = vmatpush.msra.mxu0 %v5448_v57  ;;  %v8366_v40 = vpop.permute.xlu2 %4338  ;;  %v5483_v8 = vld [vmem:[%s8661_s2 + $0x7a0] sm:$0xff] }
 0x7fa   : > { %4457 = vmatpush.msrb.mxu3 %v5447_v48  ;;  %4411 = vmatpush.msrb.mxu1 %v5450_v21  ;;  %v5485_v48 = vld [vmem:[%s8661_s2 + $0x870] sm:$0xff]  ;;  %v5487_v21 = vld [vmem:[%s8661_s2 + $0x798] sm:$0xff] }
 0x7fb   : > { %4424 = vmatpush.msrb.mxu2 %v5449_v4  ;;  %4479 = vmatpush.msra.mxu0 %v5452_v51  ;;  %v5486_v4 = vld [vmem:[%s8661_s2 + $0x720] sm:$0xff]  ;;  %v5489_v51 = vld [vmem:[%s8661_s2 + $0x868] sm:$0xff] }
 0x7fc   : > { %4458 = vmatpush.msrb.mxu3 %v5451_v56  ;;  %4412 = vmatpush.msrb.mxu1 %v5454_v1  ;;  %v5488_v56 = vld [vmem:[%s8661_s2 + $0x698] sm:$0xff] }
 0x7fd   : > { %4425 = vmatpush.msrb.mxu2 %v5453_v34  ;;  %4480 = vmatpush.msra.mxu0 %v5456_v2  ;;  %v8420_v34 = vpop.permute.xlu1 %3791  ;;  %v5490_v1 = vld [vmem:[%s8661_s2 + $0x718] sm:$0xff]  ;;  %v5492_v2 = vld [vmem:[%s8661_s2 + $0x690] sm:$0xff] }
 0x7fe   : > { %4459 = vmatpush.msrb.mxu3 %v5455_v0  ;;  %4413 = vmatpush.msrb.mxu1 %v5458_v3  ;;  %v5491_v0 = vld [vmem:[%s8661_s2 + $0x790] sm:$0xff] }
 0x7ff   : > { %4426 = vmatpush.msrb.mxu2 %v5457_v18  ;;  %4481 = vmatpush.msra.mxu0 %v5460_v44  ;;  %v8319_v58 = vpop.f32.mrf.mxu2  ;;  %v8321_v55 = vpop.f32.mrf.mxu3 }
 0x800   : > { %4460 = vmatpush.msrb.mxu3 %v5459_v59  ;;  %4414 = vmatpush.msrb.mxu1 %v5462_v61  ;;  %v8406_v57 = vpop.permute.xlu0 %4392  ;;  %v5493_v59 = vld [vmem:[%s8661_s2 + $0x860] sm:$0xff]  ;;  %v5495_v61 = vld [vmem:[%s8661_s2 + $0x788] sm:$0xff] }
 0x801   : > { %4427 = vmatpush.msrb.mxu2 %v5461_v13  ;;  %4482 = vmatpush.msra.mxu0 %v5464_v9  ;;  %v8438_v44 = vpop.permute.xlu2 %3861  ;;  %v5494_v13 = vld [vmem:[%s8661_s2 + $0x710] sm:$0xff]  ;;  %v5496_v9 = vld [vmem:[%s8661_s2 + $0x688] sm:$0xff] }
 0x802   : > { %4461 = vmatpush.msrb.mxu3 %v5463_v12  ;;  %4415 = vmatpush.msrb.mxu1 %v5466_v46  ;;  %v8446_v12 = vpop.f32.mrf.mxu0  ;;  %v5498_v46 = vld [vmem:[%s8661_s2 + $0x708] sm:$0xff] }
 0x803   : > { %4428 = vmatpush.msrb.mxu2 %v5465_v14  ;;  %4483 = vmatpush.msra.mxu0 %v5468_v36  ;;  %v5497_v14 = vld [vmem:[%s8661_s2 + $0x858] sm:$0xff]  ;;  %v5500_v36 = vld [vmem:[%s8661_s2 + $0x680] sm:$0xff] }
 0x804   : > { %4462 = vmatpush.msrb.mxu3 %v5467_v33  ;;  %4416 = vmatpush.msrb.mxu1 %v5470_v10  ;;  %v5499_v33 = vld [vmem:[%s8661_s2 + $0x780] sm:$0xff]  ;;  %v5502_v10 = vld [vmem:[%s8661_s2 + $0x8f8] sm:$0xff] }
 0x805   : > { %4429 = vmatpush.msrb.mxu2 %v5469_v30  ;;  %4484 = vmatpush.msra.mxu0 %v5472_v38  ;;  %v5501_v30 = vld [vmem:[%s8661_s2 + $0x700] sm:$0xff]  ;;  %v5504_v38 = vld [vmem:[%s8661_s2 + $0x8f0] sm:$0xff] }
 0x806   : > { %4463 = vmatpush.msrb.mxu3 %v5471_v47  ;;  %4417 = vmatpush.msrb.mxu1 %v5474_v24  ;;  %v8487_v24 = vpop.permute.xlu1 %4446 }
 0x807   : > { %4430 = vmatpush.msrb.mxu2 %v5473_v63  ;;  %4485 = vmatpush.msra.mxu0 %v5476_v54  ;;  %v8377_v35 = vpop.f32.mrf.mxu2  ;;  %v8379_v17 = vpop.f32.mrf.mxu3  ;;  %v5505_v63 = vld [vmem:[%s8661_s2 + $0x848] sm:$0xff] }
 0x808   : > { %4464 = vmatpush.msrb.mxu3 %v5475_v11  ;;  %4418 = vmatmul.f32.vlgmr.msrb.gmra.mxu1 %v8194_v39  ;;  %v5482_v39 = vld [vmem:[%s8661_s2 + $0x728] sm:$0xff]  ;;  %v8472_v47 = vpop.permute.xlu0 %3921 }
 0x809   : > { %4431 = vmatpush.msrb.mxu2 %v5477_v60  ;;  %4486 = vmatpush.msra.mxu0 %v5479_v29  ;;  %v5506_v11 = vld [vmem:[%s8661_s2 + $0x8e8] sm:$0xff]  ;;  %v8492_v54 = vpop.permute.xlu2 %3856  ;;  %v5507_v60 = vld [vmem:[%s8661_s2 + $0x840] sm:$0xff] }
 0x80a   : > { %4465 = vmatpush.msrb.mxu3 %v5478_v19  ;;  %4510 = vmatpush.msra.mxu1 %v5481_v45  ;;  %v8497_v19 = vpop.f32.mrf.mxu0  ;;  %v5508_v29 = vld [vmem:[%s8661_s2 + $0x8e0] sm:$0xff]  ;;  %v5510_v45 = vld [vmem:[%s8661_s2 + $0x8d8] sm:$0xff] }
 0x80b   : > { %4432 = vmatpush.msrb.mxu2 %v5480_v49  ;;  %4487 = vmatpush.msra.mxu0 %v5483_v8  ;;  %v5509_v49 = vld [vmem:[%s8661_s2 + $0x838] sm:$0xff]  ;;  %v5512_v8 = vld [vmem:[%s8661_s2 + $0x8d0] sm:$0xff] }
 0x80c   : > { %4466 = vmatpush.msrb.mxu3 %v5482_v39  ;;  %4511 = vmatpush.msra.mxu1 %v5485_v48  ;;  %v5511_v39 = vld [vmem:[%s8661_s2 + $0x830] sm:$0xff] }
 0x80d   : > { %4433 = vmatpush.msrb.mxu2 %v5484_v32  ;;  %4488 = vmatpush.msra.mxu0 %v5487_v21 }
 0x80e   : > { %4467 = vmatpush.msrb.mxu3 %v5486_v4  ;;  %4512 = vmatpush.msra.mxu1 %v5489_v51  ;;  %v5513_v4 = vld [vmem:[%s8661_s2 + $0x828] sm:$0xff]  ;;  %v5515_v51 = vld [vmem:[%s8661_s2 + $0x820] sm:$0xff] }
 0x80f   : > { %4434 = vmatpush.msrb.mxu2 %v5488_v56  ;;  %4489 = vmatpush.msra.mxu0 %v5491_v0  ;;  %v8431_v18 = vpop.f32.mrf.mxu2  ;;  %v8433_v3 = vpop.f32.mrf.mxu3  ;;  %v5514_v56 = vld [vmem:[%s8661_s2 + $0x8c8] sm:$0xff]  ;;  %v5516_v0 = vld [vmem:[%s8661_s2 + $0x8c0] sm:$0xff] }
 0x810   : > { %4468 = vmatpush.msrb.mxu3 %v5490_v1  ;;  %4513 = vmatpush.msra.mxu1 %v5493_v59  ;;  %v8517_v21 = vpop.permute.xlu0 %3916  ;;  %v8525_v1 = vpop.permute.xlu1 %3981  ;;  %v5517_v59 = vld [vmem:[%s8661_s2 + $0x818] sm:$0xff] }
 0x811   : > { %4435 = vmatpush.msrb.mxu2 %v5492_v2  ;;  %4490 = vmatpush.msra.mxu0 %v5495_v61  ;;  %v8530_v2 = vpop.permute.xlu2 %3851  ;;  %v5518_v61 = vld [vmem:[%s8661_s2 + $0x8b8] sm:$0xff] }
 0x812   : > { %4469 = vmatpush.msrb.mxu3 %v5494_v13  ;;  %4514 = vmatpush.msra.mxu1 %v5497_v14  ;;  %v8535_v13 = vpop.f32.mrf.mxu0  ;;  %v5520_v14 = vld [vmem:[%s8661_s2 + $0x8b0] sm:$0xff] }
 0x813   : > { %4436 = vmatpush.msrb.mxu2 %v5496_v9  ;;  %4491 = vmatpush.msra.mxu0 %v5499_v33  ;;  %v5519_v9 = vld [vmem:[%s8661_s2 + $0x810] sm:$0xff] }
 0x814   : > { %4470 = vmatpush.msrb.mxu3 %v5498_v46  ;;  %4492 = vmatmul.f32.vlgmr.msra.gmra.mxu0 %v8279_v53  ;;  %v5503_v53 = vld [vmem:[%s8661_s2 + $0x850] sm:$0xff] }
 0x815   : > { %4437 = vmatpush.msrb.mxu2 %v5500_v36  ;;  %4515 = vmatpush.msra.mxu1 %v5503_v53  ;;  %v5521_v36 = vld [vmem:[%s8661_s2 + $0x808] sm:$0xff] }
 0x816   : > { %4471 = vmatpush.msrb.mxu3 %v5501_v30  ;;  %4438 = vmatmul.f32.vlgmr.msrb.gmra.mxu2 %v8192_v31  ;;  %v4506_v30 = vld.sshfl [vmem:[#allocation1] sm:$0xff pattern:$0x75316420]  ;;  %v5522_v53 = vld [vmem:[%s8661_s2 + $0x8a8] sm:$0xff] }
 0x817   : > { %4472 = vmatmul.f32.vlgmr.msrb.gmra.mxu3 %v8277_v23  ;;  %4530 = vmatpush.msra.mxu2 %v5502_v10  ;;  %v8480_v31 = vpop.f32.mrf.mxu2  ;;  %v8482_v23 = vpop.f32.mrf.mxu3 }
 0x818   : > { %4516 = vmatpush.msra.mxu1 %v5505_v63  ;;  %v3836_v10 = vpop.f32.mrf.mxu1  ;;  %v3625_v63 = vmul.f32 %v8096_v7, %v8379_v17  ;;  %v5525_v17 = vld [vmem:[%s8661_s2 + $0x898] sm:$0xff] }
 0x819   : > { %4531 = vmatpush.msra.mxu2 %v5504_v38  ;;  %v3565_v38 = vmul.f32 %v8029_v5, %v8377_v35  ;;  %v3624_v5 = vmul.f32 %v8015_v42, %v8321_v55  ;;  %v3977_v35 = vpop.permute.xlu1 %3976 }
 0x81a   : > { %4517 = vmatpush.msra.mxu1 %v5507_v60  ;;  %v3912_v60 = vpop.permute.xlu0 %3911 }
 0x81b   : > { %4532 = vmatpush.msra.mxu2 %v5506_v11  ;;  %v5523_v11 = vld [vmem:[%s8661_s2 + $0x800] sm:$0xff] }
 0x81c   : > { %4518 = vmatpush.msra.mxu1 %v5509_v49  ;;  %v3564_v49 = vmul.f32 %v7948_v26, %v8319_v58  ;;  %v5526_v26 = vld [vmem:[%s8661_s2 + $0x890] sm:$0xff]  ;;  %v3626_v58 = vmul.f32 %v8063_v20, %v8433_v3 }
 0x81d   : > { %4533 = vmatpush.msra.mxu2 %v5508_v29  ;;  %v5524_v29 = vld [vmem:[%s8661_s2 + $0x8a0] sm:$0xff] }
 0x81e   : > { %4519 = vmatpush.msra.mxu1 %v5511_v39  ;;  %v3628_v39 = vadd.f32 %v3625_v63, %v3565_v38  ;;  %v3627_v42 = vadd.f32 %v3624_v5, %v3564_v49 }
 0x81f   : > { %4534 = vmatpush.msra.mxu2 %v5510_v45  ;;  %v3659_v32 = vpop.f32.mrf.mxu2  ;;  %v8570_v45 = vpop.permute.xlu2 %4500 }
 0x820   : > { %v3719_v48 = vpop.f32.mrf.mxu3  ;;  %4520 = vmatpush.msra.mxu1 %v5513_v4  ;;  %v3685_v7 = vmul.f32 %v8160_v25, %v3659_v32  ;;  %v8574_v4 = vpop.f32.mrf.mxu0  ;;  %v3566_v25 = vmul.f32 %v8001_v28, %v8431_v18  ;;  %v5528_v28 = vld [vmem:[%s8661_s2 + $0x880] sm:$0xff]  ;;  %v3744_v18 = vmul.f32 %v8338_v27, %v8482_v23 }
 0x821   : > { %4535 = vmatpush.msra.mxu2 %v5512_v8  ;;  %v3684_v8 = vmul.f32 %v8082_v52, %v8480_v31  ;;  %v5527_v52 = vld [vmem:[%s8661_s2 + $0x888] sm:$0xff] }
 0x822   : > { %4521 = vmatpush.msra.mxu1 %v5515_v51  ;;  %v3688_v55 = vadd.f32 %v3685_v7, %v3628_v39  ;;  %v3629_v20 = vadd.f32 %v3626_v58, %v3566_v25 }
 0x823   : > { %4536 = vmatpush.msra.mxu2 %v5514_v56  ;;  %v4507_v56 = vld.sshfl [vmem:[#allocation1 + $0x8] sm:$0xff pattern:$0x75316420]  ;;  %v3687_v51 = vadd.f32 %v3684_v8, %v3627_v42 }
 0x824   : > { %4522 = vmatpush.msra.mxu1 %v5517_v59 }
 0x825   : > { %4537 = vmatpush.msra.mxu2 %v5516_v0  ;;  %v3745_v0 = vmul.f32 %v8263_v50, %v3719_v48  ;;  %v3747_v50 = vadd.f32 %v3744_v18, %v3687_v51 }
 0x826   : > { %4523 = vmatpush.msra.mxu1 %v5519_v9  ;;  %v8593_v9 = vpop.permute.xlu0 %4554 }
 0x827   : > { %4538 = vmatpush.msra.mxu2 %v5518_v61  ;;  %v3839_v61 = vpop.f32.mrf.mxu1  ;;  %v3748_v3 = vadd.f32 %v3745_v0, %v3688_v55 }
 0x828   : > { %v3662_v46 = vpop.f32.mrf.mxu2  ;;  %v3722_v33 = vpop.f32.mrf.mxu3  ;;  %4524 = vmatpush.msra.mxu1 %v5521_v36  ;;  %v3804_v36 = vmul.f32 %v8420_v34, %v8446_v12  ;;  %v3865_v27 = vmul.f32 %v8492_v54, %v3839_v61 }
 0x829   : > { %4539 = vmatpush.msra.mxu2 %v5520_v14  ;;  %v3686_v59 = vmul.f32 %v8229_v37, %v3662_v46  ;;  %v3805_v14 = vmul.f32 %v8352_v62, %v8497_v19  ;;  %v3972_v37 = vpop.permute.xlu1 %3971  ;;  %v4042_v46 = vpop.permute.xlu2 %4041  ;;  %v3864_v62 = vmul.f32 %v8530_v2, %v3836_v10  ;;  %v3806_v19 = vmul.f32 %v8281_v16, %v8535_v13 }
 0x82a   : > { %4525 = vmatpush.msra.mxu1 %v5523_v11  ;;  %v4019_v38 = vpop.f32.mrf.mxu0  ;;  %v3807_v23 = vadd.f32 %v3804_v36, %v3747_v50 }
 0x82b   : > { %4540 = vmatpush.msra.mxu2 %v5522_v53  ;;  %4526 = vmatmul.f32.vlgmr.msra.gmra.mxu1 %v4506_v30  ;;  %v3689_v48 = vadd.f32 %v3686_v59, %v3629_v20  ;;  %v3808_v30 = vadd.f32 %v3805_v14, %v3748_v3  ;;  %v3746_v53 = vmul.f32 %v8217_v41, %v3722_v33 }
 0x82d   : > { %4541 = vmatpush.msra.mxu2 %v5524_v29  ;;  %v3749_v11 = vadd.f32 %v3746_v53, %v3689_v48  ;;  %v3868_v7 = vadd.f32 %v3865_v27, %v3808_v30 }
 0x82e   : > { %v4032_v33 = vpop.permute.xlu0 %4031 }
 0x82f   : > { %4542 = vmatpush.msra.mxu2 %v5525_v17  ;;  %v3842_v34 = vpop.f32.mrf.mxu1  ;;  %v3809_v12 = vadd.f32 %v3806_v19, %v3749_v11  ;;  %v3867_v17 = vadd.f32 %v3864_v62, %v3807_v23 }
 0x830   : > { %v3866_v39 = vmul.f32 %v8438_v44, %v3842_v34 }
 0x831   : > { %4543 = vmatpush.msra.mxu2 %v5526_v26  ;;  %v3896_v32 = vpop.f32.mrf.mxu2  ;;  %v3956_v31 = vpop.f32.mrf.mxu3 }
 0x832   : > { %v3924_v5 = vmul.f32 %v3912_v60, %v3896_v32  ;;  %v4066_v26 = vpop.permute.xlu1 %4065  ;;  %v3869_v58 = vadd.f32 %v3866_v39, %v3809_v12  ;;  %v4037_v16 = vpop.permute.xlu2 %4036 }
 0x833   : > { %4544 = vmatpush.msra.mxu2 %v5527_v52  ;;  %v4022_v13 = vpop.f32.mrf.mxu0  ;;  %v4045_v60 = vmul.f32 %v4037_v16, %v4019_v38 }
 0x834   : > { %v3927_v54 = vadd.f32 %v3924_v5, %v3867_v17  ;;  %v4046_v44 = vmul.f32 %v4042_v46, %v4022_v13 }
 0x835   : > { %4545 = vmatpush.msra.mxu2 %v5528_v28 }
 0x836   : > { %4546 = vmatmul.f32.vlgmr.msra.gmra.mxu2 %v4507_v56  ;;  %v4044_v56 = vmul.f32 %v4032_v33, %v8574_v4 }
 0x837   : > { %v4096_v50 = vpop.f32.mrf.mxu1 }
 0x839   : > { %v3899_v63 = vpop.f32.mrf.mxu2 }
 0x83a   : > { %v3925_v29 = vmul.f32 %v8517_v21, %v3899_v63  ;;  %v3959_v49 = vpop.f32.mrf.mxu3  ;;  %v3984_v21 = vmul.f32 %v3972_v37, %v3956_v31  ;;  %v4061_v31 = vpop.permute.xlu0 %4060  ;;  %v4566_v63 = vld [vmem:[#allocation8] sm:$0xff] }
 0x83b   : > { %v3985_v8 = vmul.f32 %v3977_v35, %v3959_v49  ;;  %v4056_v20 = vpop.permute.xlu1 %4055  ;;  %v4169_v4 = vpop.f32.mrf.mxu0 }
 0x83c   : > { %v3928_v41 = vadd.f32 %v3925_v29, %v3868_v7  ;;  %v3987_v55 = vadd.f32 %v3984_v21, %v3927_v54 }
 0x83e   : > { %v3988_v25 = vadd.f32 %v3985_v8, %v3928_v41  ;;  %v4047_v0 = vadd.f32 %v4044_v56, %v3987_v55 }
 0x83f   : > { %v4203_v37 = vpop.f32.mrf.mxu1 }
 0x840   : > { %v4048_v51 = vadd.f32 %v4045_v60, %v3988_v25  ;;  %v4068_v18 = vadd.f32 %v4056_v20, %v4047_v0 }
 0x841   : > { %v3902_v42 = vpop.f32.mrf.mxu2 }
 0x842   : > { %v3926_v2 = vmul.f32 %v8472_v47, %v3902_v42  ;;  %v3962_v10 = vpop.f32.mrf.mxu3  ;;  %v4069_v28 = vadd.f32 %v4061_v31, %v4048_v51  ;;  %v4071_v14 = vmax.f32 %v4068_v18, 0.0 }
 0x843   : > { %v3986_v52 = vmul.f32 %v8525_v1, %v3962_v10 }
 0x844   : > { %v3929_v32 = vadd.f32 %v3926_v2, %v3869_v58  ;;  %v4072_v3 = vmax.f32 %v4069_v28, 0.0 }
 0x846   : > { %v3989_v35 = vadd.f32 %v3986_v52, %v3929_v32  ;;  %v4563_v52 = vpop.permute.xlu2 %4562 }
 0x848   : > { %v4049_v59 = vadd.f32 %v4046_v44, %v3989_v35 }
 0x849   : > { %v4116_v1 = vpop.f32.mrf.mxu2 }
 0x84a   : > { %v4070_v61 = vadd.f32 %v4066_v26, %v4049_v59  ;;  %v4149_v48 = vpop.f32.mrf.mxu3  ;;  %v4117_v36 = vadd.f32 %v4116_v1, %v4096_v50 }
 0x84b   : > { %v4170_v30 = vadd.f32 %v4169_v4, %v4149_v48 }
 0x84c   : > { %v4073_v47 = vmax.f32 %v4070_v61, 0.0  ;;  %v4277_v38 = vpop.f32.mrf.mxu0  ;;  %v4125_v29 = vmul.f32 %v8132_v15, %v4117_v36 }
 0x84d   : > { %v4179_v49 = vmul.f32 %v8146_v43, %v4170_v30 }
 0x84e   : > { %4611 = vmatpush.msrb.mxu0 %v4073_v47  ;;  %v4622_v44 = vpop.permute.xlu2 %4621 }
 0x84f   : > { %v4180_v19 = vadd.f32 %v4179_v49, %v4125_v29 }
 0x850   : > { %4612 = vmatpush.msrb.mxu0 %v4072_v3 }
 0x852   : > { %4613 = vmatpush.msrb.mxu0 %v4071_v14 }
 0x853   : > { %5150 = vmatmul.msk.f32.vlgmr.msrb.gmra.mxu0 %vm4594_vm3, %v4566_v63 }
 0x859   : > { %v4223_v46 = vpop.f32.mrf.mxu2 }
 0x85a   : > { %v4257_v53 = vpop.f32.mrf.mxu3  ;;  %v4224_v27 = vadd.f32 %v4223_v46, %v4203_v37 }
 0x85b   : > { %v4278_v5 = vadd.f32 %v4277_v38, %v4257_v53 }
 0x85c   : > { %v4233_v62 = vmul.f32 %v8203_v6, %v4224_v27 }
 0x85d   : > { %v4287_v39 = vmul.f32 %v8296_v22, %v4278_v5 }
 0x85e   : > { %v4311_v23 = vpop.f32.mrf.mxu1  ;;  %v4234_v17 = vadd.f32 %v4233_v62, %v4180_v19 }
 0x860   : > { %v4288_v8 = vadd.f32 %v4287_v39, %v4234_v17 }
 0x86e   : > { %v4385_v12 = vpop.f32.mrf.mxu0 }
 0x879   : > { %v4331_v11 = vpop.f32.mrf.mxu2 }
 0x87a   : > { %v4332_v7 = vadd.f32 %v4331_v11, %v4311_v23  ;;  %v4365_v34 = vpop.f32.mrf.mxu3 }
 0x87b   : > { %v4386_v26 = vadd.f32 %v4385_v12, %v4365_v34 }
 0x87c   : > { %v4341_v54 = vmul.f32 %v8366_v40, %v4332_v7 }
 0x87d   : > { %v4395_v6 = vmul.f32 %v8406_v57, %v4386_v26  ;;  %v4567_v57 = vld [vmem:[%s8714_s18] sm:$0xff] }
 0x87e   : > { %v4342_v15 = vadd.f32 %v4341_v54, %v4288_v8 }
 0x880   : > { %v4396_v58 = vadd.f32 %v4395_v6, %v4342_v15 }
 0x885   : > { %v4419_v41 = vpop.f32.mrf.mxu1 }
 0x891   : > { %v4493_v43 = vpop.f32.mrf.mxu0 }
 0x899   : > { %v4439_v33 = vpop.f32.mrf.mxu2 }
 0x89a   : > { %v4440_v42 = vadd.f32 %v4439_v33, %v4419_v41  ;;  %v4473_v21 = vpop.f32.mrf.mxu3 }
 0x89b   : > { %v4494_v2 = vadd.f32 %v4493_v43, %v4473_v21 }
 0x89c   : > { %v4449_v25 = vmul.f32 %v8487_v24, %v4440_v42 }
 0x89d   : > { %v4503_v22 = vmul.f32 %v8570_v45, %v4494_v2 }
 0x89e   : > { %v4450_v16 = vadd.f32 %v4449_v25, %v4396_v58 }
 0x8a0   : > { %v4504_v60 = vadd.f32 %v4503_v22, %v4450_v16 }
 0x8a8   : > { %v4527_v10 = vpop.f32.mrf.mxu1 }
 0x8b9   : > { %v4547_v13 = vpop.f32.mrf.mxu2 }
 0x8ba   : > { %v4548_v40 = vadd.f32 %v4547_v13, %v4527_v10 }
 0x8bc   : > { %v4557_v55 = vmul.f32 %v8593_v9, %v4548_v40 }
 0x8be   : > { %v4558_v32 = vadd.f32 %v4557_v55, %v4504_v60 }
 0x8c0   : > { %v4565_v56 = vadd.f32 %v4563_v52, %v4558_v32 }
 0x8c2   : > { %5148 = vmatpush.msk.msra.mxu3 %vm896_vm0, %v4565_v56 }
 0x8c3   : > { %5149 = vmatmul.msk.f32.vlgmr.msra.gmra.mxu3 %vm892_vm1, %v4567_v57 }
 0x8d0   : > { %v4615_v24 = vpop.f32.mrf.mxu0 }
 0x946   : > { %v4591_v45 = vpop.f32.mrf.mxu3 }
 0x947   : > { %v4616_v9 = vadd.f32 %v4615_v24, %v4591_v45 }
 0x949   : > { %v4624_v51 = vadd.f32 %v4622_v44, %v4616_v9 }
 0x94b   : > { %v4625_v35 = vmax.f32 %v4624_v51, 0.0 }
 0x94d   : > { %4626 = vst.msk [vmem:[%s587_s14] sm:$0xff] %vm3510_vm2, %v4625_v35 }
 0x94e   : > { %5676 = shalt.err (!%p5673_p9)
}
 0x94f   : > { %5170 = dma.vmem_to_hbm [thread:$0]  (%p5894_p13), %s4641_s20, 128, %s4643_s19, %s4628_s28  }
 0x950 PF: > { %s4654_s27 = sand.u32 1, %s5711_s21   ;;  %p8717_p10 = scmp.ge.s32.totalorder %s5723_s24, 2 }
 0x951   : > { %s4655_s23 = scalar_lea.sflag [#allocation4], %s4654_s27 }
 0x952   : > { %p5187_p11 = pnand %p8717_p10, %p5899_p4 }
 0x954   : > { %p5188_p0 = pneg %p5187_p11 }
 0x956   : > { %5706 = dma.done.wait (%p5188_p0), %s4655_s23, 128  }
 0x957   : > { %5708 = vsyncadd (%p5188_p0), %s4655_s23, 4294967168  ;;  %s8718_s24 = sld [smem:[#allocation16_spill]]  ;;  %s8721_s21 = smov %s5715_s22 }
 0x958   : > { %s8719_s3 = sld [smem:[#allocation15_spill]] }
 0x959   : > { %s8720_s23 = sld [smem:[#allocation17_spill]] }
 0x95d   : > { %p31_p2 = scmp.ge.s32.totalorder %s8718_s24, 4  }
 0x95e   : > { %s8722_s22 = smov %s8719_s3 }
 0x95f   :  { %33 = sbr.rel (!%p31_p2) target bundleno = 15 (0xf), region = 197 }
 0x964   :  { %4661 = vsyncpa [#allocation3], 1 }
 0x965   :  { %4663 = vsyncpa [#allocation3 + $0x1], 1 }
 0x966   :  { %4664 = vsyncpa [#allocation6], 1 }
 0x967   :  { %4665 = vsyncpa [#allocation9], 1 }
 0x968   :  { %4666 = vsyncpa [#allocation4], 1 }
 0x969   :  { %4668 = vsyncpa [#allocation4 + $0x1], 1 }

</bundles_post_ra>
